<compile_context>
chip_gen: v5e
topology: v5e:2x2
jax: 0.10.0
libtpu: 0.0.40
codegen_flags: <defaults>
</compile_context>

<pallas_src>
import jax
import jax.numpy as jnp
from jax.experimental import pallas as pl
from jax.experimental.pallas import tpu as pltpu

DINO_DIM = 384
CLIP_N_DIMS = 512          # OpenCLIPNetworkConfig().clip_n_dims
MHE_DIM = 128              # lerf_field.intermed_vlfeat_dim (synthetic, lane aligned)
HIDDEN = 256

MAX_TILE_P = 1024          # max pixels (lanes) per grid step (2048 ok on v6e)
VMEM_LIMIT_BYTES = 32 * 1024 * 1024


# ----------------------------- Pallas kernel --------------------------------

def _fused_cnn_kernel(x_ref,
                      w1_ref, b1_ref,
                      w2c_ref, b2c_ref, w3c_ref, b3c_ref, w4c_ref, b4c_ref,
                      w5c_ref, b5c_ref,
                      w2d_ref, b2d_ref,
                      dino_ref, clip_ref):
    """One (C_in, TILE_P) pixel tile -> dino (384, TILE_P) and clip (512, TILE_P)."""
    # no-op if the caller already feeds bf16 activations
    x = x_ref[...].astype(jnp.bfloat16)                         # (C_in, P)

    # Merged first layer: rows [0:HIDDEN] feed the clip branch, [HIDDEN:] dino.
    h1 = jnp.dot(w1_ref[...], x, preferred_element_type=jnp.float32) + b1_ref[...]
    h1 = jnp.maximum(h1, 0.0)                                   # f32 (2*HIDDEN, P)
    hc = h1[:HIDDEN].astype(jnp.bfloat16)
    hd = h1[HIDDEN:].astype(jnp.bfloat16)

    # dino head: Conv1x1 -> ReLU (above) -> Conv1x1
    d = jnp.dot(w2d_ref[...], hd, preferred_element_type=jnp.float32) + b2d_ref[...]
    dino_ref[...] = d.astype(dino_ref.dtype)

    # clip head: (Conv1x1 -> ReLU) x 3 more -> Conv1x1
    h = jnp.dot(w2c_ref[...], hc, preferred_element_type=jnp.float32) + b2c_ref[...]
    h = jnp.maximum(h, 0.0).astype(jnp.bfloat16)
    h = jnp.dot(w3c_ref[...], h, preferred_element_type=jnp.float32) + b3c_ref[...]
    h = jnp.maximum(h, 0.0).astype(jnp.bfloat16)
    h = jnp.dot(w4c_ref[...], h, preferred_element_type=jnp.float32) + b4c_ref[...]
    h = jnp.maximum(h, 0.0).astype(jnp.bfloat16)
    h = jnp.dot(w5c_ref[...], h, preferred_element_type=jnp.float32) + b5c_ref[...]
    clip_ref[...] = h.astype(clip_ref.dtype)


# ------------------------------- wrapper -------------------------------------

def _round_up(x, m):
    return -(-x // m) * m


def lerf_model_forward(mhe_feat_map, clip_params, dino_params,
                       max_tile_p=MAX_TILE_P, out_dtype=jnp.bfloat16):
    """Replicates LERFModel.forward(mhe_feat_map=...) -> (dino_out, clip_out).

    mhe_feat_map: (N, MHE_DIM, H, W), f32 or bf16 (NCHW, like PyTorch).
    clip_params / dino_params: lists of (w, b) with w (C_out, C_in) f32
      (= squeezed PyTorch Conv2d 1x1 weight) and b (C_out,) f32.
    Returns NCHW: dino (N, 384, H, W), clip (N, 512, H, W) in `out_dtype`
      (bf16 by default to halve output HBM traffic; pass jnp.float32 for
      PyTorch-exact output dtype).
    """
    N, C, H, W = mhe_feat_map.shape
    assert C == MHE_DIM
    HW = H * W
    tile_p = min(max_tile_p, _round_up(HW, 128))
    grid = (N, pl.cdiv(HW, tile_p))          # ragged tail handled by Pallas

    # Metadata-only reshape: no pad, no extra HBM pass.
    x = mhe_feat_map.reshape(N, C, HW)

    # Weight prep (tiny, once per call under jit): bf16 matmul operands,
    # f32 biases as (C_out, 1), merged first layer (clip rows first, then dino).
    (w1c, b1c), (w2c, b2c), (w3c, b3c), (w4c, b4c), (w5c, b5c) = clip_params
    (w1d, b1d), (w2d, b2d) = dino_params
    w1 = jnp.concatenate([w1c, w1d], axis=0).astype(jnp.bfloat16)     # (2*HIDDEN, C)
    b1 = jnp.concatenate([b1c, b1d], axis=0).astype(jnp.float32)[:, None]

    def _wb(w, b):
        return w.astype(jnp.bfloat16), b.astype(jnp.float32)[:, None]

    w2c, b2c = _wb(w2c, b2c)
    w3c, b3c = _wb(w3c, b3c)
    w4c, b4c = _wb(w4c, b4c)
    w5c, b5c = _wb(w5c, b5c)
    w2d, b2d = _wb(w2d, b2d)

    params = [w1, b1, w2c, b2c, w3c, b3c, w4c, b4c, w5c, b5c, w2d, b2d]

    def resident(p):
        # Full-array block, constant index_map -> stays resident in VMEM
        # (DMA'd once; ~1 MiB total, negligible under the raised VMEM limit).
        return pl.BlockSpec(p.shape, lambda n, i: (0, 0))

    in_specs = [pl.BlockSpec((None, C, tile_p), lambda n, i: (n, 0, i))]
    in_specs += [resident(p) for p in params]

    out_specs = [
        pl.BlockSpec((None, DINO_DIM, tile_p), lambda n, i: (n, 0, i)),
        pl.BlockSpec((None, CLIP_N_DIMS, tile_p), lambda n, i: (n, 0, i)),
    ]
    out_shape = (
        jax.ShapeDtypeStruct((N, DINO_DIM, HW), out_dtype),
        jax.ShapeDtypeStruct((N, CLIP_N_DIMS, HW), out_dtype),
    )

    dino, clip = pl.pallas_call(
        _fused_cnn_kernel,
        out_shape=out_shape,
        grid_spec=pltpu.PrefetchScalarGridSpec(
            num_scalar_prefetch=0,
            grid=grid,
            in_specs=in_specs,
            out_specs=out_specs,
        ),
        compiler_params=pltpu.CompilerParams(
            dimension_semantics=("parallel", "parallel"),
            vmem_limit_bytes=VMEM_LIMIT_BYTES),
    )(x, *params)

    # Metadata-only reshapes back to NCHW.
    return (dino.reshape(N, DINO_DIM, H, W),
            clip.reshape(N, CLIP_N_DIMS, H, W))


# --------------------------- parameter construction --------------------------

def _make_conv1x1(key, c_in, c_out):
    kw, kb = jax.random.split(key)
    # (C_out, C_in) = squeezed PyTorch Conv2d 1x1 weight (C_out, C_in, 1, 1)
    w = jax.random.normal(kw, (c_out, c_in), jnp.float32) * (1.0 / jnp.sqrt(c_in))
    b = jax.random.normal(kb, (c_out,), jnp.float32) * 0.01
    return w, b


def make_params(key):
    keys = jax.random.split(key, 7)
    # clip_cnn: 128 -> 256 -> 256 -> 256 -> 256 -> 512
    clip_dims = [MHE_DIM, HIDDEN, HIDDEN, HIDDEN, HIDDEN, CLIP_N_DIMS]
    clip_params = [_make_conv1x1(keys[i], clip_dims[i], clip_dims[i + 1])
                   for i in range(5)]
    # dino_cnn: 128 -> 256 -> 384
    dino_params = [_make_conv1x1(keys[5], MHE_DIM, HIDDEN),
                   _make_conv1x1(keys[6], HIDDEN, DINO_DIM)]
    return clip_params, dino_params


# --------------------------------- references --------------------------------

def _ref_cnn(x, layers, bf16_operands):
    # x: (N, C_in, HW) f32 ; layers: [(w (C_out, C_in), b (C_out,)), ...]
    h = x
    last = len(layers) - 1
    for idx, (w, b) in enumerate(layers):
        if bf16_operands:
            lhs, rhs = w.astype(jnp.bfloat16), h.astype(jnp.bfloat16)
        else:
            lhs, rhs = w, h
        h = jnp.einsum('oc,ncp->nop', lhs, rhs,
                       preferred_element_type=jnp.float32) + b[:, None]
        if idx != last:
            h = jnp.maximum(h, 0.0)
    return h


def _ref_forward(mhe_feat_map, clip_params, dino_params, bf16_operands):
    N, C, H, W = mhe_feat_map.shape
    x = mhe_feat_map.reshape(N, C, H * W)
    dino = _ref_cnn(x, dino_params, bf16_operands).reshape(N, DINO_DIM, H, W)
    clip = _ref_cnn(x, clip_params, bf16_operands).reshape(N, CLIP_N_DIMS, H, W)
    return dino, clip


def _check(out, ref, atol, rtol):
    out = out.astype(jnp.float32)
    ok = jnp.allclose(out, ref, atol=atol, rtol=rtol)
    assert ok, float(jnp.max(jnp.abs(out - ref)))


# ----------------------------------- main -------------------------------------

if __name__ == "__main__":
    key = jax.random.PRNGKey(0)
    k_x, k_p, k_x2 = jax.random.split(key, 3)

    clip_params, dino_params = make_params(k_p)
    fwd = jax.jit(lerf_model_forward, static_argnames=("max_tile_p", "out_dtype"))

    # --- test 1: aligned HW (multiple of 128) ---
    N, H, W = 2, 16, 16
    mhe_feat_map = jax.random.normal(k_x, (N, MHE_DIM, H, W), jnp.float32)
    dino_out, clip_out = fwd(mhe_feat_map, clip_params, dino_params)
    jax.block_until_ready((dino_out, clip_out))

    assert dino_out.shape == (N, DINO_DIM, H, W), dino_out.shape
    assert clip_out.shape == (N, CLIP_N_DIMS, H, W), clip_out.shape

    # Tight check vs. a reference using the same bf16-operand / f32-accumulate
    # mixed precision (extra slack for the bf16 output rounding).
    dino_rb, clip_rb = _ref_forward(mhe_feat_map, clip_params, dino_params, True)
    _check(dino_out, dino_rb, atol=4e-2, rtol=4e-2)
    _check(clip_out, clip_rb, atol=4e-2, rtol=4e-2)

    # Loose sanity check vs. the full-f32 PyTorch-equivalent reference.
    dino_rf, clip_rf = _ref_forward(mhe_feat_map, clip_params, dino_params, False)
    _check(dino_out, dino_rf, atol=1.5e-1, rtol=1.5e-1)
    _check(clip_out, clip_rf, atol=1.5e-1, rtol=1.5e-1)

    # --- test 2: ragged HW (not a multiple of 128) + multi-tile ragged tail ---
    # Validates that the cdiv grid with a partially out-of-bounds last block
    # (padded reads, dropped OOB writes) produces exact results on the valid
    # region -- per the perf-review correctness concern.
    N2, H2, W2 = 1, 12, 12            # HW = 144; max_tile_p=128 -> 2 tiles, ragged tail
    mhe2 = jax.random.normal(k_x2, (N2, MHE_DIM, H2, W2), jnp.float32)
    dino2, clip2 = fwd(mhe2, clip_params, dino_params, max_tile_p=128)
    jax.block_until_ready((dino2, clip2))
    assert dino2.shape == (N2, DINO_DIM, H2, W2)
    assert clip2.shape == (N2, CLIP_N_DIMS, H2, W2)
    dino2_rb, clip2_rb = _ref_forward(mhe2, clip_params, dino_params, True)
    _check(dino2, dino2_rb, atol=4e-2, rtol=4e-2)
    _check(clip2, clip2_rb, atol=4e-2, rtol=4e-2)

    print("KERNEL_OK")
</pallas_src>

<mosaic_0001>
module attributes {stable_mosaic.version = 11 : i64} {
  func.func @_fused_cnn_kernel(%arg0: i32, %arg1: i32, %arg2: memref<1x128x256xf32, #tpu.memory_space<vmem>>, %arg3: memref<512x128xbf16, #tpu.memory_space<vmem>>, %arg4: memref<512x1xf32, #tpu.memory_space<vmem>>, %arg5: memref<256x256xbf16, #tpu.memory_space<vmem>>, %arg6: memref<256x1xf32, #tpu.memory_space<vmem>>, %arg7: memref<256x256xbf16, #tpu.memory_space<vmem>>, %arg8: memref<256x1xf32, #tpu.memory_space<vmem>>, %arg9: memref<256x256xbf16, #tpu.memory_space<vmem>>, %arg10: memref<256x1xf32, #tpu.memory_space<vmem>>, %arg11: memref<512x256xbf16, #tpu.memory_space<vmem>>, %arg12: memref<512x1xf32, #tpu.memory_space<vmem>>, %arg13: memref<384x256xbf16, #tpu.memory_space<vmem>>, %arg14: memref<384x1xf32, #tpu.memory_space<vmem>>, %arg15: memref<1x384x256xbf16, #tpu.memory_space<vmem>>, %arg16: memref<1x512x256xbf16, #tpu.memory_space<vmem>>) attributes {dimension_semantics = [#tpu.dimension_semantics<parallel>, #tpu.dimension_semantics<parallel>], iteration_bounds = array<i64: 2, 1>, scalar_prefetch = 0 : i64, scratch_operands = 0 : i64, tpu.core_type = #tpu.core_type<tc>, window_params = [{transform_indices = @transform_0, window_bounds = array<i64: 1, 128, 256>}, {pipeline_mode = #tpu.pipeline_mode<synchronous>, transform_indices = @transform_1, window_bounds = array<i64: 512, 128>}, {pipeline_mode = #tpu.pipeline_mode<synchronous>, transform_indices = @transform_2, window_bounds = array<i64: 512, 1>}, {pipeline_mode = #tpu.pipeline_mode<synchronous>, transform_indices = @transform_3, window_bounds = array<i64: 256, 256>}, {pipeline_mode = #tpu.pipeline_mode<synchronous>, transform_indices = @transform_4, window_bounds = array<i64: 256, 1>}, {pipeline_mode = #tpu.pipeline_mode<synchronous>, transform_indices = @transform_5, window_bounds = array<i64: 256, 256>}, {pipeline_mode = #tpu.pipeline_mode<synchronous>, transform_indices = @transform_6, window_bounds = array<i64: 256, 1>}, {pipeline_mode = #tpu.pipeline_mode<synchronous>, transform_indices = @transform_7, window_bounds = array<i64: 256, 256>}, {pipeline_mode = #tpu.pipeline_mode<synchronous>, transform_indices = @transform_8, window_bounds = array<i64: 256, 1>}, {pipeline_mode = #tpu.pipeline_mode<synchronous>, transform_indices = @transform_9, window_bounds = array<i64: 512, 256>}, {pipeline_mode = #tpu.pipeline_mode<synchronous>, transform_indices = @transform_10, window_bounds = array<i64: 512, 1>}, {pipeline_mode = #tpu.pipeline_mode<synchronous>, transform_indices = @transform_11, window_bounds = array<i64: 384, 256>}, {pipeline_mode = #tpu.pipeline_mode<synchronous>, transform_indices = @transform_12, window_bounds = array<i64: 384, 1>}, {transform_indices = @transform_13, window_bounds = array<i64: 1, 384, 256>}, {transform_indices = @transform_14, window_bounds = array<i64: 1, 512, 256>}]} {
    %c0 = arith.constant 0 : index
    %c0_0 = arith.constant 0 : index
    %c0_1 = arith.constant 0 : index
    %0 = vector.load %arg2[%c0, %c0_0, %c0_1] : memref<1x128x256xf32, #tpu.memory_space<vmem>>, vector<1x128x256xf32>
    %1 = vector.shape_cast %0 : vector<1x128x256xf32> to vector<128x256xf32>
    %2 = arith.truncf %1 : vector<128x256xf32> to vector<128x256xbf16>
    %c0_2 = arith.constant 0 : index
    %c0_3 = arith.constant 0 : index
    %3 = vector.load %arg3[%c0_2, %c0_3] : memref<512x128xbf16, #tpu.memory_space<vmem>>, vector<512x128xbf16>
    %cst = arith.constant dense<0.000000e+00> : vector<512x256xf32>
    %4 = tpu.matmul %3, %2, %cst {dimension_numbers = #tpu.dot_dimension_numbers<[1], [0], [0], [1], [0, 0, 1, 1], [], []>} : vector<512x128xbf16>, vector<128x256xbf16>, vector<512x256xf32> -> vector<512x256xf32>
    %c0_4 = arith.constant 0 : index
    %c0_5 = arith.constant 0 : index
    %5 = vector.load %arg4[%c0_4, %c0_5] : memref<512x1xf32, #tpu.memory_space<vmem>>, vector<512x1xf32>
    %6 = vector.broadcast %5 : vector<512x1xf32> to vector<512x256xf32>
    %7 = arith.addf %4, %6 : vector<512x256xf32>
    %cst_6 = arith.constant 0.000000e+00 : f32
    %8 = vector.broadcast %cst_6 : f32 to vector<512x256xf32>
    %9 = arith.maximumf %7, %8 : vector<512x256xf32>
    %10 = vector.extract_strided_slice %9 {offsets = [0, 0], sizes = [256, 256], strides = [1, 1]} : vector<512x256xf32> to vector<256x256xf32>
    %11 = arith.truncf %10 : vector<256x256xf32> to vector<256x256xbf16>
    %12 = vector.extract_strided_slice %9 {offsets = [256, 0], sizes = [256, 256], strides = [1, 1]} : vector<512x256xf32> to vector<256x256xf32>
    %13 = arith.truncf %12 : vector<256x256xf32> to vector<256x256xbf16>
    %c0_7 = arith.constant 0 : index
    %c0_8 = arith.constant 0 : index
    %14 = vector.load %arg13[%c0_7, %c0_8] : memref<384x256xbf16, #tpu.memory_space<vmem>>, vector<384x256xbf16>
    %cst_9 = arith.constant dense<0.000000e+00> : vector<384x256xf32>
    %15 = tpu.matmul %14, %13, %cst_9 {dimension_numbers = #tpu.dot_dimension_numbers<[1], [0], [0], [1], [0, 0, 1, 1], [], []>} : vector<384x256xbf16>, vector<256x256xbf16>, vector<384x256xf32> -> vector<384x256xf32>
    %c0_10 = arith.constant 0 : index
    %c0_11 = arith.constant 0 : index
    %16 = vector.load %arg14[%c0_10, %c0_11] : memref<384x1xf32, #tpu.memory_space<vmem>>, vector<384x1xf32>
    %17 = vector.broadcast %16 : vector<384x1xf32> to vector<384x256xf32>
    %18 = arith.addf %15, %17 : vector<384x256xf32>
    %19 = arith.truncf %18 : vector<384x256xf32> to vector<384x256xbf16>
    %c0_12 = arith.constant 0 : index
    %c0_13 = arith.constant 0 : index
    %c0_14 = arith.constant 0 : index
    %20 = vector.load %arg15[%c0_12, %c0_13, %c0_14] : memref<1x384x256xbf16, #tpu.memory_space<vmem>>, vector<1x384x256xbf16>
    %21 = vector.shape_cast %20 : vector<1x384x256xbf16> to vector<384x256xbf16>
    %22 = vector.shape_cast %19 : vector<384x256xbf16> to vector<1x384x256xbf16>
    tpu.vector_store %arg15[%c0_12, %c0_13, %c0_14], %22 {strides = array<i32>} : memref<1x384x256xbf16, #tpu.memory_space<vmem>>, vector<1x384x256xbf16>,
    %c0_15 = arith.constant 0 : index
    %c0_16 = arith.constant 0 : index
    %23 = vector.load %arg5[%c0_15, %c0_16] : memref<256x256xbf16, #tpu.memory_space<vmem>>, vector<256x256xbf16>
    %cst_17 = arith.constant dense<0.000000e+00> : vector<256x256xf32>
    %24 = tpu.matmul %23, %11, %cst_17 {dimension_numbers = #tpu.dot_dimension_numbers<[1], [0], [0], [1], [0, 0, 1, 1], [], []>} : vector<256x256xbf16>, vector<256x256xbf16>, vector<256x256xf32> -> vector<256x256xf32>
    %c0_18 = arith.constant 0 : index
    %c0_19 = arith.constant 0 : index
    %25 = vector.load %arg6[%c0_18, %c0_19] : memref<256x1xf32, #tpu.memory_space<vmem>>, vector<256x1xf32>
    %26 = vector.broadcast %25 : vector<256x1xf32> to vector<256x256xf32>
    %27 = arith.addf %24, %26 : vector<256x256xf32>
    %cst_20 = arith.constant 0.000000e+00 : f32
    %28 = vector.broadcast %cst_20 : f32 to vector<256x256xf32>
    %29 = arith.maximumf %27, %28 : vector<256x256xf32>
    %30 = arith.truncf %29 : vector<256x256xf32> to vector<256x256xbf16>
    %c0_21 = arith.constant 0 : index
    %c0_22 = arith.constant 0 : index
    %31 = vector.load %arg7[%c0_21, %c0_22] : memref<256x256xbf16, #tpu.memory_space<vmem>>, vector<256x256xbf16>
    %cst_23 = arith.constant dense<0.000000e+00> : vector<256x256xf32>
    %32 = tpu.matmul %31, %30, %cst_23 {dimension_numbers = #tpu.dot_dimension_numbers<[1], [0], [0], [1], [0, 0, 1, 1], [], []>} : vector<256x256xbf16>, vector<256x256xbf16>, vector<256x256xf32> -> vector<256x256xf32>
    %c0_24 = arith.constant 0 : index
    %c0_25 = arith.constant 0 : index
    %33 = vector.load %arg8[%c0_24, %c0_25] : memref<256x1xf32, #tpu.memory_space<vmem>>, vector<256x1xf32>
    %34 = vector.broadcast %33 : vector<256x1xf32> to vector<256x256xf32>
    %35 = arith.addf %32, %34 : vector<256x256xf32>
    %cst_26 = arith.constant 0.000000e+00 : f32
    %36 = vector.broadcast %cst_26 : f32 to vector<256x256xf32>
    %37 = arith.maximumf %35, %36 : vector<256x256xf32>
    %38 = arith.truncf %37 : vector<256x256xf32> to vector<256x256xbf16>
    %c0_27 = arith.constant 0 : index
    %c0_28 = arith.constant 0 : index
    %39 = vector.load %arg9[%c0_27, %c0_28] : memref<256x256xbf16, #tpu.memory_space<vmem>>, vector<256x256xbf16>
    %cst_29 = arith.constant dense<0.000000e+00> : vector<256x256xf32>
    %40 = tpu.matmul %39, %38, %cst_29 {dimension_numbers = #tpu.dot_dimension_numbers<[1], [0], [0], [1], [0, 0, 1, 1], [], []>} : vector<256x256xbf16>, vector<256x256xbf16>, vector<256x256xf32> -> vector<256x256xf32>
    %c0_30 = arith.constant 0 : index
    %c0_31 = arith.constant 0 : index
    %41 = vector.load %arg10[%c0_30, %c0_31] : memref<256x1xf32, #tpu.memory_space<vmem>>, vector<256x1xf32>
    %42 = vector.broadcast %41 : vector<256x1xf32> to vector<256x256xf32>
    %43 = arith.addf %40, %42 : vector<256x256xf32>
    %cst_32 = arith.constant 0.000000e+00 : f32
    %44 = vector.broadcast %cst_32 : f32 to vector<256x256xf32>
    %45 = arith.maximumf %43, %44 : vector<256x256xf32>
    %46 = arith.truncf %45 : vector<256x256xf32> to vector<256x256xbf16>
    %c0_33 = arith.constant 0 : index
    %c0_34 = arith.constant 0 : index
    %47 = vector.load %arg11[%c0_33, %c0_34] : memref<512x256xbf16, #tpu.memory_space<vmem>>, vector<512x256xbf16>
    %cst_35 = arith.constant dense<0.000000e+00> : vector<512x256xf32>
    %48 = tpu.matmul %47, %46, %cst_35 {dimension_numbers = #tpu.dot_dimension_numbers<[1], [0], [0], [1], [0, 0, 1, 1], [], []>} : vector<512x256xbf16>, vector<256x256xbf16>, vector<512x256xf32> -> vector<512x256xf32>
    %c0_36 = arith.constant 0 : index
    %c0_37 = arith.constant 0 : index
    %49 = vector.load %arg12[%c0_36, %c0_37] : memref<512x1xf32, #tpu.memory_space<vmem>>, vector<512x1xf32>
    %50 = vector.broadcast %49 : vector<512x1xf32> to vector<512x256xf32>
    %51 = arith.addf %48, %50 : vector<512x256xf32>
    %52 = arith.truncf %51 : vector<512x256xf32> to vector<512x256xbf16>
    %c0_38 = arith.constant 0 : index
    %c0_39 = arith.constant 0 : index
    %c0_40 = arith.constant 0 : index
    %53 = vector.load %arg16[%c0_38, %c0_39, %c0_40] : memref<1x512x256xbf16, #tpu.memory_space<vmem>>, vector<1x512x256xbf16>
    %54 = vector.shape_cast %53 : vector<1x512x256xbf16> to vector<512x256xbf16>
    %55 = vector.shape_cast %52 : vector<512x256xbf16> to vector<1x512x256xbf16>
    tpu.vector_store %arg16[%c0_38, %c0_39, %c0_40], %55 {strides = array<i32>} : memref<1x512x256xbf16, #tpu.memory_space<vmem>>, vector<1x512x256xbf16>,
    return
  }
  func.func @transform_0(%arg0: i32, %arg1: i32) -> (i32, i32, i32) {
    %c0_i32 = arith.constant 0 : i32
    %c0_i32_0 = arith.constant 0 : i32
    return %arg0, %c0_i32, %arg1 : i32, i32, i32
  }
  func.func @transform_1(%arg0: i32, %arg1: i32) -> (i32, i32) {
    %c0_i32 = arith.constant 0 : i32
    %c0_i32_0 = arith.constant 0 : i32
    %c0_i32_1 = arith.constant 0 : i32
    return %c0_i32, %c0_i32_0 : i32, i32
  }
  func.func @transform_2(%arg0: i32, %arg1: i32) -> (i32, i32) {
    %c0_i32 = arith.constant 0 : i32
    %c0_i32_0 = arith.constant 0 : i32
    %c0_i32_1 = arith.constant 0 : i32
    return %c0_i32, %c0_i32_0 : i32, i32
  }
  func.func @transform_3(%arg0: i32, %arg1: i32) -> (i32, i32) {
    %c0_i32 = arith.constant 0 : i32
    %c0_i32_0 = arith.constant 0 : i32
    %c0_i32_1 = arith.constant 0 : i32
    return %c0_i32, %c0_i32_0 : i32, i32
  }
  func.func @transform_4(%arg0: i32, %arg1: i32) -> (i32, i32) {
    %c0_i32 = arith.constant 0 : i32
    %c0_i32_0 = arith.constant 0 : i32
    %c0_i32_1 = arith.constant 0 : i32
    return %c0_i32, %c0_i32_0 : i32, i32
  }
  func.func @transform_5(%arg0: i32, %arg1: i32) -> (i32, i32) {
    %c0_i32 = arith.constant 0 : i32
    %c0_i32_0 = arith.constant 0 : i32
    %c0_i32_1 = arith.constant 0 : i32
    return %c0_i32, %c0_i32_0 : i32, i32
  }
  func.func @transform_6(%arg0: i32, %arg1: i32) -> (i32, i32) {
    %c0_i32 = arith.constant 0 : i32
    %c0_i32_0 = arith.constant 0 : i32
    %c0_i32_1 = arith.constant 0 : i32
    return %c0_i32, %c0_i32_0 : i32, i32
  }
  func.func @transform_7(%arg0: i32, %arg1: i32) -> (i32, i32) {
    %c0_i32 = arith.constant 0 : i32
    %c0_i32_0 = arith.constant 0 : i32
    %c0_i32_1 = arith.constant 0 : i32
    return %c0_i32, %c0_i32_0 : i32, i32
  }
  func.func @transform_8(%arg0: i32, %arg1: i32) -> (i32, i32) {
    %c0_i32 = arith.constant 0 : i32
    %c0_i32_0 = arith.constant 0 : i32
    %c0_i32_1 = arith.constant 0 : i32
    return %c0_i32, %c0_i32_0 : i32, i32
  }
  func.func @transform_9(%arg0: i32, %arg1: i32) -> (i32, i32) {
    %c0_i32 = arith.constant 0 : i32
    %c0_i32_0 = arith.constant 0 : i32
    %c0_i32_1 = arith.constant 0 : i32
    return %c0_i32, %c0_i32_0 : i32, i32
  }
  func.func @transform_10(%arg0: i32, %arg1: i32) -> (i32, i32) {
    %c0_i32 = arith.constant 0 : i32
    %c0_i32_0 = arith.constant 0 : i32
    %c0_i32_1 = arith.constant 0 : i32
    return %c0_i32, %c0_i32_0 : i32, i32
  }
  func.func @transform_11(%arg0: i32, %arg1: i32) -> (i32, i32) {
    %c0_i32 = arith.constant 0 : i32
    %c0_i32_0 = arith.constant 0 : i32
    %c0_i32_1 = arith.constant 0 : i32
    return %c0_i32, %c0_i32_0 : i32, i32
  }
  func.func @transform_12(%arg0: i32, %arg1: i32) -> (i32, i32) {
    %c0_i32 = arith.constant 0 : i32
    %c0_i32_0 = arith.constant 0 : i32
    %c0_i32_1 = arith.constant 0 : i32
    return %c0_i32, %c0_i32_0 : i32, i32
  }
  func.func @transform_13(%arg0: i32, %arg1: i32) -> (i32, i32, i32) {
    %c0_i32 = arith.constant 0 : i32
    %c0_i32_0 = arith.constant 0 : i32
    return %arg0, %c0_i32, %arg1 : i32, i32, i32
  }
  func.func @transform_14(%arg0: i32, %arg1: i32) -> (i32, i32, i32) {
    %c0_i32 = arith.constant 0 : i32
    %c0_i32_0 = arith.constant 0 : i32
    return %arg0, %c0_i32, %arg1 : i32, i32, i32
  }
}

</mosaic_0001>

<bundles_post_ra>
// kernel: lerf_model_forward.1
= control target key start
LH: loop header
LB: loop body
LE: loop exit
PB: predicated region body
PF: predicated region fallthrough
CT: control target
= control target key end

     0   :  { %s8513_s29 = smov 0   ;;  %s8515_s30 = smov 0   ;;  %s14329_s0 = inlined_call_operand.vmem [shape: f32[2,128,256], index: 0, kind: input, shape index: {}]   ;;  %s14330_s1 = inlined_call_operand.vmem [shape: bf16[512,128], index: 1, kind: input, shape index: {}]   ;;  %s14331_s2 = inlined_call_operand.vmem [shape: f32[512,1], index: 2, kind: input, shape index: {}]   ;;  %s14332_s3 = inlined_call_operand.vmem [shape: bf16[256,256], index: 3, kind: input, shape index: {}]   ;;  %s14333_s4 = inlined_call_operand.vmem [shape: f32[256,1], index: 4, kind: input, shape index: {}]   ;;  %s14334_s5 = inlined_call_operand.vmem [shape: bf16[256,256], index: 5, kind: input, shape index: {}]   ;;  %s14335_s6 = inlined_call_operand.vmem [shape: f32[256,1], index: 6, kind: input, shape index: {}]   ;;  %s14336_s7 = inlined_call_operand.vmem [shape: bf16[256,256], index: 7, kind: input, shape index: {}]   ;;  %s14337_s8 = inlined_call_operand.vmem [shape: f32[256,1], index: 8, kind: input, shape index: {}]   ;;  %s14338_s9 = inlined_call_operand.vmem [shape: bf16[512,256], index: 9, kind: input, shape index: {}]   ;;  %s14339_s10 = inlined_call_operand.vmem [shape: f32[512,1], index: 10, kind: input, shape index: {}]   ;;  %s14340_s11 = inlined_call_operand.vmem [shape: bf16[384,256], index: 11, kind: input, shape index: {}]   ;;  %s14341_s12 = inlined_call_operand.vmem [shape: f32[384,1], index: 12, kind: input, shape index: {}]   ;;  %s14342_s13 = inlined_call_operand.vmem [shape: bf16[2,384,256], index: 13, kind: output, shape index: {0}]   ;;  %s14343_s14 = inlined_call_operand.vmem [shape: bf16[2,512,256], index: 14, kind: output, shape index: {1}]  }
   0x1   :  { %s8517_s15 = smov 0  }
   0x2 LB: > { %s37_s16 = sadd.s32 1, %s8431_s30  ;;  %p7158_p0 = scmp.ge.s32.totalorder %s8435_s15, 1  ;;  %s8435_s15 = sphi %s8517_s15, %s25_s15   ;;  %s8431_s30 = sphi %s8515_s30, %s15622_s30   ;;  %s8427_s29 = sphi %s8513_s29, %s15621_s29  }
   0x3   : > { %p39_p1 = scmp.ge.s32.totalorder %s37_s16, 2  ;;  %p438_p2 = scmp.lt.s32.totalorder %s8435_s15, 3 }
   0x5   : > { %s15624_s16 = smov (%p39_p1, %s37_s16), 0  ;;  %p439_p3 = pnand %p7158_p0, %p438_p2 }
   0x7   : > { %442 = sbr.rel (%p439_p3) target bundleno = 2838 (0xb16), region = 72 }
   0xc   : > { %v705_v0 = vld [vmem:[%s14331_s2 + $0x1f0] sm:$0xff]  ;;  %v687_v2 = vld [vmem:[%s14331_s2 + $0x160] sm:$0xff]  ;;  %p502_p4 = scmp.lt.s32.totalorder %s8427_s29, 1  ;;  %v8437_v3 = vmov 0   ;;  %v706_v4 = vld [vmem:[%s14331_s2 + $0x1f8] sm:$0xff] }
   0xd   : > { %v689_v1 = vld [vmem:[%s14331_s2 + $0x170] sm:$0xff]  ;;  %8412 = vset.pattern.permute.xlu2 %v8437_v3  ;;  %8411 = vset.pattern.permute.xlu1 %v8437_v3  ;;  %v690_v8 = vld [vmem:[%s14331_s2 + $0x178] sm:$0xff]  ;;  %v688_v14 = vld [vmem:[%s14331_s2 + $0x168] sm:$0xff] }
   0xe   : > { %8410 = vset.pattern.permute.xlu0 %v8437_v3  ;;  %1019 = vperm.xlu1 %8411, %v705_v0   ;;  %s15626_s29 = smov (!%p502_p4, %s8427_s29), 1  ;;  %v704_v27 = vld [vmem:[%s14331_s2 + $0x1e8] sm:$0xff]  ;;  %v703_v30 = vld [vmem:[%s14331_s2 + $0x1e0] sm:$0xff]  ;;  %v685_v31 = vld [vmem:[%s14331_s2 + $0x150] sm:$0xff] }
   0xf   : > { %939 = vperm.xlu0 %8410, %v689_v1   ;;  %929 = vperm.xlu2 %8412, %v687_v2   ;;  %s8126_s23 = sshll.u32 %s15626_s29, 8  ;;  %v701_v42 = vld [vmem:[%s14331_s2 + $0x1d0] sm:$0xff]  ;;  %v686_v45 = vld [vmem:[%s14331_s2 + $0x158] sm:$0xff]  ;;  %v684_v57 = vld [vmem:[%s14331_s2 + $0x148] sm:$0xff]  ;;  %s8127_s17 = sshll.u32 %s15626_s29, 9 }
  0x10   : > { %s8546_s26 = scalar_lea.vmem %s14329_s0, %s8126_s23  ;;  %v702_v46 = vld [vmem:[%s14331_s2 + $0x1d8] sm:$0xff]  ;;  %v699_v60 = vld [vmem:[%s14331_s2 + $0x1c0] sm:$0xff]  ;;  %v681_v1 = vld [vmem:[%s14331_s2 + $0x130] sm:$0xff]  ;;  %s13930_s19 = scalar_lea.vmem %s14343_s14, %s8127_s17 }
  0x11   : > { %v559_v5 = vld [vmem:[%s8546_s26 + $0xe0] sm:$0xff]  ;;  %v561_v6 = vld [vmem:[%s8546_s26 + $0xf0] sm:$0xff]  ;;  %v560_v7 = vld [vmem:[%s8546_s26 + $0xe8] sm:$0xff] }
  0x12   : > { %v577_v9 = vpack.c.bf16 %v561_v6, %v559_v5  ;;  %v562_v10 = vld [vmem:[%s8546_s26 + $0xf8] sm:$0xff]  ;;  %v555_v11 = vld [vmem:[%s8546_s26 + $0xc0] sm:$0xff]  ;;  %v557_v12 = vld [vmem:[%s8546_s26 + $0xd0] sm:$0xff] }
  0x13   : > { %v578_v13 = vpack.c.bf16 %v562_v10, %v560_v7  ;;  %v556_v15 = vld [vmem:[%s8546_s26 + $0xc8] sm:$0xff]  ;;  %v558_v16 = vld [vmem:[%s8546_s26 + $0xd8] sm:$0xff]  ;;  %v575_v17 = vpack.c.bf16 %v557_v12, %v555_v11  ;;  %v551_v19 = vld [vmem:[%s8546_s26 + $0xa0] sm:$0xff] }
  0x14   : > { %1219 = vmatpush.bf16.msra.mxu0 %v577_v9  ;;  %8368 = vmatpush.bf16.msra.mxu2 %v577_v9  ;;  %v576_v18 = vpack.c.bf16 %v558_v16, %v556_v15  ;;  %v553_v20 = vld [vmem:[%s8546_s26 + $0xb0] sm:$0xff]  ;;  %v552_v21 = vld [vmem:[%s8546_s26 + $0xa8] sm:$0xff]  ;;  %v554_v22 = vld [vmem:[%s8546_s26 + $0xb8] sm:$0xff] }
  0x15   : > { %1388 = vmatpush.bf16.msra.mxu1 %v578_v13  ;;  %8376 = vmatpush.bf16.msra.mxu3 %v578_v13  ;;  %v573_v23 = vpack.c.bf16 %v553_v20, %v551_v19  ;;  %v574_v24 = vpack.c.bf16 %v554_v22, %v552_v21  ;;  %v547_v25 = vld [vmem:[%s8546_s26 + $0x80] sm:$0xff]  ;;  %v549_v26 = vld [vmem:[%s8546_s26 + $0x90] sm:$0xff]  ;;  %v548_v28 = vld [vmem:[%s8546_s26 + $0x88] sm:$0xff] }
  0x16   : > { %1024 = vperm.xlu1 %8411, %v706_v4   ;;  %v550_v29 = vld [vmem:[%s8546_s26 + $0x98] sm:$0xff]  ;;  %v571_v32 = vpack.c.bf16 %v549_v26, %v547_v25  ;;  %v543_v34 = vld [vmem:[%s8546_s26 + $0x60] sm:$0xff]  ;;  %v545_v35 = vld [vmem:[%s8546_s26 + $0x70] sm:$0xff] }
  0x17   : > { %944 = vperm.xlu0 %8410, %v690_v8   ;;  %934 = vperm.xlu2 %8412, %v688_v14   ;;  %v572_v33 = vpack.c.bf16 %v550_v29, %v548_v28  ;;  %v544_v36 = vld [vmem:[%s8546_s26 + $0x68] sm:$0xff]  ;;  %v546_v37 = vld [vmem:[%s8546_s26 + $0x78] sm:$0xff]  ;;  %v569_v38 = vpack.c.bf16 %v545_v35, %v543_v34  ;;  %v539_v40 = vld [vmem:[%s8546_s26 + $0x40] sm:$0xff] }
  0x18   : > { %1220 = vmatpush.bf16.msra.mxu0 %v575_v17  ;;  %8369 = vmatpush.bf16.msra.mxu2 %v575_v17  ;;  %v570_v39 = vpack.c.bf16 %v546_v37, %v544_v36  ;;  %v541_v41 = vld [vmem:[%s8546_s26 + $0x50] sm:$0xff]  ;;  %v540_v43 = vld [vmem:[%s8546_s26 + $0x48] sm:$0xff]  ;;  %v542_v44 = vld [vmem:[%s8546_s26 + $0x58] sm:$0xff] }
  0x19   : > { %1389 = vmatpush.bf16.msra.mxu1 %v576_v18  ;;  %8377 = vmatpush.bf16.msra.mxu3 %v576_v18  ;;  %v567_v47 = vpack.c.bf16 %v541_v41, %v539_v40  ;;  %v568_v48 = vpack.c.bf16 %v542_v44, %v540_v43  ;;  %v535_v49 = vld [vmem:[%s8546_s26 + $0x20] sm:$0xff]  ;;  %v537_v50 = vld [vmem:[%s8546_s26 + $0x30] sm:$0xff]  ;;  %v536_v51 = vld [vmem:[%s8546_s26 + $0x28] sm:$0xff] }
  0x1a   : > { %v538_v52 = vld [vmem:[%s8546_s26 + $0x38] sm:$0xff]  ;;  %v565_v53 = vpack.c.bf16 %v537_v50, %v535_v49  ;;  %v531_v55 = vld [vmem:[%s8546_s26] sm:$0xff]  ;;  %v533_v56 = vld [vmem:[%s8546_s26 + $0x10] sm:$0xff] }
  0x1b   : > { %v566_v54 = vpack.c.bf16 %v538_v52, %v536_v51  ;;  %v532_v58 = vld [vmem:[%s8546_s26 + $0x8] sm:$0xff]  ;;  %v534_v59 = vld [vmem:[%s8546_s26 + $0x18] sm:$0xff]  ;;  %v683_v61 = vld [vmem:[%s14331_s2 + $0x140] sm:$0xff]  ;;  %v563_v62 = vpack.c.bf16 %v533_v56, %v531_v55  ;;  %s8384_s26 = smul.u32 384, %s15626_s29 }
  0x1c   : > { %1221 = vmatpush.bf16.msra.mxu0 %v573_v23  ;;  %8370 = vmatpush.bf16.msra.mxu2 %v573_v23  ;;  %v564_v63 = vpack.c.bf16 %v534_v59, %v532_v58  ;;  %v8128_v0 = vld [vmem:[%s14330_s1] sm:$0xff]  ;;  %v700_v2 = vld [vmem:[%s14331_s2 + $0x1c8] sm:$0xff]  ;;  %v682_v3 = vld [vmem:[%s14331_s2 + $0x138] sm:$0xff] }
  0x1d   : > { %1390 = vmatpush.bf16.msra.mxu1 %v574_v24  ;;  %8378 = vmatpush.bf16.msra.mxu3 %v574_v24  ;;  %v698_v4 = vld [vmem:[%s14331_s2 + $0x1b8] sm:$0xff]  ;;  %v697_v5 = vld [vmem:[%s14331_s2 + $0x1b0] sm:$0xff]  ;;  %v679_v6 = vld [vmem:[%s14331_s2 + $0x120] sm:$0xff]  ;;  %s11726_s25 = scalar_lea.vmem %s14342_s13, %s8384_s26 }
  0x1e   : > { %1014 = vperm.xlu1 %8411, %v704_v27   ;;  %v8129_v7 = vld [vmem:[%s14330_s1 + $0x8] sm:$0xff]  ;;  %v695_v8 = vld [vmem:[%s14331_s2 + $0x1a0] sm:$0xff]  ;;  %v678_v11 = vld [vmem:[%s14331_s2 + $0x118] sm:$0xff] }
  0x1f   : > { %1009 = vperm.xlu0 %8410, %v703_v30   ;;  %919 = vperm.xlu2 %8412, %v685_v31   ;;  %v680_v9 = vld [vmem:[%s14331_s2 + $0x128] sm:$0xff]  ;;  %v693_v12 = vld [vmem:[%s14331_s2 + $0x190] sm:$0xff]  ;;  %v675_v15 = vld [vmem:[%s14331_s2 + $0x100] sm:$0xff] }
  0x20   : > { %1222 = vmatpush.bf16.msra.mxu0 %v571_v32  ;;  %8371 = vmatpush.bf16.msra.mxu2 %v571_v32  ;;  %v696_v10 = vld [vmem:[%s14331_s2 + $0x1a8] sm:$0xff]  ;;  %v677_v13 = vld [vmem:[%s14331_s2 + $0x110] sm:$0xff]  ;;  %v694_v16 = vld [vmem:[%s14331_s2 + $0x198] sm:$0xff] }
  0x21   : > { %1391 = vmatpush.bf16.msra.mxu1 %v572_v33  ;;  %8379 = vmatpush.bf16.msra.mxu3 %v572_v33  ;;  %v8130_v14 = vld [vmem:[%s14330_s1 + $0x10] sm:$0xff]  ;;  %v676_v17 = vld [vmem:[%s14331_s2 + $0x108] sm:$0xff]  ;;  %v691_v19 = vld [vmem:[%s14331_s2 + $0x180] sm:$0xff] }
  0x22   : > { %v692_v18 = vld [vmem:[%s14331_s2 + $0x188] sm:$0xff]  ;;  %v657_v20 = vld [vmem:[%s14331_s2 + $0x70] sm:$0xff]  ;;  %v8131_v21 = vld [vmem:[%s14330_s1 + $0x18] sm:$0xff] }
  0x23   : > { %v673_v22 = vld [vmem:[%s14331_s2 + $0xf0] sm:$0xff]  ;;  %v658_v23 = vld [vmem:[%s14331_s2 + $0x78] sm:$0xff]  ;;  %v656_v26 = vld [vmem:[%s14331_s2 + $0x68] sm:$0xff] }
  0x24   : > { %1223 = vmatpush.bf16.msra.mxu0 %v569_v38  ;;  %8372 = vmatpush.bf16.msra.mxu2 %v569_v38  ;;  %v674_v24 = vld [vmem:[%s14331_s2 + $0xf8] sm:$0xff]  ;;  %v671_v27 = vld [vmem:[%s14331_s2 + $0xe0] sm:$0xff]  ;;  %v653_v31 = vld [vmem:[%s14331_s2 + $0x50] sm:$0xff] }
  0x25   : > { %1392 = vmatpush.bf16.msra.mxu1 %v570_v39  ;;  %8380 = vmatpush.bf16.msra.mxu3 %v570_v39  ;;  %v655_v28 = vld [vmem:[%s14331_s2 + $0x60] sm:$0xff]  ;;  %v672_v32 = vld [vmem:[%s14331_s2 + $0xe8] sm:$0xff]  ;;  %v654_v33 = vld [vmem:[%s14331_s2 + $0x58] sm:$0xff] }
  0x26   : > { %999 = vperm.xlu1 %8411, %v701_v42   ;;  %v8132_v29 = vld [vmem:[%s14330_s1 + $0x20] sm:$0xff]  ;;  %v670_v36 = vld [vmem:[%s14331_s2 + $0xd8] sm:$0xff]  ;;  %v669_v37 = vld [vmem:[%s14331_s2 + $0xd0] sm:$0xff] }
  0x27   : > { %924 = vperm.xlu0 %8410, %v686_v45   ;;  %1004 = vperm.xlu2 %8412, %v702_v46   ;;  %v8152_v34 = vld [vmem:[%s14330_s1 + $0xc0] sm:$0xff]  ;;  %v8133_v40 = vld [vmem:[%s14330_s1 + $0x28] sm:$0xff]  ;;  %v650_v50 = vld [vmem:[%s14331_s2 + $0x38] sm:$0xff] }
  0x28   : > { %1224 = vmatpush.bf16.msra.mxu0 %v567_v47  ;;  %8373 = vmatpush.bf16.msra.mxu2 %v567_v47  ;;  %v651_v38 = vld [vmem:[%s14331_s2 + $0x40] sm:$0xff]  ;;  %v652_v44 = vld [vmem:[%s14331_s2 + $0x48] sm:$0xff]  ;;  %v665_v51 = vld [vmem:[%s14331_s2 + $0xb0] sm:$0xff] }
  0x29   : > { %1393 = vmatpush.bf16.msra.mxu1 %v568_v48  ;;  %8381 = vmatpush.bf16.msra.mxu3 %v568_v48  ;;  %v667_v43 = vld [vmem:[%s14331_s2 + $0xc0] sm:$0xff]  ;;  %v668_v45 = vld [vmem:[%s14331_s2 + $0xc8] sm:$0xff]  ;;  %v649_v52 = vld [vmem:[%s14331_s2 + $0x30] sm:$0xff] }
  0x2a   : > { %v8153_v46 = vld [vmem:[%s14330_s1 + $0xc8] sm:$0xff]  ;;  %v666_v58 = vld [vmem:[%s14331_s2 + $0xb8] sm:$0xff] }
  0x2b   : > { %v648_v59 = vld [vmem:[%s14331_s2 + $0x28] sm:$0xff] }
  0x2c   : > { %1225 = vmatpush.bf16.msra.mxu0 %v565_v53  ;;  %8374 = vmatpush.bf16.msra.mxu2 %v565_v53 }
  0x2d   : > { %1394 = vmatpush.bf16.msra.mxu1 %v566_v54  ;;  %8382 = vmatpush.bf16.msra.mxu3 %v566_v54  ;;  %v8134_v54 = vld [vmem:[%s14330_s1 + $0x30] sm:$0xff] }
  0x2e   : > { %914 = vperm.xlu1 %8411, %v684_v57   ;;  %v647_v57 = vld [vmem:[%s14331_s2 + $0x20] sm:$0xff] }
  0x2f   : > { %989 = vperm.xlu2 %8412, %v699_v60   ;;  %909 = vperm.xlu0 %8410, %v683_v61   ;;  %v8154_v60 = vld [vmem:[%s14330_s1 + $0xd0] sm:$0xff] }
  0x30   : > { %1226 = vmatpush.bf16.msra.mxu0 %v563_v62  ;;  %8375 = vmatpush.bf16.msra.mxu2 %v563_v62 }
  0x31   : > { %1395 = vmatpush.bf16.msra.mxu1 %v564_v63  ;;  %8383 = vmatpush.bf16.msra.mxu3 %v564_v63 }
  0x33   : > { %1227 = vmatmul.bf16.vlgmr.msra.gmra.mxu0 %v8128_v0  ;;  %1347 = vmatmul.bf16.vlgmr.msra.gmra.mxu2 %v8152_v34 }
  0x34   : > { %1396 = vmatmul.bf16.vlgmr.msra.gmra.mxu1 %v8128_v0  ;;  %1516 = vmatmul.bf16.vlgmr.msra.gmra.mxu3 %v8152_v34  ;;  %v664_v0 = vld [vmem:[%s14331_s2 + $0xa8] sm:$0xff]  ;;  %v2981_v34 = vld [vmem:[%s14333_s4 + $0x60] sm:$0xff] }
  0x36   : > { %899 = vperm.xlu1 %8411, %v681_v1   ;;  %v663_v1 = vld [vmem:[%s14331_s2 + $0xa0] sm:$0xff] }
  0x37   : > { %994 = vperm.xlu0 %8410, %v700_v2   ;;  %904 = vperm.xlu2 %8412, %v682_v3   ;;  %v645_v2 = vld [vmem:[%s14331_s2 + $0x10] sm:$0xff] }
  0x3e   : > { %984 = vperm.xlu1 %8411, %v698_v4   ;;  %v8135_v4 = vld [vmem:[%s14330_s1 + $0x38] sm:$0xff] }
  0x3f   : > { %979 = vperm.xlu0 %8410, %v697_v5   ;;  %889 = vperm.xlu2 %8412, %v679_v6  }
  0x43   : > { %1232 = vmatmul.bf16.gmra.mxu0 %v8129_v7  ;;  %1352 = vmatmul.bf16.gmra.mxu2 %v8153_v46 }
  0x44   : > { %1401 = vmatmul.bf16.gmra.mxu1 %v8129_v7  ;;  %1521 = vmatmul.bf16.gmra.mxu3 %v8153_v46  ;;  %v661_v7 = vld [vmem:[%s14331_s2 + $0x90] sm:$0xff]  ;;  %v2997_v46 = vld [vmem:[%s14333_s4 + $0xe0] sm:$0xff] }
  0x46   : > { %969 = vperm.xlu1 %8411, %v695_v8   ;;  %v646_v8 = vld [vmem:[%s14331_s2 + $0x18] sm:$0xff] }
  0x47   : > { %894 = vperm.xlu0 %8410, %v680_v9   ;;  %974 = vperm.xlu2 %8412, %v696_v10   ;;  %v662_v9 = vld [vmem:[%s14331_s2 + $0x98] sm:$0xff] }
  0x48   : > { %v8155_v10 = vld [vmem:[%s14330_s1 + $0xd8] sm:$0xff] }
  0x4e   : > { %884 = vperm.xlu1 %8411, %v678_v11  }
  0x4f   : > { %959 = vperm.xlu2 %8412, %v693_v12   ;;  %879 = vperm.xlu0 %8410, %v677_v13  }
  0x53   : > { %1237 = vmatmul.bf16.gmra.mxu0 %v8130_v14  ;;  %1357 = vmatmul.bf16.gmra.mxu2 %v8154_v60 }
  0x54   : > { %1406 = vmatmul.bf16.gmra.mxu1 %v8130_v14  ;;  %1526 = vmatmul.bf16.gmra.mxu3 %v8154_v60  ;;  %v644_v14 = vld [vmem:[%s14331_s2 + $0x8] sm:$0xff] }
  0x56   : > { %869 = vperm.xlu1 %8411, %v675_v15   ;;  %v659_v15 = vld [vmem:[%s14331_s2 + $0x80] sm:$0xff] }
  0x57   : > { %964 = vperm.xlu0 %8410, %v694_v16   ;;  %874 = vperm.xlu2 %8412, %v676_v17   ;;  %v643_v16 = vld [vmem:[%s14331_s2] sm:$0xff] }
  0x5e   : > { %954 = vperm.xlu1 %8411, %v692_v18   ;;  %v8136_v18 = vld [vmem:[%s14330_s1 + $0x40] sm:$0xff] }
  0x5f   : > { %949 = vperm.xlu0 %8410, %v691_v19   ;;  %779 = vperm.xlu2 %8412, %v657_v20  }
  0x63   : > { %1242 = vmatmul.bf16.gmra.mxu0 %v8131_v21  ;;  %1362 = vmatmul.bf16.gmra.mxu2 %v8155_v10 }
  0x64   : > { %1411 = vmatmul.bf16.gmra.mxu1 %v8131_v21  ;;  %1531 = vmatmul.bf16.gmra.mxu3 %v8155_v10 }
  0x66   : > { %859 = vperm.xlu1 %8411, %v673_v22  }
  0x67   : > { %784 = vperm.xlu0 %8410, %v658_v23   ;;  %864 = vperm.xlu2 %8412, %v674_v24   ;;  %v2983_v23 = vld [vmem:[%s14333_s4 + $0x70] sm:$0xff]  ;;  %v2984_v24 = vld [vmem:[%s14333_s4 + $0x78] sm:$0xff] }
  0x69   : > { %v8691_v25 = vpop.permute.xlu2 %929 }
  0x6a   : > { %14681 = vst [vmem:[#allocation2_spill] sm:$0xff] %v8691_v25 }
  0x6e   : > { %774 = vperm.xlu1 %8411, %v656_v26   ;;  %v660_v26 = vld [vmem:[%s14331_s2 + $0x88] sm:$0xff] }
  0x6f   : > { %849 = vperm.xlu2 %8412, %v671_v27   ;;  %769 = vperm.xlu0 %8410, %v655_v28   ;;  %v8156_v27 = vld [vmem:[%s14330_s1 + $0xe0] sm:$0xff] }
  0x71   : > { %v8705_v30 = vpop.permute.xlu2 %934 }
  0x72   : > { %14682 = vst [vmem:[#allocation3_spill] sm:$0xff] %v8705_v30 }
  0x73   : > { %1247 = vmatmul.bf16.gmra.mxu0 %v8132_v29  ;;  %1367 = vmatmul.bf16.gmra.mxu2 %v8156_v27 }
  0x74   : > { %1416 = vmatmul.bf16.gmra.mxu1 %v8132_v29  ;;  %1536 = vmatmul.bf16.gmra.mxu3 %v8156_v27 }
  0x76   : > { %759 = vperm.xlu1 %8411, %v653_v31  }
  0x77   : > { %854 = vperm.xlu0 %8410, %v672_v32   ;;  %764 = vperm.xlu2 %8412, %v654_v33   ;;  %v3000_v33 = vld [vmem:[%s14333_s4 + $0xf8] sm:$0xff] }
  0x79   : > { %v8719_v35 = vpop.permute.xlu2 %919 }
  0x7a   : > { %14683 = vst [vmem:[#allocation4_spill] sm:$0xff] %v8719_v35 }
  0x7e   : > { %844 = vperm.xlu1 %8411, %v670_v36   ;;  %v2999_v36 = vld [vmem:[%s14333_s4 + $0xf0] sm:$0xff] }
  0x7f   : > { %839 = vperm.xlu0 %8410, %v669_v37   ;;  %749 = vperm.xlu2 %8412, %v651_v38  }
  0x80   : > { %v8730_v39 = vpop.permute.xlu1 %1019 }
  0x81   : > { %v8735_v41 = vpop.permute.xlu0 %939  ;;  %v8737_v42 = vpop.permute.xlu2 %1004 }
  0x82   : > { %14684 = vst [vmem:[#allocation5_spill] sm:$0xff] %v8735_v41 }
  0x83   : > { %1252 = vmatmul.bf16.gmra.mxu0 %v8133_v40 }
  0x84   : > { %1421 = vmatmul.bf16.gmra.mxu1 %v8133_v40  ;;  %v8137_v40 = vld [vmem:[%s14330_s1 + $0x48] sm:$0xff] }
  0x86   : > { %829 = vperm.xlu1 %8411, %v667_v43  }
  0x87   : > { %754 = vperm.xlu0 %8410, %v652_v44   ;;  %834 = vperm.xlu2 %8412, %v668_v45  }
  0x88   : > { %v8751_v47 = vpop.permute.xlu1 %1024 }
  0x89   : > { %v8753_v48 = vpop.permute.xlu0 %944  ;;  %v8755_v49 = vpop.permute.xlu2 %989 }
  0x8a   : > { %14685 = vst [vmem:[#allocation6_spill] sm:$0xff] %v8753_v48 }
  0x8e   : > { %744 = vperm.xlu1 %8411, %v650_v50   ;;  %v2998_v50 = vld [vmem:[%s14333_s4 + $0xe8] sm:$0xff] }
  0x8f   : > { %819 = vperm.xlu2 %8412, %v665_v51   ;;  %739 = vperm.xlu0 %8410, %v649_v52   ;;  %v2982_v51 = vld [vmem:[%s14333_s4 + $0x68] sm:$0xff] }
  0x90   : > { %v8766_v53 = vpop.permute.xlu1 %1014  ;;  %v8157_v52 = vld [vmem:[%s14330_s1 + $0xe8] sm:$0xff] }
  0x91   : > { %v8771_v55 = vpop.permute.xlu0 %1009  ;;  %v8773_v56 = vpop.permute.xlu2 %904  ;;  %1372 = vmatmul.bf16.gmra.mxu2 %v8157_v52  ;;  %1541 = vmatmul.bf16.gmra.mxu3 %v8157_v52 }
  0x92   : > { %14686 = vst [vmem:[#allocation7_spill] sm:$0xff] %v8773_v56 }
  0x93   : > { %1257 = vmatmul.bf16.gmra.mxu0 %v8134_v54 }
  0x94   : > { %1426 = vmatmul.bf16.gmra.mxu1 %v8134_v54 }
  0x96   : > { %729 = vperm.xlu1 %8411, %v647_v57  }
  0x97   : > { %824 = vperm.xlu0 %8410, %v666_v58   ;;  %734 = vperm.xlu2 %8412, %v648_v59  }
  0x98   : > { %v8787_v61 = vpop.permute.xlu1 %999 }
  0x99   : > { %v8789_v62 = vpop.permute.xlu0 %924  ;;  %v8791_v63 = vpop.permute.xlu2 %889 }
  0x9a   : > { %14687 = vst [vmem:[#allocation8_spill] sm:$0xff] %v8789_v62 }
  0x9b   : > { %14688 = vst [vmem:[#allocation9_spill] sm:$0xff] %v8791_v63 }
  0x9e   : > { %814 = vperm.xlu1 %8411, %v664_v0   ;;  %v2980_v0 = vld [vmem:[%s14333_s4 + $0x58] sm:$0xff] }
  0x9f   : > { %809 = vperm.xlu0 %8410, %v663_v1   ;;  %719 = vperm.xlu2 %8412, %v645_v2   ;;  %v2995_v1 = vld [vmem:[%s14333_s4 + $0xd0] sm:$0xff] }
  0xa0   : > { %v8802_v3 = vpop.permute.xlu1 %914  ;;  %v2979_v2 = vld [vmem:[%s14333_s4 + $0x50] sm:$0xff] }
  0xa1   : > { %14689 = vst [vmem:[#allocation10_spill] sm:$0xff] %v8802_v3  ;;  %v8807_v5 = vpop.permute.xlu0 %909  ;;  %v8809_v6 = vpop.permute.xlu2 %974 }
  0xa2   : > { %14690 = vst [vmem:[#allocation11_spill] sm:$0xff] %v8807_v5  ;;  %v2989_v5 = vld [vmem:[%s14333_s4 + $0xa0] sm:$0xff] }
  0xa3   : > { %14691 = vst [vmem:[#allocation12_spill] sm:$0xff] %v8809_v6  ;;  %1262 = vmatmul.bf16.gmra.mxu0 %v8135_v4 }
  0xa4   : > { %1431 = vmatmul.bf16.gmra.mxu1 %v8135_v4 }
  0xa6   : > { %799 = vperm.xlu1 %8411, %v661_v7   ;;  %v8138_v7 = vld [vmem:[%s14330_s1 + $0x50] sm:$0xff] }
  0xa7   : > { %724 = vperm.xlu0 %8410, %v646_v8   ;;  %804 = vperm.xlu2 %8412, %v662_v9  }
  0xa8   : > { %v8823_v11 = vpop.permute.xlu1 %899 }
  0xa9   : > { %14692 = vst [vmem:[#allocation13_spill] sm:$0xff] %v8823_v11  ;;  %v8825_v12 = vpop.permute.xlu0 %994  ;;  %v8827_v13 = vpop.permute.xlu2 %959  ;;  %v2988_v11 = vld [vmem:[%s14333_s4 + $0x98] sm:$0xff] }
  0xaa   : > { %14693 = vst [vmem:[#allocation14_spill] sm:$0xff] %v8827_v13 }
  0xae   : > { %714 = vperm.xlu1 %8411, %v644_v14  }
  0xaf   : > { %789 = vperm.xlu2 %8412, %v659_v15   ;;  %709 = vperm.xlu0 %8410, %v643_v16   ;;  %v2977_v15 = vld [vmem:[%s14333_s4 + $0x40] sm:$0xff]  ;;  %v2978_v16 = vld [vmem:[%s14333_s4 + $0x48] sm:$0xff] }
  0xb0   : > { %v8838_v17 = vpop.permute.xlu1 %984  ;;  %v8845_v20 = vpop.f32.mrf.mxu0 }
  0xb1   : > { %v8843_v19 = vpop.permute.xlu0 %979  ;;  %v8847_v21 = vpop.f32.mrf.mxu1 }
  0xb2   : > { %14694 = vst [vmem:[#allocation15_spill] sm:$0xff] %v8847_v21  ;;  %v8849_v22 = vpop.permute.xlu2 %874 }
  0xb3   : > { %14695 = vst [vmem:[#allocation16_spill] sm:$0xff] %v8849_v22  ;;  %1267 = vmatmul.bf16.gmra.mxu0 %v8136_v18 }
  0xb4   : > { %1436 = vmatmul.bf16.gmra.mxu1 %v8136_v18  ;;  %v2996_v18 = vld [vmem:[%s14333_s4 + $0xd8] sm:$0xff] }
  0xb6   : > { %3073 = vperm.xlu1 %8411, %v2983_v23   ;;  %v8158_v23 = vld [vmem:[%s14330_s1 + $0xf0] sm:$0xff] }
  0xb7   : > { %3078 = vperm.xlu2 %8412, %v2984_v24   ;;  %794 = vperm.xlu0 %8410, %v660_v26  }
  0xb8   : > { %v8863_v28 = vpop.permute.xlu1 %969  ;;  %v8867_v31 = vpop.f32.mrf.mxu0  ;;  %1377 = vmatmul.bf16.gmra.mxu2 %v8158_v23  ;;  %1546 = vmatmul.bf16.gmra.mxu3 %v8158_v23 }
  0xb9   : > { %14696 = vst [vmem:[#allocation17_spill] sm:$0xff] %v8863_v28  ;;  %v8865_v29 = vpop.permute.xlu0 %894  ;;  %v8869_v32 = vpop.f32.mrf.mxu1 }
  0xba   : > { %14697 = vst [vmem:[#allocation18_spill] sm:$0xff] %v8865_v29  ;;  %v8880_v37 = vpop.permute.xlu2 %779  ;;  %v9041_v29 = vpop.f32.mrf.mxu2 }
  0xbb   : > { %14698 = vst [vmem:[#allocation19_spill] sm:$0xff] %v8869_v32 }
  0xbc   : > { %14718 = vst [vmem:[#allocation39_spill] sm:$0xff] %v9041_v29  ;;  %v3831_v29 = vld [vmem:[%s14335_s6 + $0xd0] sm:$0xff] }
  0xbe   : > { %3158 = vperm.xlu1 %8411, %v3000_v33  }
  0xbf   : > { %3063 = vperm.xlu2 %8412, %v2981_v34   ;;  %3153 = vperm.xlu0 %8410, %v2999_v36   ;;  %v2994_v36 = vld [vmem:[%s14333_s4 + $0xc8] sm:$0xff] }
  0xc0   : > { %v8882_v38 = vpop.permute.xlu1 %884  ;;  %v8889_v44 = vpop.f32.mrf.mxu0 }
  0xc1   : > { %14699 = vst [vmem:[#allocation20_spill] sm:$0xff] %v8882_v38  ;;  %v8887_v43 = vpop.permute.xlu0 %879  ;;  %v8891_v45 = vpop.f32.mrf.mxu1 }
  0xc2   : > { %14700 = vst [vmem:[#allocation21_spill] sm:$0xff] %v8887_v43  ;;  %v8905_v54 = vpop.permute.xlu2 %864 }
  0xc3   : > { %14701 = vst [vmem:[#allocation22_spill] sm:$0xff] %v8891_v45  ;;  %1272 = vmatmul.bf16.gmra.mxu0 %v8137_v40 }
  0xc4   : > { %1441 = vmatmul.bf16.gmra.mxu1 %v8137_v40  ;;  %14702 = vst [vmem:[#allocation23_spill] sm:$0xff] %v8905_v54  ;;  %v2975_v40 = vld [vmem:[%s14333_s4 + $0x30] sm:$0xff] }
  0xc6   : > { %3143 = vperm.xlu1 %8411, %v2997_v46   ;;  %v2993_v46 = vld [vmem:[%s14333_s4 + $0xc0] sm:$0xff] }
  0xc7   : > { %3148 = vperm.xlu2 %8412, %v2998_v50   ;;  %3068 = vperm.xlu0 %8410, %v2982_v51   ;;  %v8139_v51 = vld [vmem:[%s14330_s1 + $0x58] sm:$0xff] }
  0xc8   : > { %v8907_v57 = vpop.permute.xlu1 %869  ;;  %v8911_v59 = vpop.f32.mrf.mxu0 }
  0xc9   : > { %14703 = vst [vmem:[#allocation24_spill] sm:$0xff] %v8907_v57  ;;  %v8909_v58 = vpop.permute.xlu0 %964  ;;  %v8913_v60 = vpop.f32.mrf.mxu1 }
  0xca   : > { %14704 = vst [vmem:[#allocation25_spill] sm:$0xff] %v8909_v58  ;;  %v8929_v8 = vpop.permute.xlu2 %849 }
  0xcb   : > { %14705 = vst [vmem:[#allocation26_spill] sm:$0xff] %v8913_v60  ;;  %v3834_v60 = vld [vmem:[%s14335_s6 + $0xe8] sm:$0xff] }
  0xcc   : > { %14707 = vst [vmem:[#allocation28_spill] sm:$0xff] %v8929_v8 }
  0xce   : > { %3058 = vperm.xlu1 %8411, %v2980_v0  }
  0xcf   : > { %3133 = vperm.xlu2 %8412, %v2995_v1   ;;  %3053 = vperm.xlu0 %8410, %v2979_v2   ;;  %v2991_v2 = vld [vmem:[%s14333_s4 + $0xb0] sm:$0xff] }
  0xd0   : > { %v8924_v4 = vpop.permute.xlu1 %954  ;;  %v8933_v10 = vpop.f32.mrf.mxu0 }
  0xd1   : > { %14706 = vst [vmem:[#allocation27_spill] sm:$0xff] %v8924_v4  ;;  %v8931_v9 = vpop.permute.xlu0 %949  ;;  %v8935_v14 = vpop.f32.mrf.mxu1 }
  0xd2   : > { %14708 = vst [vmem:[#allocation29_spill] sm:$0xff] %v8931_v9  ;;  %v8957_v34 = vpop.permute.xlu2 %764 }
  0xd3   : > { %14709 = vst [vmem:[#allocation30_spill] sm:$0xff] %v8935_v14  ;;  %1277 = vmatmul.bf16.gmra.mxu0 %v8138_v7 }
  0xd4   : > { %1446 = vmatmul.bf16.gmra.mxu1 %v8138_v7  ;;  %v2992_v7 = vld [vmem:[%s14333_s4 + $0xb8] sm:$0xff] }
  0xd6   : > { %3043 = vperm.xlu1 %8411, %v2977_v15   ;;  %v2976_v15 = vld [vmem:[%s14333_s4 + $0x38] sm:$0xff] }
  0xd7   : > { %3048 = vperm.xlu2 %8412, %v2978_v16   ;;  %3138 = vperm.xlu0 %8410, %v2996_v18   ;;  %v8159_v18 = vld [vmem:[%s14330_s1 + $0xf8] sm:$0xff] }
  0xd8   : > { %v8949_v24 = vpop.permute.xlu1 %859  ;;  %v8953_v27 = vpop.f32.mrf.mxu0  ;;  %1382 = vmatmul.bf16.gmra.mxu2 %v8159_v18  ;;  %1551 = vmatmul.bf16.gmra.mxu3 %v8159_v18  ;;  %v8140_v18 = vld [vmem:[%s14330_s1 + $0x60] sm:$0xff] }
  0xd9   : > { %14710 = vst [vmem:[#allocation31_spill] sm:$0xff] %v8949_v24  ;;  %v8951_v26 = vpop.permute.xlu0 %784  ;;  %v8955_v33 = vpop.f32.mrf.mxu1  ;;  %v3817_v24 = vld [vmem:[%s14335_s6 + $0x60] sm:$0xff] }
  0xda   : > { %14711 = vst [vmem:[#allocation32_spill] sm:$0xff] %v8955_v33  ;;  %v8986_v16 = vpop.permute.xlu2 %749 }
  0xde   : > { %3128 = vperm.xlu1 %8411, %v2994_v36  }
  0xdf   : > { %3033 = vperm.xlu2 %8412, %v2975_v40   ;;  %3123 = vperm.xlu0 %8410, %v2993_v46  }
  0xe0   : > { %v8968_v50 = vpop.permute.xlu1 %774  ;;  %v1243_v0 = vpop.f32.mrf.mxu0 }
  0xe1   : > { %v8973_v52 = vpop.permute.xlu0 %769  ;;  %v8975_v1 = vpop.f32.mrf.mxu1 }
  0xe2   : > { %14712 = vst [vmem:[#allocation33_spill] sm:$0xff] %v8975_v1 }
  0xe3   : > { %1282 = vmatmul.bf16.gmra.mxu0 %v8139_v51 }
  0xe4   : > { %1451 = vmatmul.bf16.gmra.mxu1 %v8139_v51  ;;  %v2974_v51 = vld [vmem:[%s14333_s4 + $0x28] sm:$0xff] }
  0xe6   : > { %3113 = vperm.xlu1 %8411, %v2991_v2   ;;  %v2973_v2 = vld [vmem:[%s14333_s4 + $0x20] sm:$0xff] }
  0xe7   : > { %3118 = vperm.xlu2 %8412, %v2992_v7   ;;  %3038 = vperm.xlu0 %8410, %v2976_v15   ;;  %v9006_v7 = vpop.permute.xlu2 %834 }
  0xe8   : > { %v8991_v23 = vpop.permute.xlu1 %759  ;;  %v1245_v40 = vpop.f32.mrf.mxu0  ;;  %14714 = vst [vmem:[#allocation35_spill] sm:$0xff] %v9006_v7 }
  0xe9   : > { %v8993_v36 = vpop.permute.xlu0 %854  ;;  %v8995_v46 = vpop.f32.mrf.mxu1 }
  0xea   : > { %14713 = vst [vmem:[#allocation34_spill] sm:$0xff] %v8993_v36 }
  0xee   : > { %3028 = vperm.xlu1 %8411, %v2974_v51   ;;  %v2971_v51 = vld [vmem:[%s14333_s4 + $0x10] sm:$0xff] }
  0xef   : > { %3103 = vperm.xlu2 %8412, %v2989_v5   ;;  %3023 = vperm.xlu0 %8410, %v2973_v2   ;;  %v2972_v5 = vld [vmem:[%s14333_s4 + $0x18] sm:$0xff]  ;;  %v2990_v2 = vld [vmem:[%s14333_s4 + $0xa8] sm:$0xff]  ;;  %v9030_v48 = vpop.permute.xlu2 %819 }
  0xf0   : > { %v9008_v15 = vpop.permute.xlu1 %844  ;;  %v9015_v35 = vpop.f32.mrf.mxu0 }
  0xf1   : > { %14715 = vst [vmem:[#allocation36_spill] sm:$0xff] %v9008_v15  ;;  %v9013_v3 = vpop.permute.xlu0 %839  ;;  %v9017_v62 = vpop.f32.mrf.mxu1 }
  0xf2   : > { %14716 = vst [vmem:[#allocation37_spill] sm:$0xff] %v9013_v3 }
  0xf3   : > { %1287 = vmatmul.bf16.gmra.mxu0 %v8140_v18 }
  0xf4   : > { %1456 = vmatmul.bf16.gmra.mxu1 %v8140_v18  ;;  %v2969_v18 = vld [vmem:[%s14333_s4] sm:$0xff] }
  0xf6   : > { %3013 = vperm.xlu1 %8411, %v2971_v51   ;;  %v2987_v51 = vld [vmem:[%s14333_s4 + $0x90] sm:$0xff] }
  0xf7   : > { %3018 = vperm.xlu2 %8412, %v2972_v5   ;;  %3108 = vperm.xlu0 %8410, %v2990_v2   ;;  %v8141_v2 = vld [vmem:[%s14330_s1 + $0x68] sm:$0xff] }
  0xf8   : > { %v9028_v25 = vpop.permute.xlu1 %829  ;;  %v9034_v41 = vpop.f32.mrf.mxu0 }
  0xf9   : > { %14717 = vst [vmem:[#allocation38_spill] sm:$0xff] %v9028_v25  ;;  %v9032_v30 = vpop.permute.xlu0 %754  ;;  %v9036_v56 = vpop.f32.mrf.mxu1 }
  0xfa   : > { %v9067_v25 = vpop.permute.xlu2 %734 }
  0xfb   : > { %14721 = vst [vmem:[#allocation42_spill] sm:$0xff] %v9067_v25  ;;  %v1241_v15 = vadd.f32 %v8953_v27, %v9067_v25  ;;  %v3835_v27 = vld [vmem:[%s14335_s6 + $0xf0] sm:$0xff] }
  0xfe   : > { %3098 = vperm.xlu1 %8411, %v2988_v11   ;;  %v2985_v11 = vld [vmem:[%s14333_s4 + $0x80] sm:$0xff] }
  0xff   : > { %3003 = vperm.xlu2 %8412, %v2969_v18   ;;  %3093 = vperm.xlu0 %8410, %v2987_v51   ;;  %v9065_v18 = vpop.f32.mrf.mxu2 }
 0x100   : > { %v9049_v5 = vpop.permute.xlu1 %744  ;;  %v9058_v22 = vpop.f32.mrf.mxu0  ;;  %14720 = vst [vmem:[#allocation41_spill] sm:$0xff] %v9065_v18 }
 0x101   : > { %v1246_v63 = vadd.f32 %v1245_v40, %v9049_v5  ;;  %v9055_v38 = vpop.permute.xlu0 %739  ;;  %v9060_v57 = vpop.f32.mrf.mxu1  ;;  %v2986_v40 = vld [vmem:[%s14333_s4 + $0x88] sm:$0xff] }
 0x102   : > { %14719 = vst [vmem:[#allocation40_spill] sm:$0xff] %v9055_v38  ;;  %v1244_v43 = vadd.f32 %v1243_v0, %v9055_v38  ;;  %v2970_v0 = vld [vmem:[%s14333_s4 + $0x8] sm:$0xff]  ;;  %v9147_v45 = vpop.permute.xlu2 %719 }
 0x103   : > { %v1571_v51 = vmax.f32 %v1246_v63, 0.0  ;;  %1292 = vmatmul.bf16.gmra.mxu0 %v8141_v2 }
 0x104   : > { %v1569_v7 = vmax.f32 %v1244_v43, 0.0  ;;  %1461 = vmatmul.bf16.gmra.mxu1 %v8141_v2  ;;  %v3820_v43 = vld [vmem:[%s14335_s6 + $0x78] sm:$0xff] }
 0x106   : > { %3083 = vperm.xlu1 %8411, %v2985_v11   ;;  %v9075_v3 = vpack.c.bf16 %v1571_v51, %v1569_v7  ;;  %v1567_v11 = vmax.f32 %v1241_v15, 0.0 }
 0x107   : > { %3088 = vperm.xlu2 %8412, %v2986_v40   ;;  %3008 = vperm.xlu0 %8410, %v2970_v0   ;;  %v9090_v7 = vpop.f32.mrf.mxu2  ;;  %v8142_v40 = vld [vmem:[%s14330_s1 + $0x70] sm:$0xff] }
 0x108   : > { %v9079_v63 = vpop.permute.xlu1 %729  ;;  %v9083_v54 = vpop.f32.mrf.mxu0  ;;  %14723 = vst [vmem:[#allocation44_spill] sm:$0xff] %v9090_v7 }
 0x109   : > { %14722 = vst [vmem:[#allocation43_spill] sm:$0xff] %v9079_v63  ;;  %v1239_v8 = vadd.f32 %v8933_v10, %v9079_v63  ;;  %v9085_v36 = vpop.f32.mrf.mxu1  ;;  %v3819_v10 = vld [vmem:[%s14335_s6 + $0x70] sm:$0xff]  ;;  %v9103_v0 = vpop.permute.xlu0 %824  ;;  %v3814_v63 = vld [vmem:[%s14335_s6 + $0x48] sm:$0xff]  ;;  %v1256_v25 = vadd.f32 %v9083_v54, %v8957_v34 }
 0x10b   : > { %v1565_v2 = vmax.f32 %v1239_v8, 0.0  ;;  %v1579_v54 = vmax.f32 %v1256_v25, 0.0 }
 0x10d   : > { %v9098_v51 = vpack.c.bf16 %v1567_v11, %v1565_v2  ;;  %v3836_v2 = vld [vmem:[%s14335_s6 + $0xf8] sm:$0xff]  ;;  %v9118_v11 = vpop.f32.mrf.mxu3 }
 0x10e   : > { %3914 = vperm.xlu1 %8411, %v3820_v43   ;;  %v3818_v43 = vld [vmem:[%s14335_s6 + $0x68] sm:$0xff]  ;;  %14725 = vst [vmem:[#allocation46_spill] sm:$0xff] %v9118_v11 }
 0x10f   : > { %3989 = vperm.xlu2 %8412, %v3835_v27   ;;  %3909 = vperm.xlu0 %8410, %v3819_v10   ;;  %v9110_v21 = vpop.f32.mrf.mxu2 }
 0x110   : > { %v1258_v8 = vpop.f32.mrf.mxu0  ;;  %14724 = vst [vmem:[#allocation45_spill] sm:$0xff] %v9110_v21 }
 0x111   : > { %v9105_v15 = vpop.f32.mrf.mxu1  ;;  %v9122_v32 = vpop.permute.xlu0 %809 }
 0x112   : > { %14726 = vst [vmem:[#allocation47_spill] sm:$0xff] %v9122_v32 }
 0x113   : > { %1297 = vmatmul.bf16.gmra.mxu0 %v8142_v40 }
 0x114   : > { %1466 = vmatmul.bf16.gmra.mxu1 %v8142_v40  ;;  %v3815_v40 = vld [vmem:[%s14335_s6 + $0x50] sm:$0xff] }
 0x116   : > { %3899 = vperm.xlu1 %8411, %v3817_v24   ;;  %v3833_v24 = vld [vmem:[%s14335_s6 + $0xe0] sm:$0xff] }
 0x117   : > { %3904 = vperm.xlu2 %8412, %v3818_v43   ;;  %3994 = vperm.xlu0 %8410, %v3836_v2   ;;  %v9127_v18 = vpop.f32.mrf.mxu2  ;;  %v9135_v43 = vpop.f32.mrf.mxu3  ;;  %v8143_v2 = vld [vmem:[%s14330_s1 + $0x78] sm:$0xff] }
 0x118   : > { %v1260_v27 = vpop.f32.mrf.mxu0  ;;  %14727 = vst [vmem:[#allocation48_spill] sm:$0xff] %v9127_v18 }
 0x119   : > { %v9120_v10 = vpop.f32.mrf.mxu1  ;;  %14728 = vst [vmem:[#allocation49_spill] sm:$0xff] %v9135_v43  ;;  %v1261_v13 = vadd.f32 %v1260_v27, %v8968_v50  ;;  %v1259_v27 = vadd.f32 %v1258_v8, %v8973_v52  ;;  %v8144_v8 = vld [vmem:[%s14330_s1 + $0x80] sm:$0xff] }
 0x11e   : > { %3984 = vperm.xlu1 %8411, %v3834_v60   ;;  %v3832_v60 = vld [vmem:[%s14335_s6 + $0xd8] sm:$0xff] }
 0x11f   : > { %3889 = vperm.xlu2 %8412, %v3815_v40   ;;  %3979 = vperm.xlu0 %8410, %v3833_v24   ;;  %v9145_v9 = vpop.f32.mrf.mxu2  ;;  %v3816_v40 = vld [vmem:[%s14335_s6 + $0x58] sm:$0xff]  ;;  %v9155_v24 = vpop.permute.xlu0 %724 }
 0x120   : > { %v1263_v11 = vpop.f32.mrf.mxu0  ;;  %14729 = vst [vmem:[#allocation50_spill] sm:$0xff] %v9145_v9  ;;  %v9157_v43 = vpop.f32.mrf.mxu3  ;;  %v1583_v9 = vmax.f32 %v1261_v13, 0.0  ;;  %v1251_v13 = vadd.f32 %v9034_v41, %v9032_v30  ;;  %v1249_v41 = vadd.f32 %v9015_v35, %v8986_v16 }
 0x121   : > { %v9140_v4 = vpop.f32.mrf.mxu1  ;;  %14730 = vst [vmem:[#allocation51_spill] sm:$0xff] %v9157_v43  ;;  %v1264_v21 = vadd.f32 %v1263_v11, %v8880_v37  ;;  %v3813_v11 = vld [vmem:[%s14335_s6 + $0x40] sm:$0xff]  ;;  %v9180_v43 = vpop.permute.xlu2 %804 }
 0x122   : > { %14733 = vst [vmem:[#allocation54_spill] sm:$0xff] %v9180_v43 }
 0x123   : > { %1302 = vmatmul.bf16.gmra.mxu0 %v8143_v2 }
 0x124   : > { %1471 = vmatmul.bf16.gmra.mxu1 %v8143_v2  ;;  %v9169_v2 = vpop.permute.xlu1 %814 }
 0x125   : > { %14731 = vst [vmem:[#allocation52_spill] sm:$0xff] %v9169_v2 }
 0x126   : > { %3969 = vperm.xlu1 %8411, %v3831_v29   ;;  %v3829_v29 = vld [vmem:[%s14335_s6 + $0xc0] sm:$0xff] }
 0x127   : > { %3974 = vperm.xlu2 %8412, %v3832_v60   ;;  %3894 = vperm.xlu0 %8410, %v3816_v40   ;;  %v9167_v33 = vpop.f32.mrf.mxu2  ;;  %v1585_v60 = vmax.f32 %v1264_v21, 0.0  ;;  %v9184_v6 = vpop.permute.xlu0 %709  ;;  %v1254_v21 = vadd.f32 %v9058_v22, %v8991_v23  ;;  %v3812_v22 = vld [vmem:[%s14335_s6 + $0x38] sm:$0xff] }
 0x128   : > { %v1265_v58 = vpop.f32.mrf.mxu0  ;;  %v9178_v40 = vpop.f32.mrf.mxu3 }
 0x129   : > { %v9160_v7 = vpop.f32.mrf.mxu1  ;;  %v1266_v14 = vadd.f32 %v1265_v58, %v8951_v26  ;;  %14732 = vst [vmem:[#allocation53_spill] sm:$0xff] %v9178_v40  ;;  %v1577_v25 = vmax.f32 %v1254_v21, 0.0 }
 0x12b   : > { %v1587_v58 = vmax.f32 %v1266_v14, 0.0  ;;  %v1581_v14 = vmax.f32 %v1259_v27, 0.0 }
 0x12c   : > { %v9210_v27 = vpop.permute.xlu1 %799 }
 0x12d   : > { %v1699_v18 = vpack.c.bf16 %v1587_v58, %v1585_v60  ;;  %v1697_v28 = vpack.c.bf16 %v1583_v9, %v1581_v14  ;;  %14735 = vst [vmem:[#allocation56_spill] sm:$0xff] %v9210_v27  ;;  %v1575_v60 = vmax.f32 %v1251_v13, 0.0  ;;  %v1695_v58 = vpack.c.bf16 %v1579_v54, %v1577_v25  ;;  %v9212_v14 = vpop.permute.xlu2 %789  ;;  %v3828_v13 = vld [vmem:[%s14335_s6 + $0xb8] sm:$0xff]  ;;  %v3809_v54 = vld [vmem:[%s14335_s6 + $0x20] sm:$0xff] }
 0x12e   : > { %3884 = vperm.xlu1 %8411, %v3814_v63   ;;  %14736 = vst [vmem:[#allocation57_spill] sm:$0xff] %v9212_v14 }
 0x12f   : > { %3959 = vperm.xlu2 %8412, %v3829_v29   ;;  %3879 = vperm.xlu0 %8410, %v3813_v11   ;;  %v3811_v29 = vld [vmem:[%s14335_s6 + $0x30] sm:$0xff]  ;;  %v9198_v11 = vpop.f32.mrf.mxu2  ;;  %v9214_v1 = vpop.permute.xlu0 %794 }
 0x130   : > { %3321 = vmatpush.bf16.msrb.mxu0 %v1699_v18  ;;  %v1268_v40 = vpop.f32.mrf.mxu0  ;;  %v3830_v18 = vld [vmem:[%s14335_s6 + $0xc8] sm:$0xff]  ;;  %v9208_v9 = vpop.f32.mrf.mxu3  ;;  %14737 = vst [vmem:[#allocation58_spill] sm:$0xff] %v9214_v1 }
 0x131   : > { %v9191_v63 = vpop.f32.mrf.mxu1  ;;  %v1269_v38 = vadd.f32 %v1268_v40, %v9212_v14  ;;  %v3827_v40 = vld [vmem:[%s14335_s6 + $0xb0] sm:$0xff] }
 0x132   : > { %14734 = vst [vmem:[#allocation55_spill] sm:$0xff] %v9191_v63  ;;  %v1573_v63 = vmax.f32 %v1249_v41, 0.0 }
 0x133   : > { %1307 = vmatmul.bf16.gmra.mxu0 %v8144_v8 }
 0x134   : > { %1476 = vmatmul.bf16.gmra.mxu1 %v8144_v8  ;;  %3322 = vmatpush.bf16.msrb.mxu0 %v1697_v28  ;;  %v1693_v21 = vpack.c.bf16 %v1575_v60, %v1573_v63  ;;  %v1236_v63 = vadd.f32 %v8911_v59, %v9155_v24  ;;  %v9237_v60 = vpop.permute.xlu1 %714  ;;  %v1435_v59 = vadd.f32 %v9160_v7, %v8951_v26 }
 0x136   : > { %3869 = vperm.xlu1 %8411, %v3811_v29   ;;  %v1588_v7 = vmax.f32 %v1435_v59, 0.0  ;;  %v3823_v59 = vld [vmem:[%s14335_s6 + $0x90] sm:$0xff] }
 0x137   : > { %3874 = vperm.xlu2 %8412, %v3812_v22   ;;  %3964 = vperm.xlu0 %8410, %v3830_v18   ;;  %v9223_v29 = vpop.f32.mrf.mxu2  ;;  %v1589_v22 = vmax.f32 %v1269_v38, 0.0  ;;  %v1234_v38 = vadd.f32 %v8889_v44, %v9147_v45  ;;  %v3825_v44 = vld [vmem:[%s14335_s6 + $0xa0] sm:$0xff] }
 0x138   : > { %3323 = vmatpush.bf16.msrb.mxu0 %v1695_v58  ;;  %v1270_v35 = vpop.f32.mrf.mxu0  ;;  %v9231_v41 = vpop.f32.mrf.mxu3  ;;  %v8145_v58 = vld [vmem:[%s14330_s1 + $0x88] sm:$0xff] }
 0x139   : > { %v9217_v8 = vpop.f32.mrf.mxu1  ;;  %v1271_v28 = vadd.f32 %v1270_v35, %v9214_v1  ;;  %v1433_v35 = vadd.f32 %v9140_v4, %v8880_v37  ;;  %v3826_v37 = vld [vmem:[%s14335_s6 + $0xa8] sm:$0xff] }
 0x13a   : > { %14738 = vst [vmem:[#allocation59_spill] sm:$0xff] %v9217_v8  ;;  %v3810_v4 = vld [vmem:[%s14335_s6 + $0x28] sm:$0xff] }
 0x13b   : > { %v1591_v18 = vmax.f32 %v1271_v28, 0.0  ;;  %v1586_v26 = vmax.f32 %v1433_v35, 0.0 }
 0x13c   : > { %3324 = vmatpush.bf16.msrb.mxu0 %v1693_v21 }
 0x13d   : > { %v9235_v25 = vpack.c.bf16 %v1591_v18, %v1589_v22  ;;  %v1700_v8 = vpack.c.bf16 %v1588_v7, %v1586_v26  ;;  %v3824_v26 = vld [vmem:[%s14335_s6 + $0x98] sm:$0xff] }
 0x13e   : > { %3954 = vperm.xlu1 %8411, %v3828_v13   ;;  %v1231_v13 = vadd.f32 %v8867_v31, %v9237_v60 }
 0x13f   : > { %3859 = vperm.xlu2 %8412, %v3809_v54   ;;  %3949 = vperm.xlu0 %8410, %v3827_v40   ;;  %14739 = vst [vmem:[#allocation60_spill] sm:$0xff] %v9235_v25  ;;  %v1229_v54 = vadd.f32 %v8845_v20, %v9184_v6  ;;  %v9258_v40 = vpop.f32.mrf.mxu2  ;;  %v1561_v20 = vmax.f32 %v1234_v38, 0.0  ;;  %v3808_v38 = vld [vmem:[%s14335_s6 + $0x18] sm:$0xff] }
 0x140   : > { %3325 = vmatpush.bf16.msrb.mxu0 %v9075_v3  ;;  %v1273_v28 = vpop.f32.mrf.mxu0  ;;  %v1563_v3 = vmax.f32 %v1236_v63, 0.0  ;;  %v9267_v31 = vpop.f32.mrf.mxu3  ;;  %v1559_v63 = vmax.f32 %v1231_v13, 0.0 }
 0x141   : > { %v9249_v21 = vpop.f32.mrf.mxu1  ;;  %v1557_v18 = vmax.f32 %v1229_v54, 0.0  ;;  %v1274_v25 = vadd.f32 %v1273_v28, %v9210_v27  ;;  %v3807_v28 = vld [vmem:[%s14335_s6 + $0x10] sm:$0xff] }
 0x142   : > { %14740 = vst [vmem:[#allocation61_spill] sm:$0xff] %v9249_v21  ;;  %v1687_v22 = vpack.c.bf16 %v1563_v3, %v1561_v20  ;;  %v8146_v3 = vld [vmem:[%s14330_s1 + $0x90] sm:$0xff] }
 0x143   : > { %1312 = vmatmul.bf16.gmra.mxu0 %v8145_v58  ;;  %v1593_v13 = vmax.f32 %v1274_v25, 0.0  ;;  %v3805_v25 = vld [vmem:[%s14335_s6] sm:$0xff] }
 0x144   : > { %1481 = vmatmul.bf16.gmra.mxu1 %v8145_v58  ;;  %3326 = vmatpush.bf16.msrb.mxu0 %v9098_v51  ;;  %v1685_v58 = vpack.c.bf16 %v1559_v63, %v1557_v18 }
 0x146   : > { %3939 = vperm.xlu1 %8411, %v3825_v44  }
 0x147   : > { %3944 = vperm.xlu2 %8412, %v3826_v37   ;;  %3864 = vperm.xlu0 %8410, %v3810_v4   ;;  %v9276_v35 = vpop.f32.mrf.mxu2 }
 0x148   : > { %3327 = vmatpush.bf16.msrb.mxu0 %v1687_v22  ;;  %v1275_v1 = vpop.f32.mrf.mxu0  ;;  %v9284_v44 = vpop.f32.mrf.mxu3  ;;  %v1374_v21 = vadd.f32 %v9276_v35, %v8787_v61  ;;  %v1425_v35 = vadd.f32 %v9085_v36, %v8957_v34  ;;  %v1418_v36 = vadd.f32 %v9017_v62, %v8986_v16 }
 0x149   : > { %v9270_v14 = vpop.f32.mrf.mxu1  ;;  %v1276_v51 = vadd.f32 %v1275_v1, %v9180_v43  ;;  %v1428_v43 = vadd.f32 %v9105_v15, %v8973_v52  ;;  %v1423_v52 = vadd.f32 %v9060_v57, %v8991_v23  ;;  %v1808_v15 = vld [vmem:[%s14341_s12 + $0x58] sm:$0xff]  ;;  %v1369_v57 = vadd.f32 %v9223_v29, %v8755_v49 }
 0x14a   : > { %14741 = vst [vmem:[#allocation62_spill] sm:$0xff] %v9270_v14  ;;  %v1371_v23 = vadd.f32 %v9258_v40, %v8825_v12  ;;  %v1366_v29 = vadd.f32 %v9198_v11, %v8838_v17  ;;  %v8149_v40 = vld [vmem:[%s14330_s1 + $0xa8] sm:$0xff] }
 0x14b   : > { %v1595_v54 = vmax.f32 %v1276_v51, 0.0  ;;  %v1669_v62 = vmax.f32 %v1369_v57, 0.0  ;;  %v14754_v57 = vld [vmem:[#allocation48_spill] sm:$0xff] }
 0x14c   : > { %3328 = vmatpush.bf16.msrb.mxu0 %v1685_v58  ;;  %v3822_v58 = vld [vmem:[%s14335_s6 + $0x88] sm:$0xff]  ;;  %v1671_v16 = vmax.f32 %v1371_v23, 0.0 }
 0x14d   : > { %v9286_v1 = vpack.c.bf16 %v1595_v54, %v1593_v13 }
 0x14e   : > { %3854 = vperm.xlu1 %8411, %v3808_v38  }
 0x14f   : > { %3929 = vperm.xlu2 %8412, %v3823_v59   ;;  %3849 = vperm.xlu0 %8410, %v3807_v28   ;;  %14742 = vst [vmem:[#allocation63_spill] sm:$0xff] %v9286_v1  ;;  %v9296_v20 = vpop.f32.mrf.mxu2  ;;  %v1797_v59 = vld [vmem:[%s14341_s12] sm:$0xff] }
 0x150   : > { %3499 = vmatpush.bf16.msra.mxu0 %v1700_v8  ;;  %v1278_v37 = vpop.f32.mrf.mxu0  ;;  %v3806_v8 = vld [vmem:[%s14335_s6 + $0x8] sm:$0xff]  ;;  %v9304_v7 = vpop.f32.mrf.mxu3  ;;  %v3821_v28 = vld [vmem:[%s14335_s6 + $0x80] sm:$0xff] }
 0x151   : > { %v9291_v4 = vpop.f32.mrf.mxu1  ;;  %v1279_v22 = vadd.f32 %v1278_v37, %v9122_v32 }
 0x152   : > { %14743 = vst [vmem:[#allocation64_spill] sm:$0xff] %v9291_v4 }
 0x153   : > { %1317 = vmatmul.bf16.gmra.mxu0 %v8146_v3  ;;  %v1597_v13 = vmax.f32 %v1279_v22, 0.0 }
 0x154   : > { %1486 = vmatmul.bf16.gmra.mxu1 %v8146_v3 }
 0x156   : > { %3839 = vperm.xlu1 %8411, %v3805_v25   ;;  %v8147_v25 = vld [vmem:[%s14330_s1 + $0x98] sm:$0xff] }
 0x157   : > { %3844 = vperm.xlu2 %8412, %v3806_v8   ;;  %3934 = vperm.xlu0 %8410, %v3824_v26   ;;  %v1378_v38 = vpop.f32.mrf.mxu2 }
 0x158   : > { %v1280_v18 = vpop.f32.mrf.mxu0  ;;  %v9319_v3 = vpop.f32.mrf.mxu3 }
 0x159   : > { %v9307_v63 = vpop.f32.mrf.mxu1  ;;  %v1281_v51 = vadd.f32 %v1280_v18, %v9169_v2  ;;  %v1799_v18 = vld [vmem:[%s14341_s12 + $0x10] sm:$0xff]  ;;  %v8148_v2 = vld [vmem:[%s14330_s1 + $0xa0] sm:$0xff] }
 0x15a   : > { %14744 = vst [vmem:[#allocation65_spill] sm:$0xff] %v9307_v63 }
 0x15b   : > { %v1599_v54 = vmax.f32 %v1281_v51, 0.0  ;;  %v1800_v51 = vld [vmem:[%s14341_s12 + $0x18] sm:$0xff] }
 0x15d   : > { %v9321_v37 = vpack.c.bf16 %v1599_v54, %v1597_v13 }
 0x15e   : > { %3924 = vperm.xlu1 %8411, %v3822_v58   ;;  %v1798_v58 = vld [vmem:[%s14341_s12 + $0x8] sm:$0xff] }
 0x15f   : > { %1847 = vperm.xlu2 %8412, %v1797_v59   ;;  %3919 = vperm.xlu0 %8410, %v3821_v28   ;;  %14745 = vst [vmem:[#allocation66_spill] sm:$0xff] %v9321_v37  ;;  %v1380_v22 = vpop.f32.mrf.mxu2  ;;  %v1802_v37 = vld [vmem:[%s14341_s12 + $0x28] sm:$0xff] }
 0x160   : > { %v1283_v8 = vpop.f32.mrf.mxu0  ;;  %v9337_v59 = vpop.f32.mrf.mxu3 }
 0x161   : > { %v9326_v26 = vpop.f32.mrf.mxu1  ;;  %v1284_v28 = vadd.f32 %v1283_v8, %v9030_v48 }
 0x163   : > { %1322 = vmatmul.bf16.gmra.mxu0 %v8147_v25 }
 0x164   : > { %1491 = vmatmul.bf16.gmra.mxu1 %v8147_v25  ;;  %v1803_v25 = vld [vmem:[%s14341_s12 + $0x30] sm:$0xff] }
 0x166   : > { %1857 = vperm.xlu1 %8411, %v1799_v18   ;;  %v1801_v18 = vld [vmem:[%s14341_s12 + $0x20] sm:$0xff] }
 0x167   : > { %1862 = vperm.xlu2 %8412, %v1800_v51   ;;  %1852 = vperm.xlu0 %8410, %v1798_v58   ;;  %v1383_v63 = vpop.f32.mrf.mxu2  ;;  %v1601_v51 = vmax.f32 %v1284_v28, 0.0 }
 0x168   : > { %v1285_v13 = vpop.f32.mrf.mxu0  ;;  %v9352_v58 = vpop.f32.mrf.mxu3  ;;  %v1384_v4 = vadd.f32 %v1383_v63, %v8730_v39 }
 0x169   : > { %v9340_v54 = vpop.f32.mrf.mxu1  ;;  %v1286_v1 = vadd.f32 %v1285_v13, %v9103_v0 }
 0x16b   : > { %v1603_v8 = vmax.f32 %v1286_v1, 0.0  ;;  %v1805_v1 = vld [vmem:[%s14341_s12 + $0x40] sm:$0xff] }
 0x16d   : > { %v9354_v13 = vpack.c.bf16 %v1603_v8, %v1601_v51  ;;  %v1379_v51 = vadd.f32 %v1378_v38, %v8771_v55  ;;  %v1381_v8 = vadd.f32 %v1380_v22, %v8766_v53  ;;  %v1430_v38 = vadd.f32 %v9120_v10, %v8968_v50  ;;  %v1809_v10 = vld [vmem:[%s14341_s12 + $0x60] sm:$0xff] }
 0x16e   : > { %1872 = vperm.xlu1 %8411, %v1802_v37   ;;  %v1806_v37 = vld [vmem:[%s14341_s12 + $0x48] sm:$0xff] }
 0x16f   : > { %1877 = vperm.xlu2 %8412, %v1803_v25   ;;  %1867 = vperm.xlu0 %8410, %v1801_v18   ;;  %14746 = vst [vmem:[#allocation67_spill] sm:$0xff] %v9354_v13  ;;  %v1385_v28 = vpop.f32.mrf.mxu2  ;;  %v1804_v25 = vld [vmem:[%s14341_s12 + $0x38] sm:$0xff]  ;;  %v1681_v18 = vmax.f32 %v1384_v4, 0.0  ;;  %v1376_v4 = vadd.f32 %v9296_v20, %v8737_v42  ;;  %v1677_v22 = vmax.f32 %v1379_v51, 0.0  ;;  %v1582_v20 = vmax.f32 %v1428_v43, 0.0 }
 0x170   : > { %v9360_v32 = vpop.f32.mrf.mxu0  ;;  %v1386_v63 = vadd.f32 %v1385_v28, %v8751_v47  ;;  %v1679_v28 = vmax.f32 %v1381_v8, 0.0  ;;  %v1420_v43 = vadd.f32 %v9036_v56, %v9032_v30  ;;  %v1580_v8 = vmax.f32 %v1425_v35, 0.0 }
 0x171   : > { %14747 = vst [vmem:[#allocation68_spill] sm:$0xff] %v9360_v32  ;;  %v9362_v14 = vpop.f32.mrf.mxu1  ;;  %v1675_v50 = vmax.f32 %v1376_v4, 0.0 }
 0x172   : > { %14748 = vst [vmem:[#allocation69_spill] sm:$0xff] %v9362_v14  ;;  %v9376_v14 = vpop.f32.mrf.mxu3  ;;  %v1683_v13 = vmax.f32 %v1386_v63, 0.0  ;;  %v1364_v63 = vadd.f32 %v9167_v33, %v8843_v19  ;;  %v1811_v33 = vld [vmem:[%s14341_s12 + $0x70] sm:$0xff] }
 0x173   : > { %1327 = vmatmul.bf16.gmra.mxu0 %v8148_v2 }
 0x174   : > { %1496 = vmatmul.bf16.gmra.mxu1 %v8148_v2  ;;  %v1747_v2 = vpack.c.bf16 %v1683_v13, %v1681_v18  ;;  %v1673_v13 = vmax.f32 %v1374_v21, 0.0  ;;  %v1745_v18 = vpack.c.bf16 %v1679_v28, %v1677_v22  ;;  %v1578_v21 = vmax.f32 %v1423_v52, 0.0  ;;  %v1810_v22 = vld [vmem:[%s14341_s12 + $0x68] sm:$0xff] }
 0x175   : > { %v1665_v11 = vmax.f32 %v1364_v63, 0.0  ;;  %v1574_v28 = vmax.f32 %v1418_v36, 0.0  ;;  %v1576_v52 = vmax.f32 %v1420_v43, 0.0  ;;  %v14756_v63 = vld [vmem:[#allocation50_spill] sm:$0xff]  ;;  %v14758_v43 = vld [vmem:[#allocation32_spill] sm:$0xff] }
 0x176   : > { %1887 = vperm.xlu1 %8411, %v1805_v1   ;;  %2454 = vmatpush.bf16.msrb.mxu3 %v1747_v2  ;;  %v1743_v51 = vpack.c.bf16 %v1675_v50, %v1673_v13  ;;  %v1667_v2 = vmax.f32 %v1366_v29, 0.0  ;;  %v1415_v13 = vadd.f32 %v8995_v46, %v9049_v5  ;;  %v14751_v50 = vld [vmem:[#allocation40_spill] sm:$0xff]  ;;  %v14757_v36 = vld [vmem:[#allocation42_spill] sm:$0xff] }
 0x177   : > { %1892 = vperm.xlu2 %8412, %v1806_v37   ;;  %1882 = vperm.xlu0 %8410, %v1804_v25   ;;  %v1807_v37 = vld [vmem:[%s14341_s12 + $0x50] sm:$0xff]  ;;  %v1584_v25 = vmax.f32 %v1430_v38, 0.0  ;;  %v1812_v38 = vld [vmem:[%s14341_s12 + $0x78] sm:$0xff]  ;;  %v14760_v46 = vld [vmem:[#allocation30_spill] sm:$0xff] }
 0x178   : > { %v9386_v27 = vpop.f32.mrf.mxu0 }
 0x179   : > { %v9388_v1 = vpop.f32.mrf.mxu1  ;;  %v1698_v4 = vpack.c.bf16 %v1584_v25, %v1582_v20  ;;  %v1696_v20 = vpack.c.bf16 %v1580_v8, %v1578_v21  ;;  %v14753_v25 = vld [vmem:[#allocation17_spill] sm:$0xff]  ;;  %v1739_v21 = vpack.c.bf16 %v1667_v2, %v1665_v11  ;;  %v14761_v8 = vld [vmem:[#allocation14_spill] sm:$0xff]  ;;  %v1814_v11 = vld [vmem:[%s14341_s12 + $0x88] sm:$0xff] }
 0x17a   : > { %14749 = vst [vmem:[#allocation70_spill] sm:$0xff] %v9388_v1  ;;  %v9407_v34 = vpop.f32.mrf.mxu3  ;;  %2455 = vmatpush.bf16.msrb.mxu3 %v1745_v18  ;;  %v1359_v23 = vadd.f32 %v14754_v57, %v14753_v25  ;;  %v14755_v18 = vld [vmem:[#allocation12_spill] sm:$0xff] }
 0x17b   : > { %3500 = vmatpush.bf16.msra.mxu0 %v1698_v4  ;;  %v1361_v29 = vadd.f32 %v14756_v63, %v14755_v18  ;;  %v14763_v4 = vld [vmem:[#allocation25_spill] sm:$0xff] }
 0x17e   : > { %1902 = vperm.xlu1 %8411, %v1808_v15   ;;  %2456 = vmatpush.bf16.msrb.mxu3 %v1743_v51  ;;  %v1741_v15 = vpack.c.bf16 %v1671_v16, %v1669_v62  ;;  %v14759_v51 = vld [vmem:[#allocation43_spill] sm:$0xff]  ;;  %v14762_v62 = vld [vmem:[#allocation44_spill] sm:$0xff] }
 0x17f   : > { %1907 = vperm.xlu2 %8412, %v1809_v10   ;;  %1897 = vperm.xlu0 %8410, %v1807_v37   ;;  %v14752_v10 = vld [vmem:[#allocation33_spill] sm:$0xff]  ;;  %v1408_v5 = vadd.f32 %v14760_v46, %v14759_v51  ;;  %v1354_v16 = vadd.f32 %v14762_v62, %v14761_v8  ;;  %v14768_v46 = vld [vmem:[#allocation39_spill] sm:$0xff] }
 0x180   : > { %v9420_v30 = vpop.f32.mrf.mxu0  ;;  %v1413_v37 = vadd.f32 %v14752_v10, %v14751_v50  ;;  %3501 = vmatpush.bf16.msra.mxu0 %v1696_v20  ;;  %v1694_v10 = vpack.c.bf16 %v1576_v52, %v1574_v28  ;;  %v14766_v20 = vld [vmem:[#allocation22_spill] sm:$0xff]  ;;  %v14767_v51 = vld [vmem:[#allocation29_spill] sm:$0xff]  ;;  %v14769_v28 = vld [vmem:[#allocation27_spill] sm:$0xff] }
 0x181   : > { %v9422_v56 = vpop.f32.mrf.mxu1  ;;  %v1349_v62 = vadd.f32 %v14768_v46, %v14767_v51  ;;  %v14770_v52 = vld [vmem:[#allocation41_spill] sm:$0xff] }
 0x182   : > { %14750 = vst [vmem:[#allocation71_spill] sm:$0xff] %v9422_v56  ;;  %v1552_v35 = vpop.f32.mrf.mxu3  ;;  %2457 = vmatpush.bf16.msrb.mxu3 %v1741_v15  ;;  %v1570_v63 = vmax.f32 %v1413_v37, 0.0  ;;  %v1663_v15 = vmax.f32 %v1361_v29, 0.0  ;;  %v1813_v37 = vld [vmem:[%s14341_s12 + $0x80] sm:$0xff] }
 0x183   : > { %1332 = vmatmul.bf16.gmra.mxu0 %v8149_v40  ;;  %v14771_v29 = vld [vmem:[#allocation26_spill] sm:$0xff]  ;;  %v1553_v46 = vadd.f32 %v1552_v35, %v8730_v39  ;;  %v1653_v32 = vmax.f32 %v1349_v62, 0.0 }
 0x184   : > { %1501 = vmatmul.bf16.gmra.mxu1 %v8149_v40  ;;  %v1410_v40 = vadd.f32 %v14758_v43, %v14757_v36  ;;  %v1661_v36 = vmax.f32 %v1359_v23, 0.0  ;;  %v1403_v43 = vadd.f32 %v14766_v20, %v9147_v45  ;;  %3502 = vmatpush.bf16.msra.mxu0 %v1694_v10  ;;  %v1566_v23 = vmax.f32 %v1408_v5, 0.0 }
 0x185   : > { %v1405_v45 = vadd.f32 %v14771_v29, %v9155_v24 }
 0x186   : > { %1917 = vperm.xlu1 %8411, %v1811_v33   ;;  %v14764_v33 = vld [vmem:[#allocation45_spill] sm:$0xff]  ;;  %v1568_v2 = vmax.f32 %v1410_v40, 0.0  ;;  %2458 = vmatpush.bf16.msrb.mxu3 %v1739_v21  ;;  %v1657_v40 = vmax.f32 %v1354_v16, 0.0  ;;  %v1562_v56 = vmax.f32 %v1403_v43, 0.0  ;;  %v8150_v21 = vld [vmem:[%s14330_s1 + $0xb0] sm:$0xff] }
 0x187   : > { %1922 = vperm.xlu2 %8412, %v1812_v38   ;;  %1912 = vperm.xlu0 %8410, %v1810_v22   ;;  %v1356_v50 = vadd.f32 %v14764_v33, %v14763_v4  ;;  %v1572_v22 = vmax.f32 %v1415_v13, 0.0  ;;  %v1351_v33 = vadd.f32 %v14770_v52, %v14769_v28  ;;  %v1815_v13 = vld [vmem:[%s14341_s12 + $0x90] sm:$0xff]  ;;  %v1737_v52 = vpack.c.bf16 %v1663_v15, %v1661_v36 }
 0x188   : > { %v9449_v57 = vpop.f32.mrf.mxu0  ;;  %v1564_v10 = vmax.f32 %v1405_v45, 0.0  ;;  %v1682_v36 = vmax.f32 %v1553_v46, 0.0  ;;  %v1535_v45 = vadd.f32 %v9284_v44, %v8838_v17 }
 0x189   : > { %v9451_v38 = vpop.f32.mrf.mxu1  ;;  %v1659_v20 = vmax.f32 %v1356_v50, 0.0  ;;  %v1655_v24 = vmax.f32 %v1351_v33, 0.0  ;;  %v1690_v50 = vpack.c.bf16 %v1568_v2, %v1566_v23  ;;  %v1538_v23 = vadd.f32 %v9304_v7, %v8755_v49  ;;  %v4655_v49 = vld [vmem:[%s14337_s8 + $0x70] sm:$0xff] }
 0x18a   : > { %14765 = vst [vmem:[#allocation40_spill] sm:$0xff] %v9451_v38  ;;  %v1554_v1 = vpop.f32.mrf.mxu3  ;;  %v1692_v38 = vpack.c.bf16 %v1572_v22, %v1570_v63  ;;  %2459 = vmatpush.bf16.msrb.mxu3 %v1737_v52  ;;  %v1548_v22 = vadd.f32 %v9376_v14, %v8771_v55  ;;  %v1550_v63 = vadd.f32 %v9407_v34, %v8766_v53  ;;  %v1818_v55 = vld [vmem:[%s14341_s12 + $0xa8] sm:$0xff]  ;;  %v1816_v53 = vld [vmem:[%s14341_s12 + $0x98] sm:$0xff]  ;;  %v1668_v17 = vmax.f32 %v1535_v45, 0.0 }
 0x18b   : > { %v1555_v5 = vadd.f32 %v1554_v1, %v8751_v47  ;;  %v1735_v16 = vpack.c.bf16 %v1659_v20, %v1657_v40  ;;  %v1817_v47 = vld [vmem:[%s14341_s12 + $0xa0] sm:$0xff]  ;;  %v14772_v1 = vld [vmem:[#allocation19_spill] sm:$0xff]  ;;  %v1543_v14 = vadd.f32 %v9337_v59, %v8787_v61  ;;  %v1545_v34 = vadd.f32 %v9352_v58, %v8737_v42  ;;  %v8151_v52 = vld [vmem:[%s14330_s1 + $0xb8] sm:$0xff] }
 0x18c   : > { %3503 = vmatpush.bf16.msra.mxu0 %v1692_v38  ;;  %v1400_v38 = vadd.f32 %v14772_v1, %v9237_v60  ;;  %v1733_v60 = vpack.c.bf16 %v1655_v24, %v1653_v32  ;;  %v1678_v43 = vmax.f32 %v1548_v22, 0.0  ;;  %v1688_v33 = vpack.c.bf16 %v1564_v10, %v1562_v56  ;;  %v1820_v56 = vld [vmem:[%s14341_s12 + $0xb8] sm:$0xff]  ;;  %v4671_v24 = vld [vmem:[%s14337_s8 + $0xf0] sm:$0xff]  ;;  %v14777_v1 = vld [vmem:[#allocation31_spill] sm:$0xff] }
 0x18d   : > { %v1684_v15 = vmax.f32 %v1555_v5, 0.0  ;;  %v1540_v42 = vadd.f32 %v9319_v3, %v8825_v12  ;;  %v1674_v61 = vmax.f32 %v1543_v14, 0.0  ;;  %v1676_v59 = vmax.f32 %v1545_v34, 0.0  ;;  %v1819_v12 = vld [vmem:[%s14341_s12 + $0xb0] sm:$0xff]  ;;  %v14779_v34 = vld [vmem:[#allocation34_spill] sm:$0xff] }
 0x18e   : > { %1932 = vperm.xlu1 %8411, %v1814_v11   ;;  %v14773_v11 = vld [vmem:[#allocation15_spill] sm:$0xff]  ;;  %2460 = vmatpush.bf16.msrb.mxu3 %v1735_v16  ;;  %v1533_v3 = vadd.f32 %v9267_v31, %v8843_v19  ;;  %v1670_v40 = vmax.f32 %v1538_v23, 0.0  ;;  %v1530_v19 = vadd.f32 %v9231_v41, %v14755_v18  ;;  %v4672_v16 = vld [vmem:[%s14337_s8 + $0xf8] sm:$0xff] }
 0x18f   : > { %1937 = vperm.xlu2 %8412, %v1815_v13   ;;  %1927 = vperm.xlu0 %8410, %v1813_v37   ;;  %v1398_v2 = vadd.f32 %v14773_v11, %v9184_v6  ;;  %v1680_v6 = vmax.f32 %v1550_v63, 0.0  ;;  %v1748_v62 = vpack.c.bf16 %v1684_v15, %v1682_v36  ;;  %v1560_v13 = vmax.f32 %v1400_v38, 0.0  ;;  %v14774_v41 = vld [vmem:[#allocation51_spill] sm:$0xff]  ;;  %v14775_v18 = vld [vmem:[#allocation53_spill] sm:$0xff]  ;;  %v14776_v15 = vld [vmem:[#allocation46_spill] sm:$0xff] }
 0x190   : > { %v9475_v39 = vpop.f32.mrf.mxu0  ;;  %3504 = vmatpush.bf16.msra.mxu0 %v1690_v50  ;;  %v1672_v20 = vmax.f32 %v1540_v42, 0.0  ;;  %v1744_v46 = vpack.c.bf16 %v1676_v59, %v1674_v61  ;;  %v1666_v31 = vmax.f32 %v1533_v3, 0.0  ;;  %v1525_v50 = vadd.f32 %v14775_v18, %v14763_v4  ;;  %v14778_v11 = vld [vmem:[#allocation49_spill] sm:$0xff]  ;;  %v7486_v42 = vld [vmem:[%s14332_s3] sm:$0xf] }
 0x191   : > { %v9477_v35 = vpop.f32.mrf.mxu1  ;;  %v1558_v37 = vmax.f32 %v1398_v2, 0.0  ;;  %v1746_v29 = vpack.c.bf16 %v1680_v6, %v1678_v43  ;;  %v1664_v63 = vmax.f32 %v1530_v19, 0.0  ;;  %v1520_v2 = vadd.f32 %v14778_v11, %v14769_v28  ;;  %v14780_v43 = vld [vmem:[#allocation23_spill] sm:$0xff]  ;;  %v4653_v28 = vld [vmem:[%s14337_s8 + $0x60] sm:$0xff]  ;;  %v14783_v3 = vld [vmem:[#allocation37_spill] sm:$0xff] }
 0x192   : > { %2461 = vmatpush.bf16.msrb.mxu3 %v1733_v60  ;;  %v1742_v10 = vpack.c.bf16 %v1672_v20, %v1670_v40  ;;  %v1740_v36 = vpack.c.bf16 %v1668_v17, %v1666_v31  ;;  %v8209_v61 = vld [vmem:[%s14332_s3 + $0x4] sm:$0xf0]  ;;  %v1294_v45 = vadd.f32 %v9420_v30, %v14783_v3  ;;  %v4651_v17 = vld [vmem:[%s14337_s8 + $0x50] sm:$0xff]  ;;  %v4652_v30 = vld [vmem:[%s14337_s8 + $0x58] sm:$0xff] }
 0x193   : > { %1337 = vmatmul.bf16.gmra.mxu0 %v8150_v21  ;;  %v1686_v7 = vpack.c.bf16 %v1560_v13, %v1558_v37  ;;  %v14789_v11 = vld [vmem:[#allocation56_spill] sm:$0xff] }
 0x194   : > { %1506 = vmatmul.bf16.gmra.mxu1 %v8150_v21  ;;  %3505 = vmatpush.bf16.msra.mxu0 %v1688_v33  ;;  %v1528_v21 = vadd.f32 %v9208_v9, %v14753_v25  ;;  %v4656_v9 = vld [vmem:[%s14337_s8 + $0x78] sm:$0xff]  ;;  %v1523_v25 = vadd.f32 %v14774_v41, %v14761_v8  ;;  %v14781_v33 = vld [vmem:[#allocation28_spill] sm:$0xff]  ;;  %v1609_v41 = vmax.f32 %v1294_v45, 0.0 }
 0x195   : > { %v1299_v13 = vadd.f32 %v9475_v39, %v14781_v33 }
 0x196   : > { %1947 = vperm.xlu1 %8411, %v1817_v47   ;;  %2712 = vmatpush.bf16.msra.mxu3 %v1748_v62  ;;  %v1662_v22 = vmax.f32 %v1528_v21, 0.0  ;;  %v1518_v47 = vadd.f32 %v14776_v15, %v14767_v51  ;;  %v1658_v8 = vmax.f32 %v1523_v25, 0.0  ;;  %v4654_v51 = vld [vmem:[%s14337_s8 + $0x68] sm:$0xff]  ;;  %v4669_v62 = vld [vmem:[%s14337_s8 + $0xe0] sm:$0xff] }
 0x197   : > { %1952 = vperm.xlu2 %8412, %v1818_v55   ;;  %1942 = vperm.xlu0 %8410, %v1816_v53   ;;  %v1660_v55 = vmax.f32 %v1525_v50, 0.0  ;;  %v1613_v40 = vmax.f32 %v1299_v13, 0.0  ;;  %v14784_v21 = vld [vmem:[#allocation35_spill] sm:$0xff]  ;;  %v14795_v13 = vld [vmem:[#allocation52_spill] sm:$0xff] }
 0x198   : > { %v1300_v32 = vpop.f32.mrf.mxu0  ;;  %3506 = vmatpush.bf16.msra.mxu0 %v1686_v7  ;;  %v1738_v4 = vpack.c.bf16 %v1664_v63, %v1662_v22  ;;  %v1654_v59 = vmax.f32 %v1518_v47, 0.0  ;;  %v9569_v7 = vor.u32 %v8209_v61, %v7486_v42  ;;  %v1291_v19 = vadd.f32 %v9386_v27, %v14784_v21 }
 0x199   : > { %v9504_v58 = vpop.f32.mrf.mxu1  ;;  %v1301_v60 = vadd.f32 %v1300_v32, %v14779_v34  ;;  %v1656_v32 = vmax.f32 %v1520_v2, 0.0  ;;  %v1455_v27 = vadd.f32 %v9340_v54, %v9103_v0  ;;  %v14788_v0 = vld [vmem:[#allocation16_spill] sm:$0xff]  ;;  %v14790_v2 = vld [vmem:[#allocation61_spill] sm:$0xff] }
 0x19a   : > { %2713 = vmatpush.bf16.msra.mxu3 %v1746_v29  ;;  %v1736_v29 = vpack.c.bf16 %v1660_v55, %v1658_v8  ;;  %v1607_v25 = vmax.f32 %v1291_v19, 0.0  ;;  %v1443_v8 = vadd.f32 %v14790_v2, %v14789_v11  ;;  %v14791_v55 = vld [vmem:[#allocation54_spill] sm:$0xff]  ;;  %v14805_v2 = vld [vmem:[#allocation63_spill] sm:$0xff] }
 0x19b   : > { %v1604_v22 = vmax.f32 %v1455_v27, 0.0  ;;  %v14801_v27 = vld [vmem:[#allocation59_spill] sm:$0xff] }
 0x19e   : > { %1962 = vperm.xlu1 %8411, %v1820_v56   ;;  %2714 = vmatpush.bf16.msra.mxu3 %v1744_v46  ;;  %v14782_v56 = vld [vmem:[#allocation36_spill] sm:$0xff] }
 0x19f   : > { %4745 = vperm.xlu2 %8412, %v4655_v49   ;;  %1957 = vperm.xlu0 %8410, %v1819_v12   ;;  %v1296_v49 = vadd.f32 %v9449_v57, %v14782_v56  ;;  %v1615_v12 = vmax.f32 %v1301_v60, 0.0  ;;  %v14793_v60 = vld [vmem:[#allocation47_spill] sm:$0xff] }
 0x1a0   : > { %v1303_v44 = vpop.f32.mrf.mxu0 }
 0x1a1   : > { %v9526_v5 = vpop.f32.mrf.mxu1  ;;  %v1304_v38 = vadd.f32 %v1303_v44, %v14777_v1  ;;  %v1611_v57 = vmax.f32 %v1296_v49, 0.0  ;;  %v1713_v31 = vpack.c.bf16 %v1615_v12, %v1613_v40  ;;  %v4670_v44 = vld [vmem:[%s14337_s8 + $0xe8] sm:$0xff] }
 0x1a2   : > { %2715 = vmatpush.bf16.msra.mxu3 %v1742_v10  ;;  %v1453_v10 = vadd.f32 %v9326_v26, %v9030_v48  ;;  %v1473_v19 = vadd.f32 %v9526_v5, %v14777_v1  ;;  %v4650_v5 = vld [vmem:[%s14337_s8 + $0x48] sm:$0xff]  ;;  %v14798_v1 = vld [vmem:[#allocation57_spill] sm:$0xff] }
 0x1a3   : > { %1342 = vmatmul.bf16.gmra.mxu0 %v8151_v52  ;;  %v1617_v37 = vmax.f32 %v1304_v38, 0.0  ;;  %v1711_v18 = vpack.c.bf16 %v1611_v57, %v1609_v41  ;;  %v4668_v38 = vld [vmem:[%s14337_s8 + $0xd8] sm:$0xff] }
 0x1a4   : > { %1511 = vmatmul.bf16.gmra.mxu1 %v8151_v52  ;;  %v1734_v52 = vpack.c.bf16 %v1656_v32, %v1654_v59  ;;  %v1602_v50 = vmax.f32 %v1453_v10, 0.0  ;;  %v7494_v59 = vld [vmem:[%s14332_s3 + $0x10] sm:$0xf]  ;;  %v8211_v32 = vld [vmem:[%s14332_s3 + $0x14] sm:$0xf0]  ;;  %v14799_v10 = vld [vmem:[#allocation55_spill] sm:$0xff] }
 0x1a5   : > { %v9624_v12 = vor.u32 %v8211_v32, %v7494_v59  ;;  %v7502_v59 = vld [vmem:[%s14332_s3 + $0x20] sm:$0xf]  ;;  %v8213_v32 = vld [vmem:[%s14332_s3 + $0x24] sm:$0xf0] }
 0x1a6   : > { %4825 = vperm.xlu1 %8411, %v4671_v24   ;;  %2716 = vmatpush.bf16.msra.mxu3 %v1740_v36  ;;  %v14785_v24 = vld [vmem:[#allocation38_spill] sm:$0xff]  ;;  %v14787_v36 = vld [vmem:[#allocation24_spill] sm:$0xff] }
 0x1a7   : > { %4830 = vperm.xlu2 %8412, %v4672_v16   ;;  %4750 = vperm.xlu0 %8410, %v4656_v9   ;;  %v14786_v16 = vld [vmem:[#allocation68_spill] sm:$0xff] }
 0x1a8   : > { %v1305_v53 = vpop.f32.mrf.mxu0  ;;  %v1289_v9 = vadd.f32 %v14786_v16, %v14785_v24 }
 0x1a9   : > { %v9546_v14 = vpop.f32.mrf.mxu1  ;;  %v1306_v6 = vadd.f32 %v1305_v53, %v14780_v43  ;;  %v14792_v53 = vld [vmem:[#allocation62_spill] sm:$0xff] }
 0x1aa   : > { %2717 = vmatpush.bf16.msra.mxu3 %v1738_v4  ;;  %v1605_v63 = vmax.f32 %v1289_v9, 0.0  ;;  %v1445_v4 = vadd.f32 %v14792_v53, %v14791_v55  ;;  %v1475_v57 = vadd.f32 %v9546_v14, %v14780_v43  ;;  %v1438_v14 = vadd.f32 %v14799_v10, %v14798_v1  ;;  %v14800_v43 = vld [vmem:[#allocation58_spill] sm:$0xff]  ;;  %v4646_v10 = vld [vmem:[%s14337_s8 + $0x28] sm:$0xff] }
 0x1ab   : > { %v1619_v23 = vmax.f32 %v1306_v6, 0.0  ;;  %v14794_v6 = vld [vmem:[#allocation64_spill] sm:$0xff]  ;;  %v1440_v16 = vadd.f32 %v14801_v27, %v14800_v43  ;;  %v14802_v9 = vld [vmem:[#allocation66_spill] sm:$0xff]  ;;  %v14813_v27 = vld [vmem:[#allocation9_spill] sm:$0xff] }
 0x1ac   : > { %v1709_v47 = vpack.c.bf16 %v1607_v25, %v1605_v63  ;;  %v1596_v45 = vmax.f32 %v1445_v4, 0.0  ;;  %v1620_v63 = vmax.f32 %v1475_v57, 0.0  ;;  %v9698_v57 = vor.u32 %v8213_v32, %v7502_v59  ;;  %v4645_v1 = vld [vmem:[%s14337_s8 + $0x20] sm:$0xff] }
 0x1ad   : > { %v1715_v39 = vpack.c.bf16 %v1619_v23, %v1617_v37  ;;  %v14796_v37 = vld [vmem:[#allocation65_spill] sm:$0xff] }
 0x1ae   : > { %4740 = vperm.xlu1 %8411, %v4654_v51   ;;  %2718 = vmatpush.bf16.msra.mxu3 %v1736_v29  ;;  %v1448_v51 = vadd.f32 %v14794_v6, %v14793_v60  ;;  %v1450_v23 = vadd.f32 %v14796_v37, %v14795_v13  ;;  %v9620_v29 = vpack.c.bf16 %v1604_v22, %v1602_v50  ;;  %v1618_v22 = vmax.f32 %v1473_v19, 0.0  ;;  %v14807_v60 = vld [vmem:[#allocation20_spill] sm:$0xff]  ;;  %v14809_v13 = vld [vmem:[#allocation69_spill] sm:$0xff] }
 0x1af   : > { %4815 = vperm.xlu2 %8412, %v4669_v62   ;;  %4735 = vperm.xlu0 %8410, %v4653_v28   ;;  %v4649_v62 = vld [vmem:[%s14337_s8 + $0x40] sm:$0xff]  ;;  %v4667_v28 = vld [vmem:[%s14337_s8 + $0xd0] sm:$0xff]  ;;  %v1470_v50 = vadd.f32 %v9504_v58, %v14779_v34  ;;  %v7488_v58 = vld [vmem:[%s14332_s3 + $0x8] sm:$0xf0]  ;;  %v1458_v37 = vadd.f32 %v14809_v13, %v14785_v24  ;;  %14812 = vst [vmem:[#allocation17_spill] sm:$0xff] %v9698_v57 }
 0x1b0   : > { %3410 = vmatpush.bf16.msrb.mxu1 %v1715_v39  ;;  %v1308_v20 = vpop.f32.mrf.mxu0  ;;  %v1594_v39 = vmax.f32 %v1443_v8, 0.0  ;;  %v1598_v40 = vmax.f32 %v1448_v51, 0.0  ;;  %v14806_v34 = vld [vmem:[#allocation40_spill] sm:$0xff]  ;;  %v1716_v53 = vpack.c.bf16 %v1620_v63, %v1618_v22  ;;  %v4648_v51 = vld [vmem:[%s14337_s8 + $0x38] sm:$0xff]  ;;  %v14814_v22 = vld [vmem:[#allocation18_spill] sm:$0xff] }
 0x1b1   : > { %v9573_v46 = vpop.f32.mrf.mxu1  ;;  %v1309_v15 = vadd.f32 %v1308_v20, %v14787_v36  ;;  %v1600_v20 = vmax.f32 %v1450_v23, 0.0  ;;  %v1616_v55 = vmax.f32 %v1470_v50, 0.0 }
 0x1b2   : > { %2719 = vmatpush.bf16.msra.mxu3 %v1734_v52  ;;  %v14797_v52 = vld [vmem:[#allocation67_spill] sm:$0xff]  ;;  %v9650_v25 = vpack.c.bf16 %v1596_v45, %v1594_v39  ;;  %v14811_v45 = vld [vmem:[#allocation70_spill] sm:$0xff] }
 0x1b3   : > { %3329 = vmatmul.bf16.vlgmr.msrb.gmra.mxu0 %v9569_v7  ;;  %v1621_v42 = vmax.f32 %v1309_v15, 0.0  ;;  %v9648_v41 = vpack.c.bf16 %v1600_v20, %v1598_v40  ;;  %v1590_v15 = vmax.f32 %v1438_v14, 0.0  ;;  %v1460_v40 = vadd.f32 %v14811_v45, %v14784_v21  ;;  %v4664_v14 = vld [vmem:[%s14337_s8 + $0xb8] sm:$0xff] }
 0x1b4   : > { %3411 = vmatpush.bf16.msrb.mxu1 %v1713_v31 }
 0x1b6   : > { %4725 = vperm.xlu1 %8411, %v4651_v17  }
 0x1b7   : > { %4730 = vperm.xlu2 %8412, %v4652_v30   ;;  %4820 = vperm.xlu0 %8410, %v4670_v44   ;;  %v4665_v30 = vld [vmem:[%s14337_s8 + $0xc0] sm:$0xff]  ;;  %v4666_v44 = vld [vmem:[%s14337_s8 + $0xc8] sm:$0xff] }
 0x1b8   : > { %3412 = vmatpush.bf16.msrb.mxu1 %v1711_v18  ;;  %v1310_v48 = vpop.f32.mrf.mxu0  ;;  %v1468_v18 = vadd.f32 %v9477_v35, %v14781_v33  ;;  %v8208_v35 = vld [vmem:[%s14332_s3 + $0x4] sm:$0xf]  ;;  %v1465_v33 = vadd.f32 %v14806_v34, %v14782_v56  ;;  %v4647_v56 = vld [vmem:[%s14337_s8 + $0x30] sm:$0xff]  ;;  %v8215_v34 = vld [vmem:[%s14332_s3 + $0x34] sm:$0xf0] }
 0x1b9   : > { %v9594_v26 = vpop.f32.mrf.mxu1  ;;  %v1311_v54 = vadd.f32 %v1310_v48, %v14788_v0  ;;  %v1592_v48 = vmax.f32 %v1440_v16, 0.0 }
 0x1ba   : > { %v1614_v8 = vmax.f32 %v1468_v18, 0.0  ;;  %v7496_v18 = vld [vmem:[%s14332_s3 + $0x18] sm:$0xf0] }
 0x1bb   : > { %v1623_v61 = vmax.f32 %v1311_v54, 0.0  ;;  %v14803_v54 = vld [vmem:[#allocation71_spill] sm:$0xff]  ;;  %v9691_v39 = vpack.c.bf16 %v1592_v48, %v1590_v15 }
 0x1bc   : > { %3413 = vmatpush.bf16.msrb.mxu1 %v1709_v47  ;;  %v1463_v47 = vadd.f32 %v14803_v54, %v14783_v3  ;;  %v1714_v24 = vpack.c.bf16 %v1616_v55, %v1614_v8  ;;  %v4662_v15 = vld [vmem:[%s14337_s8 + $0xa8] sm:$0xff]  ;;  %v4643_v54 = vld [vmem:[%s14337_s8 + $0x10] sm:$0xff] }
 0x1bd   : > { %v9622_v49 = vpack.c.bf16 %v1623_v61, %v1621_v42  ;;  %v14810_v61 = vld [vmem:[#allocation60_spill] sm:$0xff] }
 0x1be   : > { %4810 = vperm.xlu1 %8411, %v4668_v38   ;;  %v14804_v38 = vld [vmem:[#allocation21_spill] sm:$0xff]  ;;  %v1610_v20 = vmax.f32 %v1463_v47, 0.0  ;;  %v4661_v47 = vld [vmem:[%s14337_s8 + $0xa0] sm:$0xff] }
 0x1bf   : > { %4715 = vperm.xlu2 %8412, %v4649_v62   ;;  %4805 = vperm.xlu0 %8410, %v4667_v28   ;;  %v4663_v62 = vld [vmem:[%s14337_s8 + $0xb0] sm:$0xff]  ;;  %v9680_v28 = vor.u32 %v8208_v35, %v7488_v58 }
 0x1c0   : > { %3414 = vmatpush.bf16.msrb.mxu1 %v14797_v52  ;;  %v1313_v31 = vpop.f32.mrf.mxu0  ;;  %v1612_v52 = vmax.f32 %v1465_v33, 0.0  ;;  %v7510_v58 = vld [vmem:[%s14332_s3 + $0x30] sm:$0xf] }
 0x1c1   : > { %v9631_v17 = vpop.f32.mrf.mxu1  ;;  %v1314_v11 = vadd.f32 %v1313_v31, %v14804_v38  ;;  %14808 = vst [vmem:[#allocation33_spill] sm:$0xff] %v9680_v28  ;;  %v1606_v31 = vmax.f32 %v1458_v37, 0.0  ;;  %v9743_v8 = vor.u32 %v8215_v34, %v7510_v58  ;;  %v14818_v37 = vld [vmem:[#allocation7_spill] sm:$0xff]  ;;  %v9842_v34 = vpop.permute.xlu1 %3073 }
 0x1c2   : > { %v1712_v21 = vpack.c.bf16 %v1612_v52, %v1610_v20  ;;  %14826 = vst [vmem:[#allocation25_spill] sm:$0xff] %v9842_v34 }
 0x1c3   : > { %3334 = vmatmul.bf16.gmra.mxu0 %v9624_v12  ;;  %v1625_v23 = vmax.f32 %v1314_v11, 0.0  ;;  %14816 = vst [vmem:[#allocation12_spill] sm:$0xff] %v9743_v8 }
 0x1c4   : > { %3415 = vmatpush.bf16.msrb.mxu1 %v14802_v9  ;;  %v8210_v9 = vld [vmem:[%s14332_s3 + $0x14] sm:$0xf] }
 0x1c5   : > { %v9731_v11 = vor.u32 %v8210_v9, %v7496_v18 }
 0x1c6   : > { %4795 = vperm.xlu1 %8411, %v4665_v30   ;;  %v1608_v30 = vmax.f32 %v1460_v40, 0.0  ;;  %v8217_v40 = vld [vmem:[%s14332_s3 + $0x44] sm:$0xf0] }
 0x1c7   : > { %4800 = vperm.xlu2 %8412, %v4666_v44   ;;  %4720 = vperm.xlu0 %8410, %v4650_v5   ;;  %14815 = vst [vmem:[#allocation48_spill] sm:$0xff] %v9731_v11 }
 0x1c8   : > { %3416 = vmatpush.bf16.msrb.mxu1 %v14805_v2  ;;  %v1315_v4 = vpop.f32.mrf.mxu0  ;;  %v1710_v43 = vpack.c.bf16 %v1608_v30, %v1606_v31  ;;  %v9792_v31 = vpop.permute.xlu2 %3078 }
 0x1c9   : > { %v9668_v3 = vpop.f32.mrf.mxu1  ;;  %v1316_v6 = vadd.f32 %v1315_v4, %v14807_v60  ;;  %v4644_v4 = vld [vmem:[%s14337_s8 + $0x18] sm:$0xff]  ;;  %14821 = vst [vmem:[#allocation32_spill] sm:$0xff] %v9792_v31 }
 0x1cb   : > { %v1627_v42 = vmax.f32 %v1316_v6, 0.0 }
 0x1cc   : > { %3417 = vmatpush.bf16.msrb.mxu1 %v14810_v61  ;;  %v4641_v61 = vld [vmem:[%s14337_s8] sm:$0xff] }
 0x1cd   : > { %v9695_v19 = vpack.c.bf16 %v1627_v42, %v1625_v23  ;;  %v4657_v42 = vld [vmem:[%s14337_s8 + $0x80] sm:$0xff] }
 0x1ce   : > { %4710 = vperm.xlu1 %8411, %v4648_v51  }
 0x1cf   : > { %4785 = vperm.xlu2 %8412, %v4663_v62   ;;  %4705 = vperm.xlu0 %8410, %v4647_v56   ;;  %v8212_v62 = vld [vmem:[%s14332_s3 + $0x24] sm:$0xf]  ;;  %v7504_v56 = vld [vmem:[%s14332_s3 + $0x28] sm:$0xf0] }
 0x1d0   : > { %3588 = vmatpush.bf16.msra.mxu1 %v1716_v53  ;;  %v1318_v44 = vpop.f32.mrf.mxu0  ;;  %v4659_v53 = vld [vmem:[%s14337_s8 + $0x90] sm:$0xff]  ;;  %v9777_v59 = vor.u32 %v8212_v62, %v7504_v56  ;;  %v9818_v18 = vpop.permute.xlu2 %3063  ;;  %v8216_v56 = vld [vmem:[%s14332_s3 + $0x44] sm:$0xf] }
 0x1d1   : > { %3418 = vmatmul.bf16.vlgmr.msrb.gmra.mxu1 %v9680_v28  ;;  %v9700_v5 = vpop.f32.mrf.mxu1  ;;  %v1319_v16 = vadd.f32 %v1318_v44, %v14813_v27  ;;  %v1821_v44 = vld [vmem:[%s14341_s12 + $0xc0] sm:$0xff]  ;;  %14823 = vst [vmem:[#allocation30_spill] sm:$0xff] %v9818_v18 }
 0x1d2   : > { %14819 = vst [vmem:[#allocation50_spill] sm:$0xff] %v9777_v59 }
 0x1d3   : > { %3339 = vmatmul.bf16.gmra.mxu0 %v9698_v57  ;;  %v1629_v2 = vmax.f32 %v1319_v16, 0.0  ;;  %v14848_v57 = vld [vmem:[#allocation8_spill] sm:$0xff] }
 0x1d4   : > { %3589 = vmatpush.bf16.msra.mxu1 %v1714_v24 }
 0x1d6   : > { %4695 = vperm.xlu1 %8411, %v4645_v1   ;;  %v4658_v1 = vld [vmem:[%s14337_s8 + $0x88] sm:$0xff] }
 0x1d7   : > { %4700 = vperm.xlu2 %8412, %v4646_v10   ;;  %4790 = vperm.xlu0 %8410, %v4664_v14   ;;  %v9806_v10 = vpop.permute.xlu0 %3153  ;;  %v8214_v14 = vld [vmem:[%s14332_s3 + $0x34] sm:$0xf] }
 0x1d8   : > { %3590 = vmatpush.bf16.msra.mxu1 %v1712_v21  ;;  %v1320_v50 = vpop.f32.mrf.mxu0  ;;  %v1822_v21 = vld [vmem:[%s14341_s12 + $0xc8] sm:$0xff]  ;;  %14822 = vst [vmem:[#allocation43_spill] sm:$0xff] %v9806_v10  ;;  %v9858_v62 = vpop.permute.xlu2 %3148 }
 0x1d9   : > { %v1321_v63 = vadd.f32 %v1320_v50, %v14814_v22  ;;  %v9723_v48 = vpop.f32.mrf.mxu1  ;;  %v1824_v50 = vld [vmem:[%s14341_s12 + $0xd8] sm:$0xff]  ;;  %14828 = vst [vmem:[#allocation22_spill] sm:$0xff] %v9858_v62 }
 0x1db   : > { %v1631_v35 = vmax.f32 %v1321_v63, 0.0  ;;  %v1825_v63 = vld [vmem:[%s14341_s12 + $0xe0] sm:$0xff] }
 0x1dc   : > { %3591 = vmatpush.bf16.msra.mxu1 %v1710_v43  ;;  %v7512_v43 = vld [vmem:[%s14332_s3 + $0x38] sm:$0xf0] }
 0x1dd   : > { %v9740_v33 = vpack.c.bf16 %v1631_v35, %v1629_v2  ;;  %v8219_v2 = vld [vmem:[%s14332_s3 + $0x54] sm:$0xf0] }
 0x1de   : > { %4780 = vperm.xlu1 %8411, %v4662_v15   ;;  %v1823_v15 = vld [vmem:[%s14341_s12 + $0xd0] sm:$0xff] }
 0x1df   : > { %4685 = vperm.xlu2 %8412, %v4643_v54   ;;  %4775 = vperm.xlu0 %8410, %v4661_v47   ;;  %v9829_v54 = vor.u32 %v8214_v14, %v7512_v43  ;;  %v7526_v47 = vld [vmem:[%s14332_s3 + $0x50] sm:$0xf] }
 0x1e0   : > { %3592 = vmatpush.bf16.msra.mxu1 %v9620_v29  ;;  %v1323_v55 = vpop.f32.mrf.mxu0  ;;  %v4660_v29 = vld [vmem:[%s14337_s8 + $0x98] sm:$0xff]  ;;  %v9838_v35 = vor.u32 %v8219_v2, %v7526_v47 }
 0x1e1   : > { %3423 = vmatmul.bf16.gmra.mxu1 %v9731_v11  ;;  %v9756_v6 = vpop.f32.mrf.mxu1  ;;  %14824 = vst [vmem:[#allocation14_spill] sm:$0xff] %v9829_v54  ;;  %v8225_v11 = vld [vmem:[%s14332_s3 + $0x84] sm:$0xf0] }
 0x1e2   : > { %14825 = vst [vmem:[#allocation44_spill] sm:$0xff] %v9838_v35 }
 0x1e3   : > { %3344 = vmatmul.bf16.gmra.mxu0 %v9743_v8 }
 0x1e4   : > { %3593 = vmatpush.bf16.msra.mxu1 %v9648_v41  ;;  %v14817_v41 = vld [vmem:[#allocation13_spill] sm:$0xff] }
 0x1e5   : > { %v1324_v51 = vadd.f32 %v1323_v55, %v14817_v41  ;;  %v9844_v55 = vpop.permute.xlu0 %3068 }
 0x1e6   : > { %4765 = vperm.xlu1 %8411, %v4659_v53   ;;  %14827 = vst [vmem:[#allocation45_spill] sm:$0xff] %v9844_v55  ;;  %v1827_v53 = vld [vmem:[%s14341_s12 + $0xf0] sm:$0xff] }
 0x1e7   : > { %4770 = vperm.xlu2 %8412, %v4660_v29   ;;  %4690 = vperm.xlu0 %8410, %v4644_v4   ;;  %v1633_v32 = vmax.f32 %v1324_v51, 0.0  ;;  %v1828_v4 = vld [vmem:[%s14341_s12 + $0xf8] sm:$0xff]  ;;  %v1826_v51 = vld [vmem:[%s14341_s12 + $0xe8] sm:$0xff] }
 0x1e8   : > { %3594 = vmatpush.bf16.msra.mxu1 %v9650_v25  ;;  %v1325_v13 = vpop.f32.mrf.mxu0  ;;  %v4642_v25 = vld [vmem:[%s14337_s8 + $0x8] sm:$0xff] }
 0x1e9   : > { %v1326_v23 = vadd.f32 %v1325_v13, %v14818_v37  ;;  %v9787_v52 = vpop.f32.mrf.mxu1  ;;  %v7520_v13 = vld [vmem:[%s14332_s3 + $0x48] sm:$0xf0] }
 0x1eb   : > { %v1635_v45 = vmax.f32 %v1326_v23, 0.0 }
 0x1ec   : > { %3595 = vmatpush.bf16.msra.mxu1 %v9691_v39  ;;  %v7518_v39 = vld [vmem:[%s14332_s3 + $0x40] sm:$0xf] }
 0x1ed   : > { %v9785_v20 = vpack.c.bf16 %v1635_v45, %v1633_v32  ;;  %v9790_v24 = vor.u32 %v8217_v40, %v7518_v39  ;;  %v9877_v32 = vor.u32 %v8216_v56, %v7520_v13  ;;  %v9879_v45 = vpop.permute.xlu1 %3158  ;;  %v9881_v39 = vpop.permute.xlu0 %3053  ;;  %v7534_v40 = vld [vmem:[%s14332_s3 + $0x60] sm:$0xf]  ;;  %v7528_v56 = vld [vmem:[%s14332_s3 + $0x58] sm:$0xf0] }
 0x1ee   : > { %4680 = vperm.xlu1 %8411, %v4642_v25   ;;  %v1830_v25 = vld [vmem:[%s14341_s12 + $0x108] sm:$0xff]  ;;  %14830 = vst [vmem:[#allocation39_spill] sm:$0xff] %v9879_v45  ;;  %v8220_v45 = vld [vmem:[%s14332_s3 + $0x64] sm:$0xf] }
 0x1ef   : > { %4755 = vperm.xlu2 %8412, %v4657_v42   ;;  %4675 = vperm.xlu0 %8410, %v4641_v61   ;;  %14820 = vst [vmem:[#allocation42_spill] sm:$0xff] %v9790_v24  ;;  %v1831_v42 = vld [vmem:[%s14341_s12 + $0x110] sm:$0xff]  ;;  %v1829_v61 = vld [vmem:[%s14341_s12 + $0x100] sm:$0xff] }
 0x1f0   : > { %v9794_v30 = vpop.f32.mrf.mxu0  ;;  %14829 = vst [vmem:[#allocation29_spill] sm:$0xff] %v9877_v32 }
 0x1f1   : > { %3428 = vmatmul.bf16.gmra.mxu1 %v9777_v59  ;;  %v9814_v16 = vpop.f32.mrf.mxu1  ;;  %14831 = vst [vmem:[#allocation27_spill] sm:$0xff] %v9881_v39  ;;  %v14851_v39 = vld [vmem:[#allocation10_spill] sm:$0xff] }
 0x1f3   : > { %3349 = vmatmul.bf16.gmra.mxu0 %v9790_v24 }
 0x1f5   : > { %v9906_v47 = vpop.permute.xlu1 %3143  ;;  %v9908_v2 = vpop.permute.xlu0 %3138 }
 0x1f6   : > { %1967 = vperm.xlu1 %8411, %v1821_v44   ;;  %v8221_v44 = vld [vmem:[%s14332_s3 + $0x64] sm:$0xf0]  ;;  %14834 = vst [vmem:[#allocation19_spill] sm:$0xff] %v9906_v47  ;;  %v1839_v47 = vld [vmem:[%s14341_s12 + $0x150] sm:$0xff] }
 0x1f7   : > { %1972 = vperm.xlu2 %8412, %v1822_v21   ;;  %4760 = vperm.xlu0 %8410, %v4658_v1   ;;  %v9891_v1 = vpop.permute.xlu2 %3133  ;;  %v9894_v14 = vor.u32 %v8221_v44, %v7534_v40  ;;  %14835 = vst [vmem:[#allocation15_spill] sm:$0xff] %v9908_v2  ;;  %v7542_v44 = vld [vmem:[%s14332_s3 + $0x70] sm:$0xf] }
 0x1f8   : > { %v9816_v9 = vpop.f32.mrf.mxu0  ;;  %14832 = vst [vmem:[#allocation41_spill] sm:$0xff] %v9891_v1 }
 0x1f9   : > { %v9849_v29 = vpop.f32.mrf.mxu1  ;;  %14833 = vst [vmem:[#allocation26_spill] sm:$0xff] %v9894_v14 }
 0x1fd   : > { %v9942_v1 = vpop.permute.xlu0 %3123 }
 0x1fe   : > { %1982 = vperm.xlu1 %8411, %v1824_v50   ;;  %v1833_v50 = vld [vmem:[%s14341_s12 + $0x120] sm:$0xff]  ;;  %14840 = vst [vmem:[#allocation49_spill] sm:$0xff] %v9942_v1 }
 0x1ff   : > { %1987 = vperm.xlu2 %8412, %v1825_v63   ;;  %1977 = vperm.xlu0 %8410, %v1823_v15   ;;  %v1834_v63 = vld [vmem:[%s14341_s12 + $0x128] sm:$0xff]  ;;  %v1832_v15 = vld [vmem:[%s14341_s12 + $0x118] sm:$0xff] }
 0x200   : > { %v9840_v58 = vpop.f32.mrf.mxu0 }
 0x201   : > { %3433 = vmatmul.bf16.gmra.mxu1 %v9829_v54  ;;  %v9889_v21 = vpop.f32.mrf.mxu1 }
 0x203   : > { %3354 = vmatmul.bf16.gmra.mxu0 %v9838_v35 }
 0x206   : > { %1997 = vperm.xlu1 %8411, %v1827_v53  }
 0x207   : > { %2002 = vperm.xlu2 %8412, %v1828_v4   ;;  %1992 = vperm.xlu0 %8410, %v1826_v51   ;;  %v9912_v4 = vpop.permute.xlu2 %3048  ;;  %v8218_v51 = vld [vmem:[%s14332_s3 + $0x54] sm:$0xf] }
 0x208   : > { %v9866_v23 = vpop.f32.mrf.mxu0  ;;  %14836 = vst [vmem:[#allocation51_spill] sm:$0xff] %v9912_v4  ;;  %v9929_v40 = vor.u32 %v8218_v51, %v7528_v56 }
 0x209   : > { %v9910_v53 = vpop.f32.mrf.mxu1  ;;  %v1336_v28 = vadd.f32 %v9866_v23, %v14848_v57 }
 0x20a   : > { %14837 = vst [vmem:[#allocation53_spill] sm:$0xff] %v9929_v40 }
 0x20e   : > { %2012 = vperm.xlu1 %8411, %v1830_v25   ;;  %v1836_v25 = vld [vmem:[%s14341_s12 + $0x138] sm:$0xff] }
 0x20f   : > { %2017 = vperm.xlu2 %8412, %v1831_v42   ;;  %2007 = vperm.xlu0 %8410, %v1829_v61   ;;  %v1837_v42 = vld [vmem:[%s14341_s12 + $0x140] sm:$0xff]  ;;  %v1835_v61 = vld [vmem:[%s14341_s12 + $0x130] sm:$0xff]  ;;  %v9946_v2 = vpop.permute.xlu2 %3033 }
 0x210   : > { %v1338_v43 = vpop.f32.mrf.mxu0 }
 0x211   : > { %3438 = vmatmul.bf16.gmra.mxu1 %v9877_v32  ;;  %v9944_v51 = vpop.f32.mrf.mxu1  ;;  %v14845_v32 = vld [vmem:[#allocation6_spill] sm:$0xff] }
 0x213   : > { %3359 = vmatmul.bf16.gmra.mxu0 %v9894_v14 }
 0x216   : > { %2027 = vperm.xlu1 %8411, %v1833_v50   ;;  %v8223_v50 = vld [vmem:[%s14332_s3 + $0x74] sm:$0xf0] }
 0x217   : > { %2032 = vperm.xlu2 %8412, %v1834_v63   ;;  %2022 = vperm.xlu0 %8410, %v1832_v15   ;;  %v9938_v63 = vor.u32 %v8223_v50, %v7542_v44  ;;  %v9940_v15 = vpop.permute.xlu1 %3058  ;;  %v7296_v44 = vld [vmem:[%s14340_s11 + $0x8] sm:$0xf0]  ;;  %v14841_v50 = vld [vmem:[#allocation5_spill] sm:$0xff] }
 0x218   : > { %v1340_v13 = vpop.f32.mrf.mxu0  ;;  %14839 = vst [vmem:[#allocation31_spill] sm:$0xff] %v9940_v15  ;;  %v1643_v15 = vmax.f32 %v1336_v28, 0.0  ;;  %v14853_v28 = vld [vmem:[#allocation11_spill] sm:$0xff] }
 0x219   : > { %14838 = vst [vmem:[#allocation46_spill] sm:$0xff] %v9938_v63  ;;  %v9983_v35 = vpop.f32.mrf.mxu1 }
 0x21e   : > { %2042 = vperm.xlu1 %8411, %v1836_v25   ;;  %v1840_v25 = vld [vmem:[%s14341_s12 + $0x158] sm:$0xff] }
 0x21f   : > { %2047 = vperm.xlu2 %8412, %v1837_v42   ;;  %2037 = vperm.xlu0 %8410, %v1835_v61   ;;  %v1838_v42 = vld [vmem:[%s14341_s12 + $0x148] sm:$0xff]  ;;  %v8160_v61 = vld [vmem:[%s14340_s11 + $0x4] sm:$0xf]  ;;  %v9973_v10 = vpop.permute.xlu1 %3043 }
 0x220   : > { %v1343_v56 = vpop.f32.mrf.mxu0  ;;  %14843 = vst [vmem:[#allocation23_spill] sm:$0xff] %v9973_v10 }
 0x221   : > { %3443 = vmatmul.bf16.gmra.mxu1 %v9929_v40  ;;  %v1344_v62 = vadd.f32 %v1343_v56, %v14841_v50  ;;  %v14844_v40 = vld [vmem:[#allocation3_spill] sm:$0xff] }
 0x222   : > { %v1341_v14 = vadd.f32 %v1340_v13, %v14844_v40  ;;  %v1842_v56 = vld [vmem:[%s14341_s12 + $0x168] sm:$0xff]  ;;  %v9993_v13 = vpop.permute.xlu2 %3118 }
 0x223   : > { %3364 = vmatmul.bf16.gmra.mxu0 %v9938_v63  ;;  %v9975_v63 = vpop.permute.xlu0 %3038  ;;  %14846 = vst [vmem:[#allocation28_spill] sm:$0xff] %v9993_v13  ;;  %v1649_v59 = vmax.f32 %v1344_v62, 0.0 }
 0x226   : > { %2057 = vperm.xlu1 %8411, %v1839_v47   ;;  %v7536_v47 = vld [vmem:[%s14332_s3 + $0x68] sm:$0xf0] }
 0x227   : > { %2062 = vperm.xlu2 %8412, %v1840_v25   ;;  %2052 = vperm.xlu0 %8410, %v1838_v42   ;;  %v9971_v25 = vor.u32 %v8160_v61, %v7296_v44  ;;  %v1843_v61 = vld [vmem:[%s14341_s12 + $0x170] sm:$0xff]  ;;  %v1841_v44 = vld [vmem:[%s14341_s12 + $0x160] sm:$0xff]  ;;  %v9991_v54 = vor.u32 %v8220_v45, %v7536_v47  ;;  %v1647_v45 = vmax.f32 %v1341_v14, 0.0 }
 0x228   : > { %v1345_v42 = vpop.f32.mrf.mxu0 }
 0x229   : > { %14842 = vst [vmem:[#allocation34_spill] sm:$0xff] %v9971_v25  ;;  %v1346_v1 = vadd.f32 %v1345_v42, %v14845_v32  ;;  %2462 = vmatmul.bf16.vlgmr.msrb.gmra.mxu3 %v9971_v25  ;;  %v14847_v42 = vld [vmem:[#allocation2_spill] sm:$0xff] }
 0x22a   : > { %v1339_v24 = vadd.f32 %v1338_v43, %v14847_v42  ;;  %v7550_v25 = vld [vmem:[%s14332_s3 + $0x80] sm:$0xf] }
 0x22b   : > { %v1651_v8 = vmax.f32 %v1346_v1, 0.0  ;;  %v10005_v62 = vor.u32 %v8225_v11, %v7550_v25  ;;  %v14850_v1 = vld [vmem:[#allocation4_spill] sm:$0xff]  ;;  %v5510_v11 = vld [vmem:[%s14339_s10 + $0x8] sm:$0xff]  ;;  %v1512_v25 = vpop.f32.mrf.mxu1 }
 0x22c   : > { %v1334_v43 = vadd.f32 %v9840_v58, %v14850_v1  ;;  %v1645_v13 = vmax.f32 %v1339_v24, 0.0  ;;  %v10023_v24 = vpop.permute.xlu1 %3128  ;;  %v10025_v58 = vpop.permute.xlu0 %3023 }
 0x22d   : > { %v1731_v47 = vpack.c.bf16 %v1651_v8, %v1649_v59  ;;  %14849 = vst [vmem:[#allocation36_spill] sm:$0xff] %v10005_v62  ;;  %v5509_v8 = vld [vmem:[%s14339_s10] sm:$0xff]  ;;  %v1844_v59 = vld [vmem:[%s14341_s12 + $0x178] sm:$0xff] }
 0x22e   : > { %2072 = vperm.xlu1 %8411, %v1842_v56   ;;  %v1331_v56 = vadd.f32 %v9816_v9, %v14851_v39  ;;  %v1729_v23 = vpack.c.bf16 %v1647_v45, %v1645_v13  ;;  %14852 = vst [vmem:[#allocation37_spill] sm:$0xff] %v10023_v24  ;;  %v1329_v9 = vadd.f32 %v9794_v30, %v14853_v28  ;;  %v1641_v14 = vmax.f32 %v1334_v43, 0.0  ;;  %v8162_v45 = vld [vmem:[%s14340_s11 + $0x14] sm:$0xf]  ;;  %v7544_v43 = vld [vmem:[%s14332_s3 + $0x78] sm:$0xf0] }
 0x22f   : > { %2077 = vperm.xlu2 %8412, %v1843_v61   ;;  %2067 = vperm.xlu0 %8410, %v1841_v44   ;;  %v10029_v61 = vpop.permute.xlu2 %3103  ;;  %v8222_v30 = vld [vmem:[%s14332_s3 + $0x74] sm:$0xf] }
 0x230   : > { %2325 = vmatpush.bf16.msrb.mxu2 %v1731_v47  ;;  %v10009_v4 = vpop.f32.mrf.mxu0  ;;  %14854 = vst [vmem:[#allocation35_spill] sm:$0xff] %v10029_v61  ;;  %v1639_v44 = vmax.f32 %v1331_v56, 0.0  ;;  %v1727_v13 = vpack.c.bf16 %v1643_v15, %v1641_v14  ;;  %v7304_v47 = vld [vmem:[%s14340_s11 + $0x18] sm:$0xf0]  ;;  %v1637_v24 = vmax.f32 %v1329_v9, 0.0  ;;  %v10057_v9 = vor.u32 %v8222_v30, %v7544_v43 }
 0x231   : > { %3448 = vmatmul.bf16.gmra.mxu1 %v9991_v54  ;;  %v10043_v56 = vor.u32 %v8162_v45, %v7304_v47  ;;  %v8227_v14 = vld [vmem:[%s14332_s3 + $0x94] sm:$0xf0] }
 0x232   : > { %14856 = vst [vmem:[#allocation68_spill] sm:$0xff] %v10057_v9 }
 0x233   : > { %3369 = vmatmul.bf16.gmra.mxu0 %v10005_v62  ;;  %14855 = vst [vmem:[#allocation38_spill] sm:$0xff] %v10043_v56  ;;  %v1514_v45 = vpop.f32.mrf.mxu1  ;;  %v5518_v62 = vld [vmem:[%s14339_s10 + $0x48] sm:$0xff] }
 0x234   : > { %2326 = vmatpush.bf16.msrb.mxu2 %v1729_v23  ;;  %v1725_v23 = vpack.c.bf16 %v1639_v44, %v1637_v24  ;;  %v7558_v24 = vld [vmem:[%s14332_s3 + $0x90] sm:$0xf]  ;;  %v10065_v44 = vpop.permute.xlu1 %3113 }
 0x235   : > { %14857 = vst [vmem:[#allocation24_spill] sm:$0xff] %v10065_v44  ;;  %v10070_v47 = vor.u32 %v8227_v14, %v7558_v24  ;;  %v7294_v14 = vld [vmem:[%s14340_s11] sm:$0xf] }
 0x236   : > { %5575 = vperm.xlu1 %8411, %v5509_v8   ;;  %v5512_v8 = vld [vmem:[%s14339_s10 + $0x18] sm:$0xff] }
 0x237   : > { %5580 = vperm.xlu2 %8412, %v5510_v11   ;;  %2082 = vperm.xlu0 %8410, %v1844_v59   ;;  %v5513_v11 = vld [vmem:[%s14339_s10 + $0x20] sm:$0xff]  ;;  %v5511_v59 = vld [vmem:[%s14339_s10 + $0x10] sm:$0xff]  ;;  %14859 = vst [vmem:[#allocation56_spill] sm:$0xff] %v10070_v47  ;;  %v10072_v30 = vpop.permute.xlu2 %3018 }
 0x238   : > { %2327 = vmatpush.bf16.msrb.mxu2 %v1727_v13  ;;  %v10045_v15 = vpop.f32.mrf.mxu0  ;;  %v10067_v13 = vpop.permute.xlu0 %3108 }
 0x239   : > { %2467 = vmatmul.bf16.gmra.mxu3 %v10043_v56  ;;  %14858 = vst [vmem:[#allocation16_spill] sm:$0xff] %v10067_v13 }
 0x23c   : > { %2328 = vmatpush.bf16.msrb.mxu2 %v1725_v23  ;;  %v1515_v23 = vadd.f32 %v1514_v45, %v14845_v32  ;;  %v1510_v32 = vadd.f32 %v9983_v35, %v14844_v40  ;;  %v8164_v45 = vld [vmem:[%s14340_s11 + $0x24] sm:$0xf]  ;;  %v8161_v35 = vld [vmem:[%s14340_s11 + $0x4] sm:$0xf0] }
 0x23d   : > { %v8224_v40 = vld [vmem:[%s14332_s3 + $0x84] sm:$0xf] }
 0x23e   : > { %5590 = vperm.xlu1 %8411, %v5512_v8   ;;  %v5515_v8 = vld [vmem:[%s14339_s10 + $0x30] sm:$0xff]  ;;  %v1652_v24 = vmax.f32 %v1515_v23, 0.0  ;;  %v7552_v23 = vld [vmem:[%s14332_s3 + $0x88] sm:$0xf0] }
 0x23f   : > { %5595 = vperm.xlu2 %8412, %v5513_v11   ;;  %5585 = vperm.xlu0 %8410, %v5511_v59   ;;  %v5516_v11 = vld [vmem:[%s14339_s10 + $0x38] sm:$0xff]  ;;  %v5514_v59 = vld [vmem:[%s14339_s10 + $0x28] sm:$0xff] }
 0x240   : > { %2329 = vmatpush.bf16.msrb.mxu2 %v9785_v20  ;;  %v10075_v43 = vpop.f32.mrf.mxu0  ;;  %v1513_v20 = vadd.f32 %v1512_v25, %v14841_v50  ;;  %v10101_v50 = vpop.permute.xlu1 %3028 }
 0x241   : > { %3453 = vmatmul.bf16.gmra.mxu1 %v10057_v9  ;;  %v10103_v25 = vpop.permute.xlu0 %3093  ;;  %v1648_v9 = vmax.f32 %v1510_v32, 0.0  ;;  %v7566_v32 = vld [vmem:[%s14332_s3 + $0xa0] sm:$0xf] }
 0x242   : > { %14860 = vst [vmem:[#allocation61_spill] sm:$0xff] %v10103_v25 }
 0x243   : > { %3374 = vmatmul.bf16.gmra.mxu0 %v10070_v47  ;;  %v1505_v47 = vadd.f32 %v9910_v53, %v14848_v57  ;;  %v10137_v57 = vor.u32 %v8161_v35, %v7294_v14  ;;  %v10139_v53 = vor.u32 %v8224_v40, %v7552_v23 }
 0x244   : > { %2330 = vmatpush.bf16.msrb.mxu2 %v9740_v33  ;;  %v7312_v33 = vld [vmem:[%s14340_s11 + $0x28] sm:$0xf0] }
 0x245   : > { %14862 = vst [vmem:[#allocation62_spill] sm:$0xff] %v10137_v57  ;;  %v1644_v14 = vmax.f32 %v1505_v47, 0.0 }
 0x246   : > { %5605 = vperm.xlu1 %8411, %v5515_v8   ;;  %v10115_v8 = vor.u32 %v8164_v45, %v7312_v33 }
 0x247   : > { %5610 = vperm.xlu2 %8412, %v5516_v11   ;;  %5600 = vperm.xlu0 %8410, %v5514_v59   ;;  %v1508_v11 = vadd.f32 %v9944_v51, %v14847_v42  ;;  %v1650_v59 = vmax.f32 %v1513_v20, 0.0  ;;  %v5519_v51 = vld [vmem:[%s14339_s10 + $0x50] sm:$0xff]  ;;  %v5517_v42 = vld [vmem:[%s14339_s10 + $0x40] sm:$0xff] }
 0x248   : > { %2331 = vmatpush.bf16.msrb.mxu2 %v9695_v19  ;;  %14861 = vst [vmem:[#allocation54_spill] sm:$0xff] %v10115_v8  ;;  %v10119_v56 = vpop.f32.mrf.mxu0  ;;  %v10121_v19 = vpop.permute.xlu2 %3003 }
 0x249   : > { %2472 = vmatmul.bf16.gmra.mxu3 %v10115_v8  ;;  %v1732_v45 = vpack.c.bf16 %v1652_v24, %v1650_v59  ;;  %v3331_v33 = vadd.f32 %v10009_v4, %v10121_v19  ;;  %v8229_v4 = vld [vmem:[%s14332_s3 + $0xa4] sm:$0xf0]  ;;  %v1503_v24 = vadd.f32 %v9889_v21, %v14850_v1  ;;  %v1646_v59 = vmax.f32 %v1508_v11, 0.0  ;;  %v10162_v11 = vpop.permute.xlu0 %3008 }
 0x24a   : > { %v10154_v40 = vor.u32 %v8229_v4, %v7566_v32  ;;  %v1498_v21 = vadd.f32 %v9814_v16, %v14853_v28  ;;  %v3333_v16 = vadd.f32 %v10045_v15, %v10162_v11  ;;  %v1490_v15 = vadd.f32 %v9723_v48, %v14814_v22  ;;  %v8226_v22 = vld [vmem:[%s14332_s3 + $0x94] sm:$0xf]  ;;  %v7560_v48 = vld [vmem:[%s14332_s3 + $0x98] sm:$0xf0] }
 0x24b   : > { %v1730_v35 = vpack.c.bf16 %v1648_v9, %v1646_v59  ;;  %v1642_v1 = vmax.f32 %v1503_v24, 0.0  ;;  %v5521_v9 = vld [vmem:[%s14339_s10 + $0x60] sm:$0xff]  ;;  %v8166_v59 = vld [vmem:[%s14340_s11 + $0x34] sm:$0xf] }
 0x24c   : > { %2332 = vmatpush.bf16.msrb.mxu2 %v9622_v49  ;;  %v1500_v49 = vadd.f32 %v9849_v29, %v14851_v39  ;;  %v1493_v29 = vadd.f32 %v9756_v6, %v14817_v41  ;;  %v1495_v39 = vadd.f32 %v9787_v52, %v14818_v37  ;;  %v5520_v6 = vld [vmem:[%s14339_s10 + $0x58] sm:$0xff]  ;;  %v1638_v37 = vmax.f32 %v1498_v21, 0.0 }
 0x24d   : > { %v1728_v28 = vpack.c.bf16 %v1644_v14, %v1642_v1  ;;  %v1485_v21 = vadd.f32 %v9668_v3, %v14807_v60  ;;  %v10226_v3 = vor.u32 %v8226_v22, %v7560_v48 }
 0x24e   : > { %v3419_v20 = vpop.f32.mrf.mxu1  ;;  %5620 = vperm.xlu1 %8411, %v5518_v62   ;;  %v10160_v62 = vpop.permute.xlu1 %3013  ;;  %v1640_v47 = vmax.f32 %v1500_v49, 0.0 }
 0x24f   : > { %v3420_v8 = vadd.f32 %v3419_v20, %v3331_v33  ;;  %5625 = vperm.xlu2 %8412, %v5519_v51   ;;  %5615 = vperm.xlu0 %8410, %v5517_v42   ;;  %v1488_v33 = vadd.f32 %v9700_v5, %v14813_v27  ;;  %v1634_v51 = vmax.f32 %v1493_v29, 0.0  ;;  %v1636_v42 = vmax.f32 %v1495_v39, 0.0  ;;  %v7302_v20 = vld [vmem:[%s14340_s11 + $0x10] sm:$0xf]  ;;  %v7320_v5 = vld [vmem:[%s14340_s11 + $0x38] sm:$0xf0] }
 0x250   : > { %2583 = vmatpush.bf16.msra.mxu2 %v1732_v45  ;;  %v10158_v23 = vpop.f32.mrf.mxu0  ;;  %v5522_v45 = vld [vmem:[%s14339_s10 + $0x68] sm:$0xff]  ;;  %v1726_v24 = vpack.c.bf16 %v1640_v47, %v1638_v37  ;;  %v8163_v27 = vld [vmem:[%s14340_s11 + $0x14] sm:$0xf0]  ;;  %v1632_v29 = vmax.f32 %v1490_v15, 0.0  ;;  %v1480_v37 = vadd.f32 %v9594_v26, %v14788_v0  ;;  %v3338_v0 = vadd.f32 %v10119_v56, %v10072_v30  ;;  %v7310_v56 = vld [vmem:[%s14340_s11 + $0x20] sm:$0xf] }
 0x251   : > { %2333 = vmatmul.bf16.vlgmr.msrb.gmra.mxu2 %v10137_v57  ;;  %3458 = vmatmul.bf16.gmra.mxu1 %v10139_v53  ;;  %v3677_v32 = vmax.f32 %v3420_v8, 0.0  ;;  %v10202_v8 = vor.u32 %v8166_v59, %v7320_v5  ;;  %v1630_v1 = vmax.f32 %v1488_v33, 0.0  ;;  %v5524_v39 = vld [vmem:[%s14339_s10 + $0x78] sm:$0xff]  ;;  %v1724_v47 = vpack.c.bf16 %v1636_v42, %v1634_v51 }
 0x252   : > { %v1628_v33 = vmax.f32 %v1485_v21, 0.0  ;;  %v1624_v26 = vmax.f32 %v1480_v37, 0.0  ;;  %v8168_v21 = vld [vmem:[%s14340_s11 + $0x44] sm:$0xf] }
 0x253   : > { %3379 = vmatmul.bf16.gmra.mxu0 %v10154_v40  ;;  %14863 = vst [vmem:[#allocation47_spill] sm:$0xff] %v10202_v8  ;;  %v1722_v15 = vpack.c.bf16 %v1632_v29, %v1630_v1  ;;  %v7328_v1 = vld [vmem:[%s14340_s11 + $0x48] sm:$0xf0]  ;;  %v8165_v29 = vld [vmem:[%s14340_s11 + $0x24] sm:$0xf0] }
 0x254   : > { %2584 = vmatpush.bf16.msra.mxu2 %v1730_v35  ;;  %v1483_v35 = vadd.f32 %v9631_v17, %v14804_v38  ;;  %v5523_v17 = vld [vmem:[%s14339_s10 + $0x70] sm:$0xff]  ;;  %v10224_v38 = vor.u32 %v8163_v27, %v7302_v20 }
 0x256   : > { %v3421_v41 = vpop.f32.mrf.mxu1  ;;  %5635 = vperm.xlu1 %8411, %v5521_v9   ;;  %v3336_v9 = vadd.f32 %v10075_v43, %v10160_v62  ;;  %14864 = vst [vmem:[#allocation64_spill] sm:$0xff] %v10224_v38  ;;  %v10228_v60 = vpop.permute.xlu1 %3098  ;;  %v7574_v43 = vld [vmem:[%s14332_s3 + $0xb0] sm:$0xf] }
 0x257   : > { %v3422_v52 = vadd.f32 %v3421_v41, %v3333_v16  ;;  %5640 = vperm.xlu2 %8412, %v5522_v45   ;;  %5630 = vperm.xlu0 %8410, %v5520_v6   ;;  %v5525_v16 = vld [vmem:[%s14339_s10 + $0x80] sm:$0xff]  ;;  %14865 = vst [vmem:[#allocation52_spill] sm:$0xff] %v10228_v60  ;;  %v8231_v45 = vld [vmem:[%s14332_s3 + $0xb4] sm:$0xf0]  ;;  %v1478_v41 = vadd.f32 %v9573_v46, %v14787_v36  ;;  %v5527_v46 = vld [vmem:[%s14339_s10 + $0x90] sm:$0xff] }
 0x258   : > { %2585 = vmatpush.bf16.msra.mxu2 %v1728_v28  ;;  %v10204_v49 = vpop.f32.mrf.mxu0  ;;  %v10242_v51 = vor.u32 %v8231_v45, %v7574_v43  ;;  %v3341_v43 = vadd.f32 %v10158_v23, %v10025_v58  ;;  %v5531_v45 = vld [vmem:[%s14339_s10 + $0xb0] sm:$0xff]  ;;  %v8233_v23 = vld [vmem:[%s14332_s3 + $0xc4] sm:$0xf0] }
 0x259   : > { %v3679_v4 = vmax.f32 %v3422_v52, 0.0  ;;  %2477 = vmatmul.bf16.gmra.mxu3 %v10202_v8  ;;  %v1626_v52 = vmax.f32 %v1483_v35, 0.0  ;;  %v1622_v36 = vmax.f32 %v1478_v41, 0.0  ;;  %v10298_v41 = vor.u32 %v8165_v29, %v7310_v56  ;;  %v7336_v29 = vld [vmem:[%s14340_s11 + $0x58] sm:$0xf0] }
 0x25b   : > { %v10206_v14 = vpack.c.bf16 %v3679_v4, %v3677_v32  ;;  %v1720_v20 = vpack.c.bf16 %v1628_v33, %v1626_v52  ;;  %v5528_v32 = vld [vmem:[%s14339_s10 + $0x98] sm:$0xff]  ;;  %v5526_v4 = vld [vmem:[%s14339_s10 + $0x88] sm:$0xff]  ;;  %v1718_v35 = vpack.c.bf16 %v1624_v26, %v1622_v36  ;;  %14869 = vst [vmem:[#allocation55_spill] sm:$0xff] %v10298_v41  ;;  %v10302_v52 = vpop.permute.xlu0 %3909 }
 0x25c   : > { %2586 = vmatpush.bf16.msra.mxu2 %v1726_v24  ;;  %v10258_v24 = vpop.permute.xlu2 %3088  ;;  %14870 = vst [vmem:[#allocation58_spill] sm:$0xff] %v10302_v52  ;;  %v5547_v52 = vld [vmem:[%s14339_s10 + $0x130] sm:$0xff] }
 0x25d   : > { %14866 = vst [vmem:[#allocation65_spill] sm:$0xff] %v10258_v24 }
 0x25e   : > { %v3424_v28 = vpop.f32.mrf.mxu1  ;;  %5650 = vperm.xlu1 %8411, %v5524_v39   ;;  %v10260_v27 = vpop.permute.xlu1 %3083  ;;  %v8228_v39 = vld [vmem:[%s14332_s3 + $0xa4] sm:$0xf] }
 0x25f   : > { %v3425_v6 = vadd.f32 %v3424_v28, %v3336_v9  ;;  %5655 = vperm.xlu2 %8412, %v5525_v16   ;;  %5645 = vperm.xlu0 %8410, %v5523_v17   ;;  %14867 = vst [vmem:[#allocation67_spill] sm:$0xff] %v10260_v27  ;;  %v7568_v9 = vld [vmem:[%s14332_s3 + $0xa8] sm:$0xf0] }
 0x260   : > { %2587 = vmatpush.bf16.msra.mxu2 %v1724_v47  ;;  %v10244_v42 = vpop.f32.mrf.mxu0  ;;  %v10280_v47 = vor.u32 %v8168_v21, %v7328_v1  ;;  %v5530_v28 = vld [vmem:[%s14339_s10 + $0xa8] sm:$0xff]  ;;  %v10300_v37 = vor.u32 %v8228_v39, %v7568_v9  ;;  %v8170_v1 = vld [vmem:[%s14340_s11 + $0x54] sm:$0xf]  ;;  %v8167_v9 = vld [vmem:[%s14340_s11 + $0x34] sm:$0xf0] }
 0x261   : > { %2338 = vmatmul.bf16.gmra.mxu2 %v10224_v38  ;;  %3463 = vmatmul.bf16.gmra.mxu1 %v10226_v3  ;;  %v3681_v22 = vmax.f32 %v3425_v6, 0.0  ;;  %v5529_v6 = vld [vmem:[%s14339_s10 + $0xa0] sm:$0xff] }
 0x262   : > { %14868 = vst [vmem:[#allocation57_spill] sm:$0xff] %v10280_v47 }
 0x263   : > { %3384 = vmatmul.bf16.gmra.mxu0 %v10242_v51 }
 0x264   : > { %2588 = vmatpush.bf16.msra.mxu2 %v1722_v15  ;;  %v7582_v15 = vld [vmem:[%s14332_s3 + $0xc0] sm:$0xf]  ;;  %v10310_v36 = vpop.permute.xlu2 %3989 }
 0x265   : > { %14871 = vst [vmem:[#allocation59_spill] sm:$0xff] %v10310_v36  ;;  %v10314_v26 = vor.u32 %v8233_v23, %v7582_v15  ;;  %v5536_v23 = vld [vmem:[%s14339_s10 + $0xd8] sm:$0xff] }
 0x266   : > { %v3426_v59 = vpop.f32.mrf.mxu1  ;;  %5665 = vperm.xlu1 %8411, %v5527_v46  }
 0x267   : > { %v3427_v5 = vadd.f32 %v3426_v59, %v3338_v0  ;;  %5670 = vperm.xlu2 %8412, %v5528_v32   ;;  %5660 = vperm.xlu0 %8410, %v5526_v4   ;;  %v10316_v0 = vpop.permute.xlu1 %3914  ;;  %v5533_v32 = vld [vmem:[%s14339_s10 + $0xc0] sm:$0xff]  ;;  %v3343_v4 = vadd.f32 %v10204_v49, %v10101_v50  ;;  %v5534_v59 = vld [vmem:[%s14339_s10 + $0xc8] sm:$0xff]  ;;  %v7318_v49 = vld [vmem:[%s14340_s11 + $0x30] sm:$0xf] }
 0x268   : > { %2589 = vmatpush.bf16.msra.mxu2 %v1720_v20  ;;  %v10282_v16 = vpop.f32.mrf.mxu0  ;;  %14872 = vst [vmem:[#allocation66_spill] sm:$0xff] %v10316_v0 }
 0x269   : > { %v3683_v48 = vmax.f32 %v3427_v5, 0.0  ;;  %2482 = vmatmul.bf16.gmra.mxu3 %v10280_v47  ;;  %v5532_v5 = vld [vmem:[%s14339_s10 + $0xb8] sm:$0xff]  ;;  %v5553_v47 = vld [vmem:[%s14339_s10 + $0x160] sm:$0xff] }
 0x26b   : > { %v10284_v17 = vpack.c.bf16 %v3683_v48, %v3681_v22  ;;  %v10332_v48 = vpop.permute.xlu0 %3994 }
 0x26c   : > { %2590 = vmatpush.bf16.msra.mxu2 %v1718_v35  ;;  %14873 = vst [vmem:[#allocation71_spill] sm:$0xff] %v10332_v48  ;;  %v10343_v39 = vpop.permute.xlu2 %3904  ;;  %v5542_v48 = vld [vmem:[%s14339_s10 + $0x108] sm:$0xff] }
 0x26d   : > { %14874 = vst [vmem:[#allocation21_spill] sm:$0xff] %v10343_v39  ;;  %v5549_v39 = vld [vmem:[%s14339_s10 + $0x140] sm:$0xff] }
 0x26e   : > { %v3429_v33 = vpop.f32.mrf.mxu1  ;;  %5680 = vperm.xlu1 %8411, %v5530_v28   ;;  %v8230_v28 = vld [vmem:[%s14332_s3 + $0xb4] sm:$0xf] }
 0x26f   : > { %v3430_v46 = vadd.f32 %v3429_v33, %v3341_v43  ;;  %5685 = vperm.xlu2 %8412, %v5531_v45   ;;  %5675 = vperm.xlu0 %8410, %v5529_v6   ;;  %v7576_v43 = vld [vmem:[%s14332_s3 + $0xb8] sm:$0xf0]  ;;  %v10354_v45 = vor.u32 %v8170_v1, %v7336_v29  ;;  %v10360_v15 = vpop.permute.xlu1 %3899 }
 0x270   : > { %v10318_v20 = vpop.f32.mrf.mxu0  ;;  %14876 = vst [vmem:[#allocation40_spill] sm:$0xff] %v10360_v15 }
 0x271   : > { %2343 = vmatmul.bf16.gmra.mxu2 %v10298_v41  ;;  %3468 = vmatmul.bf16.gmra.mxu1 %v10300_v37  ;;  %v3685_v35 = vmax.f32 %v3430_v46, 0.0  ;;  %14875 = vst [vmem:[#allocation63_spill] sm:$0xff] %v10354_v45  ;;  %v3346_v46 = vadd.f32 %v10244_v42, %v9946_v2  ;;  %v8235_v42 = vld [vmem:[%s14332_s3 + $0xd4] sm:$0xf0]  ;;  %v5555_v41 = vld [vmem:[%s14339_s10 + $0x170] sm:$0xff] }
 0x273   : > { %3389 = vmatmul.bf16.gmra.mxu0 %v10314_v26 }
 0x274   : > { %v10392_v29 = vpop.permute.xlu2 %3889 }
 0x275   : > { %14880 = vst [vmem:[#allocation70_spill] sm:$0xff] %v10392_v29 }
 0x276   : > { %v3431_v56 = vpop.f32.mrf.mxu1  ;;  %5695 = vperm.xlu1 %8411, %v5533_v32   ;;  %v5537_v32 = vld [vmem:[%s14339_s10 + $0xe0] sm:$0xff] }
 0x277   : > { %v3432_v22 = vadd.f32 %v3431_v56, %v3343_v4  ;;  %5700 = vperm.xlu2 %8412, %v5534_v59   ;;  %5690 = vperm.xlu0 %8410, %v5532_v5   ;;  %v5535_v4 = vld [vmem:[%s14339_s10 + $0xd0] sm:$0xff]  ;;  %v10374_v59 = vor.u32 %v8167_v9, %v7318_v49  ;;  %v10376_v5 = vor.u32 %v8230_v28, %v7576_v43  ;;  %v5540_v43 = vld [vmem:[%s14339_s10 + $0xf8] sm:$0xff] }
 0x278   : > { %v10356_v6 = vpop.f32.mrf.mxu0  ;;  %v5539_v9 = vld [vmem:[%s14339_s10 + $0xf0] sm:$0xff]  ;;  %v3348_v28 = vadd.f32 %v10282_v16, %v9975_v63  ;;  %v7326_v16 = vld [vmem:[%s14340_s11 + $0x40] sm:$0xf] }
 0x279   : > { %v3687_v21 = vmax.f32 %v3432_v22, 0.0  ;;  %2487 = vmatmul.bf16.gmra.mxu3 %v10354_v45  ;;  %14877 = vst [vmem:[#allocation20_spill] sm:$0xff] %v10374_v59  ;;  %v7590_v22 = vld [vmem:[%s14332_s3 + $0xd0] sm:$0xf] }
 0x27a   : > { %v10386_v49 = vor.u32 %v8235_v42, %v7590_v22  ;;  %v8172_v42 = vld [vmem:[%s14340_s11 + $0x64] sm:$0xf] }
 0x27b   : > { %v10358_v33 = vpack.c.bf16 %v3687_v21, %v3685_v35  ;;  %v10388_v21 = vpop.permute.xlu0 %3979 }
 0x27c   : > { %14878 = vst [vmem:[#allocation69_spill] sm:$0xff] %v10386_v49  ;;  %v10450_v36 = vpop.permute.xlu2 %3974 }
 0x27d   : > { %14879 = vst [vmem:[#allocation60_spill] sm:$0xff] %v10388_v21  ;;  %v7344_v21 = vld [vmem:[%s14340_s11 + $0x68] sm:$0xf0] }
 0x27e   : > { %v3434_v56 = vpop.f32.mrf.mxu1  ;;  %5710 = vperm.xlu1 %8411, %v5536_v23   ;;  %v5538_v23 = vld [vmem:[%s14339_s10 + $0xe8] sm:$0xff]  ;;  %14886 = vst [vmem:[#allocation3_spill] sm:$0xff] %v10450_v36 }
 0x27f   : > { %v3435_v35 = vadd.f32 %v3434_v56, %v3346_v46  ;;  %5715 = vperm.xlu2 %8412, %v5537_v32   ;;  %5705 = vperm.xlu0 %8410, %v5535_v4   ;;  %v10406_v46 = vpop.permute.xlu1 %3984 }
 0x280   : > { %v10390_v1 = vpop.f32.mrf.mxu0  ;;  %14881 = vst [vmem:[#allocation9_spill] sm:$0xff] %v10406_v46  ;;  %v3351_v46 = vadd.f32 %v10318_v20, %v9973_v10  ;;  %v8237_v20 = vld [vmem:[%s14332_s3 + $0xe4] sm:$0xf0] }
 0x281   : > { %2348 = vmatmul.bf16.gmra.mxu2 %v10374_v59  ;;  %3473 = vmatmul.bf16.gmra.mxu1 %v10376_v5  ;;  %v3689_v56 = vmax.f32 %v3435_v35, 0.0  ;;  %v7584_v35 = vld [vmem:[%s14332_s3 + $0xc8] sm:$0xf0] }
 0x283   : > { %3394 = vmatmul.bf16.gmra.mxu0 %v10386_v49  ;;  %v15000_v49 = vld [vmem:[#allocation19_spill] sm:$0xff] }
 0x286   : > { %v3436_v32 = vpop.f32.mrf.mxu1  ;;  %5725 = vperm.xlu1 %8411, %v5539_v9   ;;  %v8169_v9 = vld [vmem:[%s14340_s11 + $0x44] sm:$0xf0] }
 0x287   : > { %v3437_v4 = vadd.f32 %v3436_v32, %v3348_v28  ;;  %5730 = vperm.xlu2 %8412, %v5540_v43   ;;  %5720 = vperm.xlu0 %8410, %v5538_v23   ;;  %v8232_v28 = vld [vmem:[%s14332_s3 + $0xc4] sm:$0xf]  ;;  %v10426_v43 = vor.u32 %v8172_v42, %v7344_v21  ;;  %v5543_v21 = vld [vmem:[%s14339_s10 + $0x110] sm:$0xff]  ;;  %v10460_v0 = vpop.permute.xlu1 %3969 }
 0x288   : > { %v10428_v23 = vpop.f32.mrf.mxu0  ;;  %v10448_v42 = vor.u32 %v8232_v28, %v7584_v35  ;;  %14887 = vst [vmem:[#allocation6_spill] sm:$0xff] %v10460_v0  ;;  %v5545_v28 = vld [vmem:[%s14339_s10 + $0x120] sm:$0xff] }
 0x289   : > { %v3691_v22 = vmax.f32 %v3437_v4, 0.0  ;;  %14882 = vst [vmem:[#allocation18_spill] sm:$0xff] %v10426_v43  ;;  %v10432_v4 = vpop.permute.xlu0 %3894  ;;  %2492 = vmatmul.bf16.gmra.mxu3 %v10426_v43 }
 0x28a   : > { %14883 = vst [vmem:[#allocation13_spill] sm:$0xff] %v10432_v4  ;;  %v7598_v4 = vld [vmem:[%s14332_s3 + $0xe0] sm:$0xf] }
 0x28b   : > { %v10430_v32 = vpack.c.bf16 %v3691_v22, %v3689_v56  ;;  %v5541_v56 = vld [vmem:[%s14339_s10 + $0x100] sm:$0xff]  ;;  %v10446_v22 = vor.u32 %v8169_v9, %v7326_v16  ;;  %14885 = vst [vmem:[#allocation5_spill] sm:$0xff] %v10448_v42  ;;  %v10464_v16 = vor.u32 %v8237_v20, %v7598_v4  ;;  %v10482_v4 = vpop.permute.xlu2 %3959  ;;  %v7352_v20 = vld [vmem:[%s14340_s11 + $0x78] sm:$0xf0] }
 0x28c   : > { %14890 = vst [vmem:[#allocation4_spill] sm:$0xff] %v10482_v4 }
 0x28d   : > { %14884 = vst [vmem:[#allocation7_spill] sm:$0xff] %v10446_v22 }
 0x28e   : > { %v3439_v29 = vpop.f32.mrf.mxu1  ;;  %5740 = vperm.xlu1 %8411, %v5542_v48   ;;  %14888 = vst [vmem:[#allocation2_spill] sm:$0xff] %v10464_v16  ;;  %v5546_v48 = vld [vmem:[%s14339_s10 + $0x128] sm:$0xff] }
 0x28f   : > { %v10458_v15 = vadd.f32 %v3439_v29, %v3351_v46  ;;  %5745 = vperm.xlu2 %8412, %v5543_v21   ;;  %5735 = vperm.xlu0 %8410, %v5541_v56   ;;  %v5544_v29 = vld [vmem:[%s14339_s10 + $0x118] sm:$0xff]  ;;  %v7334_v21 = vld [vmem:[%s14340_s11 + $0x50] sm:$0xf]  ;;  %v8174_v56 = vld [vmem:[%s14340_s11 + $0x74] sm:$0xf]  ;;  %v10493_v0 = vpop.permute.xlu1 %3884 }
 0x290   : > { %v10466_v9 = vpop.f32.mrf.mxu0  ;;  %14891 = vst [vmem:[#allocation10_spill] sm:$0xff] %v10493_v0  ;;  %v10504_v36 = vor.u32 %v8174_v56, %v7352_v20  ;;  %v5548_v0 = vld [vmem:[%s14339_s10 + $0x138] sm:$0xff] }
 0x291   : > { %2353 = vmatmul.bf16.gmra.mxu2 %v10446_v22  ;;  %3478 = vmatmul.bf16.gmra.mxu1 %v10448_v42  ;;  %v10478_v46 = vpop.permute.xlu0 %3879  ;;  %v7606_v22 = vld [vmem:[%s14332_s3 + $0xf0] sm:$0xf] }
 0x292   : > { %14889 = vst [vmem:[#allocation8_spill] sm:$0xff] %v10478_v46 }
 0x293   : > { %3399 = vmatmul.bf16.gmra.mxu0 %v10464_v16  ;;  %14892 = vst [vmem:[#allocation11_spill] sm:$0xff] %v10504_v36 }
 0x296   : > { %v10480_v35 = vpop.f32.mrf.mxu1  ;;  %5755 = vperm.xlu1 %8411, %v5545_v28   ;;  %v8171_v28 = vld [vmem:[%s14340_s11 + $0x54] sm:$0xf0] }
 0x297   : > { %5760 = vperm.xlu2 %8412, %v5546_v48   ;;  %5750 = vperm.xlu0 %8410, %v5544_v29   ;;  %v8234_v48 = vld [vmem:[%s14332_s3 + $0xd4] sm:$0xf]  ;;  %v7592_v29 = vld [vmem:[%s14332_s3 + $0xd8] sm:$0xf0]  ;;  %v10518_v46 = vor.u32 %v8171_v28, %v7334_v21  ;;  %v10536_v28 = vpop.permute.xlu2 %3874 }
 0x298   : > { %v10506_v4 = vpop.f32.mrf.mxu0  ;;  %v10520_v56 = vor.u32 %v8234_v48, %v7592_v29  ;;  %14897 = vst [vmem:[#allocation76_spill] sm:$0xff] %v10536_v28  ;;  %v10540_v29 = vpop.permute.xlu1 %3869  ;;  %v7360_v28 = vld [vmem:[%s14340_s11 + $0x88] sm:$0xf0] }
 0x299   : > { %2497 = vmatmul.bf16.gmra.mxu3 %v10504_v36  ;;  %14893 = vst [vmem:[#allocation72_spill] sm:$0xff] %v10518_v46  ;;  %v8239_v36 = vld [vmem:[%s14332_s3 + $0xf4] sm:$0xf0]  ;;  %v10530_v43 = vpop.permute.xlu0 %3964 }
 0x29a   : > { %14894 = vst [vmem:[#allocation73_spill] sm:$0xff] %v10520_v56  ;;  %v10534_v21 = vor.u32 %v8239_v36, %v7606_v22  ;;  %v5550_v36 = vld [vmem:[%s14339_s10 + $0x148] sm:$0xff]  ;;  %v7342_v22 = vld [vmem:[%s14340_s11 + $0x60] sm:$0xf] }
 0x29b   : > { %14895 = vst [vmem:[#allocation74_spill] sm:$0xff] %v10530_v43  ;;  %v8176_v43 = vld [vmem:[%s14340_s11 + $0x84] sm:$0xf] }
 0x29c   : > { %14896 = vst [vmem:[#allocation75_spill] sm:$0xff] %v10534_v21 }
 0x29d   : > { %14898 = vst [vmem:[#allocation77_spill] sm:$0xff] %v10540_v29 }
 0x29e   : > { %v10522_v20 = vpop.f32.mrf.mxu1  ;;  %5770 = vperm.xlu1 %8411, %v5548_v0   ;;  %v5551_v0 = vld [vmem:[%s14339_s10 + $0x150] sm:$0xff] }
 0x29f   : > { %5775 = vperm.xlu2 %8412, %v5549_v39   ;;  %5765 = vperm.xlu0 %8410, %v5547_v52   ;;  %v5552_v52 = vld [vmem:[%s14339_s10 + $0x158] sm:$0xff]  ;;  %v10576_v45 = vpop.permute.xlu2 %3859 }
 0x2a0   : > { %v10538_v48 = vpop.f32.mrf.mxu0  ;;  %14901 = vst [vmem:[#allocation80_spill] sm:$0xff] %v10576_v45 }
 0x2a1   : > { %2358 = vmatmul.bf16.gmra.mxu2 %v10518_v46  ;;  %3483 = vmatmul.bf16.gmra.mxu1 %v10520_v56  ;;  %v10563_v29 = vpop.permute.xlu0 %3949  ;;  %v10574_v46 = vor.u32 %v8176_v43, %v7360_v28  ;;  %v10592_v28 = vpop.permute.xlu1 %3954 }
 0x2a2   : > { %14899 = vst [vmem:[#allocation78_spill] sm:$0xff] %v10563_v29  ;;  %v5554_v29 = vld [vmem:[%s14339_s10 + $0x168] sm:$0xff] }
 0x2a3   : > { %3404 = vmatmul.bf16.gmra.mxu0 %v10534_v21  ;;  %14900 = vst [vmem:[#allocation79_spill] sm:$0xff] %v10574_v46  ;;  %v5559_v21 = vld [vmem:[%s14339_s10 + $0x190] sm:$0xff] }
 0x2a4   : > { %14904 = vst [vmem:[#allocation83_spill] sm:$0xff] %v10592_v28  ;;  %v8178_v28 = vld [vmem:[%s14340_s11 + $0x94] sm:$0xf] }
 0x2a6   : > { %v10552_v39 = vpop.f32.mrf.mxu1  ;;  %5785 = vperm.xlu1 %8411, %v5551_v0   ;;  %v8173_v0 = vld [vmem:[%s14340_s11 + $0x64] sm:$0xf0] }
 0x2a7   : > { %5790 = vperm.xlu2 %8412, %v5552_v52   ;;  %5780 = vperm.xlu0 %8410, %v5550_v36   ;;  %v8236_v52 = vld [vmem:[%s14332_s3 + $0xe4] sm:$0xf]  ;;  %v7600_v36 = vld [vmem:[%s14332_s3 + $0xe8] sm:$0xf0]  ;;  %v10588_v38 = vor.u32 %v8173_v0, %v7342_v22 }
 0x2a8   : > { %v3367_v59 = vpop.f32.mrf.mxu0  ;;  %v10590_v43 = vor.u32 %v8236_v52, %v7600_v36  ;;  %v5557_v22 = vld [vmem:[%s14339_s10 + $0x180] sm:$0xff] }
 0x2a9   : > { %2502 = vmatmul.bf16.gmra.mxu3 %v10574_v46  ;;  %14902 = vst [vmem:[#allocation81_spill] sm:$0xff] %v10588_v38  ;;  %v10602_v57 = vpop.permute.xlu0 %3864  ;;  %v10618_v36 = vpop.permute.xlu1 %3939 }
 0x2aa   : > { %14903 = vst [vmem:[#allocation82_spill] sm:$0xff] %v10590_v43 }
 0x2ab   : > { %14905 = vst [vmem:[#allocation84_spill] sm:$0xff] %v10602_v57 }
 0x2ac   : > { %v10596_v8 = vpop.f32.mrf.mxu3  ;;  %14907 = vst [vmem:[#allocation86_spill] sm:$0xff] %v10618_v36 }
 0x2ae   : > { %v10594_v45 = vpop.f32.mrf.mxu1  ;;  %5800 = vperm.xlu1 %8411, %v5554_v29   ;;  %v5558_v29 = vld [vmem:[%s14339_s10 + $0x188] sm:$0xff] }
 0x2af   : > { %5805 = vperm.xlu2 %8412, %v5555_v41   ;;  %5795 = vperm.xlu0 %8410, %v5553_v47   ;;  %v5556_v47 = vld [vmem:[%s14339_s10 + $0x178] sm:$0xff]  ;;  %v10614_v41 = vpop.permute.xlu2 %3944 }
 0x2b0   : > { %v10600_v46 = vpop.f32.mrf.mxu0  ;;  %14906 = vst [vmem:[#allocation85_spill] sm:$0xff] %v10614_v41  ;;  %v7368_v41 = vld [vmem:[%s14340_s11 + $0x98] sm:$0xf0] }
 0x2b1   : > { %2363 = vmatmul.bf16.gmra.mxu2 %v10588_v38  ;;  %3488 = vmatmul.bf16.gmra.mxu1 %v10590_v43  ;;  %v10638_v36 = vor.u32 %v8178_v28, %v7368_v41  ;;  %v5560_v38 = vld [vmem:[%s14339_s10 + $0x198] sm:$0xff]  ;;  %v5561_v43 = vld [vmem:[%s14339_s10 + $0x1a0] sm:$0xff]  ;;  %v10656_v41 = vpop.permute.xlu0 %3849 }
 0x2b2   : > { %14911 = vst [vmem:[#allocation90_spill] sm:$0xff] %v10656_v41 }
 0x2b3   : > { %3507 = vmatmul.bf16.vlgmr.msra.gmra.mxu0 %v9569_v7  ;;  %v7350_v7 = vld [vmem:[%s14340_s11 + $0x70] sm:$0xf]  ;;  %14908 = vst [vmem:[#allocation87_spill] sm:$0xff] %v10638_v36 }
 0x2b4   : > { %v10616_v52 = vpop.f32.mrf.mxu3 }
 0x2b6   : > { %v3451_v0 = vpop.f32.mrf.mxu1  ;;  %5815 = vperm.xlu1 %8411, %v5557_v22   ;;  %v8175_v22 = vld [vmem:[%s14340_s11 + $0x74] sm:$0xf0] }
 0x2b7   : > { %5820 = vperm.xlu2 %8412, %v5558_v29   ;;  %5810 = vperm.xlu0 %8410, %v5556_v47   ;;  %v8238_v29 = vld [vmem:[%s14332_s3 + $0xf4] sm:$0xf]  ;;  %v7608_v47 = vld [vmem:[%s14332_s3 + $0xf8] sm:$0xf0]  ;;  %v10652_v56 = vor.u32 %v8175_v22, %v7350_v7  ;;  %v10660_v10 = vpop.permute.xlu2 %3929  ;;  %v3366_v7 = vadd.f32 %v10538_v48, %v9842_v34  ;;  %v3363_v48 = vadd.f32 %v10506_v4, %v9844_v55 }
 0x2b8   : > { %v10640_v57 = vpop.f32.mrf.mxu0  ;;  %v10654_v28 = vor.u32 %v8238_v29, %v7608_v47  ;;  %14912 = vst [vmem:[#allocation91_spill] sm:$0xff] %v10660_v10  ;;  %v3368_v29 = vadd.f32 %v3367_v59, %v9792_v31  ;;  %v8180_v31 = vld [vmem:[%s14340_s11 + $0xa4] sm:$0xf] }
 0x2b9   : > { %2507 = vmatmul.bf16.gmra.mxu3 %v10638_v36  ;;  %14909 = vst [vmem:[#allocation88_spill] sm:$0xff] %v10652_v56  ;;  %v10664_v36 = vpop.permute.xlu1 %3854  ;;  %v10685_v59 = vpop.permute.xlu0 %3934 }
 0x2ba   : > { %14910 = vst [vmem:[#allocation89_spill] sm:$0xff] %v10654_v28 }
 0x2bb   : > { %14913 = vst [vmem:[#allocation92_spill] sm:$0xff] %v10664_v36 }
 0x2bc   : > { %v10658_v42 = vpop.f32.mrf.mxu3  ;;  %14914 = vst [vmem:[#allocation93_spill] sm:$0xff] %v10685_v59  ;;  %v14919_v59 = vld [vmem:[#allocation27_spill] sm:$0xff] }
 0x2be   : > { %v3454_v16 = vpop.f32.mrf.mxu1  ;;  %5830 = vperm.xlu1 %8411, %v5560_v38   ;;  %v5563_v38 = vld [vmem:[%s14339_s10 + $0x1b0] sm:$0xff] }
 0x2bf   : > { %5835 = vperm.xlu2 %8412, %v5561_v43   ;;  %5825 = vperm.xlu0 %8410, %v5559_v21   ;;  %v3455_v47 = vadd.f32 %v3454_v16, %v3366_v7  ;;  %v5564_v21 = vld [vmem:[%s14339_s10 + $0x1b8] sm:$0xff]  ;;  %v5562_v43 = vld [vmem:[%s14339_s10 + $0x1a8] sm:$0xff]  ;;  %v3452_v16 = vadd.f32 %v3451_v0, %v3363_v48  ;;  %v10695_v4 = vpop.permute.xlu2 %3844  ;;  %v7358_v0 = vld [vmem:[%s14340_s11 + $0x80] sm:$0xf] }
 0x2c0   : > { %v10668_v22 = vpop.f32.mrf.mxu0  ;;  %14915 = vst [vmem:[#allocation94_spill] sm:$0xff] %v10695_v4  ;;  %v5566_v4 = vld [vmem:[%s14339_s10 + $0x1c8] sm:$0xff] }
 0x2c1   : > { %2368 = vmatmul.bf16.gmra.mxu2 %v10652_v56  ;;  %3493 = vmatmul.bf16.gmra.mxu1 %v10654_v28  ;;  %v3705_v7 = vmax.f32 %v3455_v47, 0.0  ;;  %v10710_v48 = vpop.permute.xlu1 %3839  ;;  %v14994_v28 = vld [vmem:[#allocation43_spill] sm:$0xff] }
 0x2c2   : > { %14918 = vst [vmem:[#allocation96_spill] sm:$0xff] %v10710_v48 }
 0x2c3   : > { %3512 = vmatmul.bf16.gmra.mxu0 %v9624_v12  ;;  %v3361_v12 = vadd.f32 %v10466_v9, %v9818_v18 }
 0x2c4   : > { %v10683_v41 = vpop.f32.mrf.mxu3 }
 0x2c5   : > { %v3450_v9 = vadd.f32 %v10594_v45, %v3361_v12  ;;  %v3703_v12 = vmax.f32 %v3452_v16, 0.0  ;;  %v14921_v16 = vld [vmem:[#allocation51_spill] sm:$0xff] }
 0x2c6   : > { %v3456_v10 = vpop.f32.mrf.mxu1  ;;  %5845 = vperm.xlu1 %8411, %v5563_v38   ;;  %v14916_v38 = vld [vmem:[#allocation31_spill] sm:$0xff] }
 0x2c7   : > { %v3457_v36 = vadd.f32 %v3456_v10, %v3368_v29  ;;  %5850 = vperm.xlu2 %8412, %v5564_v21   ;;  %5840 = vperm.xlu0 %8410, %v5562_v43   ;;  %v7376_v10 = vld [vmem:[%s14340_s11 + $0xa8] sm:$0xf0]  ;;  %v3358_v29 = vadd.f32 %v10428_v23, %v14916_v38  ;;  %v3356_v23 = vadd.f32 %v10390_v1, %v14919_v59  ;;  %v5565_v1 = vld [vmem:[%s14339_s10 + $0x1c0] sm:$0xff] }
 0x2c8   : > { %v10706_v47 = vor.u32 %v8180_v31, %v7376_v10  ;;  %v10708_v43 = vpop.f32.mrf.mxu0  ;;  %v3371_v31 = vadd.f32 %v10600_v46, %v10260_v27 }
 0x2c9   : > { %v3707_v56 = vmax.f32 %v3457_v36, 0.0  ;;  %v8177_v36 = vld [vmem:[%s14340_s11 + $0x84] sm:$0xf0]  ;;  %v3447_v45 = vadd.f32 %v10552_v39, %v3358_v29  ;;  %v3445_v10 = vadd.f32 %v10522_v20, %v3356_v23  ;;  %v3701_v29 = vmax.f32 %v3450_v9, 0.0  ;;  %v10741_v9 = vpop.permute.xlu2 %1847 }
 0x2ca   : > { %14917 = vst [vmem:[#allocation95_spill] sm:$0xff] %v10706_v47  ;;  %2512 = vmatmul.bf16.gmra.mxu3 %v10706_v47  ;;  %v10727_v39 = vor.u32 %v8177_v36, %v7358_v0  ;;  %v14922_v0 = vld [vmem:[#allocation33_spill] sm:$0xff]  ;;  %v10737_v36 = vpop.permute.xlu0 %3919 }
 0x2cb   : > { %v3755_v21 = vpack.c.bf16 %v3707_v56, %v3705_v7  ;;  %v5567_v56 = vld [vmem:[%s14339_s10 + $0x1d0] sm:$0xff]  ;;  %v3353_v7 = vadd.f32 %v10356_v6, %v14921_v16  ;;  %v3699_v27 = vmax.f32 %v3447_v45, 0.0  ;;  %v3753_v59 = vpack.c.bf16 %v3703_v12, %v3701_v29  ;;  %14923 = vst [vmem:[#allocation33_spill] sm:$0xff] %v10737_v36 }
 0x2cc   : > { %14920 = vst [vmem:[#allocation97_spill] sm:$0xff] %v10727_v39  ;;  %v10732_v46 = vpop.f32.mrf.mxu3  ;;  %v3697_v6 = vmax.f32 %v3445_v10, 0.0  ;;  %v3373_v45 = vadd.f32 %v10640_v57, %v10258_v24 }
 0x2cd   : > { %4157 = vmatpush.bf16.msrb.mxu2 %v3755_v21  ;;  %v3442_v21 = vadd.f32 %v10480_v35, %v3353_v7  ;;  %14924 = vst [vmem:[#allocation98_spill] sm:$0xff] %v10741_v9  ;;  %v5569_v35 = vld [vmem:[%s14339_s10 + $0x1e0] sm:$0xff] }
 0x2ce   : > { %v3459_v48 = vpop.f32.mrf.mxu1  ;;  %5860 = vperm.xlu1 %8411, %v5566_v4   ;;  %v3751_v23 = vpack.c.bf16 %v3699_v27, %v3697_v6  ;;  %v10756_v27 = vpop.permute.xlu1 %3924 }
 0x2cf   : > { %v3460_v47 = vadd.f32 %v3459_v48, %v3371_v31  ;;  %5865 = vperm.xlu2 %8412, %v5567_v56   ;;  %5855 = vperm.xlu0 %8410, %v5565_v1   ;;  %v3695_v4 = vmax.f32 %v3442_v21, 0.0  ;;  %v14925_v31 = vld [vmem:[#allocation17_spill] sm:$0xff]  ;;  %v3693_v1 = vmax.f32 %v10458_v15, 0.0 }
 0x2d0   : > { %v10739_v20 = vpop.f32.mrf.mxu0  ;;  %v5568_v56 = vld [vmem:[%s14339_s10 + $0x1d8] sm:$0xff]  ;;  %14926 = vst [vmem:[#allocation17_spill] sm:$0xff] %v10756_v27 }
 0x2d1   : > { %2373 = vmatmul.bf16.gmra.mxu2 %v10727_v39  ;;  %3596 = vmatmul.bf16.vlgmr.msra.gmra.mxu1 %v14922_v0  ;;  %v3749_v21 = vpack.c.bf16 %v3695_v4, %v3693_v1  ;;  %v3709_v0 = vmax.f32 %v3460_v47, 0.0  ;;  %v7384_v15 = vld [vmem:[%s14340_s11 + $0xb8] sm:$0xf0]  ;;  %v5571_v1 = vld [vmem:[%s14339_s10 + $0x1f0] sm:$0xff] }
 0x2d2   : > { %4158 = vmatpush.bf16.msrb.mxu2 %v3753_v59  ;;  %v5570_v59 = vld [vmem:[%s14339_s10 + $0x1e8] sm:$0xff] }
 0x2d3   : > { %3517 = vmatmul.bf16.gmra.mxu0 %v14925_v31  ;;  %v5572_v31 = vld [vmem:[%s14339_s10 + $0x1f8] sm:$0xff] }
 0x2d4   : > { %v2334_v48 = vpop.f32.mrf.mxu2  ;;  %v10762_v29 = vpop.f32.mrf.mxu3 }
 0x2d5   : > { %v2335_v12 = vadd.f32 %v2334_v48, %v10741_v9  ;;  %v8182_v48 = vld [vmem:[%s14340_s11 + $0xb4] sm:$0xf] }
 0x2d6   : > { %4159 = vmatpush.bf16.msrb.mxu2 %v3751_v23  ;;  %v3461_v7 = vpop.f32.mrf.mxu1  ;;  %5875 = vperm.xlu1 %8411, %v5569_v35   ;;  %v8179_v23 = vld [vmem:[%s14340_s11 + $0x94] sm:$0xf0]  ;;  %v10776_v4 = vor.u32 %v8182_v48, %v7384_v15  ;;  %v10800_v48 = vpop.permute.xlu1 %1857 }
 0x2d7   : > { %v10760_v57 = vadd.f32 %v10596_v8, %v2335_v12  ;;  %v3462_v10 = vadd.f32 %v3461_v7, %v3373_v45  ;;  %5880 = vperm.xlu2 %8412, %v5570_v59   ;;  %5870 = vperm.xlu0 %8410, %v5568_v56   ;;  %v7366_v8 = vld [vmem:[%s14340_s11 + $0x90] sm:$0xf]  ;;  %v10780_v45 = vpop.permute.xlu0 %1852  ;;  %v3376_v59 = vadd.f32 %v10668_v22, %v10103_v25 }
 0x2d8   : > { %14928 = vst [vmem:[#allocation100_spill] sm:$0xff] %v10776_v4  ;;  %v3382_v47 = vpop.f32.mrf.mxu0  ;;  %v10792_v7 = vor.u32 %v8179_v23, %v7366_v8  ;;  %v14933_v22 = vld [vmem:[#allocation48_spill] sm:$0xff] }
 0x2d9   : > { %14927 = vst [vmem:[#allocation99_spill] sm:$0xff] %v10760_v57  ;;  %v3711_v6 = vmax.f32 %v3462_v10, 0.0  ;;  %v14934_v23 = vld [vmem:[#allocation12_spill] sm:$0xff] }
 0x2da   : > { %4160 = vmatpush.bf16.msrb.mxu2 %v3749_v21  ;;  %14929 = vst [vmem:[#allocation101_spill] sm:$0xff] %v10780_v45  ;;  %2517 = vmatmul.bf16.gmra.mxu3 %v10776_v4 }
 0x2db   : > { %v10778_v35 = vpack.c.bf16 %v3711_v6, %v3709_v0  ;;  %14930 = vst [vmem:[#allocation102_spill] sm:$0xff] %v10792_v7 }
 0x2dc   : > { %v2336_v12 = vpop.f32.mrf.mxu2  ;;  %v10798_v6 = vpop.f32.mrf.mxu3  ;;  %14932 = vst [vmem:[#allocation104_spill] sm:$0xff] %v10800_v48 }
 0x2dd   : > { %v2337_v56 = vadd.f32 %v2336_v12, %v10780_v45  ;;  %v14956_v45 = vld [vmem:[#allocation44_spill] sm:$0xff] }
 0x2de   : > { %4161 = vmatpush.bf16.msrb.mxu2 %v10430_v32  ;;  %v3464_v10 = vpop.f32.mrf.mxu1  ;;  %5890 = vperm.xlu1 %8411, %v5572_v31   ;;  %v3378_v32 = vadd.f32 %v10708_v43, %v10228_v60  ;;  %v8184_v43 = vld [vmem:[%s14340_s11 + $0xc4] sm:$0xf] }
 0x2df   : > { %v10796_v21 = vadd.f32 %v10616_v52, %v2337_v56  ;;  %v3465_v0 = vadd.f32 %v3464_v10, %v3376_v59  ;;  %5885 = vperm.xlu0 %8410, %v5571_v1   ;;  %v10815_v1 = vpop.permute.xlu2 %1862 }
 0x2e0   : > { %v3385_v15 = vpop.f32.mrf.mxu0  ;;  %14936 = vst [vmem:[#allocation12_spill] sm:$0xff] %v10815_v1 }
 0x2e1   : > { %14931 = vst [vmem:[#allocation103_spill] sm:$0xff] %v10796_v21  ;;  %2378 = vmatmul.bf16.gmra.mxu2 %v10792_v7  ;;  %3601 = vmatmul.bf16.gmra.mxu1 %v14933_v22  ;;  %v7392_v22 = vld [vmem:[%s14340_s11 + $0xc8] sm:$0xf0] }
 0x2e2   : > { %4162 = vmatpush.bf16.msrb.mxu2 %v10358_v33  ;;  %v3713_v33 = vmax.f32 %v3465_v0, 0.0  ;;  %v8181_v0 = vld [vmem:[%s14340_s11 + $0xa4] sm:$0xf0] }
 0x2e3   : > { %3522 = vmatmul.bf16.gmra.mxu0 %v14934_v23 }
 0x2e4   : > { %v2339_v8 = vpop.f32.mrf.mxu2  ;;  %v10813_v56 = vpop.f32.mrf.mxu3 }
 0x2e5   : > { %v2340_v52 = vadd.f32 %v2339_v8, %v10800_v48  ;;  %v10832_v8 = vor.u32 %v8184_v43, %v7392_v22  ;;  %v10847_v22 = vpop.permute.xlu0 %1867 }
 0x2e6   : > { %4163 = vmatpush.bf16.msrb.mxu2 %v10284_v17  ;;  %v3466_v12 = vpop.f32.mrf.mxu1  ;;  %v10823_v17 = vpop.permute.xlu1 %1872  ;;  %14941 = vst [vmem:[#allocation109_spill] sm:$0xff] %v10847_v22 }
 0x2e7   : > { %v10811_v31 = vadd.f32 %v10658_v42, %v2340_v52  ;;  %v3467_v59 = vadd.f32 %v3466_v12, %v3378_v32  ;;  %14937 = vst [vmem:[#allocation105_spill] sm:$0xff] %v10823_v17  ;;  %v7374_v42 = vld [vmem:[%s14340_s11 + $0xa0] sm:$0xf]  ;;  %v3381_v12 = vadd.f32 %v10739_v20, %v10029_v61 }
 0x2e8   : > { %14938 = vst [vmem:[#allocation106_spill] sm:$0xff] %v10832_v8  ;;  %v3387_v32 = vpop.f32.mrf.mxu0 }
 0x2e9   : > { %14935 = vst [vmem:[#allocation48_spill] sm:$0xff] %v10811_v31  ;;  %v3715_v10 = vmax.f32 %v3467_v59, 0.0  ;;  %v10840_v59 = vor.u32 %v8181_v0, %v7374_v42  ;;  %v3383_v0 = vadd.f32 %v3382_v47, %v10067_v13  ;;  %v7400_v47 = vld [vmem:[%s14340_s11 + $0xd8] sm:$0xf0] }
 0x2ea   : > { %4164 = vmatpush.bf16.msrb.mxu2 %v10206_v14  ;;  %2522 = vmatmul.bf16.gmra.mxu3 %v10832_v8 }
 0x2eb   : > { %v10834_v52 = vpack.c.bf16 %v3715_v10, %v3713_v33  ;;  %14939 = vst [vmem:[#allocation107_spill] sm:$0xff] %v10840_v59  ;;  %v14942_v33 = vld [vmem:[#allocation50_spill] sm:$0xff]  ;;  %v10851_v10 = vpop.permute.xlu2 %1877 }
 0x2ec   : > { %v2341_v23 = vpop.f32.mrf.mxu2  ;;  %v10845_v43 = vpop.f32.mrf.mxu3  ;;  %14943 = vst [vmem:[#allocation50_spill] sm:$0xff] %v10851_v10 }
 0x2ed   : > { %v2342_v14 = vadd.f32 %v2341_v23, %v10815_v1  ;;  %v14945_v23 = vld [vmem:[#allocation42_spill] sm:$0xff]  ;;  %v8186_v1 = vld [vmem:[%s14340_s11 + $0xd4] sm:$0xf] }
 0x2ee   : > { %v3469_v27 = vpop.f32.mrf.mxu1  ;;  %v10853_v8 = vpop.permute.xlu1 %1887 }
 0x2ef   : > { %v10843_v36 = vadd.f32 %v10683_v41, %v2342_v14  ;;  %v3470_v31 = vadd.f32 %v3469_v27, %v3381_v12  ;;  %14944 = vst [vmem:[#allocation110_spill] sm:$0xff] %v10853_v8 }
 0x2f0   : > { %v3390_v20 = vpop.f32.mrf.mxu0 }
 0x2f1   : > { %14940 = vst [vmem:[#allocation108_spill] sm:$0xff] %v10843_v36  ;;  %2383 = vmatmul.bf16.gmra.mxu2 %v10840_v59  ;;  %3606 = vmatmul.bf16.gmra.mxu1 %v14942_v33  ;;  %v3717_v33 = vmax.f32 %v3470_v31, 0.0  ;;  %v10877_v31 = vor.u32 %v8186_v1, %v7400_v47 }
 0x2f3   : > { %3527 = vmatmul.bf16.gmra.mxu0 %v14945_v23  ;;  %14948 = vst [vmem:[#allocation112_spill] sm:$0xff] %v10877_v31 }
 0x2f4   : > { %v2344_v42 = vpop.f32.mrf.mxu2  ;;  %v10861_v59 = vpop.f32.mrf.mxu3 }
 0x2f5   : > { %v2345_v41 = vadd.f32 %v2344_v42, %v10847_v22  ;;  %v10869_v42 = vpop.permute.xlu0 %1882 }
 0x2f6   : > { %v3471_v27 = vpop.f32.mrf.mxu1  ;;  %14947 = vst [vmem:[#allocation111_spill] sm:$0xff] %v10869_v42  ;;  %v10890_v7 = vpop.permute.xlu1 %1902 }
 0x2f7   : > { %v10859_v12 = vadd.f32 %v10732_v46, %v2345_v41  ;;  %v3472_v14 = vadd.f32 %v3471_v27, %v3383_v0  ;;  %v7382_v46 = vld [vmem:[%s14340_s11 + $0xb0] sm:$0xf]  ;;  %v8183_v0 = vld [vmem:[%s14340_s11 + $0xb4] sm:$0xf0]  ;;  %v10883_v27 = vpop.permute.xlu2 %1892  ;;  %14951 = vst [vmem:[#allocation115_spill] sm:$0xff] %v10890_v7 }
 0x2f8   : > { %v10879_v41 = vpop.f32.mrf.mxu0  ;;  %14949 = vst [vmem:[#allocation113_spill] sm:$0xff] %v10883_v27  ;;  %v10888_v48 = vor.u32 %v8183_v0, %v7382_v46  ;;  %v14955_v46 = vld [vmem:[#allocation28_spill] sm:$0xff] }
 0x2f9   : > { %14946 = vst [vmem:[#allocation42_spill] sm:$0xff] %v10859_v12  ;;  %v3719_v36 = vmax.f32 %v3472_v14, 0.0  ;;  %v3386_v12 = vadd.f32 %v3385_v15, %v10065_v44  ;;  %v3388_v0 = vadd.f32 %v3387_v32, %v14955_v46  ;;  %v8188_v32 = vld [vmem:[%s14340_s11 + $0xe4] sm:$0xf] }
 0x2fa   : > { %2527 = vmatmul.bf16.gmra.mxu3 %v10877_v31  ;;  %14950 = vst [vmem:[#allocation114_spill] sm:$0xff] %v10888_v48 }
 0x2fb   : > { %v10881_v23 = vpack.c.bf16 %v3719_v36, %v3717_v33  ;;  %v14953_v33 = vld [vmem:[#allocation14_spill] sm:$0xff] }
 0x2fc   : > { %v2346_v14 = vpop.f32.mrf.mxu2  ;;  %v10895_v36 = vpop.f32.mrf.mxu3 }
 0x2fd   : > { %v2347_v22 = vadd.f32 %v2346_v14, %v10823_v17  ;;  %v10901_v15 = vpop.permute.xlu0 %1897 }
 0x2fe   : > { %v3474_v21 = vpop.f32.mrf.mxu1  ;;  %14954 = vst [vmem:[#allocation14_spill] sm:$0xff] %v10901_v15 }
 0x2ff   : > { %v10893_v1 = vadd.f32 %v10762_v29, %v2347_v22  ;;  %v3475_v47 = vadd.f32 %v3474_v21, %v3386_v12  ;;  %v10906_v29 = vpop.permute.xlu2 %1907 }
 0x300   : > { %v10899_v31 = vpop.f32.mrf.mxu0  ;;  %14957 = vst [vmem:[#allocation44_spill] sm:$0xff] %v10906_v29 }
 0x301   : > { %14952 = vst [vmem:[#allocation116_spill] sm:$0xff] %v10893_v1  ;;  %2388 = vmatmul.bf16.gmra.mxu2 %v10888_v48  ;;  %3611 = vmatmul.bf16.gmra.mxu1 %v14953_v33  ;;  %v10913_v33 = vpop.permute.xlu1 %1917  ;;  %v3721_v1 = vmax.f32 %v3475_v47, 0.0 }
 0x302   : > { %14959 = vst [vmem:[#allocation118_spill] sm:$0xff] %v10913_v33 }
 0x303   : > { %3532 = vmatmul.bf16.gmra.mxu0 %v14956_v45  ;;  %v7408_v45 = vld [vmem:[%s14340_s11 + $0xe8] sm:$0xf0] }
 0x304   : > { %v2349_v14 = vpop.f32.mrf.mxu2  ;;  %v10911_v48 = vpop.f32.mrf.mxu3 }
 0x305   : > { %v2350_v17 = vadd.f32 %v2349_v14, %v10851_v10  ;;  %v10927_v14 = vor.u32 %v8188_v32, %v7408_v45  ;;  %v10938_v57 = vpop.permute.xlu0 %1912 }
 0x306   : > { %v3476_v21 = vpop.f32.mrf.mxu1  ;;  %14963 = vst [vmem:[#allocation121_spill] sm:$0xff] %v10938_v57 }
 0x307   : > { %v10909_v22 = vadd.f32 %v10798_v6, %v2350_v17  ;;  %v3477_v12 = vadd.f32 %v3476_v21, %v3388_v0  ;;  %v7390_v6 = vld [vmem:[%s14340_s11 + $0xc0] sm:$0xf]  ;;  %v8185_v17 = vld [vmem:[%s14340_s11 + $0xc4] sm:$0xf0]  ;;  %14960 = vst [vmem:[#allocation119_spill] sm:$0xff] %v10927_v14 }
 0x308   : > { %v10929_v47 = vpop.f32.mrf.mxu0  ;;  %v10936_v4 = vor.u32 %v8185_v17, %v7390_v6 }
 0x309   : > { %14958 = vst [vmem:[#allocation117_spill] sm:$0xff] %v10909_v22  ;;  %v3723_v24 = vmax.f32 %v3477_v12, 0.0  ;;  %v14961_v12 = vld [vmem:[#allocation49_spill] sm:$0xff] }
 0x30a   : > { %2532 = vmatmul.bf16.gmra.mxu3 %v10927_v14  ;;  %v3391_v22 = vadd.f32 %v3390_v20, %v14961_v12  ;;  %14962 = vst [vmem:[#allocation120_spill] sm:$0xff] %v10936_v4  ;;  %v10951_v20 = vpop.permute.xlu1 %1932  ;;  %v14966_v14 = vld [vmem:[#allocation26_spill] sm:$0xff] }
 0x30b   : > { %v10931_v0 = vpack.c.bf16 %v3723_v24, %v3721_v1  ;;  %v10947_v24 = vpop.permute.xlu2 %1922  ;;  %v14965_v1 = vld [vmem:[#allocation29_spill] sm:$0xff] }
 0x30c   : > { %v2351_v21 = vpop.f32.mrf.mxu2  ;;  %v10945_v45 = vpop.f32.mrf.mxu3 }
 0x30d   : > { %v2352_v10 = vadd.f32 %v2351_v21, %v10869_v42 }
 0x30e   : > { %v3479_v60 = vpop.f32.mrf.mxu1 }
 0x30f   : > { %v10941_v9 = vadd.f32 %v10813_v56, %v2352_v10  ;;  %v10943_v32 = vadd.f32 %v3479_v60, %v3391_v22  ;;  %v10964_v22 = vpop.permute.xlu0 %1927 }
 0x310   : > { %v10953_v6 = vpop.f32.mrf.mxu0 }
 0x311   : > { %14964 = vst [vmem:[#allocation122_spill] sm:$0xff] %v10941_v9  ;;  %2393 = vmatmul.bf16.gmra.mxu2 %v10936_v4  ;;  %3616 = vmatmul.bf16.gmra.mxu1 %v14965_v1  ;;  %v8190_v1 = vld [vmem:[%s14340_s11 + $0xf4] sm:$0xf]  ;;  %v7416_v4 = vld [vmem:[%s14340_s11 + $0xf8] sm:$0xf0] }
 0x313   : > { %3537 = vmatmul.bf16.gmra.mxu0 %v14966_v14  ;;  %v7398_v14 = vld [vmem:[%s14340_s11 + $0xd0] sm:$0xf] }
 0x314   : > { %v2354_v17 = vpop.f32.mrf.mxu2  ;;  %v10962_v10 = vpop.f32.mrf.mxu3 }
 0x315   : > { %v2355_v21 = vadd.f32 %v2354_v17, %v10853_v8  ;;  %v10972_v17 = vpop.permute.xlu2 %1937  ;;  %v10984_v8 = vpop.permute.xlu1 %1947 }
 0x316   : > { %v10957_v56 = vpop.f32.mrf.mxu1  ;;  %14969 = vst [vmem:[#allocation123_spill] sm:$0xff] %v10984_v8 }
 0x317   : > { %v10960_v60 = vadd.f32 %v10845_v43, %v2355_v21  ;;  %v8187_v43 = vld [vmem:[%s14340_s11 + $0xd4] sm:$0xf0]  ;;  %v10980_v21 = vor.u32 %v8190_v1, %v7416_v4  ;;  %v10999_v1 = vpop.permute.xlu0 %1942 }
 0x318   : > { %v10988_v13 = vor.u32 %v8187_v43, %v7398_v14  ;;  %v14972_v4 = vld [vmem:[#allocation53_spill] sm:$0xff]  ;;  %v14974_v14 = vld [vmem:[#allocation46_spill] sm:$0xff] }
 0x319   : > { %14967 = vst [vmem:[#allocation29_spill] sm:$0xff] %v10960_v60  ;;  %v10982_v60 = vpop.f32.mrf.mxu0 }
 0x31a   : > { %14968 = vst [vmem:[#allocation26_spill] sm:$0xff] %v10980_v21  ;;  %2537 = vmatmul.bf16.gmra.mxu3 %v10980_v21 }
 0x31b   : > { %14970 = vst [vmem:[#allocation124_spill] sm:$0xff] %v10988_v13 }
 0x31c   : > { %v2356_v9 = vpop.f32.mrf.mxu2  ;;  %v10995_v12 = vpop.f32.mrf.mxu3 }
 0x31d   : > { %v2357_v42 = vadd.f32 %v2356_v9, %v10883_v27  ;;  %v11001_v61 = vpop.permute.xlu2 %1952  ;;  %v11005_v43 = vpop.permute.xlu1 %1962 }
 0x31e   : > { %v10990_v39 = vpop.f32.mrf.mxu1  ;;  %14973 = vst [vmem:[#allocation53_spill] sm:$0xff] %v11001_v61 }
 0x31f   : > { %v10993_v46 = vadd.f32 %v10861_v59, %v2357_v42  ;;  %14975 = vst [vmem:[#allocation46_spill] sm:$0xff] %v11005_v43 }
 0x321   : > { %14971 = vst [vmem:[#allocation125_spill] sm:$0xff] %v10993_v46  ;;  %2398 = vmatmul.bf16.gmra.mxu2 %v10988_v13  ;;  %3621 = vmatmul.bf16.gmra.mxu1 %v14972_v4  ;;  %v3405_v44 = vpop.f32.mrf.mxu0  ;;  %v8192_v4 = vld [vmem:[%s14340_s11 + $0x104] sm:$0xf]  ;;  %v7424_v46 = vld [vmem:[%s14340_s11 + $0x108] sm:$0xf0] }
 0x323   : > { %3542 = vmatmul.bf16.gmra.mxu0 %v14974_v14  ;;  %v8189_v14 = vld [vmem:[%s14340_s11 + $0xe4] sm:$0xf0] }
 0x324   : > { %v2359_v21 = vpop.f32.mrf.mxu2  ;;  %v11012_v13 = vpop.f32.mrf.mxu3 }
 0x325   : > { %v2360_v9 = vadd.f32 %v2359_v21, %v10901_v15  ;;  %v7406_v21 = vld [vmem:[%s14340_s11 + $0xe0] sm:$0xf]  ;;  %v11034_v16 = vpop.permute.xlu2 %4745 }
 0x326   : > { %v11007_v59 = vpop.f32.mrf.mxu1  ;;  %v11032_v25 = vor.u32 %v8189_v14, %v7406_v21  ;;  %14980 = vst [vmem:[#allocation130_spill] sm:$0xff] %v11034_v16  ;;  %v14983_v21 = vld [vmem:[#allocation36_spill] sm:$0xff] }
 0x327   : > { %v11010_v42 = vadd.f32 %v10895_v36, %v2360_v9  ;;  %v11026_v36 = vor.u32 %v8192_v4, %v7424_v46  ;;  %v11041_v46 = vpop.permute.xlu1 %4825 }
 0x328   : > { %14979 = vst [vmem:[#allocation129_spill] sm:$0xff] %v11032_v25 }
 0x329   : > { %14976 = vst [vmem:[#allocation126_spill] sm:$0xff] %v11010_v42  ;;  %v3407_v9 = vpop.f32.mrf.mxu0  ;;  %v11028_v42 = vpop.permute.xlu0 %1957 }
 0x32a   : > { %14977 = vst [vmem:[#allocation127_spill] sm:$0xff] %v11026_v36  ;;  %2542 = vmatmul.bf16.gmra.mxu3 %v11026_v36 }
 0x32b   : > { %14978 = vst [vmem:[#allocation128_spill] sm:$0xff] %v11028_v42 }
 0x32c   : > { %v2361_v15 = vpop.f32.mrf.mxu2  ;;  %v11039_v55 = vpop.f32.mrf.mxu3  ;;  %14982 = vst [vmem:[#allocation132_spill] sm:$0xff] %v11041_v46 }
 0x32d   : > { %v2362_v27 = vadd.f32 %v2361_v15, %v10890_v7 }
 0x32e   : > { %v3489_v38 = vpop.f32.mrf.mxu1 }
 0x32f   : > { %v11037_v18 = vadd.f32 %v10911_v48, %v2362_v27  ;;  %v11062_v46 = vpop.permute.xlu1 %4740 }
 0x330   : > { %14987 = vst [vmem:[#allocation135_spill] sm:$0xff] %v11062_v46 }
 0x331   : > { %14981 = vst [vmem:[#allocation131_spill] sm:$0xff] %v11037_v18  ;;  %2403 = vmatmul.bf16.gmra.mxu2 %v11032_v25  ;;  %3626 = vmatmul.bf16.gmra.mxu1 %v9991_v54  ;;  %v3508_v4 = vpop.f32.mrf.mxu0  ;;  %v11047_v14 = vpop.permute.xlu0 %4750  ;;  %v8194_v54 = vld [vmem:[%s14340_s11 + $0x114] sm:$0xf] }
 0x332   : > { %14984 = vst [vmem:[#allocation36_spill] sm:$0xff] %v11047_v14  ;;  %v11054_v18 = vpop.permute.xlu2 %4830 }
 0x333   : > { %3547 = vmatmul.bf16.gmra.mxu0 %v14983_v21  ;;  %14986 = vst [vmem:[#allocation134_spill] sm:$0xff] %v11054_v18  ;;  %v7414_v21 = vld [vmem:[%s14340_s11 + $0xf0] sm:$0xf] }
 0x334   : > { %v2364_v36 = vpop.f32.mrf.mxu2  ;;  %v11052_v27 = vpop.f32.mrf.mxu3 }
 0x335   : > { %v2365_v15 = vadd.f32 %v2364_v36, %v10906_v29  ;;  %v7432_v36 = vld [vmem:[%s14340_s11 + $0x118] sm:$0xf0] }
 0x336   : > { %v3491_v16 = vpop.f32.mrf.mxu1 }
 0x337   : > { %v11050_v48 = vadd.f32 %v10945_v45, %v2365_v15  ;;  %v8191_v45 = vld [vmem:[%s14340_s11 + $0xf4] sm:$0xf0]  ;;  %v11070_v15 = vor.u32 %v8194_v54, %v7432_v36  ;;  %v14992_v54 = vld [vmem:[#allocation68_spill] sm:$0xff] }
 0x338   : > { %v11076_v29 = vor.u32 %v8191_v45, %v7414_v21  ;;  %v14996_v45 = vld [vmem:[#allocation39_spill] sm:$0xff] }
 0x339   : > { %14985 = vst [vmem:[#allocation133_spill] sm:$0xff] %v11050_v48  ;;  %v11072_v18 = vpop.f32.mrf.mxu0  ;;  %v11083_v34 = vpop.permute.xlu0 %4735 }
 0x33a   : > { %14988 = vst [vmem:[#allocation136_spill] sm:$0xff] %v11070_v15  ;;  %2547 = vmatmul.bf16.gmra.mxu3 %v11070_v15  ;;  %v11087_v36 = vpop.permute.xlu2 %4815  ;;  %v3406_v15 = vadd.f32 %v3405_v44, %v14994_v28 }
 0x33b   : > { %14989 = vst [vmem:[#allocation137_spill] sm:$0xff] %v11076_v29 }
 0x33c   : > { %v2366_v14 = vpop.f32.mrf.mxu2  ;;  %v11081_v7 = vpop.f32.mrf.mxu3  ;;  %14991 = vst [vmem:[#allocation139_spill] sm:$0xff] %v11083_v34  ;;  %v14998_v34 = vld [vmem:[#allocation22_spill] sm:$0xff] }
 0x33d   : > { %v2367_v48 = vadd.f32 %v2366_v14, %v10938_v57  ;;  %14993 = vst [vmem:[#allocation68_spill] sm:$0xff] %v11087_v36  ;;  %v11092_v14 = vpop.permute.xlu1 %4725  ;;  %v14997_v57 = vld [vmem:[#allocation56_spill] sm:$0xff] }
 0x33e   : > { %v3494_v46 = vpop.f32.mrf.mxu1  ;;  %14995 = vst [vmem:[#allocation140_spill] sm:$0xff] %v11092_v14  ;;  %v3401_v14 = vadd.f32 %v10953_v6, %v15000_v49 }
 0x33f   : > { %v11079_v25 = vadd.f32 %v10962_v10, %v2367_v48  ;;  %v3408_v10 = vadd.f32 %v3407_v9, %v14996_v45  ;;  %v3495_v48 = vadd.f32 %v3494_v46, %v3406_v15 }
 0x341   : > { %14990 = vst [vmem:[#allocation138_spill] sm:$0xff] %v11079_v25  ;;  %2408 = vmatmul.bf16.gmra.mxu2 %v11076_v29  ;;  %3631 = vmatmul.bf16.gmra.mxu1 %v14992_v54  ;;  %v11090_v43 = vpop.f32.mrf.mxu0  ;;  %v3403_v29 = vadd.f32 %v10982_v60, %v14998_v34  ;;  %v3737_v9 = vmax.f32 %v3495_v48, 0.0  ;;  %v7440_v60 = vld [vmem:[%s14340_s11 + $0x128] sm:$0xf0]  ;;  %v11112_v15 = vpop.permute.xlu0 %4820 }
 0x342   : > { %15001 = vst [vmem:[#allocation56_spill] sm:$0xff] %v11112_v15 }
 0x343   : > { %3552 = vmatmul.bf16.gmra.mxu0 %v14997_v57  ;;  %v3492_v42 = vadd.f32 %v3491_v16, %v3403_v29  ;;  %v8196_v57 = vld [vmem:[%s14340_s11 + $0x124] sm:$0xf]  ;;  %v7422_v16 = vld [vmem:[%s14340_s11 + $0x100] sm:$0xf]  ;;  %v8193_v29 = vld [vmem:[%s14340_s11 + $0x104] sm:$0xf0] }
 0x344   : > { %v2369_v21 = vpop.f32.mrf.mxu2  ;;  %v11102_v28 = vpop.f32.mrf.mxu3  ;;  %v11122_v6 = vor.u32 %v8196_v57, %v7440_v60  ;;  %v11134_v57 = vor.u32 %v8193_v29, %v7422_v16 }
 0x345   : > { %v2370_v25 = vadd.f32 %v2369_v21, %v10913_v33  ;;  %v3490_v21 = vadd.f32 %v3489_v38, %v3401_v14 }
 0x346   : > { %v3496_v54 = vpop.f32.mrf.mxu1  ;;  %15003 = vst [vmem:[#allocation22_spill] sm:$0xff] %v11122_v6 }
 0x347   : > { %v11100_v36 = vadd.f32 %v10995_v12, %v2370_v25  ;;  %v3497_v44 = vadd.f32 %v3496_v54, %v3408_v10  ;;  %v15002_v25 = vld [vmem:[#allocation15_spill] sm:$0xff]  ;;  %v11126_v54 = vpop.permute.xlu2 %4730 }
 0x348   : > { %v3398_v12 = vadd.f32 %v10929_v47, %v15002_v25  ;;  %15004 = vst [vmem:[#allocation19_spill] sm:$0xff] %v11126_v54  ;;  %v3735_v47 = vmax.f32 %v3492_v42, 0.0  ;;  %v3733_v54 = vmax.f32 %v3490_v21, 0.0 }
 0x349   : > { %14999 = vst [vmem:[#allocation39_spill] sm:$0xff] %v11100_v36  ;;  %v3739_v46 = vmax.f32 %v3497_v44, 0.0  ;;  %v11124_v48 = vpop.f32.mrf.mxu0  ;;  %v15005_v44 = vld [vmem:[#allocation41_spill] sm:$0xff]  ;;  %v3509_v36 = vadd.f32 %v3508_v4, %v10121_v19 }
 0x34a   : > { %v3396_v15 = vadd.f32 %v10899_v31, %v15005_v44  ;;  %v3487_v38 = vadd.f32 %v11007_v59, %v3398_v12  ;;  %2552 = vmatmul.bf16.gmra.mxu3 %v11122_v6  ;;  %v3769_v16 = vpack.c.bf16 %v3735_v47, %v3733_v54 }
 0x34b   : > { %v3771_v10 = vpack.c.bf16 %v3739_v46, %v3737_v9  ;;  %v11136_v9 = vpop.permute.xlu1 %4810  ;;  %v15007_v46 = vld [vmem:[#allocation37_spill] sm:$0xff] }
 0x34c   : > { %v2371_v14 = vpop.f32.mrf.mxu2  ;;  %15006 = vst [vmem:[#allocation15_spill] sm:$0xff] %v11136_v9  ;;  %v3393_v60 = vadd.f32 %v10879_v41, %v15007_v46  ;;  %v3485_v31 = vadd.f32 %v10990_v39, %v3396_v15  ;;  %v3731_v4 = vmax.f32 %v3487_v38, 0.0  ;;  %v11151_v39 = vpop.permute.xlu0 %4805 }
 0x34d   : > { %v2372_v33 = vadd.f32 %v2371_v14, %v10947_v24  ;;  %4246 = vmatpush.bf16.msrb.mxu3 %v3771_v10  ;;  %v11144_v6 = vpop.f32.mrf.mxu3  ;;  %15008 = vst [vmem:[#allocation41_spill] sm:$0xff] %v11151_v39 }
 0x34e   : > { %v3597_v59 = vpop.f32.mrf.mxu1  ;;  %v3482_v19 = vadd.f32 %v10957_v56, %v3393_v60  ;;  %v3729_v29 = vmax.f32 %v3485_v31, 0.0  ;;  %v8195_v31 = vld [vmem:[%s14340_s11 + $0x114] sm:$0xf0] }
 0x34f   : > { %v11142_v42 = vadd.f32 %v11012_v13, %v2372_v33  ;;  %v3598_v12 = vadd.f32 %v3597_v59, %v3509_v36  ;;  %v3511_v36 = vadd.f32 %v11072_v18, %v10162_v11  ;;  %v11157_v21 = vpop.permute.xlu2 %4715 }
 0x350   : > { %v3727_v15 = vmax.f32 %v3482_v19, 0.0  ;;  %v3767_v33 = vpack.c.bf16 %v3731_v4, %v3729_v29  ;;  %15009 = vst [vmem:[#allocation37_spill] sm:$0xff] %v11157_v21 }
 0x351   : > { %2413 = vmatmul.bf16.gmra.mxu2 %v11134_v57  ;;  %3636 = vmatmul.bf16.gmra.mxu1 %v10139_v53  ;;  %v11149_v41 = vpop.f32.mrf.mxu0  ;;  %v3725_v53 = vmax.f32 %v10943_v32, 0.0  ;;  %v3678_v18 = vmax.f32 %v3598_v12, 0.0  ;;  %v7448_v32 = vld [vmem:[%s14340_s11 + $0x138] sm:$0xf0] }
 0x352   : > { %4247 = vmatpush.bf16.msrb.mxu3 %v3769_v16  ;;  %v3514_v16 = vadd.f32 %v11090_v43, %v10160_v62 }
 0x353   : > { %3557 = vmatmul.bf16.gmra.mxu0 %v10154_v40  ;;  %v11165_v14 = vpop.permute.xlu1 %4795  ;;  %v3765_v60 = vpack.c.bf16 %v3727_v15, %v3725_v53  ;;  %v8198_v40 = vld [vmem:[%s14340_s11 + $0x134] sm:$0xf] }
 0x354   : > { %v2374_v13 = vpop.f32.mrf.mxu2  ;;  %15010 = vst [vmem:[#allocation141_spill] sm:$0xff] %v11165_v14  ;;  %v11179_v59 = vor.u32 %v8198_v40, %v7448_v32 }
 0x355   : > { %v2375_v56 = vadd.f32 %v2374_v13, %v10964_v22  ;;  %v11163_v47 = vpop.f32.mrf.mxu3  ;;  %v11189_v13 = vpop.permute.xlu0 %4720 }
 0x356   : > { %4248 = vmatpush.bf16.msrb.mxu3 %v3767_v33  ;;  %v3599_v10 = vpop.f32.mrf.mxu1  ;;  %15011 = vst [vmem:[#allocation142_spill] sm:$0xff] %v11189_v13 }
 0x357   : > { %v11161_v54 = vadd.f32 %v11039_v55, %v2375_v56  ;;  %v3600_v38 = vadd.f32 %v3599_v10, %v3511_v36  ;;  %v7430_v55 = vld [vmem:[%s14340_s11 + $0x110] sm:$0xf]  ;;  %v11197_v10 = vpop.permute.xlu2 %4800 }
 0x358   : > { %v11187_v15 = vor.u32 %v8195_v31, %v7430_v55  ;;  %15012 = vst [vmem:[#allocation143_spill] sm:$0xff] %v11197_v10  ;;  %v15030_v10 = vld [vmem:[#allocation69_spill] sm:$0xff] }
 0x359   : > { %v3680_v11 = vmax.f32 %v3600_v38, 0.0  ;;  %v3520_v12 = vpop.f32.mrf.mxu0 }
 0x35a   : > { %4249 = vmatpush.bf16.msrb.mxu3 %v3765_v60 }
 0x35b   : > { %v11181_v19 = vpack.c.bf16 %v3680_v11, %v3678_v18  ;;  %2557 = vmatmul.bf16.gmra.mxu3 %v11179_v59  ;;  %v11201_v62 = vpop.permute.xlu1 %4710 }
 0x35c   : > { %v2376_v4 = vpop.f32.mrf.mxu2  ;;  %15013 = vst [vmem:[#allocation144_spill] sm:$0xff] %v11201_v62 }
 0x35d   : > { %v2377_v29 = vadd.f32 %v2376_v4, %v10951_v20  ;;  %v11195_v53 = vpop.f32.mrf.mxu3  ;;  %v11214_v40 = vpop.permute.xlu0 %4705 }
 0x35e   : > { %4250 = vmatpush.bf16.msrb.mxu3 %v10931_v0  ;;  %v3602_v33 = vpop.f32.mrf.mxu1  ;;  %v3516_v0 = vadd.f32 %v11124_v48, %v10072_v30  ;;  %15014 = vst [vmem:[#allocation145_spill] sm:$0xff] %v11214_v40  ;;  %v8200_v30 = vld [vmem:[%s14340_s11 + $0x144] sm:$0xf]  ;;  %v8197_v48 = vld [vmem:[%s14340_s11 + $0x124] sm:$0xf0] }
 0x35f   : > { %v11193_v36 = vadd.f32 %v11052_v27, %v2377_v29  ;;  %v3603_v56 = vadd.f32 %v3602_v33, %v3514_v16 }
 0x361   : > { %2418 = vmatmul.bf16.gmra.mxu2 %v11187_v15  ;;  %3641 = vmatmul.bf16.gmra.mxu1 %v10226_v3  ;;  %v3523_v43 = vpop.f32.mrf.mxu0 }
 0x362   : > { %4251 = vmatpush.bf16.msrb.mxu3 %v10881_v23  ;;  %v3682_v23 = vmax.f32 %v3603_v56, 0.0 }
 0x363   : > { %3562 = vmatmul.bf16.gmra.mxu0 %v10242_v51  ;;  %v7456_v51 = vld [vmem:[%s14340_s11 + $0x148] sm:$0xf0]  ;;  %v11235_v16 = vpop.permute.xlu1 %4695 }
 0x364   : > { %v2379_v38 = vpop.f32.mrf.mxu2  ;;  %v11231_v55 = vor.u32 %v8200_v30, %v7456_v51  ;;  %15016 = vst [vmem:[#allocation147_spill] sm:$0xff] %v11235_v16 }
 0x365   : > { %v2380_v27 = vadd.f32 %v2379_v38, %v10972_v17  ;;  %v11212_v11 = vpop.f32.mrf.mxu3 }
 0x366   : > { %4252 = vmatpush.bf16.msrb.mxu3 %v10834_v52  ;;  %v3604_v60 = vpop.f32.mrf.mxu1  ;;  %v11222_v52 = vpop.permute.xlu2 %4785 }
 0x367   : > { %v11210_v18 = vadd.f32 %v11081_v7, %v2380_v27  ;;  %v3605_v3 = vadd.f32 %v3604_v60, %v3516_v0  ;;  %15015 = vst [vmem:[#allocation146_spill] sm:$0xff] %v11222_v52  ;;  %v7438_v7 = vld [vmem:[%s14340_s11 + $0x120] sm:$0xf] }
 0x368   : > { %v11241_v56 = vor.u32 %v8197_v48, %v7438_v7  ;;  %v15037_v52 = vld [vmem:[#allocation46_spill] sm:$0xff] }
 0x369   : > { %v3684_v32 = vmax.f32 %v3605_v3, 0.0  ;;  %v3525_v31 = vpop.f32.mrf.mxu0  ;;  %v11250_v3 = vpop.permute.xlu0 %4790 }
 0x36a   : > { %4253 = vmatpush.bf16.msrb.mxu3 %v10778_v35  ;;  %v3519_v35 = vadd.f32 %v11149_v41, %v10025_v58  ;;  %15017 = vst [vmem:[#allocation148_spill] sm:$0xff] %v11241_v56  ;;  %v3521_v41 = vadd.f32 %v3520_v12, %v10101_v50  ;;  %v7464_v50 = vld [vmem:[%s14340_s11 + $0x158] sm:$0xf0] }
 0x36b   : > { %v11233_v4 = vpack.c.bf16 %v3684_v32, %v3682_v23  ;;  %2562 = vmatmul.bf16.gmra.mxu3 %v11231_v55  ;;  %15019 = vst [vmem:[#allocation150_spill] sm:$0xff] %v11250_v3 }
 0x36c   : > { %v2381_v29 = vpop.f32.mrf.mxu2 }
 0x36d   : > { %v2382_v33 = vadd.f32 %v2381_v29, %v10999_v1  ;;  %v11246_v60 = vpop.f32.mrf.mxu3 }
 0x36e   : > { %v3607_v38 = vpop.f32.mrf.mxu1  ;;  %v11252_v32 = vpop.permute.xlu2 %4700 }
 0x36f   : > { %v11244_v0 = vadd.f32 %v11102_v28, %v2382_v33  ;;  %v3608_v27 = vadd.f32 %v3607_v38, %v3519_v35  ;;  %15020 = vst [vmem:[#allocation151_spill] sm:$0xff] %v11252_v32  ;;  %v11257_v28 = vpop.permute.xlu1 %4780  ;;  %v8202_v33 = vld [vmem:[%s14340_s11 + $0x154] sm:$0xf] }
 0x370   : > { %15021 = vst [vmem:[#allocation152_spill] sm:$0xff] %v11257_v28  ;;  %v11276_v12 = vor.u32 %v8202_v33, %v7464_v50 }
 0x371   : > { %15018 = vst [vmem:[#allocation149_spill] sm:$0xff] %v11244_v0  ;;  %2423 = vmatmul.bf16.gmra.mxu2 %v11241_v56  ;;  %3646 = vmatmul.bf16.gmra.mxu1 %v10300_v37  ;;  %v3528_v23 = vpop.f32.mrf.mxu0  ;;  %v3686_v29 = vmax.f32 %v3608_v27, 0.0 }
 0x372   : > { %15023 = vst [vmem:[#allocation154_spill] sm:$0xff] %v11276_v12 }
 0x373   : > { %3567 = vmatmul.bf16.gmra.mxu0 %v10314_v26  ;;  %v7446_v26 = vld [vmem:[%s14340_s11 + $0x130] sm:$0xf] }
 0x374   : > { %v2384_v58 = vpop.f32.mrf.mxu2 }
 0x375   : > { %v2385_v30 = vadd.f32 %v2384_v58, %v10984_v8  ;;  %v11262_v37 = vpop.f32.mrf.mxu3  ;;  %v11282_v58 = vpop.permute.xlu0 %4775 }
 0x376   : > { %v3609_v51 = vpop.f32.mrf.mxu1  ;;  %15024 = vst [vmem:[#allocation155_spill] sm:$0xff] %v11282_v58  ;;  %v11289_v28 = vpop.permute.xlu2 %4685 }
 0x377   : > { %v11260_v7 = vadd.f32 %v11144_v6, %v2385_v30  ;;  %v3610_v48 = vadd.f32 %v3609_v51, %v3521_v41  ;;  %v8199_v6 = vld [vmem:[%s14340_s11 + $0x134] sm:$0xf0]  ;;  %v3524_v30 = vadd.f32 %v3523_v43, %v9946_v2  ;;  %15026 = vst [vmem:[#allocation157_spill] sm:$0xff] %v11289_v28 }
 0x379   : > { %15022 = vst [vmem:[#allocation153_spill] sm:$0xff] %v11260_v7  ;;  %v3688_v35 = vmax.f32 %v3610_v48, 0.0  ;;  %v11278_v38 = vpop.f32.mrf.mxu0  ;;  %v11287_v48 = vor.u32 %v8199_v6, %v7446_v26  ;;  %v3526_v26 = vadd.f32 %v3525_v31, %v9975_v63  ;;  %v15029_v6 = vld [vmem:[#allocation128_spill] sm:$0xff]  ;;  %v8204_v63 = vld [vmem:[%s14340_s11 + $0x164] sm:$0xf] }
 0x37b   : > { %v11280_v27 = vpack.c.bf16 %v3688_v35, %v3686_v29  ;;  %2567 = vmatmul.bf16.gmra.mxu3 %v11276_v12  ;;  %15025 = vst [vmem:[#allocation156_spill] sm:$0xff] %v11287_v48  ;;  %v11296_v35 = vpop.permute.xlu1 %4765 }
 0x37c   : > { %v2386_v41 = vpop.f32.mrf.mxu2  ;;  %15028 = vst [vmem:[#allocation159_spill] sm:$0xff] %v11296_v35 }
 0x37d   : > { %v2387_v51 = vadd.f32 %v2386_v41, %v11001_v61  ;;  %v11294_v29 = vpop.f32.mrf.mxu3 }
 0x37e   : > { %v3612_v3 = vpop.f32.mrf.mxu1  ;;  %v11312_v9 = vpop.permute.xlu2 %4770 }
 0x37f   : > { %v11292_v33 = vadd.f32 %v11163_v47, %v2387_v51  ;;  %v3613_v50 = vadd.f32 %v3612_v3, %v3524_v30  ;;  %v11305_v47 = vpop.permute.xlu0 %4690  ;;  %15033 = vst [vmem:[#allocation161_spill] sm:$0xff] %v11312_v9 }
 0x380   : > { %15031 = vst [vmem:[#allocation69_spill] sm:$0xff] %v11305_v47 }
 0x381   : > { %15027 = vst [vmem:[#allocation158_spill] sm:$0xff] %v11292_v33  ;;  %2428 = vmatmul.bf16.gmra.mxu2 %v11287_v48  ;;  %3651 = vmatmul.bf16.gmra.mxu1 %v10376_v5  ;;  %v11300_v2 = vpop.f32.mrf.mxu0  ;;  %v3690_v5 = vmax.f32 %v3613_v50, 0.0 }
 0x383   : > { %3572 = vmatmul.bf16.gmra.mxu0 %v15030_v10  ;;  %v7472_v10 = vld [vmem:[%s14340_s11 + $0x168] sm:$0xf0]  ;;  %v11320_v31 = vpop.permute.xlu1 %4680 }
 0x384   : > { %v2389_v43 = vpop.f32.mrf.mxu2  ;;  %15034 = vst [vmem:[#allocation162_spill] sm:$0xff] %v11320_v31  ;;  %v11328_v50 = vor.u32 %v8204_v63, %v7472_v10 }
 0x385   : > { %v2390_v41 = vadd.f32 %v2389_v43, %v15029_v6  ;;  %v11310_v39 = vpop.f32.mrf.mxu3  ;;  %v8201_v43 = vld [vmem:[%s14340_s11 + $0x144] sm:$0xf0] }
 0x386   : > { %v3614_v3 = vpop.f32.mrf.mxu1  ;;  %15035 = vst [vmem:[#allocation163_spill] sm:$0xff] %v11328_v50 }
 0x387   : > { %v11308_v30 = vadd.f32 %v11195_v53, %v2390_v41  ;;  %v3615_v51 = vadd.f32 %v3614_v3, %v3526_v26  ;;  %v7454_v53 = vld [vmem:[%s14340_s11 + $0x140] sm:$0xf]  ;;  %v11344_v10 = vpop.permute.xlu0 %4675 }
 0x388   : > { %v11337_v35 = vor.u32 %v8201_v43, %v7454_v53  ;;  %15040 = vst [vmem:[#allocation165_spill] sm:$0xff] %v11344_v10 }
 0x389   : > { %15032 = vst [vmem:[#allocation160_spill] sm:$0xff] %v11308_v30  ;;  %v3692_v14 = vmax.f32 %v3615_v51, 0.0  ;;  %v11330_v26 = vpop.f32.mrf.mxu0  ;;  %v15036_v51 = vld [vmem:[#allocation23_spill] sm:$0xff]  ;;  %v15067_v30 = vld [vmem:[#allocation25_spill] sm:$0xff] }
 0x38a   : > { %v3529_v9 = vadd.f32 %v3528_v23, %v15036_v51  ;;  %15038 = vst [vmem:[#allocation23_spill] sm:$0xff] %v11337_v35  ;;  %v8206_v51 = vld [vmem:[%s14340_s11 + $0x174] sm:$0xf] }
 0x38b   : > { %v11332_v41 = vpack.c.bf16 %v3692_v14, %v3690_v5  ;;  %2572 = vmatmul.bf16.gmra.mxu3 %v11328_v50  ;;  %v15041_v14 = vld [vmem:[#allocation5_spill] sm:$0xff]  ;;  %v11348_v5 = vpop.permute.xlu2 %4755 }
 0x38c   : > { %v2391_v3 = vpop.f32.mrf.mxu2  ;;  %15042 = vst [vmem:[#allocation5_spill] sm:$0xff] %v11348_v5 }
 0x38d   : > { %v2392_v58 = vadd.f32 %v2391_v3, %v15037_v52  ;;  %v2533_v63 = vpop.f32.mrf.mxu3  ;;  %v11352_v3 = vpop.permute.xlu1 %1967 }
 0x38e   : > { %v3617_v13 = vpop.f32.mrf.mxu1  ;;  %15043 = vst [vmem:[#allocation166_spill] sm:$0xff] %v11352_v3 }
 0x38f   : > { %v11340_v21 = vadd.f32 %v11212_v11, %v2392_v58  ;;  %v11342_v62 = vadd.f32 %v3617_v13, %v3529_v9  ;;  %v15044_v11 = vld [vmem:[#allocation2_spill] sm:$0xff]  ;;  %v11367_v5 = vpop.permute.xlu0 %4760 }
 0x390   : > { %15046 = vst [vmem:[#allocation167_spill] sm:$0xff] %v11367_v5 }
 0x391   : > { %15039 = vst [vmem:[#allocation164_spill] sm:$0xff] %v11340_v21  ;;  %2433 = vmatmul.bf16.gmra.mxu2 %v11337_v35  ;;  %3656 = vmatmul.bf16.gmra.mxu1 %v15041_v14  ;;  %v11350_v23 = vpop.f32.mrf.mxu0  ;;  %v7480_v14 = vld [vmem:[%s14340_s11 + $0x178] sm:$0xf0] }
 0x393   : > { %3577 = vmatmul.bf16.gmra.mxu0 %v15044_v11  ;;  %v11377_v40 = vpop.permute.xlu2 %1972 }
 0x394   : > { %v2394_v53 = vpop.f32.mrf.mxu2  ;;  %15048 = vst [vmem:[#allocation169_spill] sm:$0xff] %v11377_v40 }
 0x395   : > { %v2395_v43 = vadd.f32 %v2394_v53, %v11352_v3  ;;  %v2535_v58 = vpop.f32.mrf.mxu3  ;;  %v7462_v53 = vld [vmem:[%s14340_s11 + $0x150] sm:$0xf]  ;;  %v15053_v3 = vld [vmem:[#allocation75_spill] sm:$0xff] }
 0x396   : > { %v11356_v9 = vpop.f32.mrf.mxu1 }
 0x397   : > { %v11359_v13 = vadd.f32 %v11246_v60, %v2395_v43  ;;  %v8203_v60 = vld [vmem:[%s14340_s11 + $0x154] sm:$0xf0]  ;;  %v11375_v43 = vor.u32 %v8206_v51, %v7480_v14  ;;  %v11390_v10 = vpop.permute.xlu0 %1977 }
 0x398   : > { %v11381_v47 = vor.u32 %v8203_v60, %v7462_v53  ;;  %v15051_v51 = vld [vmem:[#allocation73_spill] sm:$0xff] }
 0x399   : > { %15045 = vst [vmem:[#allocation2_spill] sm:$0xff] %v11359_v13  ;;  %v3540_v11 = vpop.f32.mrf.mxu0 }
 0x39a   : > { %15047 = vst [vmem:[#allocation168_spill] sm:$0xff] %v11375_v43 }
 0x39b   : > { %2577 = vmatmul.bf16.gmra.mxu3 %v11375_v43  ;;  %15049 = vst [vmem:[#allocation170_spill] sm:$0xff] %v11381_v47  ;;  %v11418_v21 = vpop.permute.xlu2 %1987 }
 0x39c   : > { %v2396_v32 = vpop.f32.mrf.mxu2  ;;  %15052 = vst [vmem:[#allocation73_spill] sm:$0xff] %v11390_v10 }
 0x39d   : > { %v2397_v16 = vadd.f32 %v2396_v32, %v11377_v40  ;;  %v2538_v31 = vpop.f32.mrf.mxu3  ;;  %v15059_v40 = vld [vmem:[#allocation82_spill] sm:$0xff] }
 0x39e   : > { %v11383_v5 = vpop.f32.mrf.mxu1  ;;  %15060 = vst [vmem:[#allocation82_spill] sm:$0xff] %v11418_v21 }
 0x39f   : > { %v11386_v28 = vadd.f32 %v11262_v37, %v2397_v16  ;;  %v7470_v16 = vld [vmem:[%s14340_s11 + $0x160] sm:$0xf]  ;;  %v8205_v37 = vld [vmem:[%s14340_s11 + $0x164] sm:$0xf0] }
 0x3a1   : > { %15050 = vst [vmem:[#allocation171_spill] sm:$0xff] %v11386_v28  ;;  %2438 = vmatmul.bf16.gmra.mxu2 %v11381_v47  ;;  %3661 = vmatmul.bf16.gmra.mxu1 %v15051_v51  ;;  %v3543_v14 = vpop.f32.mrf.mxu0  ;;  %v11405_v47 = vpop.permute.xlu1 %1982 }
 0x3a2   : > { %15055 = vst [vmem:[#allocation172_spill] sm:$0xff] %v11405_v47  ;;  %v3544_v6 = vadd.f32 %v3543_v14, %v15067_v30  ;;  %v15073_v14 = vld [vmem:[#allocation31_spill] sm:$0xff] }
 0x3a3   : > { %3582 = vmatmul.bf16.gmra.mxu0 %v15053_v3  ;;  %v3536_v8 = vadd.f32 %v11330_v26, %v15073_v14  ;;  %v15080_v14 = vld [vmem:[#allocation62_spill] sm:$0xff] }
 0x3a4   : > { %v2399_v13 = vpop.f32.mrf.mxu2 }
 0x3a5   : > { %v2400_v43 = vadd.f32 %v2399_v13, %v11390_v10  ;;  %v11397_v60 = vpop.f32.mrf.mxu3  ;;  %v15056_v10 = vld [vmem:[#allocation34_spill] sm:$0xff] }
 0x3a6   : > { %v3624_v32 = vpop.f32.mrf.mxu1 }
 0x3a7   : > { %v11395_v53 = vadd.f32 %v11294_v29, %v2400_v43  ;;  %v11409_v29 = vor.u32 %v8205_v37, %v7470_v16  ;;  %v8207_v37 = vld [vmem:[%s14340_s11 + $0x174] sm:$0xf0] }
 0x3a9   : > { %15054 = vst [vmem:[#allocation75_spill] sm:$0xff] %v11395_v53  ;;  %v3545_v51 = vpop.f32.mrf.mxu0  ;;  %v11446_v33 = vpop.permute.xlu1 %1997 }
 0x3aa   : > { %15057 = vst [vmem:[#allocation34_spill] sm:$0xff] %v11409_v29 }
 0x3ab   : > { %2720 = vmatmul.bf16.vlgmr.msra.gmra.mxu3 %v15056_v10 }
 0x3ac   : > { %v2401_v13 = vpop.f32.mrf.mxu2 }
 0x3ad   : > { %v2402_v3 = vadd.f32 %v2401_v13, %v11405_v47  ;;  %v11414_v28 = vpop.f32.mrf.mxu3  ;;  %v15066_v47 = vld [vmem:[#allocation89_spill] sm:$0xff] }
 0x3ae   : > { %v3627_v43 = vpop.f32.mrf.mxu1  ;;  %15068 = vst [vmem:[#allocation89_spill] sm:$0xff] %v11446_v33 }
 0x3af   : > { %v11412_v53 = vadd.f32 %v11310_v39, %v2402_v3  ;;  %v7478_v39 = vld [vmem:[%s14340_s11 + $0x170] sm:$0xf]  ;;  %v11433_v3 = vpop.permute.xlu0 %1992 }
 0x3b0   : > { %15062 = vst [vmem:[#allocation175_spill] sm:$0xff] %v11433_v3 }
 0x3b1   : > { %15058 = vst [vmem:[#allocation173_spill] sm:$0xff] %v11412_v53  ;;  %2443 = vmatmul.bf16.gmra.mxu2 %v11409_v29  ;;  %3666 = vmatmul.bf16.gmra.mxu1 %v15059_v40  ;;  %v3548_v35 = vpop.f32.mrf.mxu0  ;;  %v15063_v53 = vld [vmem:[#allocation38_spill] sm:$0xff] }
 0x3b4   : > { %v2404_v50 = vpop.f32.mrf.mxu2 }
 0x3b5   : > { %v2405_v10 = vadd.f32 %v2404_v50, %v11418_v21  ;;  %v11423_v16 = vpop.f32.mrf.mxu3 }
 0x3b6   : > { %v3629_v52 = vpop.f32.mrf.mxu1 }
 0x3b7   : > { %v11421_v13 = vadd.f32 %v2533_v63, %v2405_v10  ;;  %v11437_v63 = vor.u32 %v8207_v37, %v7478_v39 }
 0x3b9   : > { %15061 = vst [vmem:[#allocation174_spill] sm:$0xff] %v11421_v13  ;;  %v11431_v40 = vpop.f32.mrf.mxu0 }
 0x3ba   : > { %15064 = vst [vmem:[#allocation38_spill] sm:$0xff] %v11437_v63 }
 0x3bb   : > { %2725 = vmatmul.bf16.gmra.mxu3 %v15063_v53  ;;  %v15069_v53 = vld [vmem:[#allocation45_spill] sm:$0xff] }
 0x3bc   : > { %v2406_v29 = vpop.f32.mrf.mxu2  ;;  %v3541_v61 = vadd.f32 %v3540_v11, %v15069_v53 }
 0x3bd   : > { %v2407_v50 = vadd.f32 %v2406_v29, %v11433_v3  ;;  %v11441_v21 = vpop.f32.mrf.mxu3  ;;  %v15070_v29 = vld [vmem:[#allocation32_spill] sm:$0xff] }
 0x3be   : > { %v3632_v10 = vpop.f32.mrf.mxu1  ;;  %v3546_v39 = vadd.f32 %v3545_v51, %v15070_v29  ;;  %v15074_v51 = vld [vmem:[#allocation27_spill] sm:$0xff] }
 0x3bf   : > { %v11439_v13 = vadd.f32 %v2535_v58, %v2407_v50  ;;  %v3633_v37 = vadd.f32 %v3632_v10, %v3544_v6  ;;  %v3534_v6 = vadd.f32 %v11300_v2, %v15074_v51 }
 0x3c1   : > { %15065 = vst [vmem:[#allocation176_spill] sm:$0xff] %v11439_v13  ;;  %2448 = vmatmul.bf16.gmra.mxu2 %v11437_v63  ;;  %3671 = vmatmul.bf16.gmra.mxu1 %v15066_v47  ;;  %v3553_v48 = vpop.f32.mrf.mxu0  ;;  %v15071_v13 = vld [vmem:[#allocation30_spill] sm:$0xff]  ;;  %v3630_v63 = vadd.f32 %v3629_v52, %v3541_v61  ;;  %v3706_v11 = vmax.f32 %v3633_v37, 0.0  ;;  %v11463_v61 = vpop.permute.xlu2 %2002  ;;  %v15076_v52 = vld [vmem:[#allocation51_spill] sm:$0xff]  ;;  %v3623_v26 = vadd.f32 %v11383_v5, %v3534_v6 }
 0x3c2   : > { %v3539_v3 = vadd.f32 %v11350_v23, %v15071_v13  ;;  %15075 = vst [vmem:[#allocation45_spill] sm:$0xff] %v11463_v61  ;;  %v15077_v13 = vld [vmem:[#allocation54_spill] sm:$0xff] }
 0x3c3   : > { %v3704_v10 = vmax.f32 %v3630_v63, 0.0 }
 0x3c4   : > { %v2409_v12 = vpop.f32.mrf.mxu2  ;;  %v3628_v56 = vadd.f32 %v3627_v43, %v3539_v3  ;;  %v15078_v3 = vld [vmem:[#allocation67_spill] sm:$0xff] }
 0x3c5   : > { %v2410_v58 = vadd.f32 %v2409_v12, %v11446_v33  ;;  %v11455_v30 = vpop.f32.mrf.mxu3  ;;  %v3625_v12 = vadd.f32 %v3624_v32, %v3536_v8 }
 0x3c6   : > { %v3634_v50 = vpop.f32.mrf.mxu1  ;;  %v3702_v43 = vmax.f32 %v3628_v56, 0.0  ;;  %v11478_v56 = vpop.permute.xlu0 %2007 }
 0x3c7   : > { %v11453_v7 = vadd.f32 %v2538_v31, %v2410_v58  ;;  %v3635_v47 = vadd.f32 %v3634_v50, %v3546_v39  ;;  %v3531_v31 = vadd.f32 %v11278_v38, %v15076_v52  ;;  %v3549_v39 = vadd.f32 %v3548_v35, %v15078_v3  ;;  %15081 = vst [vmem:[#allocation30_spill] sm:$0xff] %v11478_v56 }
 0x3c8   : > { %v3700_v63 = vmax.f32 %v3625_v12, 0.0  ;;  %v3754_v38 = vpack.c.bf16 %v3704_v10, %v3702_v43 }
 0x3c9   : > { %15072 = vst [vmem:[#allocation25_spill] sm:$0xff] %v11453_v7  ;;  %v3708_v53 = vmax.f32 %v3635_v47, 0.0  ;;  %v11461_v33 = vpop.f32.mrf.mxu0  ;;  %v3620_v8 = vadd.f32 %v11356_v9, %v3531_v31  ;;  %v3698_v47 = vmax.f32 %v3623_v26, 0.0  ;;  %v3694_v9 = vmax.f32 %v11342_v62, 0.0  ;;  %v15084_v31 = vld [vmem:[#allocation47_spill] sm:$0xff] }
 0x3cb   : > { %v3756_v29 = vpack.c.bf16 %v3708_v53, %v3706_v11  ;;  %2730 = vmatmul.bf16.gmra.mxu3 %v15077_v13  ;;  %v3696_v35 = vmax.f32 %v3620_v8, 0.0  ;;  %v3752_v5 = vpack.c.bf16 %v3700_v63, %v3698_v47  ;;  %v11502_v8 = vpop.permute.xlu2 %2017 }
 0x3cc   : > { %v2411_v23 = vpop.f32.mrf.mxu2  ;;  %15088 = vst [vmem:[#allocation54_spill] sm:$0xff] %v11502_v8 }
 0x3cd   : > { %v2412_v2 = vadd.f32 %v2411_v23, %v11463_v61  ;;  %4335 = vmatpush.bf16.msrb.mxu0 %v3756_v29  ;;  %v2553_v50 = vpop.f32.mrf.mxu3  ;;  %v3750_v12 = vpack.c.bf16 %v3696_v35, %v3694_v9  ;;  %v11487_v29 = vpop.permute.xlu1 %2012  ;;  %v15085_v23 = vld [vmem:[#allocation61_spill] sm:$0xff] }
 0x3ce   : > { %v3637_v32 = vpop.f32.mrf.mxu1  ;;  %15083 = vst [vmem:[#allocation27_spill] sm:$0xff] %v11487_v29  ;;  %v3554_v13 = vadd.f32 %v3553_v48, %v15085_v23  ;;  %v15095_v23 = vld [vmem:[#allocation55_spill] sm:$0xff] }
 0x3cf   : > { %v11473_v37 = vadd.f32 %v11397_v60, %v2412_v2  ;;  %v11475_v58 = vadd.f32 %v3637_v32, %v3549_v39  ;;  %v15087_v2 = vld [vmem:[#allocation64_spill] sm:$0xff] }
 0x3d1   : > { %15079 = vst [vmem:[#allocation32_spill] sm:$0xff] %v11473_v37  ;;  %2591 = vmatmul.bf16.vlgmr.msra.gmra.mxu2 %v15080_v14  ;;  %4336 = vmatpush.bf16.msrb.mxu0 %v3754_v38  ;;  %v3558_v11 = vpop.f32.mrf.mxu0 }
 0x3d4   : > { %v2414_v53 = vpop.f32.mrf.mxu2 }
 0x3d5   : > { %v2415_v51 = vadd.f32 %v2414_v53, %v11478_v56  ;;  %4337 = vmatpush.bf16.msrb.mxu0 %v3752_v5  ;;  %v2555_v10 = vpop.f32.mrf.mxu3  ;;  %v15092_v5 = vld [vmem:[#allocation57_spill] sm:$0xff]  ;;  %v15093_v53 = vld [vmem:[#allocation35_spill] sm:$0xff] }
 0x3d6   : > { %v11482_v60 = vpop.f32.mrf.mxu1  ;;  %v3559_v9 = vadd.f32 %v3558_v11, %v15093_v53  ;;  %v7622_v11 = vld [vmem:[%s14334_s5 + $0x10] sm:$0xf]  ;;  %v15100_v53 = vld [vmem:[#allocation63_spill] sm:$0xff] }
 0x3d7   : > { %v11485_v6 = vadd.f32 %v11414_v28, %v2415_v51 }
 0x3d9   : > { %15082 = vst [vmem:[#allocation31_spill] sm:$0xff] %v11485_v6  ;;  %4338 = vmatpush.bf16.msrb.mxu0 %v3750_v12  ;;  %v11493_v26 = vpop.f32.mrf.mxu0 }
 0x3db   : > { %2735 = vmatmul.bf16.gmra.mxu3 %v15084_v31 }
 0x3dc   : > { %v2416_v52 = vpop.f32.mrf.mxu2 }
 0x3dd   : > { %v2417_v62 = vadd.f32 %v2416_v52, %v11487_v29  ;;  %4339 = vmatpush.bf16.msrb.mxu0 %v11332_v41  ;;  %v7614_v41 = vld [vmem:[%s14334_s5] sm:$0xf] }
 0x3de   : > { %v3642_v43 = vpop.f32.mrf.mxu1  ;;  %v2558_v39 = vpop.f32.mrf.mxu3 }
 0x3df   : > { %v11496_v28 = vadd.f32 %v11423_v16, %v2417_v62  ;;  %v11498_v3 = vadd.f32 %v3642_v43, %v3554_v13  ;;  %v8241_v16 = vld [vmem:[%s14334_s5 + $0x4] sm:$0xf0]  ;;  %v11534_v13 = vpop.permute.xlu1 %2027 }
 0x3e0   : > { %v11517_v14 = vor.u32 %v8241_v16, %v7614_v41  ;;  %15096 = vst [vmem:[#allocation64_spill] sm:$0xff] %v11534_v13  ;;  %v11549_v16 = vpop.permute.xlu2 %2032 }
 0x3e1   : > { %15086 = vst [vmem:[#allocation51_spill] sm:$0xff] %v11496_v28  ;;  %2596 = vmatmul.bf16.gmra.mxu2 %v15087_v2  ;;  %4340 = vmatpush.bf16.msrb.mxu0 %v11280_v27  ;;  %v3563_v47 = vpop.f32.mrf.mxu0 }
 0x3e2   : > { %15090 = vst [vmem:[#allocation62_spill] sm:$0xff] %v11517_v14 }
 0x3e3   : > { %15099 = vst [vmem:[#allocation55_spill] sm:$0xff] %v11549_v16 }
 0x3e4   : > { %v2419_v48 = vpop.f32.mrf.mxu2 }
 0x3e5   : > { %v2420_v32 = vadd.f32 %v2419_v48, %v11502_v8  ;;  %4341 = vmatpush.bf16.msrb.mxu0 %v11233_v4  ;;  %v11520_v4 = vpop.permute.xlu0 %2022 }
 0x3e6   : > { %v11512_v63 = vpop.f32.mrf.mxu1  ;;  %v2560_v27 = vpop.f32.mrf.mxu3  ;;  %15091 = vst [vmem:[#allocation47_spill] sm:$0xff] %v11520_v4 }
 0x3e7   : > { %v11515_v38 = vadd.f32 %v11441_v21, %v2420_v32 }
 0x3e9   : > { %15089 = vst [vmem:[#allocation67_spill] sm:$0xff] %v11515_v38  ;;  %4342 = vmatpush.bf16.msrb.mxu0 %v11181_v19  ;;  %v11532_v19 = vpop.f32.mrf.mxu0 }
 0x3eb   : > { %2740 = vmatmul.bf16.gmra.mxu3 %v15092_v5 }
 0x3ec   : > { %v2421_v35 = vpop.f32.mrf.mxu2  ;;  %4343 = vmatmul.bf16.vlgmr.msrb.gmra.mxu0 %v11517_v14 }
 0x3ed   : > { %v2422_v51 = vadd.f32 %v2421_v35, %v11520_v4 }
 0x3ee   : > { %v3647_v12 = vpop.f32.mrf.mxu1  ;;  %v2563_v31 = vpop.f32.mrf.mxu3 }
 0x3ef   : > { %v11527_v21 = vadd.f32 %v11455_v30, %v2422_v51  ;;  %v11529_v52 = vadd.f32 %v3647_v12, %v3559_v9  ;;  %v8243_v30 = vld [vmem:[%s14334_s5 + $0x14] sm:$0xf0]  ;;  %v15101_v9 = vld [vmem:[#allocation24_spill] sm:$0xff] }
 0x3f0   : > { %v11547_v41 = vor.u32 %v8243_v30, %v7622_v11  ;;  %v3564_v51 = vadd.f32 %v3563_v47, %v15101_v9  ;;  %v15103_v11 = vld [vmem:[#allocation20_spill] sm:$0xff]  ;;  %v11560_v30 = vpop.permute.xlu0 %2037  ;;  %v8245_v47 = vld [vmem:[%s14334_s5 + $0x24] sm:$0xf0] }
 0x3f1   : > { %15094 = vst [vmem:[#allocation61_spill] sm:$0xff] %v11527_v21  ;;  %2601 = vmatmul.bf16.gmra.mxu2 %v15095_v23  ;;  %v3568_v35 = vpop.f32.mrf.mxu0 }
 0x3f2   : > { %15098 = vst [vmem:[#allocation35_spill] sm:$0xff] %v11547_v41 }
 0x3f3   : > { %15104 = vst [vmem:[#allocation24_spill] sm:$0xff] %v11560_v30 }
 0x3f4   : > { %v2424_v62 = vpop.f32.mrf.mxu2 }
 0x3f5   : > { %v2425_v43 = vadd.f32 %v2424_v62, %v11534_v13 }
 0x3f6   : > { %v11543_v2 = vpop.f32.mrf.mxu1  ;;  %v2565_v32 = vpop.f32.mrf.mxu3 }
 0x3f7   : > { %v11545_v48 = vadd.f32 %v2553_v50, %v2425_v43 }
 0x3f9   : > { %15097 = vst [vmem:[#allocation57_spill] sm:$0xff] %v11545_v48 }
 0x3fb   : > { %2745 = vmatmul.bf16.gmra.mxu3 %v15100_v53  ;;  %v7630_v53 = vld [vmem:[%s14334_s5 + $0x20] sm:$0xf] }
 0x3fc   : > { %v2426_v5 = vpop.f32.mrf.mxu2  ;;  %4348 = vmatmul.bf16.gmra.mxu0 %v11547_v41 }
 0x3fd   : > { %v2427_v12 = vadd.f32 %v2426_v5, %v11549_v16 }
 0x3fe   : > { %v3652_v23 = vpop.f32.mrf.mxu1  ;;  %v2568_v43 = vpop.f32.mrf.mxu3 }
 0x3ff   : > { %v11555_v62 = vadd.f32 %v2555_v10, %v2427_v12  ;;  %v11557_v50 = vadd.f32 %v3652_v23, %v3564_v51  ;;  %v11569_v10 = vpop.f32.mrf.mxu0  ;;  %v11575_v12 = vor.u32 %v8245_v47, %v7630_v53  ;;  %v11577_v23 = vpop.permute.xlu1 %2042  ;;  %v15111_v53 = vld [vmem:[#allocation7_spill] sm:$0xff] }
 0x400   : > { %15107 = vst [vmem:[#allocation178_spill] sm:$0xff] %v11577_v23  ;;  %v11590_v47 = vpop.permute.xlu2 %2047 }
 0x401   : > { %15102 = vst [vmem:[#allocation63_spill] sm:$0xff] %v11555_v62  ;;  %2606 = vmatmul.bf16.gmra.mxu2 %v15103_v11  ;;  %v15108_v11 = vld [vmem:[#allocation18_spill] sm:$0xff] }
 0x402   : > { %15106 = vst [vmem:[#allocation177_spill] sm:$0xff] %v11575_v12 }
 0x404   : > { %v2429_v48 = vpop.f32.mrf.mxu2 }
 0x405   : > { %v2430_v13 = vadd.f32 %v2429_v48, %v11560_v30  ;;  %v15109_v30 = vld [vmem:[#allocation49_spill] sm:$0xff] }
 0x406   : > { %v11571_v5 = vpop.f32.mrf.mxu1  ;;  %v2570_v51 = vpop.f32.mrf.mxu3  ;;  %v3569_v62 = vadd.f32 %v3568_v35, %v15109_v30  ;;  %15112 = vst [vmem:[#allocation49_spill] sm:$0xff] %v11590_v47  ;;  %v7638_v35 = vld [vmem:[%s14334_s5 + $0x30] sm:$0xf] }
 0x407   : > { %v11573_v9 = vadd.f32 %v2558_v39, %v2430_v13  ;;  %v11587_v13 = vpop.f32.mrf.mxu0 }
 0x409   : > { %15105 = vst [vmem:[#allocation20_spill] sm:$0xff] %v11573_v9 }
 0x40b   : > { %2750 = vmatmul.bf16.gmra.mxu3 %v15108_v11  ;;  %v11607_v11 = vpop.permute.xlu0 %2052 }
 0x40c   : > { %v2431_v48 = vpop.f32.mrf.mxu2  ;;  %4353 = vmatmul.bf16.gmra.mxu0 %v11575_v12  ;;  %15115 = vst [vmem:[#allocation180_spill] sm:$0xff] %v11607_v11 }
 0x40d   : > { %v2432_v16 = vadd.f32 %v2431_v48, %v11577_v23 }
 0x40e   : > { %v3657_v21 = vpop.f32.mrf.mxu1  ;;  %v2573_v39 = vpop.f32.mrf.mxu3 }
 0x40f   : > { %v11583_v4 = vadd.f32 %v2560_v27, %v2432_v16  ;;  %v11585_v38 = vadd.f32 %v3657_v21, %v3569_v62  ;;  %v8247_v27 = vld [vmem:[%s14334_s5 + $0x34] sm:$0xf0]  ;;  %v11605_v48 = vpop.f32.mrf.mxu0 }
 0x410   : > { %v11603_v30 = vor.u32 %v8247_v27, %v7638_v35  ;;  %v11617_v35 = vpop.permute.xlu1 %2057 }
 0x411   : > { %15110 = vst [vmem:[#allocation18_spill] sm:$0xff] %v11583_v4  ;;  %2611 = vmatmul.bf16.gmra.mxu2 %v15111_v53  ;;  %v15116_v53 = vld [vmem:[#allocation11_spill] sm:$0xff] }
 0x412   : > { %15114 = vst [vmem:[#allocation179_spill] sm:$0xff] %v11603_v30 }
 0x414   : > { %v2434_v9 = vpop.f32.mrf.mxu2 }
 0x415   : > { %v2435_v12 = vadd.f32 %v2434_v9, %v11590_v47 }
 0x416   : > { %v11599_v21 = vpop.f32.mrf.mxu1  ;;  %v2575_v62 = vpop.f32.mrf.mxu3 }
 0x417   : > { %v11601_v16 = vadd.f32 %v2563_v31, %v2435_v12  ;;  %v15118_v12 = vld [vmem:[#allocation72_spill] sm:$0xff]  ;;  %v3578_v27 = vpop.f32.mrf.mxu0 }
 0x418   : > { %15119 = vst [vmem:[#allocation72_spill] sm:$0xff] %v11617_v35 }
 0x419   : > { %15113 = vst [vmem:[#allocation7_spill] sm:$0xff] %v11601_v16 }
 0x41b   : > { %2755 = vmatmul.bf16.gmra.mxu3 %v15116_v53 }
 0x41c   : > { %v2436_v9 = vpop.f32.mrf.mxu2  ;;  %4358 = vmatmul.bf16.gmra.mxu0 %v11603_v30  ;;  %v7646_v30 = vld [vmem:[%s14334_s5 + $0x40] sm:$0xf] }
 0x41d   : > { %v2437_v47 = vadd.f32 %v2436_v9, %v11607_v11  ;;  %v8249_v9 = vld [vmem:[%s14334_s5 + $0x44] sm:$0xf0] }
 0x41e   : > { %v11612_v4 = vpop.f32.mrf.mxu1  ;;  %v2578_v31 = vpop.f32.mrf.mxu3 }
 0x41f   : > { %v11614_v23 = vadd.f32 %v2565_v32, %v2437_v47  ;;  %v3580_v41 = vpop.f32.mrf.mxu0 }
 0x420   : > { %v3581_v7 = vadd.f32 %v3580_v41, %v14998_v34 }
 0x421   : > { %15117 = vst [vmem:[#allocation11_spill] sm:$0xff] %v11614_v23  ;;  %2616 = vmatmul.bf16.gmra.mxu2 %v15118_v12  ;;  %v11630_v12 = vor.u32 %v8249_v9, %v7646_v30  ;;  %v11632_v23 = vpop.permute.xlu2 %2062 }
 0x422   : > { %15122 = vst [vmem:[#allocation183_spill] sm:$0xff] %v11632_v23 }
 0x423   : > { %15121 = vst [vmem:[#allocation182_spill] sm:$0xff] %v11630_v12 }
 0x424   : > { %v2439_v16 = vpop.f32.mrf.mxu2 }
 0x425   : > { %v2440_v8 = vadd.f32 %v2439_v16, %v11617_v35  ;;  %v15123_v16 = vld [vmem:[#allocation79_spill] sm:$0xff] }
 0x426   : > { %v3664_v53 = vpop.f32.mrf.mxu1  ;;  %v11628_v47 = vpop.f32.mrf.mxu3 }
 0x427   : > { %v11626_v32 = vadd.f32 %v2568_v43, %v2440_v8  ;;  %v15125_v8 = vld [vmem:[#allocation81_spill] sm:$0xff]  ;;  %v11642_v43 = vpop.permute.xlu0 %2067 }
 0x428   : > { %15126 = vst [vmem:[#allocation81_spill] sm:$0xff] %v11642_v43 }
 0x429   : > { %15120 = vst [vmem:[#allocation181_spill] sm:$0xff] %v11626_v32  ;;  %v7654_v32 = vld [vmem:[%s14334_s5 + $0x50] sm:$0xf] }
 0x42b   : > { %2760 = vmatmul.bf16.gmra.mxu3 %v15123_v16 }
 0x42c   : > { %v2441_v11 = vpop.f32.mrf.mxu2  ;;  %4363 = vmatmul.bf16.gmra.mxu0 %v11630_v12 }
 0x42d   : > { %v2442_v35 = vadd.f32 %v2441_v11, %v11632_v23  ;;  %v8251_v11 = vld [vmem:[%s14334_s5 + $0x54] sm:$0xf0]  ;;  %v11657_v23 = vpop.permute.xlu1 %2072 }
 0x42e   : > { %v3667_v28 = vpop.f32.mrf.mxu1  ;;  %v11639_v6 = vpop.f32.mrf.mxu3  ;;  %15129 = vst [vmem:[#allocation186_spill] sm:$0xff] %v11657_v23 }
 0x42f   : > { %v11637_v29 = vadd.f32 %v2570_v51, %v2442_v35 }
 0x431   : > { %15124 = vst [vmem:[#allocation79_spill] sm:$0xff] %v11637_v29  ;;  %2621 = vmatmul.bf16.gmra.mxu2 %v15125_v8  ;;  %v3583_v29 = vpop.f32.mrf.mxu0  ;;  %v11655_v8 = vor.u32 %v8251_v11, %v7654_v32  ;;  %v11668_v11 = vpop.permute.xlu2 %2077 }
 0x433   : > { %15128 = vst [vmem:[#allocation185_spill] sm:$0xff] %v11655_v8 }
 0x434   : > { %v2444_v30 = vpop.f32.mrf.mxu2 }
 0x435   : > { %v2445_v9 = vadd.f32 %v2444_v30, %v11642_v43  ;;  %v15130_v30 = vld [vmem:[#allocation87_spill] sm:$0xff] }
 0x436   : > { %v3669_v16 = vpop.f32.mrf.mxu1  ;;  %v11653_v35 = vpop.f32.mrf.mxu3 }
 0x437   : > { %v11651_v51 = vadd.f32 %v2573_v39, %v2445_v9  ;;  %v15132_v39 = vld [vmem:[#allocation88_spill] sm:$0xff] }
 0x438   : > { %15134 = vst [vmem:[#allocation88_spill] sm:$0xff] %v11668_v11 }
 0x439   : > { %15127 = vst [vmem:[#allocation184_spill] sm:$0xff] %v11651_v51  ;;  %v3585_v9 = vpop.f32.mrf.mxu0  ;;  %v15133_v51 = vld [vmem:[#allocation43_spill] sm:$0xff] }
 0x43a   : > { %v3584_v32 = vadd.f32 %v3583_v29, %v15133_v51  ;;  %v3579_v29 = vadd.f32 %v3578_v27, %v15000_v49  ;;  %v3670_v51 = vadd.f32 %v3669_v16, %v3581_v7  ;;  %v11690_v7 = vpop.permute.xlu0 %2082  ;;  %v15135_v27 = vld [vmem:[#allocation95_spill] sm:$0xff]  ;;  %v3571_v16 = vadd.f32 %v11569_v10, %v15007_v46  ;;  %v15137_v10 = vld [vmem:[#allocation97_spill] sm:$0xff] }
 0x43b   : > { %2765 = vmatmul.bf16.gmra.mxu3 %v15130_v30 }
 0x43c   : > { %v2446_v12 = vpop.f32.mrf.mxu2  ;;  %4368 = vmatmul.bf16.gmra.mxu0 %v11655_v8  ;;  %v3586_v8 = vadd.f32 %v3585_v9, %v14996_v45  ;;  %v3736_v0 = vmax.f32 %v3670_v51, 0.0 }
 0x43d   : > { %v2447_v43 = vadd.f32 %v2446_v12, %v11657_v23 }
 0x43e   : > { %v3672_v56 = vpop.f32.mrf.mxu1  ;;  %v11664_v37 = vpop.f32.mrf.mxu3 }
 0x43f   : > { %v11662_v14 = vadd.f32 %v2575_v62, %v2447_v43  ;;  %v3673_v30 = vadd.f32 %v3672_v56, %v3584_v32  ;;  %v7662_v62 = vld [vmem:[%s14334_s5 + $0x60] sm:$0xf]  ;;  %v8253_v43 = vld [vmem:[%s14334_s5 + $0x64] sm:$0xf0]  ;;  %v3668_v56 = vadd.f32 %v3667_v28, %v3579_v29 }
 0x440   : > { %v11684_v45 = vor.u32 %v8253_v43, %v7662_v62 }
 0x441   : > { %15131 = vst [vmem:[#allocation87_spill] sm:$0xff] %v11662_v14  ;;  %2626 = vmatmul.bf16.gmra.mxu2 %v15132_v39  ;;  %v3738_v9 = vmax.f32 %v3673_v30, 0.0  ;;  %v3734_v28 = vmax.f32 %v3668_v56, 0.0 }
 0x444   : > { %v2449_v61 = vpop.f32.mrf.mxu2 }
 0x445   : > { %v2450_v12 = vadd.f32 %v2449_v61, %v11668_v11  ;;  %v3576_v61 = vadd.f32 %v11605_v48, %v15002_v25  ;;  %v3574_v11 = vadd.f32 %v11587_v13, %v15005_v44  ;;  %v3660_v44 = vadd.f32 %v11599_v21, %v3571_v16 }
 0x446   : > { %v3674_v39 = vpop.f32.mrf.mxu1  ;;  %v11682_v41 = vpop.f32.mrf.mxu3 }
 0x447   : > { %v11680_v14 = vadd.f32 %v2578_v31, %v2450_v12  ;;  %v3675_v34 = vadd.f32 %v3674_v39, %v3586_v8  ;;  %v3665_v23 = vadd.f32 %v3664_v53, %v3576_v61  ;;  %v3663_v25 = vadd.f32 %v11612_v4, %v3574_v11  ;;  %v15136_v12 = vld [vmem:[#allocation28_spill] sm:$0xff]  ;;  %v15139_v39 = vld [vmem:[#allocation98_spill] sm:$0xff] }
 0x448   : > { %v3770_v8 = vpack.c.bf16 %v3736_v0, %v3734_v28  ;;  %v3566_v62 = vadd.f32 %v11532_v19, %v15136_v12  ;;  %v3728_v11 = vmax.f32 %v3660_v44, 0.0  ;;  %v3726_v0 = vmax.f32 %v11585_v38, 0.0  ;;  %v7670_v19 = vld [vmem:[%s14334_s5 + $0x70] sm:$0xf] }
 0x449   : > { %v3740_v32 = vmax.f32 %v3675_v34, 0.0  ;;  %v3732_v13 = vmax.f32 %v3665_v23, 0.0  ;;  %v3730_v46 = vmax.f32 %v3663_v25, 0.0  ;;  %v15138_v23 = vld [vmem:[#allocation16_spill] sm:$0xff] }
 0x44a   : > { %v3655_v4 = vadd.f32 %v11571_v5, %v3566_v62  ;;  %v8255_v5 = vld [vmem:[%s14334_s5 + $0x74] sm:$0xf0]  ;;  %v3766_v56 = vpack.c.bf16 %v3728_v11, %v3726_v0  ;;  %v15142_v28 = vld [vmem:[#allocation100_spill] sm:$0xff]  ;;  %v8240_v0 = vld [vmem:[%s14334_s5 + $0x4] sm:$0xf] }
 0x44b   : > { %v3772_v49 = vpack.c.bf16 %v3740_v32, %v3738_v9  ;;  %2770 = vmatmul.bf16.gmra.mxu3 %v15135_v27  ;;  %v3768_v43 = vpack.c.bf16 %v3732_v13, %v3730_v46  ;;  %v11728_v38 = vor.u32 %v8255_v5, %v7670_v19  ;;  %v15140_v9 = vld [vmem:[#allocation52_spill] sm:$0xff] }
 0x44c   : > { %v2451_v31 = vpop.f32.mrf.mxu2  ;;  %4373 = vmatmul.bf16.gmra.mxu0 %v11684_v45  ;;  %v3724_v34 = vmax.f32 %v3655_v4, 0.0  ;;  %v3556_v32 = vadd.f32 %v11461_v33, %v15140_v9  ;;  %v3718_v33 = vmax.f32 %v11529_v52, 0.0  ;;  %v15145_v4 = vld [vmem:[#allocation103_spill] sm:$0xff]  ;;  %v15149_v9 = vld [vmem:[#allocation12_spill] sm:$0xff] }
 0x44d   : > { %v2452_v48 = vadd.f32 %v2451_v31, %v11690_v7  ;;  %4424 = vmatpush.bf16.msrb.mxu1 %v3772_v49  ;;  %v3722_v49 = vmax.f32 %v11557_v50, 0.0  ;;  %v15144_v50 = vld [vmem:[#allocation101_spill] sm:$0xff] }
 0x44e   : > { %v11702_v30 = vpop.f32.mrf.mxu3 }
 0x44f   : > { %v11700_v53 = vadd.f32 %v11628_v47, %v2452_v48  ;;  %v3561_v47 = vadd.f32 %v11493_v26, %v15138_v23  ;;  %v3764_v16 = vpack.c.bf16 %v3724_v34, %v3722_v49  ;;  %v15143_v48 = vld [vmem:[#allocation65_spill] sm:$0xff]  ;;  %v15148_v34 = vld [vmem:[#allocation48_spill] sm:$0xff]  ;;  %v15150_v49 = vld [vmem:[#allocation106_spill] sm:$0xff] }
 0x450   : > { %v3551_v44 = vadd.f32 %v11431_v40, %v15143_v48 }
 0x451   : > { %2631 = vmatmul.bf16.gmra.mxu2 %v15137_v10  ;;  %4425 = vmatpush.bf16.msrb.mxu1 %v3770_v8  ;;  %v3650_v51 = vadd.f32 %v11543_v2, %v3561_v47  ;;  %v15141_v2 = vld [vmem:[#allocation99_spill] sm:$0xff]  ;;  %v3714_v10 = vmax.f32 %v11498_v3, 0.0 }
 0x452   : > { %v3640_v8 = vadd.f32 %v11482_v60, %v3551_v44  ;;  %v7678_v60 = vld [vmem:[%s14334_s5 + $0x80] sm:$0xf]  ;;  %v8257_v3 = vld [vmem:[%s14334_s5 + $0x84] sm:$0xf0]  ;;  %v8259_v44 = vld [vmem:[%s14334_s5 + $0x94] sm:$0xf0] }
 0x453   : > { %v3720_v27 = vmax.f32 %v3650_v51, 0.0  ;;  %v11763_v5 = vor.u32 %v8257_v3, %v7678_v60 }
 0x454   : > { %v2592_v21 = vpop.f32.mrf.mxu2  ;;  %v3712_v40 = vmax.f32 %v3640_v8, 0.0 }
 0x455   : > { %v2593_v29 = vadd.f32 %v2592_v21, %v15139_v39  ;;  %4426 = vmatpush.bf16.msrb.mxu1 %v3768_v43  ;;  %v3762_v62 = vpack.c.bf16 %v3720_v27, %v3718_v33  ;;  %v15146_v43 = vld [vmem:[#allocation102_spill] sm:$0xff]  ;;  %v3710_v21 = vmax.f32 %v11475_v58, 0.0  ;;  %v7616_v58 = vld [vmem:[%s14334_s5 + $0x8] sm:$0xf0]  ;;  %v7624_v33 = vld [vmem:[%s14334_s5 + $0x18] sm:$0xf0] }
 0x456   : > { %v11721_v26 = vpop.f32.mrf.mxu3  ;;  %v11765_v51 = vor.u32 %v8240_v0, %v7616_v58  ;;  %v15152_v27 = vld [vmem:[#allocation107_spill] sm:$0xff] }
 0x457   : > { %v2722_v61 = vadd.f32 %v11639_v6, %v2593_v29  ;;  %v3645_v6 = vadd.f32 %v11512_v63, %v3556_v32  ;;  %v3758_v29 = vpack.c.bf16 %v3712_v40, %v3710_v21  ;;  %v8261_v0 = vld [vmem:[%s14334_s5 + $0xa4] sm:$0xf0]  ;;  %v7632_v58 = vld [vmem:[%s14334_s5 + $0x28] sm:$0xf0] }
 0x459   : > { %v2841_v31 = vpack.c.bf16 %v2722_v61, %v15141_v2  ;;  %4427 = vmatpush.bf16.msrb.mxu1 %v3766_v56  ;;  %v3716_v63 = vmax.f32 %v3645_v6, 0.0 }
 0x45b   : > { %2889 = vst [vmem:[%s11726_s25] sm:$0xff] %v2841_v31  ;;  %2775 = vmatmul.bf16.gmra.mxu3 %v15142_v28  ;;  %v3760_v52 = vpack.c.bf16 %v3716_v63, %v3714_v10  ;;  %v15151_v31 = vld [vmem:[#allocation108_spill] sm:$0xff]  ;;  %v15153_v28 = vld [vmem:[#allocation109_spill] sm:$0xff] }
 0x45c   : > { %v2594_v25 = vpop.f32.mrf.mxu2  ;;  %4378 = vmatmul.bf16.gmra.mxu0 %v11728_v38 }
 0x45d   : > { %v2595_v13 = vadd.f32 %v2594_v25, %v15144_v50  ;;  %4428 = vmatpush.bf16.msrb.mxu1 %v3764_v16  ;;  %v7686_v25 = vld [vmem:[%s14334_s5 + $0x90] sm:$0xf] }
 0x45e   : > { %v2736_v46 = vpop.f32.mrf.mxu3  ;;  %v11791_v8 = vor.u32 %v8259_v44, %v7686_v25  ;;  %v15164_v25 = vld [vmem:[#allocation120_spill] sm:$0xff]  ;;  %v15165_v44 = vld [vmem:[#allocation110_spill] sm:$0xff] }
 0x45f   : > { %v2724_v12 = vadd.f32 %v11653_v35, %v2595_v13  ;;  %v15147_v35 = vld [vmem:[#allocation104_spill] sm:$0xff] }
 0x461   : > { %v2842_v11 = vpack.c.bf16 %v2724_v12, %v15145_v4  ;;  %2636 = vmatmul.bf16.gmra.mxu2 %v15146_v43  ;;  %4429 = vmatpush.bf16.msrb.mxu1 %v3762_v62  ;;  %v15154_v12 = vld [vmem:[#allocation42_spill] sm:$0xff]  ;;  %v15155_v4 = vld [vmem:[#allocation105_spill] sm:$0xff]  ;;  %v15156_v43 = vld [vmem:[#allocation112_spill] sm:$0xff] }
 0x463   : > { %2890 = vst [vmem:[%s11726_s25 + $0x8] sm:$0xff] %v2842_v11 }
 0x464   : > { %v2597_v23 = vpop.f32.mrf.mxu2 }
 0x465   : > { %v2598_v47 = vadd.f32 %v2597_v23, %v15147_v35  ;;  %4430 = vmatpush.bf16.msrb.mxu1 %v3760_v52  ;;  %v15157_v52 = vld [vmem:[#allocation116_spill] sm:$0xff]  ;;  %v15158_v23 = vld [vmem:[#allocation114_spill] sm:$0xff] }
 0x466   : > { %v2738_v19 = vpop.f32.mrf.mxu3  ;;  %v7694_v35 = vld [vmem:[%s14334_s5 + $0xa0] sm:$0xf] }
 0x467   : > { %v2727_v39 = vadd.f32 %v11664_v37, %v2598_v47  ;;  %v15159_v47 = vld [vmem:[#allocation50_spill] sm:$0xff] }
 0x469   : > { %v2843_v61 = vpack.c.bf16 %v2727_v39, %v15148_v34  ;;  %4431 = vmatpush.bf16.msrb.mxu1 %v3758_v29  ;;  %v11818_v34 = vor.u32 %v8261_v0, %v7694_v35 }
 0x46b   : > { %2891 = vst [vmem:[%s11726_s25 + $0x10] sm:$0xff] %v2843_v61  ;;  %2780 = vmatmul.bf16.gmra.mxu3 %v15150_v49  ;;  %v15161_v49 = vld [vmem:[#allocation111_spill] sm:$0xff] }
 0x46c   : > { %v2599_v56 = vpop.f32.mrf.mxu2  ;;  %4383 = vmatmul.bf16.gmra.mxu0 %v11763_v5  ;;  %4432 = vmatmul.bf16.vlgmr.msrb.gmra.mxu1 %v11765_v51 }
 0x46d   : > { %v2600_v32 = vadd.f32 %v2599_v56, %v15149_v9  ;;  %v15160_v56 = vld [vmem:[#allocation117_spill] sm:$0xff] }
 0x46e   : > { %v2741_v2 = vpop.f32.mrf.mxu3 }
 0x46f   : > { %v2729_v37 = vadd.f32 %v11682_v41, %v2600_v32  ;;  %v8242_v41 = vld [vmem:[%s14334_s5 + $0x14] sm:$0xf] }
 0x470   : > { %v11793_v63 = vor.u32 %v8242_v41, %v7624_v33  ;;  %v8263_v33 = vld [vmem:[%s14334_s5 + $0xb4] sm:$0xf0] }
 0x471   : > { %v2844_v6 = vpack.c.bf16 %v2729_v37, %v15151_v31  ;;  %2641 = vmatmul.bf16.gmra.mxu2 %v15152_v27  ;;  %v15162_v31 = vld [vmem:[#allocation119_spill] sm:$0xff] }
 0x473   : > { %2892 = vst [vmem:[%s11726_s25 + $0x18] sm:$0xff] %v2844_v6 }
 0x474   : > { %v2602_v16 = vpop.f32.mrf.mxu2 }
 0x475   : > { %v2603_v48 = vadd.f32 %v2602_v16, %v15153_v28 }
 0x476   : > { %v2743_v13 = vpop.f32.mrf.mxu3 }
 0x477   : > { %v2732_v50 = vadd.f32 %v11702_v30, %v2603_v48  ;;  %v7702_v48 = vld [vmem:[%s14334_s5 + $0xb0] sm:$0xf] }
 0x479   : > { %v2845_v62 = vpack.c.bf16 %v2732_v50, %v15154_v12  ;;  %v7640_v50 = vld [vmem:[%s14334_s5 + $0x38] sm:$0xf0]  ;;  %v11844_v12 = vpop.f32.mrf.mxu0 }
 0x47b   : > { %2893 = vst [vmem:[%s11726_s25 + $0x20] sm:$0xff] %v2845_v62  ;;  %2785 = vmatmul.bf16.gmra.mxu3 %v15156_v43  ;;  %v15167_v43 = vld [vmem:[#allocation29_spill] sm:$0xff] }
 0x47c   : > { %v2604_v10 = vpop.f32.mrf.mxu2  ;;  %4388 = vmatmul.bf16.gmra.mxu0 %v11791_v8  ;;  %4437 = vmatmul.bf16.gmra.mxu1 %v11793_v63 }
 0x47d   : > { %v2605_v11 = vadd.f32 %v2604_v10, %v15155_v4  ;;  %v11846_v4 = vor.u32 %v8263_v33, %v7702_v48  ;;  %v15176_v33 = vld [vmem:[#allocation127_spill] sm:$0xff] }
 0x47e   : > { %v2746_v30 = vpop.f32.mrf.mxu3 }
 0x47f   : > { %v2734_v40 = vadd.f32 %v11721_v26, %v2605_v11  ;;  %v8244_v26 = vld [vmem:[%s14334_s5 + $0x24] sm:$0xf]  ;;  %15166 = vst [vmem:[#allocation43_spill] sm:$0xff] %v11846_v4 }
 0x480   : > { %v11820_v61 = vor.u32 %v8244_v26, %v7632_v58  ;;  %v15171_v26 = vld [vmem:[#allocation124_spill] sm:$0xff] }
 0x481   : > { %v2846_v21 = vpack.c.bf16 %v2734_v40, %v15157_v52  ;;  %2646 = vmatmul.bf16.gmra.mxu2 %v15158_v23 }
 0x483   : > { %2894 = vst [vmem:[%s11726_s25 + $0x28] sm:$0xff] %v2846_v21  ;;  %v15168_v21 = vld [vmem:[#allocation113_spill] sm:$0xff] }
 0x484   : > { %v2607_v60 = vpop.f32.mrf.mxu2 }
 0x485   : > { %v2608_v3 = vadd.f32 %v2607_v60, %v15159_v47  ;;  %v15169_v60 = vld [vmem:[#allocation26_spill] sm:$0xff]  ;;  %v11856_v47 = vpop.f32.mrf.mxu0 }
 0x486   : > { %v2748_v29 = vpop.f32.mrf.mxu3 }
 0x487   : > { %v2737_v39 = vadd.f32 %v2736_v46, %v2608_v3  ;;  %v15163_v46 = vld [vmem:[#allocation122_spill] sm:$0xff]  ;;  %v15170_v3 = vld [vmem:[#allocation125_spill] sm:$0xff] }
 0x489   : > { %v2847_v9 = vpack.c.bf16 %v2737_v39, %v15160_v56  ;;  %v7710_v39 = vld [vmem:[%s14334_s5 + $0xc0] sm:$0xf] }
 0x48a   : > { %v15172_v56 = vld [vmem:[#allocation14_spill] sm:$0xff] }
 0x48b   : > { %2895 = vst [vmem:[%s11726_s25 + $0x30] sm:$0xff] %v2847_v9  ;;  %2790 = vmatmul.bf16.gmra.mxu3 %v15162_v31 }
 0x48c   : > { %v2609_v32 = vpop.f32.mrf.mxu2  ;;  %4393 = vmatmul.bf16.gmra.mxu0 %v11818_v34  ;;  %4442 = vmatmul.bf16.gmra.mxu1 %v11820_v61 }
 0x48d   : > { %v2610_v37 = vadd.f32 %v2609_v32, %v15161_v49  ;;  %v8248_v32 = vld [vmem:[%s14334_s5 + $0x44] sm:$0xf]  ;;  %v7648_v49 = vld [vmem:[%s14334_s5 + $0x48] sm:$0xf0] }
 0x48e   : > { %v2751_v27 = vpop.f32.mrf.mxu3 }
 0x48f   : > { %v2739_v6 = vadd.f32 %v2738_v19, %v2610_v37  ;;  %v8246_v19 = vld [vmem:[%s14334_s5 + $0x34] sm:$0xf] }
 0x490   : > { %v11848_v11 = vor.u32 %v8246_v19, %v7640_v50  ;;  %v15177_v50 = vld [vmem:[#allocation131_spill] sm:$0xff] }
 0x491   : > { %v2848_v16 = vpack.c.bf16 %v2739_v6, %v15163_v46  ;;  %2651 = vmatmul.bf16.gmra.mxu2 %v15164_v25  ;;  %v11876_v46 = vor.u32 %v8248_v32, %v7648_v49  ;;  %v15182_v32 = vld [vmem:[#allocation121_spill] sm:$0xff] }
 0x493   : > { %2896 = vst [vmem:[%s11726_s25 + $0x38] sm:$0xff] %v2848_v16  ;;  %v15174_v16 = vld [vmem:[#allocation126_spill] sm:$0xff] }
 0x494   : > { %v2612_v28 = vpop.f32.mrf.mxu2 }
 0x495   : > { %v2613_v41 = vadd.f32 %v2612_v28, %v15165_v44  ;;  %v11879_v28 = vpop.f32.mrf.mxu0  ;;  %v15175_v44 = vld [vmem:[#allocation115_spill] sm:$0xff] }
 0x496   : > { %v2753_v10 = vpop.f32.mrf.mxu3 }
 0x497   : > { %v2742_v62 = vadd.f32 %v2741_v2, %v2613_v41 }
 0x499   : > { %v2849_v40 = vpack.c.bf16 %v2742_v62, %v15167_v43  ;;  %v15178_v43 = vld [vmem:[#allocation129_spill] sm:$0xff] }
 0x49b   : > { %2897 = vst [vmem:[%s11726_s25 + $0x40] sm:$0xff] %v2849_v40  ;;  %2795 = vmatmul.bf16.gmra.mxu3 %v15169_v60 }
 0x49c   : > { %v2614_v52 = vpop.f32.mrf.mxu2  ;;  %4398 = vmatmul.bf16.gmra.mxu0 %v11846_v4  ;;  %4447 = vmatmul.bf16.gmra.mxu1 %v11848_v11  ;;  %v15244_v4 = vld [vmem:[#allocation66_spill] sm:$0xff] }
 0x49d   : > { %v2615_v23 = vadd.f32 %v2614_v52, %v15168_v21  ;;  %v11889_v40 = vpop.f32.mrf.mxu0  ;;  %v7718_v21 = vld [vmem:[%s14334_s5 + $0xd0] sm:$0xf] }
 0x49e   : > { %v2756_v2 = vpop.f32.mrf.mxu3 }
 0x49f   : > { %v2744_v35 = vadd.f32 %v2743_v13, %v2615_v23  ;;  %v8265_v13 = vld [vmem:[%s14334_s5 + $0xc4] sm:$0xf0]  ;;  %v15179_v23 = vld [vmem:[#allocation44_spill] sm:$0xff] }
 0x4a0   : > { %v11874_v6 = vor.u32 %v8265_v13, %v7710_v39 }
 0x4a1   : > { %v2850_v0 = vpack.c.bf16 %v2744_v35, %v15170_v3  ;;  %2656 = vmatmul.bf16.gmra.mxu2 %v15171_v26  ;;  %v8250_v35 = vld [vmem:[%s14334_s5 + $0x54] sm:$0xf]  ;;  %v7656_v3 = vld [vmem:[%s14334_s5 + $0x58] sm:$0xf0] }
 0x4a2   : > { %15173 = vst [vmem:[#allocation95_spill] sm:$0xff] %v11874_v6  ;;  %v11906_v39 = vor.u32 %v8250_v35, %v7656_v3  ;;  %v15188_v3 = vld [vmem:[#allocation39_spill] sm:$0xff] }
 0x4a3   : > { %2898 = vst [vmem:[%s11726_s25 + $0x48] sm:$0xff] %v2850_v0 }
 0x4a4   : > { %v2617_v58 = vpop.f32.mrf.mxu2 }
 0x4a5   : > { %v2618_v9 = vadd.f32 %v2617_v58, %v15172_v56  ;;  %v15181_v56 = vld [vmem:[#allocation133_spill] sm:$0xff] }
 0x4a6   : > { %v2758_v31 = vpop.f32.mrf.mxu3 }
 0x4a7   : > { %v2747_v37 = vadd.f32 %v2746_v30, %v2618_v9 }
 0x4a9   : > { %v2851_v25 = vpack.c.bf16 %v2747_v37, %v15174_v16  ;;  %v15183_v37 = vld [vmem:[#allocation136_spill] sm:$0xff]  ;;  %v11914_v16 = vpop.f32.mrf.mxu0 }
 0x4ab   : > { %2899 = vst [vmem:[%s11726_s25 + $0x50] sm:$0xff] %v2851_v25  ;;  %2800 = vmatmul.bf16.gmra.mxu3 %v15176_v33 }
 0x4ac   : > { %v2619_v48 = vpop.f32.mrf.mxu2  ;;  %4403 = vmatmul.bf16.gmra.mxu0 %v11874_v6  ;;  %4452 = vmatmul.bf16.gmra.mxu1 %v11876_v46 }
 0x4ad   : > { %v2620_v41 = vadd.f32 %v2619_v48, %v15175_v44  ;;  %v15184_v48 = vld [vmem:[#allocation138_spill] sm:$0xff] }
 0x4ae   : > { %v2761_v19 = vpop.f32.mrf.mxu3 }
 0x4af   : > { %v2749_v30 = vadd.f32 %v2748_v29, %v2620_v41  ;;  %v8267_v29 = vld [vmem:[%s14334_s5 + $0xd4] sm:$0xf0] }
 0x4b0   : > { %v11904_v58 = vor.u32 %v8267_v29, %v7718_v21  ;;  %v15185_v41 = vld [vmem:[#allocation137_spill] sm:$0xff] }
 0x4b1   : > { %v2852_v62 = vpack.c.bf16 %v2749_v30, %v15177_v50  ;;  %2661 = vmatmul.bf16.gmra.mxu2 %v15178_v43  ;;  %v7726_v30 = vld [vmem:[%s14334_s5 + $0xe0] sm:$0xf]  ;;  %v8269_v43 = vld [vmem:[%s14334_s5 + $0xe4] sm:$0xf0] }
 0x4b2   : > { %15180 = vst [vmem:[#allocation28_spill] sm:$0xff] %v11904_v58  ;;  %v15186_v50 = vld [vmem:[#allocation118_spill] sm:$0xff]  ;;  %v11934_v29 = vor.u32 %v8269_v43, %v7726_v30 }
 0x4b3   : > { %2900 = vst [vmem:[%s11726_s25 + $0x58] sm:$0xff] %v2852_v62 }
 0x4b4   : > { %v2622_v52 = vpop.f32.mrf.mxu2  ;;  %15187 = vst [vmem:[#allocation97_spill] sm:$0xff] %v11934_v29 }
 0x4b5   : > { %v2623_v60 = vadd.f32 %v2622_v52, %v15179_v23  ;;  %v7664_v52 = vld [vmem:[%s14334_s5 + $0x68] sm:$0xf0] }
 0x4b6   : > { %v2763_v26 = vpop.f32.mrf.mxu3 }
 0x4b7   : > { %v2752_v0 = vadd.f32 %v2751_v27, %v2623_v60  ;;  %v11932_v60 = vpop.f32.mrf.mxu0 }
 0x4b9   : > { %v2853_v9 = vpack.c.bf16 %v2752_v0, %v15181_v56 }
 0x4bb   : > { %2901 = vst [vmem:[%s11726_s25 + $0x60] sm:$0xff] %v2853_v9  ;;  %2805 = vmatmul.bf16.gmra.mxu3 %v15183_v37 }
 0x4bc   : > { %v2624_v13 = vpop.f32.mrf.mxu2  ;;  %4408 = vmatmul.bf16.gmra.mxu0 %v11904_v58  ;;  %4457 = vmatmul.bf16.gmra.mxu1 %v11906_v39  ;;  %v8268_v58 = vld [vmem:[%s14334_s5 + $0xe4] sm:$0xf] }
 0x4bd   : > { %v2625_v49 = vadd.f32 %v2624_v13, %v15182_v32  ;;  %v15189_v13 = vld [vmem:[#allocation22_spill] sm:$0xff] }
 0x4be   : > { %v2766_v25 = vpop.f32.mrf.mxu3 }
 0x4bf   : > { %v2754_v27 = vadd.f32 %v2753_v10, %v2625_v49  ;;  %v8252_v10 = vld [vmem:[%s14334_s5 + $0x64] sm:$0xf]  ;;  %v11946_v37 = vpop.f32.mrf.mxu0 }
 0x4c0   : > { %v11936_v35 = vor.u32 %v8252_v10, %v7664_v52 }
 0x4c1   : > { %v2854_v44 = vpack.c.bf16 %v2754_v27, %v15184_v48  ;;  %2666 = vmatmul.bf16.gmra.mxu2 %v15185_v41  ;;  %v7734_v48 = vld [vmem:[%s14334_s5 + $0xf0] sm:$0xf] }
 0x4c3   : > { %2902 = vst [vmem:[%s11726_s25 + $0x68] sm:$0xff] %v2854_v44 }
 0x4c4   : > { %v2627_v33 = vpop.f32.mrf.mxu2 }
 0x4c5   : > { %v2628_v62 = vadd.f32 %v2627_v33, %v15186_v50 }
 0x4c6   : > { %v2768_v23 = vpop.f32.mrf.mxu3 }
 0x4c7   : > { %v2757_v21 = vadd.f32 %v2756_v2, %v2628_v62  ;;  %v11968_v50 = vpop.f32.mrf.mxu0 }
 0x4c9   : > { %v2855_v0 = vpack.c.bf16 %v2757_v21, %v15188_v3  ;;  %v8256_v3 = vld [vmem:[%s14334_s5 + $0x84] sm:$0xf] }
 0x4cb   : > { %2903 = vst [vmem:[%s11726_s25 + $0x70] sm:$0xff] %v2855_v0  ;;  %2810 = vmatmul.bf16.gmra.mxu3 %v15189_v13  ;;  %v15191_v0 = vld [vmem:[#allocation96_spill] sm:$0xff] }
 0x4cc   : > { %v2629_v56 = vpop.f32.mrf.mxu2  ;;  %4413 = vmatmul.bf16.gmra.mxu0 %v11934_v29  ;;  %4462 = vmatmul.bf16.gmra.mxu1 %v11936_v35 }
 0x4cd   : > { %v2630_v9 = vadd.f32 %v2629_v56, %v10947_v24  ;;  %v8271_v24 = vld [vmem:[%s14334_s5 + $0xf4] sm:$0xf0] }
 0x4ce   : > { %v2771_v32 = vpop.f32.mrf.mxu3  ;;  %v11962_v33 = vor.u32 %v8271_v24, %v7734_v48  ;;  %v15193_v48 = vld [vmem:[#allocation149_spill] sm:$0xff]  ;;  %v15194_v24 = vld [vmem:[#allocation148_spill] sm:$0xff] }
 0x4cf   : > { %v2759_v2 = vadd.f32 %v2758_v31, %v2630_v9 }
 0x4d0   : > { %15190 = vst [vmem:[#allocation16_spill] sm:$0xff] %v11962_v33 }
 0x4d1   : > { %v2856_v49 = vpack.c.bf16 %v2759_v2, %v11142_v42  ;;  %2671 = vmatmul.bf16.gmra.mxu2 %v11134_v57  ;;  %v8254_v42 = vld [vmem:[%s14334_s5 + $0x74] sm:$0xf]  ;;  %v7672_v57 = vld [vmem:[%s14334_s5 + $0x78] sm:$0xf0] }
 0x4d2   : > { %v11964_v30 = vor.u32 %v8254_v42, %v7672_v57 }
 0x4d3   : > { %2904 = vst [vmem:[%s11726_s25 + $0x78] sm:$0xff] %v2856_v49  ;;  %v15192_v49 = vld [vmem:[#allocation94_spill] sm:$0xff] }
 0x4d4   : > { %v2632_v27 = vpop.f32.mrf.mxu2 }
 0x4d5   : > { %v2633_v44 = vadd.f32 %v2632_v27, %v10964_v22  ;;  %v4347_v27 = vadd.f32 %v11856_v47, %v15192_v49  ;;  %v7688_v47 = vld [vmem:[%s14334_s5 + $0x98] sm:$0xf0] }
 0x4d6   : > { %v2773_v41 = vpop.f32.mrf.mxu3 }
 0x4d7   : > { %v2762_v31 = vadd.f32 %v2761_v19, %v2633_v44 }
 0x4d9   : > { %v2857_v22 = vpack.c.bf16 %v2762_v31, %v11161_v54 }
 0x4db   : > { %2905 = vst [vmem:[%s11726_s25 + $0x80] sm:$0xff] %v2857_v22  ;;  %2815 = vmatmul.bf16.gmra.mxu3 %v11179_v59 }
 0x4dc   : > { %v2634_v62 = vpop.f32.mrf.mxu2  ;;  %4418 = vmatmul.bf16.gmra.mxu0 %v11962_v33  ;;  %4467 = vmatmul.bf16.gmra.mxu1 %v11964_v30 }
 0x4dd   : > { %v2635_v43 = vadd.f32 %v2634_v62, %v10951_v20  ;;  %v7680_v20 = vld [vmem:[%s14334_s5 + $0x88] sm:$0xf0] }
 0x4de   : > { %v11974_v10 = vpop.f32.mrf.mxu3  ;;  %v11990_v56 = vor.u32 %v8256_v3, %v7680_v20  ;;  %v15197_v20 = vld [vmem:[#allocation153_spill] sm:$0xff] }
 0x4df   : > { %v2764_v19 = vadd.f32 %v2763_v26, %v2635_v43  ;;  %v12013_v43 = vpop.f32.mrf.mxu0 }
 0x4e1   : > { %v2858_v52 = vpack.c.bf16 %v2764_v19, %v11193_v36  ;;  %2676 = vmatmul.bf16.gmra.mxu2 %v11187_v15  ;;  %v4345_v36 = vadd.f32 %v11844_v12, %v15191_v0 }
 0x4e3   : > { %2906 = vst [vmem:[%s11726_s25 + $0x88] sm:$0xff] %v2858_v52  ;;  %v15196_v52 = vld [vmem:[#allocation90_spill] sm:$0xff] }
 0x4e4   : > { %v2637_v54 = vpop.f32.mrf.mxu2 }
 0x4e5   : > { %v2638_v21 = vadd.f32 %v2637_v54, %v10972_v17  ;;  %v4350_v54 = vadd.f32 %v11879_v28, %v15196_v52 }
 0x4e6   : > { %v11986_v26 = vpop.f32.mrf.mxu3 }
 0x4e7   : > { %v2767_v59 = vadd.f32 %v2766_v25, %v2638_v21 }
 0x4e9   : > { %v2859_v15 = vpack.c.bf16 %v2767_v59, %v11210_v18  ;;  %v4433_v17 = vpop.f32.mrf.mxu1 }
 0x4ea   : > { %v4434_v9 = vadd.f32 %v4433_v17, %v4345_v36 }
 0x4eb   : > { %2907 = vst [vmem:[%s11726_s25 + $0x90] sm:$0xff] %v2859_v15  ;;  %2820 = vmatmul.bf16.gmra.mxu3 %v11231_v55  ;;  %v8258_v55 = vld [vmem:[%s14334_s5 + $0x94] sm:$0xf] }
 0x4ec   : > { %v2639_v13 = vpop.f32.mrf.mxu2  ;;  %4472 = vmatmul.bf16.gmra.mxu1 %v11990_v56  ;;  %v4514_v57 = vmax.f32 %v4434_v9, 0.0  ;;  %v12017_v21 = vor.u32 %v8258_v55, %v7688_v47  ;;  %v15198_v9 = vld [vmem:[#allocation53_spill] sm:$0xff]  ;;  %v7696_v55 = vld [vmem:[%s14334_s5 + $0xa8] sm:$0xf0] }
 0x4ed   : > { %v2640_v2 = vadd.f32 %v2639_v13, %v10999_v1  ;;  %v15195_v1 = vld [vmem:[#allocation123_spill] sm:$0xff] }
 0x4ee   : > { %v11999_v12 = vpop.f32.mrf.mxu3 }
 0x4ef   : > { %v2769_v25 = vadd.f32 %v2768_v23, %v2640_v2  ;;  %v15199_v2 = vld [vmem:[#allocation154_spill] sm:$0xff] }
 0x4f1   : > { %v2860_v44 = vpack.c.bf16 %v2769_v25, %v15193_v48  ;;  %2681 = vmatmul.bf16.gmra.mxu2 %v15194_v24  ;;  %v4435_v18 = vpop.f32.mrf.mxu1  ;;  %v15200_v25 = vld [vmem:[#allocation92_spill] sm:$0xff]  ;;  %v12030_v48 = vpop.f32.mrf.mxu0 }
 0x4f2   : > { %v4436_v42 = vadd.f32 %v4435_v18, %v4347_v27  ;;  %v4352_v28 = vadd.f32 %v11889_v40, %v15200_v25  ;;  %v15202_v18 = vld [vmem:[#allocation156_spill] sm:$0xff]  ;;  %v8260_v40 = vld [vmem:[%s14334_s5 + $0xa4] sm:$0xf] }
 0x4f3   : > { %2908 = vst [vmem:[%s11726_s25 + $0x98] sm:$0xff] %v2860_v44  ;;  %v15201_v44 = vld [vmem:[#allocation158_spill] sm:$0xff] }
 0x4f4   : > { %v4516_v31 = vmax.f32 %v4436_v42, 0.0  ;;  %v2642_v22 = vpop.f32.mrf.mxu2 }
 0x4f5   : > { %v2643_v62 = vadd.f32 %v2642_v22, %v15195_v1 }
 0x4f6   : > { %v12011_v23 = vpack.c.bf16 %v4516_v31, %v4514_v57  ;;  %v12019_v3 = vpop.f32.mrf.mxu3 }
 0x4f7   : > { %v2772_v19 = vadd.f32 %v2771_v32, %v2643_v62  ;;  %v15203_v62 = vld [vmem:[#allocation128_spill] sm:$0xff] }
 0x4f9   : > { %v2861_v59 = vpack.c.bf16 %v2772_v19, %v15197_v20  ;;  %v4438_v36 = vpop.f32.mrf.mxu1 }
 0x4fa   : > { %v4439_v15 = vadd.f32 %v4438_v36, %v4350_v54  ;;  %v15204_v54 = vld [vmem:[#allocation80_spill] sm:$0xff] }
 0x4fb   : > { %2909 = vst [vmem:[%s11726_s25 + $0xa0] sm:$0xff] %v2861_v59  ;;  %2825 = vmatmul.bf16.gmra.mxu3 %v15199_v2  ;;  %v4355_v20 = vadd.f32 %v11914_v16, %v15204_v54  ;;  %v12047_v59 = vor.u32 %v8260_v40, %v7696_v55  ;;  %v12052_v2 = vpop.f32.mrf.mxu0  ;;  %v15247_v54 = vld [vmem:[#allocation40_spill] sm:$0xff] }
 0x4fc   : > { %v2644_v17 = vpop.f32.mrf.mxu2  ;;  %4477 = vmatmul.bf16.gmra.mxu1 %v12017_v21  ;;  %v4518_v31 = vmax.f32 %v4439_v15, 0.0  ;;  %v15205_v15 = vld [vmem:[#allocation160_spill] sm:$0xff] }
 0x4fd   : > { %v2645_v13 = vadd.f32 %v2644_v17, %v15198_v9 }
 0x4fe   : > { %v12028_v27 = vpop.f32.mrf.mxu3 }
 0x4ff   : > { %v2774_v32 = vadd.f32 %v2773_v41, %v2645_v13 }
 0x501   : > { %v2862_v24 = vpack.c.bf16 %v2774_v32, %v15201_v44  ;;  %2686 = vmatmul.bf16.gmra.mxu2 %v15202_v18  ;;  %v4440_v42 = vpop.f32.mrf.mxu1  ;;  %v15207_v44 = vld [vmem:[#allocation163_spill] sm:$0xff] }
 0x502   : > { %v4441_v57 = vadd.f32 %v4440_v42, %v4352_v28  ;;  %v15206_v28 = vld [vmem:[#allocation46_spill] sm:$0xff] }
 0x503   : > { %2910 = vst [vmem:[%s11726_s25 + $0xa8] sm:$0xff] %v2862_v24  ;;  %v15208_v24 = vld [vmem:[#allocation84_spill] sm:$0xff] }
 0x504   : > { %v4520_v22 = vmax.f32 %v4441_v57, 0.0  ;;  %v2647_v1 = vpop.f32.mrf.mxu2  ;;  %v4357_v18 = vadd.f32 %v11932_v60, %v15208_v24  ;;  %v15209_v57 = vld [vmem:[#allocation164_spill] sm:$0xff] }
 0x505   : > { %v2648_v41 = vadd.f32 %v2647_v1, %v15203_v62  ;;  %v8262_v60 = vld [vmem:[%s14334_s5 + $0xb4] sm:$0xf] }
 0x506   : > { %v12042_v47 = vpack.c.bf16 %v4520_v22, %v4518_v31  ;;  %v12049_v36 = vpop.f32.mrf.mxu3  ;;  %v15210_v22 = vld [vmem:[#allocation23_spill] sm:$0xff] }
 0x507   : > { %v2777_v19 = vadd.f32 %v11974_v10, %v2648_v41 }
 0x509   : > { %v2863_v17 = vpack.c.bf16 %v2777_v19, %v15205_v15  ;;  %v4443_v9 = vpop.f32.mrf.mxu1  ;;  %v12066_v19 = vpop.f32.mrf.mxu0  ;;  %v7704_v15 = vld [vmem:[%s14334_s5 + $0xb8] sm:$0xf0] }
 0x50a   : > { %v4444_v13 = vadd.f32 %v4443_v9, %v4355_v20  ;;  %v15211_v20 = vld [vmem:[#allocation166_spill] sm:$0xff] }
 0x50b   : > { %2911 = vst [vmem:[%s11726_s25 + $0xb0] sm:$0xff] %v2863_v17  ;;  %2830 = vmatmul.bf16.gmra.mxu3 %v15207_v44  ;;  %v15213_v44 = vld [vmem:[#allocation2_spill] sm:$0xff] }
 0x50c   : > { %v2649_v32 = vpop.f32.mrf.mxu2  ;;  %4482 = vmatmul.bf16.gmra.mxu1 %v12047_v59  ;;  %v4522_v41 = vmax.f32 %v4444_v13, 0.0 }
 0x50d   : > { %v2650_v10 = vadd.f32 %v2649_v32, %v15206_v28  ;;  %v15212_v32 = vld [vmem:[#allocation77_spill] sm:$0xff]  ;;  %v12080_v28 = vor.u32 %v8262_v60, %v7704_v15  ;;  %v15218_v60 = vld [vmem:[#allocation170_spill] sm:$0xff] }
 0x50e   : > { %v12061_v42 = vpop.f32.mrf.mxu3  ;;  %v4360_v13 = vadd.f32 %v11946_v37, %v15212_v32  ;;  %v15242_v32 = vld [vmem:[#allocation58_spill] sm:$0xff] }
 0x50f   : > { %v2779_v16 = vadd.f32 %v11986_v26, %v2650_v10 }
 0x511   : > { %v2864_v31 = vpack.c.bf16 %v2779_v16, %v15209_v57  ;;  %2691 = vmatmul.bf16.gmra.mxu2 %v15210_v22  ;;  %v4445_v1 = vpop.f32.mrf.mxu1  ;;  %v15214_v22 = vld [vmem:[#allocation169_spill] sm:$0xff] }
 0x512   : > { %v4446_v62 = vadd.f32 %v4445_v1, %v4357_v18 }
 0x513   : > { %2912 = vst [vmem:[%s11726_s25 + $0xb8] sm:$0xff] %v2864_v31 }
 0x514   : > { %v4524_v40 = vmax.f32 %v4446_v62, 0.0  ;;  %v2652_v55 = vpop.f32.mrf.mxu2  ;;  %v15215_v62 = vld [vmem:[#allocation168_spill] sm:$0xff] }
 0x515   : > { %v2653_v26 = vadd.f32 %v2652_v55, %v15211_v20  ;;  %v15217_v20 = vld [vmem:[#allocation171_spill] sm:$0xff] }
 0x516   : > { %v12075_v17 = vpack.c.bf16 %v4524_v40, %v4522_v41  ;;  %v2793_v10 = vpop.f32.mrf.mxu3  ;;  %v15216_v41 = vld [vmem:[#allocation76_spill] sm:$0xff] }
 0x517   : > { %v2782_v9 = vadd.f32 %v11999_v12, %v2653_v26  ;;  %v12087_v12 = vpop.f32.mrf.mxu0  ;;  %v4362_v40 = vadd.f32 %v11968_v50, %v15216_v41  ;;  %v7712_v50 = vld [vmem:[%s14334_s5 + $0xc8] sm:$0xf0] }
 0x519   : > { %v2865_v16 = vpack.c.bf16 %v2782_v9, %v15213_v44  ;;  %v4448_v18 = vpop.f32.mrf.mxu1 }
 0x51a   : > { %v4449_v57 = vadd.f32 %v4448_v18, %v4360_v13  ;;  %v15219_v18 = vld [vmem:[#allocation73_spill] sm:$0xff] }
 0x51b   : > { %2913 = vst [vmem:[%s11726_s25 + $0xc0] sm:$0xff] %v2865_v16  ;;  %2835 = vmatmul.bf16.gmra.mxu3 %v15215_v62  ;;  %v15220_v62 = vld [vmem:[#allocation8_spill] sm:$0xff] }
 0x51c   : > { %v2654_v31 = vpop.f32.mrf.mxu2  ;;  %4487 = vmatmul.bf16.gmra.mxu1 %v12080_v28  ;;  %v4526_v13 = vmax.f32 %v4449_v57, 0.0 }
 0x51d   : > { %v2655_v1 = vadd.f32 %v2654_v31, %v15214_v22 }
 0x51e   : > { %v2796_v55 = vpop.f32.mrf.mxu3 }
 0x51f   : > { %v2784_v37 = vadd.f32 %v12019_v3, %v2655_v1  ;;  %v8264_v3 = vld [vmem:[%s14334_s5 + $0xc4] sm:$0xf] }
 0x520   : > { %v12107_v57 = vor.u32 %v8264_v3, %v7712_v50  ;;  %v15224_v3 = vld [vmem:[#allocation34_spill] sm:$0xff] }
 0x521   : > { %v2866_v26 = vpack.c.bf16 %v2784_v37, %v15217_v20  ;;  %2696 = vmatmul.bf16.gmra.mxu2 %v15218_v60  ;;  %v4450_v15 = vpop.f32.mrf.mxu1  ;;  %v4365_v37 = vadd.f32 %v12013_v43, %v15220_v62  ;;  %v12109_v20 = vpop.f32.mrf.mxu0 }
 0x522   : > { %v4451_v9 = vadd.f32 %v4450_v15, %v4362_v40 }
 0x523   : > { %2914 = vst [vmem:[%s11726_s25 + $0xc8] sm:$0xff] %v2866_v26  ;;  %v15221_v26 = vld [vmem:[#allocation75_spill] sm:$0xff] }
 0x524   : > { %v4528_v44 = vmax.f32 %v4451_v9, 0.0  ;;  %v2657_v16 = vpop.f32.mrf.mxu2 }
 0x525   : > { %v2658_v31 = vadd.f32 %v2657_v16, %v15219_v18  ;;  %v15223_v18 = vld [vmem:[#allocation173_spill] sm:$0xff] }
 0x526   : > { %v12102_v22 = vpack.c.bf16 %v4528_v44, %v4526_v13  ;;  %v2798_v40 = vpop.f32.mrf.mxu3  ;;  %v15222_v13 = vld [vmem:[#allocation172_spill] sm:$0xff] }
 0x527   : > { %v2787_v1 = vadd.f32 %v12028_v27, %v2658_v31 }
 0x529   : > { %v2867_v60 = vpack.c.bf16 %v2787_v1, %v15221_v26  ;;  %v4453_v15 = vpop.f32.mrf.mxu1  ;;  %v4379_v1 = vpop.f32.mrf.mxu0  ;;  %v15225_v26 = vld [vmem:[#allocation82_spill] sm:$0xff] }
 0x52a   : > { %v12112_v9 = vadd.f32 %v4453_v15, %v4365_v37  ;;  %v8266_v15 = vld [vmem:[%s14334_s5 + $0xd4] sm:$0xf] }
 0x52b   : > { %2915 = vst [vmem:[%s11726_s25 + $0xd0] sm:$0xff] %v2867_v60  ;;  %4254 = vmatmul.bf16.vlgmr.msrb.gmra.mxu3 %v11765_v51  ;;  %v7720_v51 = vld [vmem:[%s14334_s5 + $0xd8] sm:$0xf0] }
 0x52c   : > { %v2659_v16 = vpop.f32.mrf.mxu2  ;;  %4492 = vmatmul.bf16.gmra.mxu1 %v12107_v57 }
 0x52d   : > { %v2660_v27 = vadd.f32 %v2659_v16, %v15222_v13  ;;  %v12132_v16 = vor.u32 %v8266_v15, %v7720_v51  ;;  %v15230_v51 = vld [vmem:[#allocation38_spill] sm:$0xff] }
 0x52e   : > { %v2801_v44 = vpop.f32.mrf.mxu3 }
 0x52f   : > { %v2789_v43 = vadd.f32 %v12049_v36, %v2660_v27  ;;  %15226 = vst [vmem:[#allocation98_spill] sm:$0xff] %v12132_v16  ;;  %v15227_v27 = vld [vmem:[#allocation174_spill] sm:$0xff] }
 0x531   : > { %v2868_v31 = vpack.c.bf16 %v2789_v43, %v15223_v18  ;;  %2701 = vmatmul.bf16.gmra.mxu2 %v15224_v3  ;;  %v12121_v50 = vpop.f32.mrf.mxu1  ;;  %v4381_v3 = vpop.f32.mrf.mxu0 }
 0x533   : > { %2916 = vst [vmem:[%s11726_s25 + $0xd8] sm:$0xff] %v2868_v31 }
 0x534   : > { %v2662_v37 = vpop.f32.mrf.mxu2 }
 0x535   : > { %v2663_v60 = vadd.f32 %v2662_v37, %v15225_v26  ;;  %v15228_v37 = vld [vmem:[#allocation175_spill] sm:$0xff] }
 0x536   : > { %v2803_v13 = vpop.f32.mrf.mxu3 }
 0x537   : > { %v2792_v36 = vadd.f32 %v12061_v42, %v2663_v60  ;;  %v15229_v60 = vld [vmem:[#allocation176_spill] sm:$0xff] }
 0x539   : > { %v2869_v43 = vpack.c.bf16 %v2792_v36, %v15227_v27  ;;  %v12135_v18 = vpop.f32.mrf.mxu1 }
 0x53b   : > { %2917 = vst [vmem:[%s11726_s25 + $0xe0] sm:$0xff] %v2869_v43  ;;  %4259 = vmatmul.bf16.gmra.mxu3 %v11793_v63  ;;  %v15231_v43 = vld [vmem:[#allocation89_spill] sm:$0xff]  ;;  %v7728_v63 = vld [vmem:[%s14334_s5 + $0xe8] sm:$0xf0] }
 0x53c   : > { %v2664_v31 = vpop.f32.mrf.mxu2  ;;  %4497 = vmatmul.bf16.gmra.mxu1 %v12132_v16 }
 0x53d   : > { %v2665_v26 = vadd.f32 %v2664_v31, %v15228_v37  ;;  %v12153_v37 = vor.u32 %v8268_v58, %v7728_v63  ;;  %v15236_v58 = vld [vmem:[#allocation32_spill] sm:$0xff]  ;;  %v15237_v63 = vld [vmem:[#allocation62_spill] sm:$0xff] }
 0x53e   : > { %v12141_v42 = vpop.f32.mrf.mxu3 }
 0x53f   : > { %v2794_v33 = vadd.f32 %v2793_v10, %v2665_v26  ;;  %v4384_v10 = vpop.f32.mrf.mxu0  ;;  %15232 = vst [vmem:[#allocation52_spill] sm:$0xff] %v12153_v37  ;;  %v15233_v26 = vld [vmem:[#allocation25_spill] sm:$0xff] }
 0x541   : > { %v2870_v15 = vpack.c.bf16 %v2794_v33, %v15229_v60  ;;  %2706 = vmatmul.bf16.gmra.mxu2 %v15230_v51  ;;  %v4460_v36 = vpop.f32.mrf.mxu1 }
 0x543   : > { %2918 = vst [vmem:[%s11726_s25 + $0xe8] sm:$0xff] %v2870_v15 }
 0x544   : > { %v2667_v27 = vpop.f32.mrf.mxu2 }
 0x545   : > { %v2668_v29 = vadd.f32 %v2667_v27, %v15231_v43  ;;  %v15234_v27 = vld [vmem:[#allocation45_spill] sm:$0xff] }
 0x546   : > { %v12155_v33 = vpop.f32.mrf.mxu3 }
 0x547   : > { %v2797_v31 = vadd.f32 %v2796_v55, %v2668_v29  ;;  %v12164_v29 = vpop.f32.mrf.mxu0 }
 0x548   : > { %15235 = vst [vmem:[#allocation99_spill] sm:$0xff] %v12164_v29  ;;  %v15246_v29 = vld [vmem:[#allocation35_spill] sm:$0xff] }
 0x549   : > { %v2871_v60 = vpack.c.bf16 %v2797_v31, %v15233_v26  ;;  %v4463_v15 = vpop.f32.mrf.mxu1 }
 0x54b   : > { %2919 = vst [vmem:[%s11726_s25 + $0xf0] sm:$0xff] %v2871_v60  ;;  %4264 = vmatmul.bf16.gmra.mxu3 %v11820_v61  ;;  %v15238_v60 = vld [vmem:[#allocation30_spill] sm:$0xff]  ;;  %v7736_v61 = vld [vmem:[%s14334_s5 + $0xf8] sm:$0xf0] }
 0x54c   : > { %v2669_v51 = vpop.f32.mrf.mxu2  ;;  %4502 = vmatmul.bf16.gmra.mxu1 %v12153_v37 }
 0x54d   : > { %v2670_v43 = vadd.f32 %v2669_v51, %v15234_v27  ;;  %v8270_v51 = vld [vmem:[%s14334_s5 + $0xf4] sm:$0xf] }
 0x54e   : > { %v12162_v6 = vpop.f32.mrf.mxu3  ;;  %v12176_v27 = vor.u32 %v8270_v51, %v7736_v61  ;;  %v15243_v51 = vld [vmem:[#allocation21_spill] sm:$0xff] }
 0x54f   : > { %v2799_v62 = vadd.f32 %v2798_v40, %v2670_v43  ;;  %v4377_v61 = vadd.f32 %v12109_v20, %v15243_v51 }
 0x550   : > { %15239 = vst [vmem:[#allocation100_spill] sm:$0xff] %v12176_v27 }
 0x551   : > { %v2872_v55 = vpack.c.bf16 %v2799_v62, %v15236_v58  ;;  %4165 = vmatmul.bf16.vlgmr.msrb.gmra.mxu2 %v15237_v63  ;;  %v4465_v31 = vpop.f32.mrf.mxu1  ;;  %v15240_v62 = vld [vmem:[#allocation31_spill] sm:$0xff] }
 0x553   : > { %2920 = vst [vmem:[%s11726_s25 + $0xf8] sm:$0xff] %v2872_v55  ;;  %v12181_v55 = vpop.f32.mrf.mxu0 }
 0x554   : > { %v2672_v26 = vpop.f32.mrf.mxu2 }
 0x555   : > { %v2673_v41 = vadd.f32 %v2672_v26, %v15238_v60  ;;  %v15241_v60 = vld [vmem:[#allocation27_spill] sm:$0xff] }
 0x556   : > { %v12178_v43 = vpop.f32.mrf.mxu3 }
 0x557   : > { %v2802_v40 = vadd.f32 %v2801_v44, %v2673_v41  ;;  %v4380_v41 = vadd.f32 %v4379_v1, %v15242_v32  ;;  %v15248_v1 = vld [vmem:[#allocation13_spill] sm:$0xff] }
 0x559   : > { %v2873_v58 = vpack.c.bf16 %v2802_v40, %v15240_v62  ;;  %v4468_v63 = vpop.f32.mrf.mxu1  ;;  %v4382_v40 = vadd.f32 %v4381_v3, %v15244_v4  ;;  %v15249_v4 = vld [vmem:[#allocation54_spill] sm:$0xff] }
 0x55a   : > { %v4469_v62 = vadd.f32 %v4468_v63, %v4380_v41 }
 0x55b   : > { %2921 = vst [vmem:[%s11726_s25 + $0x100] sm:$0xff] %v2873_v58  ;;  %4269 = vmatmul.bf16.gmra.mxu3 %v11848_v11  ;;  %v15245_v58 = vld [vmem:[#allocation51_spill] sm:$0xff]  ;;  %v4466_v11 = vadd.f32 %v4465_v31, %v4377_v61  ;;  %v12200_v41 = vpop.f32.mrf.mxu0 }
 0x55c   : > { %v2674_v26 = vpop.f32.mrf.mxu2  ;;  %4507 = vmatmul.bf16.gmra.mxu1 %v12176_v27 }
 0x55d   : > { %v2675_v37 = vadd.f32 %v2674_v26, %v15241_v60  ;;  %v4375_v26 = vadd.f32 %v12087_v12, %v15247_v54  ;;  %v4540_v12 = vmax.f32 %v4466_v11, 0.0 }
 0x55e   : > { %v12191_v16 = vpop.f32.mrf.mxu3 }
 0x55f   : > { %v2804_v44 = vadd.f32 %v2803_v13, %v2675_v37  ;;  %v4372_v13 = vadd.f32 %v12066_v19, %v15248_v1  ;;  %v4464_v20 = vadd.f32 %v4463_v15, %v4375_v26  ;;  %v4542_v37 = vmax.f32 %v4469_v62, 0.0  ;;  %v15252_v15 = vld [vmem:[#allocation33_spill] sm:$0xff] }
 0x560   : > { %v4385_v61 = vadd.f32 %v4384_v10, %v15252_v15  ;;  %v15254_v10 = vld [vmem:[#allocation47_spill] sm:$0xff] }
 0x561   : > { %v2874_v24 = vpack.c.bf16 %v2804_v44, %v15245_v58  ;;  %4170 = vmatmul.bf16.gmra.mxu2 %v15246_v29  ;;  %v4470_v27 = vpop.f32.mrf.mxu1  ;;  %v15250_v58 = vld [vmem:[#allocation70_spill] sm:$0xff]  ;;  %v4461_v51 = vadd.f32 %v4460_v36, %v4372_v13  ;;  %v4538_v62 = vmax.f32 %v4464_v20, 0.0 }
 0x562   : > { %v4471_v60 = vadd.f32 %v4470_v27, %v4382_v40  ;;  %v4370_v29 = vadd.f32 %v12052_v2, %v15250_v58  ;;  %v15251_v27 = vld [vmem:[#allocation10_spill] sm:$0xff] }
 0x563   : > { %2922 = vst [vmem:[%s11726_s25 + $0x108] sm:$0xff] %v2874_v24  ;;  %v4367_v19 = vadd.f32 %v12030_v48, %v15251_v27  ;;  %v4536_v11 = vmax.f32 %v4461_v51, 0.0 }
 0x564   : > { %v4544_v3 = vmax.f32 %v4471_v60, 0.0  ;;  %v2677_v63 = vpop.f32.mrf.mxu2  ;;  %v4459_v40 = vadd.f32 %v12135_v18, %v4370_v29  ;;  %v15255_v29 = vld [vmem:[#allocation61_spill] sm:$0xff] }
 0x565   : > { %v2678_v44 = vadd.f32 %v2677_v63, %v15249_v4  ;;  %v15253_v4 = vld [vmem:[#allocation67_spill] sm:$0xff]  ;;  %v4456_v36 = vadd.f32 %v12121_v50, %v4367_v19  ;;  %v4394_v63 = vpop.f32.mrf.mxu0  ;;  %v4530_v50 = vmax.f32 %v12112_v9, 0.0 }
 0x566   : > { %v4592_v31 = vpack.c.bf16 %v4544_v3, %v4542_v37  ;;  %v12210_v26 = vpop.f32.mrf.mxu3  ;;  %v4534_v37 = vmax.f32 %v4459_v40, 0.0 }
 0x567   : > { %v2807_v24 = vadd.f32 %v12141_v42, %v2678_v44  ;;  %v4590_v42 = vpack.c.bf16 %v4540_v12, %v4538_v62  ;;  %v4532_v20 = vmax.f32 %v4456_v36, 0.0 }
 0x568   : > { %5171 = vmatpush.bf16.msra.mxu0 %v4592_v31  ;;  %v4588_v3 = vpack.c.bf16 %v4536_v11, %v4534_v37  ;;  %v15256_v31 = vld [vmem:[#allocation177_spill] sm:$0xff] }
 0x569   : > { %v2875_v60 = vpack.c.bf16 %v2807_v24, %v15253_v4  ;;  %v4473_v2 = vpop.f32.mrf.mxu1  ;;  %v4586_v19 = vpack.c.bf16 %v4532_v20, %v4530_v50  ;;  %v15261_v20 = vld [vmem:[#allocation63_spill] sm:$0xff]  ;;  %v15263_v50 = vld [vmem:[#allocation24_spill] sm:$0xff] }
 0x56a   : > { %v12214_v13 = vadd.f32 %v4473_v2, %v4385_v61  ;;  %v15259_v2 = vld [vmem:[#allocation57_spill] sm:$0xff] }
 0x56b   : > { %2923 = vst [vmem:[%s11726_s25 + $0x110] sm:$0xff] %v2875_v60  ;;  %4274 = vmatmul.bf16.gmra.mxu3 %v11876_v46  ;;  %v15257_v46 = vld [vmem:[#allocation64_spill] sm:$0xff] }
 0x56c   : > { %v2679_v48 = vpop.f32.mrf.mxu2  ;;  %5172 = vmatpush.bf16.msra.mxu0 %v4590_v42 }
 0x56d   : > { %v2680_v18 = vadd.f32 %v2679_v48, %v15254_v10  ;;  %v12231_v60 = vpop.f32.mrf.mxu0  ;;  %v15260_v48 = vld [vmem:[#allocation55_spill] sm:$0xff] }
 0x56e   : > { %v2821_v51 = vpop.f32.mrf.mxu3  ;;  %v8273_v10 = vld [vmem:[%s14336_s7 + $0x4] sm:$0xf0] }
 0x56f   : > { %v2809_v44 = vadd.f32 %v12155_v33, %v2680_v18  ;;  %v15258_v33 = vld [vmem:[#allocation91_spill] sm:$0xff] }
 0x570   : > { %5173 = vmatpush.bf16.msra.mxu0 %v4588_v3  ;;  %v4390_v9 = vadd.f32 %v12181_v55, %v15258_v33 }
 0x571   : > { %v2876_v12 = vpack.c.bf16 %v2809_v44, %v15255_v29  ;;  %4175 = vmatmul.bf16.gmra.mxu2 %v15256_v31  ;;  %v12223_v24 = vpop.f32.mrf.mxu1  ;;  %v15264_v31 = vld [vmem:[#allocation86_spill] sm:$0xff] }
 0x573   : > { %2924 = vst [vmem:[%s11726_s25 + $0x118] sm:$0xff] %v2876_v12 }
 0x574   : > { %v2682_v61 = vpop.f32.mrf.mxu2  ;;  %5174 = vmatpush.bf16.msra.mxu0 %v4586_v19  ;;  %v4395_v19 = vadd.f32 %v4394_v63, %v15264_v31  ;;  %v7750_v63 = vld [vmem:[%s14336_s7 + $0x10] sm:$0xf] }
 0x575   : > { %v2683_v40 = vadd.f32 %v2682_v61, %v15257_v46  ;;  %v15265_v46 = vld [vmem:[#allocation20_spill] sm:$0xff] }
 0x576   : > { %v2823_v4 = vpop.f32.mrf.mxu3 }
 0x577   : > { %v2812_v62 = vadd.f32 %v12162_v6, %v2683_v40 }
 0x578   : > { %5175 = vmatpush.bf16.msra.mxu0 %v12102_v22  ;;  %v7742_v22 = vld [vmem:[%s14336_s7] sm:$0xf] }
 0x579   : > { %v2877_v36 = vpack.c.bf16 %v2812_v62, %v15259_v2  ;;  %v4478_v11 = vpop.f32.mrf.mxu1 }
 0x57a   : > { %v12234_v42 = vadd.f32 %v4478_v11, %v4390_v9 }
 0x57b   : > { %2925 = vst [vmem:[%s11726_s25 + $0x120] sm:$0xff] %v2877_v36  ;;  %4279 = vmatmul.bf16.gmra.mxu3 %v11906_v39  ;;  %v4399_v39 = vpop.f32.mrf.mxu0 }
 0x57c   : > { %v2684_v37 = vpop.f32.mrf.mxu2  ;;  %5176 = vmatpush.bf16.msra.mxu0 %v12075_v17  ;;  %v15262_v17 = vld [vmem:[#allocation179_spill] sm:$0xff] }
 0x57d   : > { %v2685_v6 = vadd.f32 %v2684_v37, %v15260_v48  ;;  %v8275_v37 = vld [vmem:[%s14336_s7 + $0x14] sm:$0xf0] }
 0x57e   : > { %v2826_v18 = vpop.f32.mrf.mxu3 }
 0x57f   : > { %v2814_v55 = vadd.f32 %v12178_v43, %v2685_v6  ;;  %v12253_v43 = vor.u32 %v8273_v10, %v7742_v22  ;;  %v15267_v6 = vld [vmem:[#allocation18_spill] sm:$0xff] }
 0x580   : > { %5177 = vmatpush.bf16.msra.mxu0 %v12042_v47  ;;  %v15268_v22 = vld [vmem:[#allocation182_spill] sm:$0xff] }
 0x581   : > { %v2878_v3 = vpack.c.bf16 %v2814_v55, %v15261_v20  ;;  %4180 = vmatmul.bf16.gmra.mxu2 %v15262_v17  ;;  %v12250_v44 = vpop.f32.mrf.mxu1  ;;  %v15269_v20 = vld [vmem:[#allocation49_spill] sm:$0xff] }
 0x583   : > { %2926 = vst [vmem:[%s11726_s25 + $0x128] sm:$0xff] %v2878_v3  ;;  %v12264_v36 = vpop.f32.mrf.mxu0 }
 0x584   : > { %v2687_v47 = vpop.f32.mrf.mxu2  ;;  %5178 = vmatpush.bf16.msra.mxu0 %v12011_v23  ;;  %v15266_v23 = vld [vmem:[#allocation178_spill] sm:$0xff] }
 0x585   : > { %v2688_v29 = vadd.f32 %v2687_v47, %v15263_v50  ;;  %v15270_v50 = vld [vmem:[#allocation78_spill] sm:$0xff] }
 0x586   : > { %v2828_v61 = vpop.f32.mrf.mxu3 }
 0x587   : > { %v2817_v12 = vadd.f32 %v12191_v16, %v2688_v29  ;;  %5179 = vmatmul.bf16.vlgmr.msra.gmra.mxu0 %v12253_v43  ;;  %v4400_v29 = vadd.f32 %v4399_v39, %v15270_v50  ;;  %v8277_v39 = vld [vmem:[%s14336_s7 + $0x24] sm:$0xf0] }
 0x589   : > { %v2879_v40 = vpack.c.bf16 %v2817_v12, %v15265_v46  ;;  %v4483_v62 = vpop.f32.mrf.mxu1 }
 0x58a   : > { %v12261_v9 = vadd.f32 %v4483_v62, %v4395_v19  ;;  %v15271_v19 = vld [vmem:[#allocation7_spill] sm:$0xff] }
 0x58b   : > { %2927 = vst [vmem:[%s11726_s25 + $0x130] sm:$0xff] %v2879_v40  ;;  %4284 = vmatmul.bf16.gmra.mxu3 %v11936_v35  ;;  %v12280_v35 = vor.u32 %v8275_v37, %v7750_v63  ;;  %v4404_v17 = vpop.f32.mrf.mxu0 }
 0x58c   : > { %v2689_v2 = vpop.f32.mrf.mxu2 }
 0x58d   : > { %v2690_v11 = vadd.f32 %v2689_v2, %v15266_v23  ;;  %v15272_v23 = vld [vmem:[#allocation180_spill] sm:$0xff] }
 0x58e   : > { %v2831_v48 = vpop.f32.mrf.mxu3 }
 0x58f   : > { %v2819_v16 = vadd.f32 %v12210_v26, %v2690_v11 }
 0x591   : > { %v2880_v55 = vpack.c.bf16 %v2819_v16, %v15267_v6  ;;  %4185 = vmatmul.bf16.gmra.mxu2 %v15268_v22  ;;  %v12277_v10 = vpop.f32.mrf.mxu1  ;;  %v15273_v6 = vld [vmem:[#allocation11_spill] sm:$0xff]  ;;  %v15274_v22 = vld [vmem:[#allocation185_spill] sm:$0xff] }
 0x593   : > { %2928 = vst [vmem:[%s11726_s25 + $0x138] sm:$0xff] %v2880_v55  ;;  %v12297_v37 = vpop.f32.mrf.mxu0 }
 0x594   : > { %v2692_v26 = vpop.f32.mrf.mxu2 }
 0x595   : > { %v2693_v3 = vadd.f32 %v2692_v26, %v15269_v20  ;;  %v15276_v20 = vld [vmem:[#allocation72_spill] sm:$0xff] }
 0x596   : > { %v2833_v12 = vpop.f32.mrf.mxu3 }
 0x597   : > { %v2822_v47 = vadd.f32 %v2821_v51, %v2693_v3  ;;  %5184 = vmatmul.bf16.gmra.mxu0 %v12280_v35  ;;  %v7758_v51 = vld [vmem:[%s14336_s7 + $0x20] sm:$0xf] }
 0x599   : > { %v2881_v46 = vpack.c.bf16 %v2822_v47, %v15271_v19  ;;  %v4488_v40 = vpop.f32.mrf.mxu1 }
 0x59a   : > { %v12286_v62 = vadd.f32 %v4488_v40, %v4400_v29  ;;  %v15277_v29 = vld [vmem:[#allocation4_spill] sm:$0xff]  ;;  %v15278_v40 = vld [vmem:[#allocation181_spill] sm:$0xff] }
 0x59b   : > { %2929 = vst [vmem:[%s11726_s25 + $0x140] sm:$0xff] %v2881_v46  ;;  %4289 = vmatmul.bf16.gmra.mxu3 %v11964_v30  ;;  %v12304_v30 = vor.u32 %v8277_v39, %v7758_v51  ;;  %v4405_v19 = vadd.f32 %v4404_v17, %v15277_v29  ;;  %v15279_v39 = vld [vmem:[#allocation183_spill] sm:$0xff]  ;;  %v7766_v17 = vld [vmem:[%s14336_s7 + $0x30] sm:$0xf] }
 0x59c   : > { %v2694_v2 = vpop.f32.mrf.mxu2 }
 0x59d   : > { %v2695_v11 = vadd.f32 %v2694_v2, %v15272_v23  ;;  %15275 = vst [vmem:[#allocation65_spill] sm:$0xff] %v12304_v30 }
 0x59e   : > { %v2836_v63 = vpop.f32.mrf.mxu3 }
 0x59f   : > { %v2824_v16 = vadd.f32 %v2823_v4, %v2695_v11 }
 0x5a1   : > { %v2882_v55 = vpack.c.bf16 %v2824_v16, %v15273_v6  ;;  %4190 = vmatmul.bf16.gmra.mxu2 %v15274_v22  ;;  %v12301_v26 = vpop.f32.mrf.mxu1  ;;  %v12312_v16 = vpop.f32.mrf.mxu0 }
 0x5a3   : > { %2930 = vst [vmem:[%s11726_s25 + $0x148] sm:$0xff] %v2882_v55  ;;  %v8279_v55 = vld [vmem:[%s14336_s7 + $0x34] sm:$0xf0] }
 0x5a4   : > { %v2697_v4 = vpop.f32.mrf.mxu2 }
 0x5a5   : > { %v2698_v3 = vadd.f32 %v2697_v4, %v15276_v20  ;;  %v15280_v4 = vld [vmem:[#allocation79_spill] sm:$0xff] }
 0x5a6   : > { %v2838_v46 = vpop.f32.mrf.mxu3 }
 0x5a7   : > { %v2827_v47 = vadd.f32 %v2826_v18, %v2698_v3  ;;  %5189 = vmatmul.bf16.gmra.mxu0 %v12304_v30 }
 0x5a9   : > { %v2883_v2 = vpack.c.bf16 %v2827_v47, %v15278_v40  ;;  %v4493_v23 = vpop.f32.mrf.mxu1  ;;  %v12328_v47 = vor.u32 %v8279_v55, %v7766_v17 }
 0x5aa   : > { %v12310_v11 = vadd.f32 %v4493_v23, %v4405_v19  ;;  %v15282_v19 = vld [vmem:[#allocation81_spill] sm:$0xff] }
 0x5ab   : > { %2931 = vst [vmem:[%s11726_s25 + $0x150] sm:$0xff] %v2883_v2  ;;  %4294 = vmatmul.bf16.gmra.mxu3 %v11990_v56 }
 0x5ac   : > { %v2699_v51 = vpop.f32.mrf.mxu2  ;;  %15281 = vst [vmem:[#allocation101_spill] sm:$0xff] %v12328_v47 }
 0x5ad   : > { %v2700_v6 = vadd.f32 %v2699_v51, %v15279_v39  ;;  %v15283_v51 = vld [vmem:[#allocation184_spill] sm:$0xff] }
 0x5ae   : > { %v4255_v22 = vpop.f32.mrf.mxu3 }
 0x5af   : > { %v2829_v18 = vadd.f32 %v2828_v61, %v2700_v6  ;;  %v12330_v61 = vpop.f32.mrf.mxu0 }
 0x5b1   : > { %v2884_v20 = vpack.c.bf16 %v2829_v18, %v15280_v4  ;;  %4195 = vmatmul.bf16.gmra.mxu2 %v11684_v45  ;;  %v12325_v3 = vpop.f32.mrf.mxu1  ;;  %v15284_v18 = vld [vmem:[#allocation186_spill] sm:$0xff] }
 0x5b3   : > { %2932 = vst [vmem:[%s11726_s25 + $0x158] sm:$0xff] %v2884_v20  ;;  %v8281_v20 = vld [vmem:[%s14336_s7 + $0x44] sm:$0xf0] }
 0x5b4   : > { %v2702_v56 = vpop.f32.mrf.mxu2 }
 0x5b5   : > { %v2703_v40 = vadd.f32 %v2702_v56, %v15282_v19  ;;  %v15285_v19 = vld [vmem:[#allocation87_spill] sm:$0xff] }
 0x5b6   : > { %v4257_v23 = vpop.f32.mrf.mxu3 }
 0x5b7   : > { %v2832_v2 = vadd.f32 %v2831_v48, %v2703_v40  ;;  %5194 = vmatmul.bf16.gmra.mxu0 %v12328_v47  ;;  %v4414_v17 = vpop.f32.mrf.mxu0  ;;  %v7774_v48 = vld [vmem:[%s14336_s7 + $0x40] sm:$0xf] }
 0x5b9   : > { %v2885_v39 = vpack.c.bf16 %v2832_v2, %v15283_v51  ;;  %v12335_v6 = vpop.f32.mrf.mxu1  ;;  %v15287_v51 = vld [vmem:[#allocation88_spill] sm:$0xff] }
 0x5bb   : > { %2933 = vst [vmem:[%s11726_s25 + $0x160] sm:$0xff] %v2885_v39  ;;  %4299 = vmatmul.bf16.gmra.mxu3 %v12017_v21  ;;  %v12351_v21 = vor.u32 %v8281_v20, %v7774_v48  ;;  %v8283_v20 = vld [vmem:[%s14336_s7 + $0x54] sm:$0xf0] }
 0x5bc   : > { %v2704_v45 = vpop.f32.mrf.mxu2 }
 0x5bd   : > { %v2705_v4 = vadd.f32 %v2704_v45, %v15284_v18  ;;  %15286 = vst [vmem:[#allocation103_spill] sm:$0xff] %v12351_v21 }
 0x5be   : > { %v12346_v56 = vpop.f32.mrf.mxu3 }
 0x5bf   : > { %v2834_v55 = vadd.f32 %v2833_v12, %v2705_v4  ;;  %v4416_v4 = vpop.f32.mrf.mxu0 }
 0x5c1   : > { %v2886_v40 = vpack.c.bf16 %v2834_v55, %v15285_v19  ;;  %4200 = vmatmul.bf16.gmra.mxu2 %v11728_v38  ;;  %v4500_v2 = vpop.f32.mrf.mxu1 }
 0x5c3   : > { %2934 = vst [vmem:[%s11726_s25 + $0x168] sm:$0xff] %v2886_v40 }
 0x5c4   : > { %v2707_v12 = vpop.f32.mrf.mxu2 }
 0x5c5   : > { %v2708_v39 = vadd.f32 %v2707_v12, %v15287_v51 }
 0x5c6   : > { %v12355_v18 = vpop.f32.mrf.mxu3 }
 0x5c7   : > { %v2837_v45 = vadd.f32 %v2836_v63, %v2708_v39  ;;  %5199 = vmatmul.bf16.gmra.mxu0 %v12351_v21  ;;  %v7782_v63 = vld [vmem:[%s14336_s7 + $0x50] sm:$0xf]  ;;  %v4419_v40 = vpop.f32.mrf.mxu0 }
 0x5c9   : > { %v2887_v47 = vpack.c.bf16 %v2837_v45, %v11680_v14  ;;  %v4503_v29 = vpop.f32.mrf.mxu1 }
 0x5cb   : > { %2935 = vst [vmem:[%s11726_s25 + $0x170] sm:$0xff] %v2887_v47  ;;  %4304 = vmatmul.bf16.gmra.mxu3 %v12047_v59 }
 0x5cc   : > { %v2709_v55 = vpop.f32.mrf.mxu2 }
 0x5cd   : > { %v2710_v38 = vadd.f32 %v2709_v55, %v11690_v7  ;;  %v12372_v7 = vor.u32 %v8283_v20, %v7782_v63  ;;  %v15290_v63 = vld [vmem:[#allocation9_spill] sm:$0xff] }
 0x5ce   : > { %v12367_v19 = vpop.f32.mrf.mxu3  ;;  %v4417_v20 = vadd.f32 %v4416_v4, %v15290_v63 }
 0x5cf   : > { %v2839_v48 = vadd.f32 %v2838_v46, %v2710_v38  ;;  %15288 = vst [vmem:[#allocation102_spill] sm:$0xff] %v12372_v7  ;;  %v4421_v55 = vpop.f32.mrf.mxu0 }
 0x5d1   : > { %v2888_v14 = vpack.c.bf16 %v2839_v48, %v11700_v53  ;;  %4205 = vmatmul.bf16.gmra.mxu2 %v11763_v5  ;;  %v4505_v47 = vpop.f32.mrf.mxu1  ;;  %v15289_v5 = vld [vmem:[#allocation59_spill] sm:$0xff] }
 0x5d2   : > { %v4420_v38 = vadd.f32 %v4419_v40, %v15289_v5  ;;  %v15292_v40 = vld [vmem:[#allocation60_spill] sm:$0xff] }
 0x5d3   : > { %2936 = vst [vmem:[%s11726_s25 + $0x178] sm:$0xff] %v2888_v14  ;;  %v15291_v14 = vld [vmem:[#allocation71_spill] sm:$0xff]  ;;  %v4415_v4 = vadd.f32 %v4414_v17, %v15292_v40 }
 0x5d4   : > { %v4166_v59 = vpop.f32.mrf.mxu2  ;;  %v4422_v21 = vadd.f32 %v4421_v55, %v15291_v14 }
 0x5d5   : > { %v4167_v46 = vadd.f32 %v4166_v59, %v15191_v0  ;;  %v8285_v59 = vld [vmem:[%s14336_s7 + $0x64] sm:$0xf0]  ;;  %v4504_v63 = vadd.f32 %v4503_v29, %v4415_v4 }
 0x5d6   : > { %v12376_v51 = vpop.f32.mrf.mxu3 }
 0x5d7   : > { %v4256_v12 = vadd.f32 %v4255_v22, %v4167_v46  ;;  %5204 = vmatmul.bf16.gmra.mxu0 %v12372_v7  ;;  %v7790_v22 = vld [vmem:[%s14336_s7 + $0x60] sm:$0xf] }
 0x5d9   : > { %v4508_v39 = vpop.f32.mrf.mxu1 }
 0x5da   : > { %v4509_v0 = vadd.f32 %v4508_v39, %v4420_v38  ;;  %v12393_v39 = vor.u32 %v8285_v59, %v7790_v22  ;;  %v15293_v38 = vld [vmem:[#allocation3_spill] sm:$0xff] }
 0x5db   : > { %4309 = vmatmul.bf16.gmra.mxu3 %v12080_v28  ;;  %v4412_v14 = vadd.f32 %v12330_v61, %v15293_v38  ;;  %v4570_v61 = vmax.f32 %v4504_v63, 0.0 }
 0x5dc   : > { %v4168_v45 = vpop.f32.mrf.mxu2  ;;  %v4574_v5 = vmax.f32 %v4509_v0, 0.0 }
 0x5dd   : > { %v4169_v53 = vadd.f32 %v4168_v45, %v15192_v49  ;;  %v4513_v49 = vmax.f32 %v4256_v12, 0.0  ;;  %v4506_v45 = vadd.f32 %v4505_v47, %v4417_v20  ;;  %v4501_v50 = vadd.f32 %v4500_v2, %v4412_v14  ;;  %v15295_v20 = vld [vmem:[#allocation74_spill] sm:$0xff]  ;;  %v15296_v2 = vld [vmem:[#allocation83_spill] sm:$0xff] }
 0x5de   : > { %v12389_v46 = vpop.f32.mrf.mxu3  ;;  %v4407_v22 = vadd.f32 %v12297_v37, %v15295_v20 }
 0x5df   : > { %v4258_v48 = vadd.f32 %v4257_v23, %v4169_v53  ;;  %v4572_v17 = vmax.f32 %v4506_v45, 0.0  ;;  %v15298_v45 = vld [vmem:[#allocation93_spill] sm:$0xff] }
 0x5e1   : > { %v4515_v28 = vmax.f32 %v4258_v48, 0.0  ;;  %4210 = vmatmul.bf16.gmra.mxu2 %v11791_v8  ;;  %v4510_v23 = vpop.f32.mrf.mxu1  ;;  %v15294_v48 = vld [vmem:[#allocation6_spill] sm:$0xff] }
 0x5e2   : > { %v4511_v55 = vadd.f32 %v4510_v23, %v4422_v21  ;;  %v4410_v8 = vadd.f32 %v12312_v16, %v15294_v48  ;;  %v4606_v16 = vpack.c.bf16 %v4572_v17, %v4570_v61  ;;  %v15299_v17 = vld [vmem:[#allocation80_spill] sm:$0xff]  ;;  %v15301_v61 = vld [vmem:[#allocation99_spill] sm:$0xff] }
 0x5e3   : > { %v12395_v53 = vpack.c.bf16 %v4515_v28, %v4513_v49  ;;  %v15297_v49 = vld [vmem:[#allocation85_spill] sm:$0xff] }
 0x5e4   : > { %v4576_v7 = vmax.f32 %v4511_v55, 0.0  ;;  %v4171_v30 = vpop.f32.mrf.mxu2  ;;  %v4499_v29 = vadd.f32 %v12335_v6, %v4410_v8  ;;  %v4392_v55 = vadd.f32 %v12200_v41, %v15298_v45 }
 0x5e5   : > { %v4172_v12 = vadd.f32 %v4171_v30, %v15196_v52  ;;  %v4496_v52 = vadd.f32 %v12325_v3, %v4407_v22  ;;  %v4568_v30 = vmax.f32 %v4501_v50, 0.0  ;;  %v4397_v50 = vadd.f32 %v12231_v60, %v15297_v49 }
 0x5e6   : > { %v4608_v47 = vpack.c.bf16 %v4576_v7, %v4574_v5  ;;  %v12407_v0 = vpop.f32.mrf.mxu3  ;;  %v4402_v7 = vadd.f32 %v12264_v36, %v15296_v2  ;;  %v4566_v5 = vmax.f32 %v4499_v29, 0.0  ;;  %v4562_v3 = vmax.f32 %v12310_v11, 0.0  ;;  %v7798_v36 = vld [vmem:[%s14336_s7 + $0x70] sm:$0xf]  ;;  %v15300_v29 = vld [vmem:[#allocation17_spill] sm:$0xff] }
 0x5e7   : > { %v4261_v21 = vadd.f32 %v12346_v56, %v4172_v12  ;;  %5209 = vmatmul.bf16.gmra.mxu0 %v12393_v39  ;;  %v4564_v6 = vmax.f32 %v4496_v52, 0.0  ;;  %v4558_v12 = vmax.f32 %v12286_v62, 0.0  ;;  %v4387_v52 = vadd.f32 %v15301_v61, %v15300_v29  ;;  %v8274_v61 = vld [vmem:[%s14336_s7 + $0x14] sm:$0xf] }
 0x5e8   : > { %5260 = vmatpush.bf16.msra.mxu1 %v4608_v47  ;;  %v4491_v37 = vadd.f32 %v12301_v26, %v4402_v7  ;;  %v4604_v63 = vpack.c.bf16 %v4568_v30, %v4566_v5  ;;  %v4554_v30 = vmax.f32 %v12261_v9, 0.0 }
 0x5e9   : > { %v4517_v26 = vmax.f32 %v4261_v21, 0.0  ;;  %v4602_v23 = vpack.c.bf16 %v4564_v6, %v4562_v3  ;;  %v4481_v21 = vadd.f32 %v12250_v44, %v4392_v55  ;;  %v4476_v62 = vadd.f32 %v12223_v24, %v4387_v52  ;;  %v7806_v24 = vld [vmem:[%s14336_s7 + $0x80] sm:$0xf]  ;;  %v7752_v52 = vld [vmem:[%s14336_s7 + $0x18] sm:$0xf0] }
 0x5ea   : > { %v4560_v60 = vmax.f32 %v4491_v37, 0.0  ;;  %v4550_v44 = vmax.f32 %v12234_v42, 0.0  ;;  %v8289_v42 = vld [vmem:[%s14336_s7 + $0x84] sm:$0xf0] }
 0x5eb   : > { %4314 = vmatmul.bf16.gmra.mxu3 %v12107_v57  ;;  %v4548_v37 = vmax.f32 %v4476_v62, 0.0 }
 0x5ec   : > { %v4173_v56 = vpop.f32.mrf.mxu2  ;;  %5261 = vmatpush.bf16.msra.mxu1 %v4606_v16  ;;  %v4600_v22 = vpack.c.bf16 %v4560_v60, %v4558_v12  ;;  %v4552_v16 = vmax.f32 %v4481_v21, 0.0 }
 0x5ed   : > { %v4174_v14 = vadd.f32 %v4173_v56, %v15200_v25  ;;  %v8287_v25 = vld [vmem:[%s14336_s7 + $0x74] sm:$0xf0]  ;;  %v15302_v56 = vld [vmem:[#allocation84_spill] sm:$0xff] }
 0x5ee   : > { %v12425_v57 = vpop.f32.mrf.mxu3  ;;  %v12429_v11 = vor.u32 %v8287_v25, %v7798_v36  ;;  %v4596_v6 = vpack.c.bf16 %v4552_v16, %v4550_v44  ;;  %v15304_v36 = vld [vmem:[#allocation43_spill] sm:$0xff]  ;;  %v12498_v44 = vor.u32 %v8274_v61, %v7752_v52 }
 0x5ef   : > { %v4263_v59 = vadd.f32 %v12355_v18, %v4174_v14  ;;  %v4486_v18 = vadd.f32 %v12277_v10, %v4397_v50  ;;  %v15303_v14 = vld [vmem:[#allocation98_spill] sm:$0xff]  ;;  %v7744_v50 = vld [vmem:[%s14336_s7 + $0x8] sm:$0xf0] }
 0x5f0   : > { %5262 = vmatpush.bf16.msra.mxu1 %v4604_v63  ;;  %v4546_v63 = vmax.f32 %v12214_v13, 0.0  ;;  %v15308_v16 = vld [vmem:[#allocation95_spill] sm:$0xff] }
 0x5f1   : > { %v4519_v28 = vmax.f32 %v4263_v59, 0.0  ;;  %4215 = vmatmul.bf16.gmra.mxu2 %v11818_v34  ;;  %v4556_v34 = vmax.f32 %v4486_v18, 0.0  ;;  %v8272_v59 = vld [vmem:[%s14336_s7 + $0x4] sm:$0xf] }
 0x5f2   : > { %v4594_v25 = vpack.c.bf16 %v4548_v37, %v4546_v63 }
 0x5f3   : > { %v12431_v4 = vpack.c.bf16 %v4519_v28, %v4517_v26  ;;  %v4598_v7 = vpack.c.bf16 %v4556_v34, %v4554_v30  ;;  %v12466_v26 = vor.u32 %v8289_v42, %v7806_v24  ;;  %v12468_v28 = vor.u32 %v8272_v59, %v7744_v50  ;;  %v15307_v34 = vld [vmem:[#allocation52_spill] sm:$0xff]  ;;  %v7822_v24 = vld [vmem:[%s14336_s7 + $0xa0] sm:$0xf]  ;;  %v8293_v42 = vld [vmem:[%s14336_s7 + $0xa4] sm:$0xf0] }
 0x5f4   : > { %v4176_v8 = vpop.f32.mrf.mxu2  ;;  %5263 = vmatpush.bf16.msra.mxu1 %v4602_v23  ;;  %v15305_v23 = vld [vmem:[#allocation77_spill] sm:$0xff]  ;;  %v7760_v59 = vld [vmem:[%s14336_s7 + $0x28] sm:$0xf0]  ;;  %v15311_v50 = vld [vmem:[#allocation28_spill] sm:$0xff] }
 0x5f5   : > { %v4177_v47 = vadd.f32 %v4176_v8, %v15299_v17 }
 0x5f6   : > { %v12443_v41 = vpop.f32.mrf.mxu3 }
 0x5f7   : > { %v4266_v10 = vadd.f32 %v12367_v19, %v4177_v47  ;;  %5214 = vmatmul.bf16.gmra.mxu0 %v12429_v11  ;;  %v15306_v47 = vld [vmem:[#allocation76_spill] sm:$0xff] }
 0x5f8   : > { %5264 = vmatpush.bf16.msra.mxu1 %v4600_v22 }
 0x5fb   : > { %4319 = vmatmul.bf16.gmra.mxu3 %v15303_v14 }
 0x5fc   : > { %v4178_v5 = vpop.f32.mrf.mxu2  ;;  %5265 = vmatpush.bf16.msra.mxu1 %v4598_v7 }
 0x5fd   : > { %v4179_v19 = vadd.f32 %v4178_v5, %v15302_v56 }
 0x5fe   : > { %v12463_v13 = vpop.f32.mrf.mxu3 }
 0x5ff   : > { %v4268_v9 = vadd.f32 %v12376_v51, %v4179_v19  ;;  %v4521_v51 = vmax.f32 %v4266_v10, 0.0  ;;  %v7814_v10 = vld [vmem:[%s14336_s7 + $0x90] sm:$0xf] }
 0x600   : > { %5266 = vmatpush.bf16.msra.mxu1 %v4596_v6  ;;  %v15309_v19 = vld [vmem:[#allocation8_spill] sm:$0xff] }
 0x601   : > { %v4523_v3 = vmax.f32 %v4268_v9, 0.0  ;;  %4220 = vmatmul.bf16.gmra.mxu2 %v15304_v36  ;;  %v15310_v9 = vld [vmem:[#allocation100_spill] sm:$0xff] }
 0x603   : > { %v12470_v18 = vpack.c.bf16 %v4523_v3, %v4521_v51  ;;  %v12522_v51 = vor.u32 %v8293_v42, %v7822_v24 }
 0x604   : > { %v4181_v60 = vpop.f32.mrf.mxu2  ;;  %5267 = vmatpush.bf16.msra.mxu1 %v4594_v25 }
 0x605   : > { %v4182_v55 = vadd.f32 %v4181_v60, %v15305_v23 }
 0x606   : > { %v12476_v8 = vpop.f32.mrf.mxu3 }
 0x607   : > { %v4271_v12 = vadd.f32 %v12389_v46, %v4182_v55  ;;  %5219 = vmatmul.bf16.gmra.mxu0 %v12466_v26  ;;  %5268 = vmatmul.bf16.vlgmr.msra.gmra.mxu1 %v12468_v28  ;;  %v8291_v46 = vld [vmem:[%s14336_s7 + $0x94] sm:$0xf0]  ;;  %v7830_v55 = vld [vmem:[%s14336_s7 + $0xb0] sm:$0xf] }
 0x608   : > { %v12496_v7 = vor.u32 %v8291_v46, %v7814_v10 }
 0x609   : > { %v4525_v62 = vmax.f32 %v4271_v12, 0.0  ;;  %v8295_v12 = vld [vmem:[%s14336_s7 + $0xb4] sm:$0xf0] }
 0x60b   : > { %4324 = vmatmul.bf16.gmra.mxu3 %v15307_v34  ;;  %v15312_v34 = vld [vmem:[#allocation97_spill] sm:$0xff] }
 0x60c   : > { %v4183_v17 = vpop.f32.mrf.mxu2 }
 0x60d   : > { %v4184_v21 = vadd.f32 %v4183_v17, %v15306_v47  ;;  %v8278_v17 = vld [vmem:[%s14336_s7 + $0x34] sm:$0xf]  ;;  %v7768_v47 = vld [vmem:[%s14336_s7 + $0x38] sm:$0xf0] }
 0x60e   : > { %v12493_v30 = vpop.f32.mrf.mxu3  ;;  %v12545_v10 = vor.u32 %v8278_v17, %v7768_v47 }
 0x60f   : > { %v4273_v22 = vadd.f32 %v12407_v0, %v4184_v21  ;;  %v12540_v21 = vpop.f32.mrf.mxu0 }
 0x610   : > { %15314 = vst [vmem:[#allocation48_spill] sm:$0xff] %v12545_v10 }
 0x611   : > { %v4527_v0 = vmax.f32 %v4273_v22, 0.0  ;;  %4225 = vmatmul.bf16.gmra.mxu2 %v15308_v16  ;;  %v12543_v22 = vor.u32 %v8295_v12, %v7830_v55  ;;  %v8297_v16 = vld [vmem:[%s14336_s7 + $0xc4] sm:$0xf0]  ;;  %v15318_v55 = vld [vmem:[#allocation21_spill] sm:$0xff] }
 0x613   : > { %v12500_v5 = vpack.c.bf16 %v4527_v0, %v4525_v62  ;;  %15313 = vst [vmem:[#allocation104_spill] sm:$0xff] %v12543_v22  ;;  %v7838_v0 = vld [vmem:[%s14336_s7 + $0xc0] sm:$0xf] }
 0x614   : > { %v4186_v56 = vpop.f32.mrf.mxu2  ;;  %v12566_v24 = vor.u32 %v8297_v16, %v7838_v0  ;;  %v15319_v0 = vld [vmem:[#allocation66_spill] sm:$0xff] }
 0x615   : > { %v4187_v14 = vadd.f32 %v4186_v56, %v15309_v19  ;;  %v8280_v56 = vld [vmem:[%s14336_s7 + $0x44] sm:$0xf]  ;;  %v7776_v19 = vld [vmem:[%s14336_s7 + $0x48] sm:$0xf0] }
 0x616   : > { %v4287_v6 = vpop.f32.mrf.mxu3  ;;  %15316 = vst [vmem:[#allocation12_spill] sm:$0xff] %v12566_v24  ;;  %v12568_v42 = vor.u32 %v8280_v56, %v7776_v19 }
 0x617   : > { %v12504_v37 = vadd.f32 %v12425_v57, %v4187_v14  ;;  %5224 = vmatmul.bf16.gmra.mxu0 %v12496_v7  ;;  %5273 = vmatmul.bf16.gmra.mxu1 %v12498_v44  ;;  %v8276_v57 = vld [vmem:[%s14336_s7 + $0x24] sm:$0xf]  ;;  %v12549_v52 = vpop.f32.mrf.mxu0  ;;  %v15315_v14 = vld [vmem:[#allocation16_spill] sm:$0xff] }
 0x618   : > { %v12524_v3 = vor.u32 %v8276_v57, %v7760_v59  ;;  %15317 = vst [vmem:[#allocation106_spill] sm:$0xff] %v12568_v42 }
 0x61b   : > { %4329 = vmatmul.bf16.gmra.mxu3 %v15310_v9 }
 0x61c   : > { %v4188_v63 = vpop.f32.mrf.mxu2 }
 0x61e   : > { %v4290_v25 = vpop.f32.mrf.mxu3 }
 0x61f   : > { %v12570_v59 = vpop.f32.mrf.mxu0 }
 0x621   : > { %4230 = vmatmul.bf16.gmra.mxu2 %v15311_v50 }
 0x624   : > { %v4191_v36 = vpop.f32.mrf.mxu2 }
 0x626   : > { %v4292_v23 = vpop.f32.mrf.mxu3 }
 0x627   : > { %5229 = vmatmul.bf16.gmra.mxu0 %v12522_v51  ;;  %5278 = vmatmul.bf16.gmra.mxu1 %v12524_v3  ;;  %v12579_v19 = vpop.f32.mrf.mxu0 }
 0x62c   : > { %v4193_v60 = vpop.f32.mrf.mxu2 }
 0x62d   : > { %v4194_v56 = vadd.f32 %v4193_v60, %v15248_v1  ;;  %v7784_v1 = vld [vmem:[%s14336_s7 + $0x58] sm:$0xf0] }
 0x62e   : > { %v4295_v61 = vpop.f32.mrf.mxu3 }
 0x631   : > { %4235 = vmatmul.bf16.gmra.mxu2 %v15312_v34 }
 0x634   : > { %v4196_v46 = vpop.f32.mrf.mxu2 }
 0x635   : > { %v4197_v34 = vadd.f32 %v4196_v46, %v15247_v54  ;;  %v8282_v54 = vld [vmem:[%s14336_s7 + $0x54] sm:$0xf]  ;;  %v4189_v46 = vadd.f32 %v4188_v63, %v15251_v27 }
 0x636   : > { %v12564_v9 = vpop.f32.mrf.mxu3 }
 0x637   : > { %5234 = vmatmul.bf16.gmra.mxu0 %v12543_v22  ;;  %5283 = vmatmul.bf16.gmra.mxu1 %v12545_v10 }
 0x63c   : > { %v4198_v62 = vpop.f32.mrf.mxu2 }
 0x63d   : > { %v4199_v12 = vadd.f32 %v4198_v62, %v15318_v55  ;;  %v4283_v62 = vadd.f32 %v12476_v8, %v4194_v56  ;;  %v8284_v56 = vld [vmem:[%s14336_s7 + $0x64] sm:$0xf] }
 0x63e   : > { %v4300_v47 = vpop.f32.mrf.mxu3 }
 0x63f   : > { %v4288_v10 = vadd.f32 %v4287_v6, %v4199_v12  ;;  %v4286_v6 = vadd.f32 %v12493_v30, %v4197_v34  ;;  %v12599_v12 = vor.u32 %v8282_v54, %v7784_v1  ;;  %v4535_v27 = vmax.f32 %v4283_v62, 0.0 }
 0x640   : > { %v4529_v34 = vmax.f32 %v12504_v37, 0.0 }
 0x641   : > { %4240 = vmatmul.bf16.gmra.mxu2 %v15315_v14  ;;  %15321 = vst [vmem:[#allocation107_spill] sm:$0xff] %v12599_v12 }
 0x644   : > { %v4201_v57 = vpop.f32.mrf.mxu2 }
 0x645   : > { %v4202_v50 = vadd.f32 %v4201_v57, %v15242_v32  ;;  %v8299_v32 = vld [vmem:[%s14336_s7 + $0xd4] sm:$0xf0]  ;;  %v4539_v57 = vmax.f32 %v4288_v10, 0.0  ;;  %v12610_v10 = vpop.f32.mrf.mxu0 }
 0x646   : > { %v12603_v30 = vpop.f32.mrf.mxu3 }
 0x647   : > { %5239 = vmatmul.bf16.gmra.mxu0 %v12566_v24  ;;  %5288 = vmatmul.bf16.gmra.mxu1 %v12568_v42  ;;  %v4291_v14 = vadd.f32 %v4290_v25, %v4202_v50  ;;  %v7846_v42 = vld [vmem:[%s14336_s7 + $0xd0] sm:$0xf]  ;;  %v4192_v25 = vadd.f32 %v4191_v36, %v15250_v58  ;;  %v4278_v36 = vadd.f32 %v12443_v41, %v4189_v46  ;;  %v15349_v24 = vld [vmem:[#allocation9_spill] sm:$0xff] }
 0x648   : > { %v12597_v55 = vor.u32 %v8299_v32, %v7846_v42  ;;  %v7792_v32 = vld [vmem:[%s14336_s7 + $0x68] sm:$0xf0] }
 0x649   : > { %v4541_v60 = vmax.f32 %v4291_v14, 0.0  ;;  %v8301_v14 = vld [vmem:[%s14336_s7 + $0xe4] sm:$0xf0] }
 0x64a   : > { %15320 = vst [vmem:[#allocation108_spill] sm:$0xff] %v12597_v55 }
 0x64c   : > { %v4203_v17 = vpop.f32.mrf.mxu2 }
 0x64d   : > { %v4204_v16 = vadd.f32 %v4203_v17, %v15319_v0  ;;  %v4281_v0 = vadd.f32 %v12463_v13, %v4192_v25  ;;  %v4531_v13 = vmax.f32 %v4278_v36, 0.0  ;;  %v12627_v37 = vpop.f32.mrf.mxu0  ;;  %v12631_v25 = vor.u32 %v8284_v56, %v7792_v32 }
 0x64e   : > { %v4305_v54 = vpop.f32.mrf.mxu3 }
 0x64f   : > { %v4293_v22 = vadd.f32 %v4292_v23, %v4204_v16  ;;  %v4537_v16 = vmax.f32 %v4286_v6, 0.0  ;;  %v4585_v41 = vpack.c.bf16 %v4531_v13, %v4529_v34  ;;  %15323 = vst [vmem:[#allocation42_spill] sm:$0xff] %v12631_v25  ;;  %v15328_v34 = vld [vmem:[#allocation78_spill] sm:$0xff] }
 0x651   : > { %v4543_v23 = vmax.f32 %v4293_v22, 0.0  ;;  %v4589_v8 = vpack.c.bf16 %v4539_v57, %v4537_v16  ;;  %v4533_v22 = vmax.f32 %v4281_v0, 0.0 }
 0x653   : > { %v4591_v50 = vpack.c.bf16 %v4543_v23, %v4541_v60  ;;  %v4587_v42 = vpack.c.bf16 %v4535_v27, %v4533_v22  ;;  %v15327_v22 = vld [vmem:[#allocation165_spill] sm:$0xff] }
 0x654   : > { %v4206_v17 = vpop.f32.mrf.mxu2  ;;  %v5181_v13 = vadd.f32 %v12540_v21, %v15327_v22 }
 0x655   : > { %v4207_v58 = vadd.f32 %v4206_v17, %v15252_v15  ;;  %4993 = vmatpush.bf16.msra.mxu2 %v4591_v50  ;;  %v12644_v57 = vpop.f32.mrf.mxu0 }
 0x656   : > { %v12640_v46 = vpop.f32.mrf.mxu3 }
 0x657   : > { %v12606_v63 = vadd.f32 %v4295_v61, %v4207_v58  ;;  %5244 = vmatmul.bf16.gmra.mxu0 %v12597_v55  ;;  %5293 = vmatmul.bf16.gmra.mxu1 %v12599_v12  ;;  %v7854_v61 = vld [vmem:[%s14336_s7 + $0xe0] sm:$0xf] }
 0x658   : > { %v12629_v1 = vor.u32 %v8301_v14, %v7854_v61  ;;  %v15347_v12 = vld [vmem:[#allocation102_spill] sm:$0xff] }
 0x659   : > { %4994 = vmatpush.bf16.msra.mxu2 %v4589_v8  ;;  %v8288_v8 = vld [vmem:[%s14336_s7 + $0x84] sm:$0xf] }
 0x65a   : > { %15322 = vst [vmem:[#allocation109_spill] sm:$0xff] %v12629_v1 }
 0x65c   : > { %v12612_v15 = vpop.f32.mrf.mxu2 }
 0x65d   : > { %4995 = vmatpush.bf16.msra.mxu2 %v4587_v42  ;;  %v12666_v58 = vpop.f32.mrf.mxu0 }
 0x65e   : > { %v4310_v0 = vpop.f32.mrf.mxu3 }
 0x661   : > { %4996 = vmatpush.bf16.msra.mxu2 %v4585_v41 }
 0x664   : > { %v4211_v6 = vpop.f32.mrf.mxu2 }
 0x665   : > { %v4212_v60 = vadd.f32 %v4211_v6, %v15258_v33  ;;  %4997 = vmatpush.bf16.msra.mxu2 %v12500_v5  ;;  %v7862_v33 = vld [vmem:[%s14336_s7 + $0xf0] sm:$0xf]  ;;  %v8303_v5 = vld [vmem:[%s14336_s7 + $0xf4] sm:$0xf0] }
 0x666   : > { %v12660_v50 = vor.u32 %v8303_v5, %v7862_v33 }
 0x667   : > { %v12635_v23 = vadd.f32 %v4300_v47, %v4212_v60  ;;  %5249 = vmatmul.bf16.gmra.mxu0 %v12629_v1  ;;  %5298 = vmatmul.bf16.gmra.mxu1 %v12631_v25  ;;  %v7800_v47 = vld [vmem:[%s14336_s7 + $0x78] sm:$0xf0] }
 0x668   : > { %15324 = vst [vmem:[#allocation105_spill] sm:$0xff] %v12660_v50 }
 0x669   : > { %4998 = vmatpush.bf16.msra.mxu2 %v12470_v18  ;;  %v8286_v18 = vld [vmem:[%s14336_s7 + $0x74] sm:$0xf] }
 0x66c   : > { %v12642_v62 = vpop.f32.mrf.mxu2 }
 0x66d   : > { %4999 = vmatpush.bf16.msra.mxu2 %v12431_v4  ;;  %v12662_v4 = vor.u32 %v8286_v18, %v7800_v47  ;;  %v7816_v47 = vld [vmem:[%s14336_s7 + $0x98] sm:$0xf0] }
 0x66f   : > { %15325 = vst [vmem:[#allocation112_spill] sm:$0xff] %v12662_v4 }
 0x671   : > { %5000 = vmatpush.bf16.msra.mxu2 %v12395_v53  ;;  %v12674_v53 = vpop.f32.mrf.mxu3 }
 0x674   : > { %v4216_v17 = vpop.f32.mrf.mxu2  ;;  %5001 = vmatmul.bf16.vlgmr.msra.gmra.mxu2 %v12253_v43  ;;  %v7808_v43 = vld [vmem:[%s14336_s7 + $0x88] sm:$0xf0] }
 0x675   : > { %v4217_v16 = vadd.f32 %v4216_v17, %v15264_v31  ;;  %v12682_v31 = vor.u32 %v8288_v8, %v7808_v43  ;;  %v15332_v8 = vld [vmem:[#allocation157_spill] sm:$0xff] }
 0x676   : > { %v5186_v43 = vadd.f32 %v12570_v59, %v15332_v8 }
 0x677   : > { %v12668_v36 = vadd.f32 %v4305_v54, %v4217_v16  ;;  %5254 = vmatmul.bf16.gmra.mxu0 %v12660_v50  ;;  %5303 = vmatmul.bf16.gmra.mxu1 %v12662_v4  ;;  %15326 = vst [vmem:[#allocation116_spill] sm:$0xff] %v12682_v31  ;;  %v15329_v54 = vld [vmem:[#allocation162_spill] sm:$0xff]  ;;  %v5200_v16 = vpop.f32.mrf.mxu0  ;;  %v15345_v50 = vld [vmem:[#allocation144_spill] sm:$0xff] }
 0x678   : > { %v5183_v6 = vadd.f32 %v12549_v52, %v15329_v54  ;;  %v5198_v25 = vadd.f32 %v12666_v58, %v15345_v50 }
 0x679   : > { %v4315_v32 = vpop.f32.mrf.mxu3 }
 0x67c   : > { %v12672_v27 = vpop.f32.mrf.mxu2 }
 0x681   : > { %v12701_v17 = vpop.f32.mrf.mxu3 }
 0x684   : > { %v4221_v42 = vpop.f32.mrf.mxu2  ;;  %5006 = vmatmul.bf16.gmra.mxu2 %v12280_v35  ;;  %v5269_v61 = vpop.f32.mrf.mxu1  ;;  %v8290_v35 = vld [vmem:[%s14336_s7 + $0x94] sm:$0xf] }
 0x685   : > { %v4222_v41 = vadd.f32 %v4221_v42, %v15328_v34  ;;  %v5270_v14 = vadd.f32 %v5269_v61, %v5181_v13  ;;  %v12705_v52 = vor.u32 %v8290_v35, %v7816_v47  ;;  %v15333_v42 = vld [vmem:[#allocation65_spill] sm:$0xff]  ;;  %v15334_v34 = vld [vmem:[#allocation4_spill] sm:$0xff]  ;;  %v12720_v35 = vpop.f32.mrf.mxu0 }
 0x687   : > { %v12688_v56 = vadd.f32 %v4310_v0, %v4222_v41  ;;  %5308 = vmatmul.bf16.gmra.mxu1 %v12682_v31  ;;  %v5350_v21 = vmax.f32 %v5270_v14, 0.0  ;;  %15331 = vst [vmem:[#allocation50_spill] sm:$0xff] %v12705_v52 }
 0x68c   : > { %v12693_v60 = vpop.f32.mrf.mxu2  ;;  %v5271_v33 = vpop.f32.mrf.mxu1 }
 0x68d   : > { %v5272_v5 = vadd.f32 %v5271_v33, %v5183_v6  ;;  %v15335_v33 = vld [vmem:[#allocation69_spill] sm:$0xff] }
 0x68f   : > { %v5352_v18 = vmax.f32 %v5272_v5, 0.0  ;;  %v5188_v5 = vadd.f32 %v12579_v19, %v15335_v33  ;;  %v15339_v33 = vld [vmem:[#allocation101_spill] sm:$0xff] }
 0x691   : > { %v12703_v0 = vpack.c.bf16 %v5352_v18, %v5350_v21  ;;  %v12718_v18 = vpop.f32.mrf.mxu3 }
 0x693   : > { %15330 = vst [vmem:[#allocation114_spill] sm:$0xff] %v12703_v0 }
 0x694   : > { %v4226_v13 = vpop.f32.mrf.mxu2  ;;  %5011 = vmatmul.bf16.gmra.mxu2 %v15333_v42  ;;  %v5274_v61 = vpop.f32.mrf.mxu1 }
 0x695   : > { %v4227_v41 = vadd.f32 %v4226_v13, %v15334_v34  ;;  %v5275_v14 = vadd.f32 %v5274_v61, %v5186_v43  ;;  %v7824_v43 = vld [vmem:[%s14336_s7 + $0xa8] sm:$0xf0] }
 0x696   : > { %v15338_v34 = vld [vmem:[#allocation147_spill] sm:$0xff] }
 0x697   : > { %v12711_v6 = vadd.f32 %v4315_v32, %v4227_v41  ;;  %5313 = vmatmul.bf16.gmra.mxu1 %v12705_v52  ;;  %v5354_v42 = vmax.f32 %v5275_v14, 0.0  ;;  %v8292_v32 = vld [vmem:[%s14336_s7 + $0xa4] sm:$0xf]  ;;  %v5191_v41 = vadd.f32 %v12610_v10, %v15338_v34  ;;  %v15340_v52 = vld [vmem:[#allocation151_spill] sm:$0xff]  ;;  %v8294_v10 = vld [vmem:[%s14336_s7 + $0xb4] sm:$0xf] }
 0x698   : > { %v12730_v19 = vor.u32 %v8292_v32, %v7824_v43  ;;  %v5193_v54 = vadd.f32 %v12627_v37, %v15340_v52  ;;  %v15343_v37 = vld [vmem:[#allocation145_spill] sm:$0xff] }
 0x69a   : > { %15337 = vst [vmem:[#allocation111_spill] sm:$0xff] %v12730_v19 }
 0x69c   : > { %v12716_v21 = vpop.f32.mrf.mxu2  ;;  %v5276_v59 = vpop.f32.mrf.mxu1 }
 0x69d   : > { %v5277_v47 = vadd.f32 %v5276_v59, %v5188_v5  ;;  %v4322_v59 = vpop.f32.mrf.mxu3 }
 0x69f   : > { %v5356_v8 = vmax.f32 %v5277_v47, 0.0  ;;  %v12735_v47 = vpop.f32.mrf.mxu0 }
 0x6a1   : > { %v12728_v13 = vpack.c.bf16 %v5356_v8, %v5354_v42 }
 0x6a3   : > { %15336 = vst [vmem:[#allocation117_spill] sm:$0xff] %v12728_v13 }
 0x6a4   : > { %v4231_v61 = vpop.f32.mrf.mxu2  ;;  %5016 = vmatmul.bf16.gmra.mxu2 %v15339_v33  ;;  %v5279_v14 = vpop.f32.mrf.mxu1  ;;  %v7832_v33 = vld [vmem:[%s14336_s7 + $0xb8] sm:$0xf0] }
 0x6a5   : > { %v5280_v5 = vadd.f32 %v5279_v14, %v5191_v41  ;;  %v4325_v31 = vpop.f32.mrf.mxu3  ;;  %v12750_v34 = vor.u32 %v8294_v10, %v7832_v33 }
 0x6a7   : > { %5318 = vmatmul.bf16.gmra.mxu1 %v12730_v19  ;;  %v5358_v43 = vmax.f32 %v5280_v5, 0.0  ;;  %v12746_v41 = vpop.f32.mrf.mxu0  ;;  %15342 = vst [vmem:[#allocation122_spill] sm:$0xff] %v12750_v34 }
 0x6ac   : > { %v4233_v8 = vpop.f32.mrf.mxu2  ;;  %v5281_v42 = vpop.f32.mrf.mxu1 }
 0x6ad   : > { %v5282_v32 = vadd.f32 %v5281_v42, %v5193_v54  ;;  %v5196_v54 = vadd.f32 %v12644_v57, %v15343_v37  ;;  %v15344_v42 = vld [vmem:[#allocation103_spill] sm:$0xff]  ;;  %v4327_v19 = vpop.f32.mrf.mxu3  ;;  %v8296_v57 = vld [vmem:[%s14336_s7 + $0xc4] sm:$0xf]  ;;  %v15346_v37 = vld [vmem:[#allocation37_spill] sm:$0xff] }
 0x6af   : > { %v5360_v22 = vmax.f32 %v5282_v32, 0.0  ;;  %v12756_v4 = vpop.f32.mrf.mxu0 }
 0x6b1   : > { %v12748_v14 = vpack.c.bf16 %v5360_v22, %v5358_v43 }
 0x6b3   : > { %15341 = vst [vmem:[#allocation119_spill] sm:$0xff] %v12748_v14 }
 0x6b4   : > { %v4236_v5 = vpop.f32.mrf.mxu2  ;;  %5021 = vmatmul.bf16.gmra.mxu2 %v15344_v42  ;;  %v5284_v32 = vpop.f32.mrf.mxu1 }
 0x6b5   : > { %v5285_v52 = vadd.f32 %v5284_v32, %v5196_v54  ;;  %v7840_v54 = vld [vmem:[%s14336_s7 + $0xc8] sm:$0xf0]  ;;  %v4330_v58 = vpop.f32.mrf.mxu3 }
 0x6b6   : > { %v12768_v32 = vor.u32 %v8296_v57, %v7840_v54  ;;  %v4237_v57 = vadd.f32 %v4236_v5, %v15292_v40  ;;  %v7848_v40 = vld [vmem:[%s14336_s7 + $0xd8] sm:$0xf0] }
 0x6b7   : > { %5323 = vmatmul.bf16.gmra.mxu1 %v12750_v34  ;;  %v5362_v33 = vmax.f32 %v5285_v52, 0.0  ;;  %v5201_v34 = vadd.f32 %v5200_v16, %v15346_v37  ;;  %v15350_v16 = vld [vmem:[#allocation71_spill] sm:$0xff] }
 0x6bc   : > { %v4238_v22 = vpop.f32.mrf.mxu2  ;;  %v5286_v43 = vpop.f32.mrf.mxu1 }
 0x6bd   : > { %v5287_v10 = vadd.f32 %v5286_v43, %v5198_v25  ;;  %v12772_v25 = vpop.f32.mrf.mxu0 }
 0x6bf   : > { %v5364_v1 = vmax.f32 %v5287_v10, 0.0  ;;  %v15348_v10 = vld [vmem:[#allocation59_spill] sm:$0xff] }
 0x6c1   : > { %v12766_v42 = vpack.c.bf16 %v5364_v1, %v5362_v33  ;;  %v4239_v1 = vadd.f32 %v4238_v22, %v15349_v24  ;;  %v4232_v24 = vadd.f32 %v4231_v61, %v15294_v48  ;;  %v4224_v48 = vadd.f32 %v12693_v60, %v15296_v2 }
 0x6c2   : > { %v4214_v2 = vadd.f32 %v12642_v62, %v15298_v45 }
 0x6c4   : > { %v4241_v50 = vpop.f32.mrf.mxu2  ;;  %5026 = vmatmul.bf16.gmra.mxu2 %v15347_v12  ;;  %v5289_v52 = vpop.f32.mrf.mxu1  ;;  %v4303_v45 = vadd.f32 %v12603_v30, %v4214_v2 }
 0x6c5   : > { %v12774_v43 = vadd.f32 %v5289_v52, %v5201_v34  ;;  %v4242_v55 = vadd.f32 %v4241_v50, %v15348_v10  ;;  %v4332_v12 = vpop.f32.mrf.mxu3  ;;  %v12783_v13 = vpop.f32.mrf.mxu0  ;;  %v4234_v34 = vadd.f32 %v4233_v8, %v15293_v38  ;;  %v4328_v52 = vadd.f32 %v4327_v19, %v4239_v1  ;;  %v8298_v50 = vld [vmem:[%s14336_s7 + $0xd4] sm:$0xf] }
 0x6c6   : > { %v12795_v8 = vor.u32 %v8298_v50, %v7848_v40  ;;  %v4553_v50 = vmax.f32 %v12668_v36, 0.0 }
 0x6c7   : > { %5328 = vmatmul.bf16.gmra.mxu1 %v12768_v32  ;;  %v4331_v54 = vadd.f32 %v4330_v58, %v4242_v55  ;;  %v4326_v55 = vadd.f32 %v4325_v31, %v4237_v57  ;;  %v4229_v58 = vadd.f32 %v12716_v21, %v15295_v20  ;;  %v4323_v10 = vadd.f32 %v4322_v59, %v4234_v34  ;;  %v8300_v34 = vld [vmem:[%s14336_s7 + $0xe4] sm:$0xf] }
 0x6c8   : > { %v4571_v38 = vmax.f32 %v4328_v52, 0.0 }
 0x6c9   : > { %v4573_v5 = vmax.f32 %v4331_v54, 0.0  ;;  %v4569_v1 = vmax.f32 %v4326_v55, 0.0  ;;  %v4318_v31 = vadd.f32 %v12701_v17, %v4229_v58  ;;  %v4567_v61 = vmax.f32 %v4323_v10, 0.0  ;;  %v7864_v58 = vld [vmem:[%s14336_s7 + $0xf8] sm:$0xf0] }
 0x6ca   : > { %v4561_v54 = vmax.f32 %v12711_v6, 0.0 }
 0x6cb   : > { %v4605_v20 = vpack.c.bf16 %v4571_v38, %v4569_v1  ;;  %v15351_v38 = vld [vmem:[#allocation130_spill] sm:$0xff] }
 0x6cc   : > { %v4243_v33 = vpop.f32.mrf.mxu2  ;;  %v12781_v0 = vpop.f32.mrf.mxu1 }
 0x6cd   : > { %v4244_v37 = vadd.f32 %v4243_v33, %v15350_v16  ;;  %v5217_v21 = vpop.f32.mrf.mxu0 }
 0x6cf   : > { %v4333_v14 = vadd.f32 %v4332_v12, %v4244_v37  ;;  %v4321_v37 = vadd.f32 %v12718_v18, %v4232_v24  ;;  %v4313_v18 = vadd.f32 %v12674_v53, %v4224_v48  ;;  %v4209_v53 = vadd.f32 %v12612_v15, %v15300_v29  ;;  %v15353_v48 = vld [vmem:[#allocation36_spill] sm:$0xff] }
 0x6d0   : > { %v4549_v29 = vmax.f32 %v12635_v23, 0.0 }
 0x6d1   : > { %v4575_v22 = vmax.f32 %v4333_v14, 0.0  ;;  %v4565_v59 = vmax.f32 %v4321_v37, 0.0  ;;  %v4563_v14 = vmax.f32 %v4318_v31, 0.0  ;;  %v4559_v17 = vmax.f32 %v4313_v18, 0.0  ;;  %v15352_v37 = vld [vmem:[#allocation135_spill] sm:$0xff] }
 0x6d2   : > { %v4298_v24 = vadd.f32 %v12564_v9, %v4209_v53  ;;  %v8302_v9 = vld [vmem:[%s14336_s7 + $0xf4] sm:$0xf]  ;;  %v5213_v1 = vadd.f32 %v12772_v25, %v15352_v37  ;;  %v5218_v31 = vadd.f32 %v5217_v21, %v15353_v48 }
 0x6d3   : > { %v4607_v19 = vpack.c.bf16 %v4575_v22, %v4573_v5  ;;  %v4603_v57 = vpack.c.bf16 %v4567_v61, %v4565_v59  ;;  %v4601_v12 = vpack.c.bf16 %v4563_v14, %v4561_v54  ;;  %v4545_v5 = vmax.f32 %v12606_v63, 0.0  ;;  %v15354_v59 = vld [vmem:[#allocation139_spill] sm:$0xff] }
 0x6d4   : > { %5031 = vmatmul.bf16.gmra.mxu2 %v12393_v39  ;;  %v12799_v33 = vpop.f32.mrf.mxu1  ;;  %v4219_v39 = vadd.f32 %v12672_v27, %v15297_v49  ;;  %v7856_v49 = vld [vmem:[%s14336_s7 + $0xe8] sm:$0xf0]  ;;  %v4557_v27 = vmax.f32 %v12688_v56, 0.0  ;;  %v4551_v56 = vmax.f32 %v4303_v45, 0.0  ;;  %v4547_v30 = vmax.f32 %v4298_v24, 0.0 }
 0x6d5   : > { %5082 = vmatpush.bf16.msra.mxu3 %v4607_v19  ;;  %v12822_v52 = vor.u32 %v8300_v34, %v7856_v49  ;;  %v12838_v23 = vor.u32 %v8302_v9, %v7864_v58  ;;  %v5216_v19 = vadd.f32 %v12783_v13, %v15351_v38  ;;  %v15356_v13 = vld [vmem:[#allocation140_spill] sm:$0xff]  ;;  %v15357_v34 = vld [vmem:[#allocation142_spill] sm:$0xff]  ;;  %v15364_v9 = vld [vmem:[#allocation155_spill] sm:$0xff] }
 0x6d6   : > { %v4308_v60 = vadd.f32 %v12640_v46, %v4219_v39  ;;  %v5220_v46 = vpop.f32.mrf.mxu0  ;;  %v4599_v6 = vpack.c.bf16 %v4559_v17, %v4557_v27  ;;  %v4595_v15 = vpack.c.bf16 %v4551_v56, %v4549_v29  ;;  %v4593_v36 = vpack.c.bf16 %v4547_v30, %v4545_v5  ;;  %v15360_v30 = vld [vmem:[#allocation119_spill] sm:$0xff] }
 0x6d7   : > { %5333 = vmatmul.bf16.gmra.mxu1 %v12795_v8  ;;  %v5211_v39 = vadd.f32 %v12756_v4, %v15354_v59  ;;  %v5206_v25 = vadd.f32 %v12735_v47, %v15356_v13  ;;  %v5203_v49 = vadd.f32 %v12720_v35, %v15357_v34  ;;  %v15358_v4 = vld [vmem:[#allocation5_spill] sm:$0xff] }
 0x6d8   : > { %v4555_v62 = vmax.f32 %v4308_v60, 0.0  ;;  %v5221_v27 = vadd.f32 %v5220_v46, %v15358_v4 }
 0x6d9   : > { %5083 = vmatpush.bf16.msra.mxu3 %v4605_v20  ;;  %v5295_v53 = vadd.f32 %v12799_v33, %v5206_v25  ;;  %v5366_v33 = vmax.f32 %v12774_v43, 0.0  ;;  %v15361_v43 = vld [vmem:[#allocation117_spill] sm:$0xff]  ;;  %v15369_v25 = vld [vmem:[#allocation12_spill] sm:$0xff] }
 0x6da   : > { %v4597_v55 = vpack.c.bf16 %v4555_v62, %v4553_v50  ;;  %v5292_v62 = vadd.f32 %v12781_v0, %v5203_v49 }
 0x6db   : > { %v5370_v50 = vmax.f32 %v5295_v53, 0.0  ;;  %v8309_v53 = vld [vmem:[%s14338_s9 + $0x24] sm:$0xf0] }
 0x6dc   : > { %v5296_v16 = vpop.f32.mrf.mxu1  ;;  %v5368_v35 = vmax.f32 %v5292_v62, 0.0 }
 0x6dd   : > { %5084 = vmatpush.bf16.msra.mxu3 %v4603_v57 }
 0x6de   : > { %v12830_v22 = vpop.f32.mrf.mxu0 }
 0x6e1   : > { %5085 = vmatpush.bf16.msra.mxu3 %v4601_v12 }
 0x6e4   : > { %5036 = vmatmul.bf16.gmra.mxu2 %v12429_v11  ;;  %v5299_v40 = vpop.f32.mrf.mxu1 }
 0x6e5   : > { %5086 = vmatpush.bf16.msra.mxu3 %v4599_v6  ;;  %v5300_v57 = vadd.f32 %v5299_v40, %v5211_v39  ;;  %v8307_v39 = vld [vmem:[%s14338_s9 + $0x14] sm:$0xf0] }
 0x6e6   : > { %v5225_v10 = vpop.f32.mrf.mxu0 }
 0x6e7   : > { %5338 = vmatmul.bf16.gmra.mxu1 %v12822_v52  ;;  %v5374_v45 = vmax.f32 %v5300_v57, 0.0 }
 0x6e9   : > { %5087 = vmatpush.bf16.msra.mxu3 %v4597_v55 }
 0x6ec   : > { %v5301_v11 = vpop.f32.mrf.mxu1 }
 0x6ed   : > { %5088 = vmatpush.bf16.msra.mxu3 %v4595_v15  ;;  %v7870_v15 = vld [vmem:[%s14338_s9] sm:$0xf] }
 0x6ee   : > { %v12852_v60 = vpop.f32.mrf.mxu0 }
 0x6f1   : > { %5089 = vmatpush.bf16.msra.mxu3 %v4593_v36  ;;  %v15363_v36 = vld [vmem:[#allocation114_spill] sm:$0xff] }
 0x6f4   : > { %5041 = vmatmul.bf16.gmra.mxu2 %v12466_v26  ;;  %5090 = vmatmul.bf16.vlgmr.msra.gmra.mxu3 %v12468_v28  ;;  %v5304_v63 = vpop.f32.mrf.mxu1  ;;  %v5302_v26 = vadd.f32 %v5301_v11, %v5213_v1  ;;  %v15355_v28 = vld [vmem:[#allocation19_spill] sm:$0xff] }
 0x6f5   : > { %v5305_v61 = vadd.f32 %v5304_v63, %v5216_v19  ;;  %v5208_v14 = vadd.f32 %v12746_v41, %v15355_v28  ;;  %v15365_v63 = vld [vmem:[#allocation104_spill] sm:$0xff] }
 0x6f6   : > { %v5376_v21 = vmax.f32 %v5302_v26, 0.0  ;;  %v5230_v46 = vpop.f32.mrf.mxu0 }
 0x6f7   : > { %5343 = vmatmul.bf16.gmra.mxu1 %v12838_v23  ;;  %v5378_v54 = vmax.f32 %v5305_v61, 0.0  ;;  %v5297_v17 = vadd.f32 %v5296_v16, %v5208_v14  ;;  %v12886_v5 = vpop.f32.mrf.mxu2  ;;  %v5231_v58 = vadd.f32 %v5230_v46, %v15364_v9 }
 0x6f8   : > { %v5426_v6 = vpack.c.bf16 %v5376_v21, %v5374_v45 }
 0x6f9   : > { %v5372_v47 = vmax.f32 %v5297_v17, 0.0  ;;  %v15370_v17 = vld [vmem:[#allocation106_spill] sm:$0xff] }
 0x6fb   : > { %v5424_v40 = vpack.c.bf16 %v5372_v47, %v5370_v50  ;;  %v15372_v47 = vld [vmem:[#allocation141_spill] sm:$0xff]  ;;  %v15373_v50 = vld [vmem:[#allocation108_spill] sm:$0xff] }
 0x6fc   : > { %v5306_v20 = vpop.f32.mrf.mxu1 }
 0x6fd   : > { %v5307_v18 = vadd.f32 %v5306_v20, %v5218_v31  ;;  %v7878_v20 = vld [vmem:[%s14338_s9 + $0x10] sm:$0xf] }
 0x6fe   : > { %v12871_v0 = vpop.f32.mrf.mxu0 }
 0x6ff   : > { %v5380_v2 = vmax.f32 %v5307_v18, 0.0  ;;  %v12897_v31 = vpop.f32.mrf.mxu2  ;;  %v12909_v18 = vor.u32 %v8307_v39, %v7878_v20  ;;  %v8313_v20 = vld [vmem:[%s14338_s9 + $0x44] sm:$0xf0] }
 0x701   : > { %v5428_v12 = vpack.c.bf16 %v5380_v2, %v5378_v54  ;;  %15367 = vst [vmem:[#allocation110_spill] sm:$0xff] %v12909_v18  ;;  %v15368_v54 = vld [vmem:[#allocation146_spill] sm:$0xff] }
 0x703   : > { %6551 = vmatpush.bf16.msrb.mxu0 %v5428_v12 }
 0x704   : > { %5046 = vmatmul.bf16.gmra.mxu2 %v12496_v7  ;;  %5095 = vmatmul.bf16.gmra.mxu3 %v12498_v44  ;;  %v5309_v41 = vpop.f32.mrf.mxu1  ;;  %v5422_v7 = vpack.c.bf16 %v5368_v35, %v5366_v33  ;;  %v15359_v44 = vld [vmem:[#allocation159_spill] sm:$0xff] }
 0x705   : > { %v12863_v16 = vadd.f32 %v5309_v41, %v5221_v27  ;;  %v5226_v56 = vadd.f32 %v5225_v10, %v15359_v44  ;;  %v15366_v10 = vld [vmem:[#allocation48_spill] sm:$0xff]  ;;  %v7886_v27 = vld [vmem:[%s14338_s9 + $0x20] sm:$0xf]  ;;  %v15374_v35 = vld [vmem:[#allocation107_spill] sm:$0xff] }
 0x706   : > { %v12931_v62 = vor.u32 %v8309_v53, %v7886_v27  ;;  %v7910_v53 = vld [vmem:[%s14338_s9 + $0x50] sm:$0xf] }
 0x707   : > { %6552 = vmatpush.bf16.msrb.mxu0 %v5426_v6  ;;  %v12911_v14 = vpop.f32.mrf.mxu2 }
 0x708   : > { %15371 = vst [vmem:[#allocation29_spill] sm:$0xff] %v12931_v62 }
 0x70b   : > { %6553 = vmatpush.bf16.msrb.mxu0 %v5424_v40 }
 0x70c   : > { %v12866_v24 = vpop.f32.mrf.mxu1 }
 0x70f   : > { %6554 = vmatpush.bf16.msrb.mxu0 %v5422_v7  ;;  %v12919_v49 = vpop.f32.mrf.mxu2 }
 0x713   : > { %6555 = vmatpush.bf16.msrb.mxu0 %v12766_v42  ;;  %v8305_v42 = vld [vmem:[%s14338_s9 + $0x4] sm:$0xf0] }
 0x714   : > { %5051 = vmatmul.bf16.gmra.mxu2 %v12522_v51  ;;  %5100 = vmatmul.bf16.gmra.mxu3 %v12524_v3  ;;  %v5314_v55 = vpop.f32.mrf.mxu1  ;;  %v5235_v3 = vpop.f32.mrf.mxu0  ;;  %v12888_v11 = vor.u32 %v8305_v42, %v7870_v15 }
 0x715   : > { %v12874_v29 = vadd.f32 %v5314_v55, %v5226_v56  ;;  %v5236_v2 = vadd.f32 %v5235_v3, %v15368_v54  ;;  %v7894_v56 = vld [vmem:[%s14338_s9 + $0x30] sm:$0xf]  ;;  %v8311_v55 = vld [vmem:[%s14338_s9 + $0x34] sm:$0xf0] }
 0x716   : > { %15362 = vst [vmem:[#allocation120_spill] sm:$0xff] %v12888_v11  ;;  %v15376_v3 = vld [vmem:[#allocation109_spill] sm:$0xff] }
 0x717   : > { %6556 = vmatpush.bf16.msrb.mxu0 %v15360_v30  ;;  %v12937_v46 = vpop.f32.mrf.mxu2 }
 0x71b   : > { %6557 = vmatpush.bf16.msrb.mxu0 %v15361_v43  ;;  %v12949_v43 = vor.u32 %v8311_v55, %v7894_v56  ;;  %v15382_v56 = vld [vmem:[#allocation116_spill] sm:$0xff] }
 0x71c   : > { %v12884_v51 = vpop.f32.mrf.mxu1  ;;  %v12899_v61 = vpop.f32.mrf.mxu0 }
 0x71d   : > { %15375 = vst [vmem:[#allocation113_spill] sm:$0xff] %v12949_v43 }
 0x71f   : > { %6558 = vmatpush.bf16.msrb.mxu0 %v15363_v36  ;;  %v12951_v15 = vpop.f32.mrf.mxu2  ;;  %v15377_v36 = vld [vmem:[#allocation42_spill] sm:$0xff] }
 0x722   : > { %6559 = vmatmul.bf16.vlgmr.msrb.gmra.mxu0 %v12888_v11  ;;  %v15390_v11 = vld [vmem:[#allocation41_spill] sm:$0xff] }
 0x724   : > { %5056 = vmatmul.bf16.gmra.mxu2 %v15365_v63  ;;  %5105 = vmatmul.bf16.gmra.mxu3 %v15366_v10  ;;  %v5319_v19 = vpop.f32.mrf.mxu1  ;;  %v5240_v57 = vpop.f32.mrf.mxu0 }
 0x725   : > { %v12895_v1 = vadd.f32 %v5319_v19, %v5231_v58  ;;  %v5241_v6 = vadd.f32 %v5240_v57, %v15372_v47  ;;  %v7902_v19 = vld [vmem:[%s14338_s9 + $0x40] sm:$0xf] }
 0x726   : > { %v12964_v57 = vor.u32 %v8313_v20, %v7902_v19 }
 0x727   : > { %v12956_v63 = vpop.f32.mrf.mxu2 }
 0x728   : > { %15378 = vst [vmem:[#allocation26_spill] sm:$0xff] %v12964_v57 }
 0x72c   : > { %v12907_v26 = vpop.f32.mrf.mxu1  ;;  %v12927_v45 = vpop.f32.mrf.mxu0 }
 0x732   : > { %6564 = vmatmul.bf16.gmra.mxu0 %v12909_v18 }
 0x734   : > { %5061 = vmatmul.bf16.gmra.mxu2 %v15369_v25  ;;  %5110 = vmatmul.bf16.gmra.mxu3 %v15370_v17  ;;  %v5324_v21 = vpop.f32.mrf.mxu1  ;;  %v5245_v7 = vpop.f32.mrf.mxu0  ;;  %v15379_v25 = vld [vmem:[#allocation105_spill] sm:$0xff] }
 0x735   : > { %v12917_v12 = vadd.f32 %v5324_v21, %v5236_v2  ;;  %v12967_v2 = vpop.f32.mrf.mxu2  ;;  %v15380_v21 = vld [vmem:[#allocation112_spill] sm:$0xff]  ;;  %v5246_v44 = vadd.f32 %v5245_v7, %v15390_v11 }
 0x73c   : > { %v12929_v41 = vpop.f32.mrf.mxu1  ;;  %v5247_v42 = vpop.f32.mrf.mxu0 }
 0x742   : > { %6569 = vmatmul.bf16.gmra.mxu0 %v12931_v62  ;;  %v15386_v62 = vld [vmem:[#allocation134_spill] sm:$0xff] }
 0x744   : > { %5066 = vmatmul.bf16.gmra.mxu2 %v15373_v50  ;;  %5115 = vmatmul.bf16.gmra.mxu3 %v15374_v35  ;;  %v5329_v40 = vpop.f32.mrf.mxu1  ;;  %v5250_v10 = vpop.f32.mrf.mxu0 }
 0x745   : > { %v12939_v33 = vadd.f32 %v5329_v40, %v5241_v6  ;;  %v8315_v6 = vld [vmem:[%s14338_s9 + $0x54] sm:$0xf0] }
 0x746   : > { %v12977_v40 = vor.u32 %v8315_v6, %v7910_v53  ;;  %v7918_v53 = vld [vmem:[%s14338_s9 + $0x60] sm:$0xf]  ;;  %v8317_v6 = vld [vmem:[%s14338_s9 + $0x64] sm:$0xf0] }
 0x748   : > { %15381 = vst [vmem:[#allocation125_spill] sm:$0xff] %v12977_v40 }
 0x74c   : > { %v12947_v30 = vpop.f32.mrf.mxu1  ;;  %v5252_v17 = vpop.f32.mrf.mxu0 }
 0x752   : > { %6574 = vmatmul.bf16.gmra.mxu0 %v12949_v43  ;;  %v15385_v43 = vld [vmem:[#allocation56_spill] sm:$0xff] }
 0x753   : > { %v5253_v47 = vadd.f32 %v5252_v17, %v15385_v43  ;;  %v15389_v17 = vld [vmem:[#allocation15_spill] sm:$0xff] }
 0x754   : > { %5071 = vmatmul.bf16.gmra.mxu2 %v15376_v3  ;;  %5120 = vmatmul.bf16.gmra.mxu3 %v15377_v36  ;;  %v5334_v58 = vpop.f32.mrf.mxu1  ;;  %v5255_v35 = vpop.f32.mrf.mxu0  ;;  %v15383_v3 = vld [vmem:[#allocation165_spill] sm:$0xff]  ;;  %v5248_v43 = vadd.f32 %v5247_v42, %v15389_v17 }
 0x755   : > { %v5003_v36 = vadd.f32 %v12886_v5, %v15383_v3  ;;  %v15387_v5 = vld [vmem:[#allocation68_spill] sm:$0xff] }
 0x756   : > { %v5251_v3 = vadd.f32 %v5250_v10, %v15387_v5 }
 0x75c   : > { %v5336_v39 = vpop.f32.mrf.mxu1 }
 0x75d   : > { %v5337_v4 = vadd.f32 %v5336_v39, %v5248_v43 }
 0x75f   : > { %v5404_v43 = vmax.f32 %v5337_v4, 0.0  ;;  %v5398_v4 = vmax.f32 %v12939_v33, 0.0  ;;  %v15397_v33 = vld [vmem:[#allocation161_spill] sm:$0xff] }
 0x762   : > { %6579 = vmatmul.bf16.gmra.mxu0 %v12964_v57 }
 0x764   : > { %5076 = vmatmul.bf16.gmra.mxu2 %v15379_v25  ;;  %5125 = vmatmul.bf16.gmra.mxu3 %v15380_v21  ;;  %v5339_v27 = vpop.f32.mrf.mxu1  ;;  %v5257_v25 = vpop.f32.mrf.mxu0  ;;  %v15384_v21 = vld [vmem:[#allocation132_spill] sm:$0xff] }
 0x765   : > { %v5256_v57 = vadd.f32 %v5255_v35, %v15384_v21  ;;  %v5258_v54 = vadd.f32 %v5257_v25, %v15386_v62 }
 0x76c   : > { %v5341_v50 = vpop.f32.mrf.mxu1 }
 0x76d   : > { %v5342_v35 = vadd.f32 %v5341_v50, %v5253_v47  ;;  %v5335_v47 = vadd.f32 %v5334_v58, %v5246_v44 }
 0x76f   : > { %v5408_v34 = vmax.f32 %v5342_v35, 0.0  ;;  %v5394_v35 = vmax.f32 %v12917_v12, 0.0 }
 0x772   : > { %6584 = vmatmul.bf16.gmra.mxu0 %v12977_v40 }
 0x774   : > { %5130 = vmatmul.bf16.gmra.mxu3 %v15382_v56  ;;  %v5344_v55 = vpop.f32.mrf.mxu1 }
 0x775   : > { %v5345_v18 = vadd.f32 %v5344_v55, %v5256_v57  ;;  %v12996_v57 = vor.u32 %v8317_v6, %v7918_v53  ;;  %v5340_v55 = vadd.f32 %v5339_v27, %v5251_v3  ;;  %v15392_v27 = vld [vmem:[#allocation50_spill] sm:$0xff]  ;;  %v15395_v6 = vld [vmem:[#allocation152_spill] sm:$0xff] }
 0x777   : > { %v5091_v19 = vpop.f32.mrf.mxu3  ;;  %v5410_v62 = vmax.f32 %v5345_v18, 0.0  ;;  %v5406_v42 = vmax.f32 %v5340_v55, 0.0  ;;  %v13004_v18 = vpop.f32.mrf.mxu2 }
 0x778   : > { %v5092_v20 = vadd.f32 %v5091_v19, %v5003_v36  ;;  %v15388_v36 = vld [vmem:[#allocation162_spill] sm:$0xff] }
 0x779   : > { %v5005_v19 = vadd.f32 %v12897_v31, %v15388_v36  ;;  %v15391_v31 = vld [vmem:[#allocation143_spill] sm:$0xff]  ;;  %v5442_v39 = vpack.c.bf16 %v5408_v34, %v5406_v42  ;;  %v7926_v34 = vld [vmem:[%s14338_s9 + $0x70] sm:$0xf] }
 0x77a   : > { %v5349_v13 = vmax.f32 %v5092_v20, 0.0 }
 0x77c   : > { %v5346_v56 = vpop.f32.mrf.mxu1 }
 0x77d   : > { %v5347_v21 = vadd.f32 %v5346_v56, %v5258_v54  ;;  %v5243_v54 = vadd.f32 %v12927_v45, %v15391_v31  ;;  %v5402_v45 = vmax.f32 %v5335_v47, 0.0  ;;  %v5233_v56 = vadd.f32 %v12871_v0, %v15395_v6 }
 0x77f   : > { %v5093_v25 = vpop.f32.mrf.mxu3  ;;  %v5412_v40 = vmax.f32 %v5347_v21, 0.0  ;;  %v5332_v7 = vadd.f32 %v12947_v30, %v5243_v54  ;;  %v5440_v53 = vpack.c.bf16 %v5404_v43, %v5402_v45  ;;  %v13025_v36 = vpop.f32.mrf.mxu2 }
 0x780   : > { %v5094_v9 = vadd.f32 %v5093_v25, %v5005_v19  ;;  %v5228_v19 = vadd.f32 %v12852_v60, %v15397_v33  ;;  %v15399_v60 = vld [vmem:[#allocation111_spill] sm:$0xff] }
 0x781   : > { %v5444_v10 = vpack.c.bf16 %v5412_v40, %v5410_v62  ;;  %v15393_v62 = vld [vmem:[#allocation157_spill] sm:$0xff]  ;;  %v15394_v40 = vld [vmem:[#allocation150_spill] sm:$0xff]  ;;  %v5400_v21 = vmax.f32 %v5332_v7, 0.0  ;;  %v5390_v7 = vmax.f32 %v12895_v1, 0.0 }
 0x782   : > { %v5351_v5 = vmax.f32 %v5094_v9, 0.0  ;;  %6589 = vmatmul.bf16.gmra.mxu0 %v12996_v57  ;;  %v5008_v9 = vadd.f32 %v12911_v14, %v15393_v62  ;;  %v5238_v20 = vadd.f32 %v12899_v61, %v15394_v40  ;;  %v8319_v61 = vld [vmem:[%s14338_s9 + $0x74] sm:$0xf0]  ;;  %v5322_v14 = vadd.f32 %v12907_v26, %v5233_v56  ;;  %v15400_v62 = vld [vmem:[#allocation147_spill] sm:$0xff] }
 0x783   : > { %6720 = vmatpush.bf16.msrb.mxu1 %v5444_v10  ;;  %v13027_v0 = vor.u32 %v8319_v61, %v7926_v34  ;;  %v5317_v10 = vadd.f32 %v12884_v51, %v5228_v19  ;;  %v15401_v56 = vld [vmem:[#allocation151_spill] sm:$0xff]  ;;  %v15402_v19 = vld [vmem:[#allocation122_spill] sm:$0xff] }
 0x784   : > { %v13002_v50 = vpack.c.bf16 %v5351_v5, %v5349_v13  ;;  %5135 = vmatmul.bf16.gmra.mxu3 %v15392_v27  ;;  %v5327_v13 = vadd.f32 %v12929_v41, %v5238_v20  ;;  %v5438_v41 = vpack.c.bf16 %v5400_v21, %v5398_v4  ;;  %v15396_v5 = vld [vmem:[#allocation69_spill] sm:$0xff]  ;;  %v5392_v26 = vmax.f32 %v5322_v14, 0.0  ;;  %v7872_v21 = vld [vmem:[%s14338_s9 + $0x8] sm:$0xf0] }
 0x785   : > { %v5010_v3 = vadd.f32 %v12919_v49, %v15396_v5  ;;  %v15398_v49 = vld [vmem:[#allocation167_spill] sm:$0xff]  ;;  %v5386_v20 = vmax.f32 %v12874_v29, 0.0  ;;  %v8304_v29 = vld [vmem:[%s14338_s9 + $0x4] sm:$0xf] }
 0x786   : > { %v5396_v30 = vmax.f32 %v5327_v13, 0.0  ;;  %v5223_v27 = vadd.f32 %v12830_v22, %v15398_v49  ;;  %v5434_v51 = vpack.c.bf16 %v5392_v26, %v5390_v7  ;;  %v5382_v13 = vmax.f32 %v12863_v16, 0.0  ;;  %v15404_v7 = vld [vmem:[#allocation144_spill] sm:$0xff] }
 0x787   : > { %v5096_v44 = vpop.f32.mrf.mxu3  ;;  %6721 = vmatpush.bf16.msrb.mxu1 %v5442_v39  ;;  %v5388_v39 = vmax.f32 %v5317_v10, 0.0  ;;  %v5015_v16 = vadd.f32 %v12951_v15, %v15401_v56  ;;  %v13063_v34 = vor.u32 %v8304_v29, %v7872_v21  ;;  %v7950_v29 = vld [vmem:[%s14338_s9 + $0xa0] sm:$0xf]  ;;  %v8325_v21 = vld [vmem:[%s14338_s9 + $0xa4] sm:$0xf0] }
 0x788   : > { %v5097_v58 = vadd.f32 %v5096_v44, %v5008_v9  ;;  %v5436_v54 = vpack.c.bf16 %v5396_v30, %v5394_v35  ;;  %v5312_v43 = vadd.f32 %v12866_v24, %v5223_v27  ;;  %v5013_v9 = vadd.f32 %v12937_v46, %v15400_v62  ;;  %v13044_v44 = vpop.f32.mrf.mxu2  ;;  %v7934_v24 = vld [vmem:[%s14338_s9 + $0x80] sm:$0xf]  ;;  %v8321_v46 = vld [vmem:[%s14338_s9 + $0x84] sm:$0xf0]  ;;  %v15403_v35 = vld [vmem:[#allocation145_spill] sm:$0xff] }
 0x789   : > { %v13061_v4 = vor.u32 %v8321_v46, %v7934_v24 }
 0x78a   : > { %v5353_v47 = vmax.f32 %v5097_v58, 0.0  ;;  %v5384_v1 = vmax.f32 %v5312_v43, 0.0  ;;  %v5432_v58 = vpack.c.bf16 %v5388_v39, %v5386_v20 }
 0x78b   : > { %6722 = vmatpush.bf16.msrb.mxu1 %v5440_v53 }
 0x78c   : > { %v5430_v53 = vpack.c.bf16 %v5384_v1, %v5382_v13  ;;  %v15407_v1 = vld [vmem:[#allocation37_spill] sm:$0xff] }
 0x78f   : > { %v5098_v25 = vpop.f32.mrf.mxu3  ;;  %6723 = vmatpush.bf16.msrb.mxu1 %v5438_v41 }
 0x790   : > { %v5099_v55 = vadd.f32 %v5098_v25, %v5010_v3  ;;  %v13067_v41 = vpop.f32.mrf.mxu2  ;;  %v5018_v25 = vadd.f32 %v12956_v63, %v15403_v35  ;;  %v7880_v63 = vld [vmem:[%s14338_s9 + $0x18] sm:$0xf0]  ;;  %v7958_v35 = vld [vmem:[%s14338_s9 + $0xb0] sm:$0xf] }
 0x792   : > { %v5355_v42 = vmax.f32 %v5099_v55, 0.0  ;;  %6594 = vmatmul.bf16.gmra.mxu0 %v13027_v0 }
 0x793   : > { %6724 = vmatpush.bf16.msrb.mxu1 %v5436_v54  ;;  %v7942_v54 = vld [vmem:[%s14338_s9 + $0x90] sm:$0xf] }
 0x794   : > { %5140 = vmatmul.bf16.gmra.mxu3 %v15399_v60  ;;  %v13038_v12 = vpack.c.bf16 %v5355_v42, %v5353_v47  ;;  %v8323_v47 = vld [vmem:[%s14338_s9 + $0x94] sm:$0xf0]  ;;  %v8306_v42 = vld [vmem:[%s14338_s9 + $0x14] sm:$0xf]  ;;  %v5020_v60 = vadd.f32 %v12967_v2, %v15404_v7  ;;  %v5023_v2 = vadd.f32 %v13004_v18, %v15407_v1  ;;  %v7888_v18 = vld [vmem:[%s14338_s9 + $0x28] sm:$0xf0] }
 0x795   : > { %v13094_v43 = vor.u32 %v8323_v47, %v7942_v54  ;;  %v13096_v39 = vor.u32 %v8306_v42, %v7880_v63 }
 0x797   : > { %v5101_v45 = vpop.f32.mrf.mxu3  ;;  %6725 = vmatpush.bf16.msrb.mxu1 %v5434_v51  ;;  %15405 = vst [vmem:[#allocation124_spill] sm:$0xff] %v13094_v43 }
 0x798   : > { %v5102_v22 = vadd.f32 %v5101_v45, %v5013_v9  ;;  %v13090_v27 = vpop.f32.mrf.mxu2  ;;  %15406 = vst [vmem:[#allocation14_spill] sm:$0xff] %v13096_v39 }
 0x79a   : > { %v5357_v5 = vmax.f32 %v5102_v22, 0.0 }
 0x79b   : > { %6726 = vmatpush.bf16.msrb.mxu1 %v5432_v58 }
 0x79f   : > { %v5103_v61 = vpop.f32.mrf.mxu3  ;;  %v13065_v14 = vpop.f32.mrf.mxu0  ;;  %6727 = vmatpush.bf16.msrb.mxu1 %v5430_v53  ;;  %v13123_v53 = vor.u32 %v8325_v21, %v7950_v29 }
 0x7a0   : > { %v5104_v30 = vadd.f32 %v5103_v61, %v5015_v16  ;;  %v5034_v58 = vpop.f32.mrf.mxu2 }
 0x7a1   : > { %15408 = vst [vmem:[#allocation126_spill] sm:$0xff] %v13123_v53 }
 0x7a2   : > { %v5359_v3 = vmax.f32 %v5104_v30, 0.0  ;;  %6599 = vmatmul.bf16.gmra.mxu0 %v13061_v4  ;;  %6728 = vmatmul.bf16.vlgmr.msrb.gmra.mxu1 %v13063_v34 }
 0x7a4   : > { %5145 = vmatmul.bf16.gmra.mxu3 %v15402_v19  ;;  %v13072_v15 = vpack.c.bf16 %v5359_v3, %v5357_v5 }
 0x7a7   : > { %v5106_v55 = vpop.f32.mrf.mxu3  ;;  %v13076_v10 = vpop.f32.mrf.mxu0 }
 0x7a8   : > { %v5107_v26 = vadd.f32 %v5106_v55, %v5018_v25  ;;  %v5037_v30 = vpop.f32.mrf.mxu2  ;;  %v8327_v25 = vld [vmem:[%s14338_s9 + $0xb4] sm:$0xf0]  ;;  %v8310_v55 = vld [vmem:[%s14338_s9 + $0x34] sm:$0xf] }
 0x7aa   : > { %v5361_v20 = vmax.f32 %v5107_v26, 0.0  ;;  %v13148_v26 = vor.u32 %v8327_v25, %v7958_v35  ;;  %v7974_v35 = vld [vmem:[%s14338_s9 + $0xd0] sm:$0xf]  ;;  %v8331_v25 = vld [vmem:[%s14338_s9 + $0xd4] sm:$0xf0] }
 0x7ac   : > { %15410 = vst [vmem:[#allocation127_spill] sm:$0xff] %v13148_v26 }
 0x7af   : > { %v5108_v51 = vpop.f32.mrf.mxu3  ;;  %v13098_v62 = vpop.f32.mrf.mxu0 }
 0x7b0   : > { %v5109_v9 = vadd.f32 %v5108_v51, %v5020_v60  ;;  %v5039_v19 = vpop.f32.mrf.mxu2  ;;  %v7966_v51 = vld [vmem:[%s14338_s9 + $0xc0] sm:$0xf] }
 0x7b2   : > { %v5363_v45 = vmax.f32 %v5109_v9, 0.0  ;;  %6604 = vmatmul.bf16.gmra.mxu0 %v13094_v43  ;;  %6733 = vmatmul.bf16.gmra.mxu1 %v13096_v39  ;;  %v8329_v9 = vld [vmem:[%s14338_s9 + $0xc4] sm:$0xf0] }
 0x7b3   : > { %v13173_v1 = vor.u32 %v8329_v9, %v7966_v51  ;;  %v5035_v51 = vadd.f32 %v5034_v58, %v15352_v37  ;;  %v5040_v9 = vadd.f32 %v5039_v19, %v15353_v48  ;;  %v15416_v19 = vld [vmem:[#allocation140_spill] sm:$0xff] }
 0x7b4   : > { %5150 = vmatmul.bf16.gmra.mxu3 %v12768_v32  ;;  %v13103_v22 = vpack.c.bf16 %v5363_v45, %v5361_v20  ;;  %v8308_v32 = vld [vmem:[%s14338_s9 + $0x24] sm:$0xf]  ;;  %v7904_v45 = vld [vmem:[%s14338_s9 + $0x48] sm:$0xf0] }
 0x7b5   : > { %v13125_v56 = vor.u32 %v8308_v32, %v7888_v18  ;;  %v8312_v20 = vld [vmem:[%s14338_s9 + $0x44] sm:$0xf]  ;;  %15412 = vst [vmem:[#allocation129_spill] sm:$0xff] %v13173_v1 }
 0x7b7   : > { %v5111_v13 = vpop.f32.mrf.mxu3  ;;  %v13107_v24 = vpop.f32.mrf.mxu0  ;;  %15409 = vst [vmem:[#allocation115_spill] sm:$0xff] %v13125_v56 }
 0x7b8   : > { %v13109_v46 = vadd.f32 %v5111_v13, %v5023_v2  ;;  %v5042_v63 = vpop.f32.mrf.mxu2  ;;  %v13175_v2 = vor.u32 %v8312_v20, %v7904_v45  ;;  %v13199_v45 = vor.u32 %v8331_v25, %v7974_v35 }
 0x7ba   : > { %15413 = vst [vmem:[#allocation44_spill] sm:$0xff] %v13175_v2 }
 0x7bb   : > { %15414 = vst [vmem:[#allocation133_spill] sm:$0xff] %v13199_v45 }
 0x7bf   : > { %v13127_v16 = vpop.f32.mrf.mxu3  ;;  %v13129_v61 = vpop.f32.mrf.mxu0 }
 0x7c2   : > { %6609 = vmatmul.bf16.gmra.mxu0 %v13123_v53  ;;  %6738 = vmatmul.bf16.gmra.mxu1 %v13125_v56 }
 0x7c4   : > { %5155 = vmatmul.bf16.gmra.mxu3 %v12795_v8  ;;  %v7896_v8 = vld [vmem:[%s14338_s9 + $0x38] sm:$0xf0] }
 0x7c5   : > { %v13150_v54 = vor.u32 %v8310_v55, %v7896_v8  ;;  %v8314_v55 = vld [vmem:[%s14338_s9 + $0x54] sm:$0xf]  ;;  %v5038_v8 = vadd.f32 %v5037_v30, %v15351_v38  ;;  %v5030_v38 = vadd.f32 %v13067_v41, %v15355_v28 }
 0x7c7   : > { %v5116_v5 = vpop.f32.mrf.mxu3  ;;  %v13134_v3 = vpop.f32.mrf.mxu0  ;;  %15411 = vst [vmem:[#allocation131_spill] sm:$0xff] %v13150_v54 }
 0x7cf   : > { %v5118_v47 = vpop.f32.mrf.mxu3  ;;  %v13152_v42 = vpop.f32.mrf.mxu0 }
 0x7d0   : > { %v5119_v35 = vadd.f32 %v5118_v47, %v5030_v38 }
 0x7d2   : > { %6614 = vmatmul.bf16.gmra.mxu0 %v13148_v26  ;;  %6743 = vmatmul.bf16.gmra.mxu1 %v13150_v54  ;;  %v5033_v26 = vadd.f32 %v13090_v27, %v15354_v59  ;;  %v15417_v27 = vld [vmem:[#allocation142_spill] sm:$0xff] }
 0x7d4   : > { %5160 = vmatmul.bf16.gmra.mxu3 %v12822_v52  ;;  %v13171_v52 = vpop.f32.mrf.mxu2 }
 0x7d7   : > { %v5121_v7 = vpop.f32.mrf.mxu3  ;;  %v13157_v60 = vpop.f32.mrf.mxu0 }
 0x7d8   : > { %v5122_v30 = vadd.f32 %v5121_v7, %v5033_v26 }
 0x7da   : > { %v5373_v26 = vmax.f32 %v5122_v30, 0.0 }
 0x7dc   : > { %v5047_v18 = vpop.f32.mrf.mxu2 }
 0x7df   : > { %v5123_v13 = vpop.f32.mrf.mxu3  ;;  %v13177_v29 = vpop.f32.mrf.mxu0 }
 0x7e0   : > { %v5124_v56 = vadd.f32 %v5123_v13, %v5035_v51  ;;  %v15418_v13 = vld [vmem:[#allocation5_spill] sm:$0xff] }
 0x7e1   : > { %v5043_v28 = vadd.f32 %v5042_v63, %v15418_v13  ;;  %v7920_v63 = vld [vmem:[%s14338_s9 + $0x68] sm:$0xf0] }
 0x7e2   : > { %6619 = vmatmul.bf16.gmra.mxu0 %v13173_v1  ;;  %6748 = vmatmul.bf16.gmra.mxu1 %v13175_v2  ;;  %v5375_v25 = vmax.f32 %v5124_v56, 0.0  ;;  %v8333_v56 = vld [vmem:[%s14338_s9 + $0xe4] sm:$0xf0] }
 0x7e4   : > { %5165 = vmatmul.bf16.gmra.mxu3 %v12838_v23  ;;  %v7912_v23 = vld [vmem:[%s14338_s9 + $0x58] sm:$0xf0]  ;;  %v13211_v48 = vpop.f32.mrf.mxu2 }
 0x7e5   : > { %v13201_v2 = vor.u32 %v8314_v55, %v7912_v23  ;;  %v5371_v55 = vmax.f32 %v5119_v35, 0.0 }
 0x7e7   : > { %v5126_v21 = vpop.f32.mrf.mxu3  ;;  %v13182_v32 = vpop.f32.mrf.mxu0  ;;  %15415 = vst [vmem:[#allocation121_spill] sm:$0xff] %v13201_v2 }
 0x7e8   : > { %v5127_v20 = vadd.f32 %v5126_v21, %v5038_v8  ;;  %v5028_v21 = vadd.f32 %v13044_v44, %v15416_v19  ;;  %v5425_v8 = vpack.c.bf16 %v5375_v25, %v5373_v26 }
 0x7ea   : > { %v5377_v37 = vmax.f32 %v5127_v20, 0.0  ;;  %v5117_v41 = vadd.f32 %v5116_v5, %v5028_v21  ;;  %v5365_v20 = vmax.f32 %v13109_v46, 0.0  ;;  %v15421_v21 = vld [vmem:[#allocation159_spill] sm:$0xff] }
 0x7eb   : > { %v5048_v35 = vadd.f32 %v5047_v18, %v15421_v21  ;;  %v8318_v18 = vld [vmem:[%s14338_s9 + $0x74] sm:$0xf] }
 0x7ec   : > { %v5369_v44 = vmax.f32 %v5117_v41, 0.0 }
 0x7ee   : > { %v5423_v47 = vpack.c.bf16 %v5371_v55, %v5369_v44 }
 0x7ef   : > { %v5128_v1 = vpop.f32.mrf.mxu3  ;;  %v13203_v54 = vpop.f32.mrf.mxu0 }
 0x7f0   : > { %v5129_v53 = vadd.f32 %v5128_v1, %v5040_v9  ;;  %v5025_v1 = vadd.f32 %v13025_v36, %v15417_v27  ;;  %v7982_v36 = vld [vmem:[%s14338_s9 + $0xe0] sm:$0xf]  ;;  %v5052_v9 = vpop.f32.mrf.mxu2  ;;  %v7990_v27 = vld [vmem:[%s14338_s9 + $0xf0] sm:$0xf] }
 0x7f1   : > { %v13236_v38 = vor.u32 %v8333_v56, %v7982_v36  ;;  %v7998_v56 = vld [vmem:[%s14338_s9 + $0x100] sm:$0xf] }
 0x7f2   : > { %v5379_v58 = vmax.f32 %v5129_v53, 0.0  ;;  %6624 = vmatmul.bf16.gmra.mxu0 %v13199_v45  ;;  %6753 = vmatmul.bf16.gmra.mxu1 %v13201_v2  ;;  %v5114_v7 = vadd.f32 %v13127_v16, %v5025_v1  ;;  %v8316_v16 = vld [vmem:[%s14338_s9 + $0x64] sm:$0xf]  ;;  %v8335_v1 = vld [vmem:[%s14338_s9 + $0xf4] sm:$0xf0] }
 0x7f3   : > { %15419 = vst [vmem:[#allocation136_spill] sm:$0xff] %v13236_v38 }
 0x7f4   : > { %v5427_v59 = vpack.c.bf16 %v5379_v58, %v5377_v37  ;;  %v5367_v5 = vmax.f32 %v5114_v7, 0.0  ;;  %v13240_v37 = vor.u32 %v8316_v16, %v7920_v63  ;;  %v15425_v7 = vld [vmem:[#allocation155_spill] sm:$0xff]  ;;  %v13297_v16 = vpop.permute.xlu1 %5575 }
 0x7f5   : > { %v5053_v55 = vadd.f32 %v5052_v9, %v15425_v7  ;;  %15426 = vst [vmem:[#allocation39_spill] sm:$0xff] %v13297_v16  ;;  %v6561_v9 = vadd.f32 %v13065_v14, %v13297_v16 }
 0x7f6   : > { %6213 = vmatpush.bf16.msrb.mxu2 %v5427_v59  ;;  %15420 = vst [vmem:[#allocation138_spill] sm:$0xff] %v13240_v37  ;;  %v5421_v58 = vpack.c.bf16 %v5367_v5, %v5365_v20  ;;  %v8320_v5 = vld [vmem:[%s14338_s9 + $0x84] sm:$0xf] }
 0x7f7   : > { %v5131_v53 = vpop.f32.mrf.mxu3  ;;  %v13221_v51 = vpop.f32.mrf.mxu0 }
 0x7f8   : > { %v13219_v23 = vadd.f32 %v5131_v53, %v5043_v28  ;;  %v13248_v46 = vpop.f32.mrf.mxu2  ;;  %v15424_v53 = vld [vmem:[#allocation120_spill] sm:$0xff] }
 0x7fa   : > { %6214 = vmatpush.bf16.msrb.mxu2 %v5425_v8 }
 0x7fe   : > { %6215 = vmatpush.bf16.msrb.mxu2 %v5423_v47  ;;  %v7936_v47 = vld [vmem:[%s14338_s9 + $0x88] sm:$0xf0] }
 0x7ff   : > { %v13238_v30 = vpop.f32.mrf.mxu3  ;;  %v13243_v19 = vpop.f32.mrf.mxu0 }
 0x800   : > { %v5057_v26 = vpop.f32.mrf.mxu2 }
 0x802   : > { %6216 = vmatpush.bf16.msrb.mxu2 %v5421_v58  ;;  %6629 = vmatmul.bf16.gmra.mxu0 %v13236_v38  ;;  %v13305_v58 = vor.u32 %v8320_v5, %v7936_v47  ;;  %v8006_v5 = vld [vmem:[%s14338_s9 + $0x110] sm:$0xf]  ;;  %v8339_v47 = vld [vmem:[%s14338_s9 + $0x114] sm:$0xf0] }
 0x803   : > { %6758 = vmatmul.bf16.gmra.mxu1 %v13240_v37  ;;  %v15466_v38 = vld [vmem:[#allocation125_spill] sm:$0xff] }
 0x804   : > { %15428 = vst [vmem:[#allocation96_spill] sm:$0xff] %v13305_v58 }
 0x806   : > { %6217 = vmatpush.bf16.msrb.mxu2 %v13103_v22  ;;  %v7928_v22 = vld [vmem:[%s14338_s9 + $0x78] sm:$0xf0] }
 0x807   : > { %v5136_v25 = vpop.f32.mrf.mxu3  ;;  %v13265_v13 = vpop.f32.mrf.mxu0  ;;  %v13272_v41 = vor.u32 %v8318_v18, %v7928_v22  ;;  %v15432_v22 = vld [vmem:[#allocation146_spill] sm:$0xff] }
 0x808   : > { %v13250_v59 = vadd.f32 %v5136_v25, %v5048_v35  ;;  %v13283_v36 = vpop.f32.mrf.mxu2  ;;  %v13314_v18 = vpop.permute.xlu2 %5580  ;;  %v5058_v14 = vadd.f32 %v5057_v26, %v15432_v22  ;;  %v7944_v26 = vld [vmem:[%s14338_s9 + $0x98] sm:$0xf0] }
 0x809   : > { %15423 = vst [vmem:[#allocation118_spill] sm:$0xff] %v13272_v41 }
 0x80a   : > { %6218 = vmatpush.bf16.msrb.mxu2 %v13072_v15  ;;  %v13268_v15 = vor.u32 %v8335_v1, %v7990_v27  ;;  %v15430_v1 = vld [vmem:[#allocation110_spill] sm:$0xff]  ;;  %15431 = vst [vmem:[#allocation149_spill] sm:$0xff] %v13314_v18 }
 0x80c   : > { %15422 = vst [vmem:[#allocation137_spill] sm:$0xff] %v13268_v15 }
 0x80e   : > { %6219 = vmatpush.bf16.msrb.mxu2 %v13038_v12 }
 0x80f   : > { %v13270_v28 = vpop.f32.mrf.mxu3  ;;  %v13279_v8 = vpop.f32.mrf.mxu0 }
 0x810   : > { %v5062_v27 = vpop.f32.mrf.mxu2 }
 0x812   : > { %6220 = vmatpush.bf16.msrb.mxu2 %v13002_v50  ;;  %6634 = vmatmul.bf16.gmra.mxu0 %v13268_v15  ;;  %v8337_v50 = vld [vmem:[%s14338_s9 + $0x104] sm:$0xf0] }
 0x813   : > { %6763 = vmatmul.bf16.gmra.mxu1 %v13272_v41  ;;  %v13299_v63 = vor.u32 %v8337_v50, %v7998_v56  ;;  %v15458_v41 = vld [vmem:[#allocation26_spill] sm:$0xff] }
 0x815   : > { %6221 = vmatmul.bf16.vlgmr.msrb.gmra.mxu2 %v15424_v53  ;;  %15427 = vst [vmem:[#allocation22_spill] sm:$0xff] %v13299_v63  ;;  %v6563_v53 = vadd.f32 %v13076_v10, %v13314_v18  ;;  %v8322_v10 = vld [vmem:[%s14338_s9 + $0x94] sm:$0xf] }
 0x817   : > { %v5141_v12 = vpop.f32.mrf.mxu3  ;;  %v13307_v35 = vpop.f32.mrf.mxu0 }
 0x818   : > { %v13281_v44 = vadd.f32 %v5141_v12, %v5053_v55  ;;  %v13343_v22 = vpop.f32.mrf.mxu2 }
 0x81f   : > { %v13303_v20 = vpop.f32.mrf.mxu3  ;;  %v6729_v21 = vpop.f32.mrf.mxu1 }
 0x820   : > { %v13309_v25 = vadd.f32 %v6729_v21, %v6561_v9  ;;  %v13323_v50 = vpop.f32.mrf.mxu0  ;;  %v13337_v9 = vpop.permute.xlu0 %5585  ;;  %v13339_v21 = vor.u32 %v8339_v47, %v8006_v5  ;;  %v15440_v5 = vld [vmem:[#allocation29_spill] sm:$0xff] }
 0x821   : > { %15434 = vst [vmem:[#allocation123_spill] sm:$0xff] %v13323_v50  ;;  %v13356_v47 = vpop.permute.xlu1 %5590 }
 0x822   : > { %15429 = vst [vmem:[#allocation94_spill] sm:$0xff] %v13309_v25  ;;  %6639 = vmatmul.bf16.gmra.mxu0 %v13299_v63  ;;  %v6568_v18 = vadd.f32 %v13107_v24, %v13356_v47  ;;  %v8324_v24 = vld [vmem:[%s14338_s9 + $0xa4] sm:$0xf] }
 0x823   : > { %6768 = vmatmul.bf16.gmra.mxu1 %v13305_v58  ;;  %15435 = vst [vmem:[#allocation90_spill] sm:$0xff] %v13337_v9 }
 0x824   : > { %15436 = vst [vmem:[#allocation153_spill] sm:$0xff] %v13339_v21 }
 0x825   : > { %6226 = vmatmul.bf16.gmra.mxu2 %v15430_v1  ;;  %v6566_v1 = vadd.f32 %v13098_v62, %v13337_v9  ;;  %15441 = vst [vmem:[#allocation158_spill] sm:$0xff] %v13356_v47  ;;  %v15442_v62 = vld [vmem:[#allocation141_spill] sm:$0xff] }
 0x826   : > { %v5063_v9 = vadd.f32 %v5062_v27, %v15442_v62  ;;  %v7952_v27 = vld [vmem:[%s14338_s9 + $0xa8] sm:$0xf0] }
 0x827   : > { %v5146_v7 = vpop.f32.mrf.mxu3  ;;  %v6731_v12 = vpop.f32.mrf.mxu1 }
 0x828   : > { %v13319_v55 = vadd.f32 %v5146_v7, %v5058_v14  ;;  %v13321_v56 = vadd.f32 %v6731_v12, %v6563_v53  ;;  %v13347_v53 = vor.u32 %v8322_v10, %v7944_v26 }
 0x82a   : > { %15433 = vst [vmem:[#allocation148_spill] sm:$0xff] %v13321_v56  ;;  %v13353_v56 = vpop.f32.mrf.mxu0 }
 0x82b   : > { %15437 = vst [vmem:[#allocation53_spill] sm:$0xff] %v13347_v53 }
 0x82c   : > { %15439 = vst [vmem:[#allocation92_spill] sm:$0xff] %v13353_v56 }
 0x82f   : > { %v13345_v14 = vpop.f32.mrf.mxu3  ;;  %v6734_v7 = vpop.f32.mrf.mxu1 }
 0x830   : > { %v13349_v12 = vadd.f32 %v6734_v7, %v6566_v1  ;;  %v13363_v7 = vpop.f32.mrf.mxu2 }
 0x832   : > { %15438 = vst [vmem:[#allocation154_spill] sm:$0xff] %v13349_v12  ;;  %6644 = vmatmul.bf16.gmra.mxu0 %v13339_v21 }
 0x833   : > { %6773 = vmatmul.bf16.gmra.mxu1 %v13347_v53  ;;  %v8014_v53 = vld [vmem:[%s14338_s9 + $0x120] sm:$0xf] }
 0x835   : > { %6231 = vmatmul.bf16.gmra.mxu2 %v15440_v5  ;;  %v8341_v5 = vld [vmem:[%s14338_s9 + $0x124] sm:$0xf0] }
 0x837   : > { %v5151_v10 = vpop.f32.mrf.mxu3  ;;  %v6736_v1 = vpop.f32.mrf.mxu1 }
 0x838   : > { %v13361_v26 = vadd.f32 %v5151_v10, %v5063_v9  ;;  %v13365_v12 = vadd.f32 %v6736_v1, %v6568_v18  ;;  %v13379_v9 = vpop.permute.xlu2 %5595  ;;  %v13381_v18 = vor.u32 %v8341_v5, %v8014_v53  ;;  %v13385_v10 = vpop.f32.mrf.mxu0  ;;  %v15449_v53 = vld [vmem:[#allocation113_spill] sm:$0xff] }
 0x839   : > { %15444 = vst [vmem:[#allocation128_spill] sm:$0xff] %v13379_v9  ;;  %v6571_v62 = vadd.f32 %v13129_v61, %v13379_v9  ;;  %v13394_v25 = vpop.f32.mrf.mxu2  ;;  %v13398_v5 = vpop.permute.xlu0 %5600 }
 0x83a   : > { %15443 = vst [vmem:[#allocation156_spill] sm:$0xff] %v13365_v12  ;;  %v13389_v12 = vor.u32 %v8324_v24, %v7952_v27  ;;  %v6573_v61 = vadd.f32 %v13134_v3, %v13398_v5  ;;  %v7960_v3 = vld [vmem:[%s14338_s9 + $0xb8] sm:$0xf0] }
 0x83b   : > { %15445 = vst [vmem:[#allocation160_spill] sm:$0xff] %v13381_v18 }
 0x83c   : > { %15446 = vst [vmem:[#allocation46_spill] sm:$0xff] %v13385_v10 }
 0x83d   : > { %15447 = vst [vmem:[#allocation163_spill] sm:$0xff] %v13389_v12 }
 0x83e   : > { %15450 = vst [vmem:[#allocation23_spill] sm:$0xff] %v13398_v5 }
 0x83f   : > { %v13387_v1 = vpop.f32.mrf.mxu3  ;;  %v6739_v47 = vpop.f32.mrf.mxu1 }
 0x840   : > { %v13391_v21 = vadd.f32 %v6739_v47, %v6571_v62  ;;  %v13404_v27 = vpop.f32.mrf.mxu0  ;;  %v8022_v62 = vld [vmem:[%s14338_s9 + $0x130] sm:$0xf] }
 0x841   : > { %15451 = vst [vmem:[#allocation166_spill] sm:$0xff] %v13404_v27  ;;  %v5072_v5 = vpop.f32.mrf.mxu2 }
 0x842   : > { %15448 = vst [vmem:[#allocation164_spill] sm:$0xff] %v13391_v21  ;;  %6649 = vmatmul.bf16.gmra.mxu0 %v13381_v18  ;;  %v8326_v21 = vld [vmem:[%s14338_s9 + $0xb4] sm:$0xf] }
 0x843   : > { %6778 = vmatmul.bf16.gmra.mxu1 %v13389_v12  ;;  %v13420_v12 = vpop.permute.xlu1 %5605  ;;  %v13428_v18 = vor.u32 %v8326_v21, %v7960_v3 }
 0x844   : > { %15453 = vst [vmem:[#allocation169_spill] sm:$0xff] %v13420_v12 }
 0x845   : > { %6236 = vmatmul.bf16.gmra.mxu2 %v15449_v53  ;;  %v8343_v53 = vld [vmem:[%s14338_s9 + $0x134] sm:$0xf0]  ;;  %15455 = vst [vmem:[#allocation171_spill] sm:$0xff] %v13428_v18 }
 0x847   : > { %v13402_v9 = vpop.f32.mrf.mxu3  ;;  %v6741_v24 = vpop.f32.mrf.mxu1 }
 0x848   : > { %v13406_v47 = vadd.f32 %v6741_v24, %v6573_v61  ;;  %v13422_v61 = vor.u32 %v8343_v53, %v8022_v62  ;;  %v6576_v24 = vadd.f32 %v13152_v42, %v13420_v12  ;;  %v13433_v63 = vpop.f32.mrf.mxu0  ;;  %v13437_v62 = vpop.permute.xlu2 %5610 }
 0x849   : > { %15457 = vst [vmem:[#allocation73_spill] sm:$0xff] %v13433_v63  ;;  %v6578_v42 = vadd.f32 %v13157_v60, %v13437_v62  ;;  %v5074_v53 = vpop.f32.mrf.mxu2  ;;  %v7968_v60 = vld [vmem:[%s14338_s9 + $0xc8] sm:$0xf0]  ;;  %v15473_v63 = vld [vmem:[#allocation68_spill] sm:$0xff] }
 0x84a   : > { %15452 = vst [vmem:[#allocation2_spill] sm:$0xff] %v13406_v47  ;;  %v5073_v27 = vadd.f32 %v5072_v5, %v15473_v63 }
 0x84b   : > { %15454 = vst [vmem:[#allocation168_spill] sm:$0xff] %v13422_v61  ;;  %v13470_v2 = vpop.permute.xlu1 %5620 }
 0x84c   : > { %15459 = vst [vmem:[#allocation75_spill] sm:$0xff] %v13437_v62 }
 0x84d   : > { %15467 = vst [vmem:[#allocation176_spill] sm:$0xff] %v13470_v2 }
 0x84f   : > { %v13426_v47 = vpop.f32.mrf.mxu3  ;;  %v6744_v16 = vpop.f32.mrf.mxu1 }
 0x850   : > { %v13430_v58 = vadd.f32 %v6744_v16, %v6576_v24  ;;  %v8030_v16 = vld [vmem:[%s14338_s9 + $0x140] sm:$0xf]  ;;  %v8345_v24 = vld [vmem:[%s14338_s9 + $0x144] sm:$0xf0]  ;;  %v13455_v62 = vpop.f32.mrf.mxu0 }
 0x851   : > { %15461 = vst [vmem:[#allocation173_spill] sm:$0xff] %v13455_v62  ;;  %v5077_v15 = vpop.f32.mrf.mxu2 }
 0x852   : > { %15456 = vst [vmem:[#allocation170_spill] sm:$0xff] %v13430_v58  ;;  %6654 = vmatmul.bf16.gmra.mxu0 %v13422_v61 }
 0x853   : > { %6783 = vmatmul.bf16.gmra.mxu1 %v13428_v18 }
 0x855   : > { %6241 = vmatmul.bf16.gmra.mxu2 %v15458_v41  ;;  %v8328_v41 = vld [vmem:[%s14338_s9 + $0xc4] sm:$0xf] }
 0x856   : > { %v13463_v18 = vor.u32 %v8328_v41, %v7968_v60 }
 0x857   : > { %v5161_v12 = vpop.f32.mrf.mxu3  ;;  %v6746_v21 = vpop.f32.mrf.mxu1 }
 0x858   : > { %v13441_v3 = vadd.f32 %v6746_v21, %v6578_v42  ;;  %v13457_v42 = vpop.permute.xlu0 %5615  ;;  %v13459_v21 = vor.u32 %v8345_v24, %v8030_v16  ;;  %15464 = vst [vmem:[#allocation174_spill] sm:$0xff] %v13463_v18  ;;  %v6583_v16 = vadd.f32 %v13182_v32, %v13470_v2  ;;  %v13474_v24 = vpop.f32.mrf.mxu0  ;;  %v8330_v32 = vld [vmem:[%s14338_s9 + $0xd4] sm:$0xf] }
 0x859   : > { %15462 = vst [vmem:[#allocation34_spill] sm:$0xff] %v13457_v42 }
 0x85a   : > { %15460 = vst [vmem:[#allocation172_spill] sm:$0xff] %v13441_v3  ;;  %v6581_v3 = vadd.f32 %v13177_v29, %v13457_v42  ;;  %v5079_v42 = vpop.f32.mrf.mxu2 }
 0x85b   : > { %15463 = vst [vmem:[#allocation82_spill] sm:$0xff] %v13459_v21 }
 0x85c   : > { %15468 = vst [vmem:[#allocation38_spill] sm:$0xff] %v13474_v24 }
 0x85f   : > { %v5163_v58 = vpop.f32.mrf.mxu3  ;;  %v6749_v61 = vpop.f32.mrf.mxu1 }
 0x860   : > { %v13465_v37 = vadd.f32 %v6749_v61, %v6581_v3  ;;  %v8038_v61 = vld [vmem:[%s14338_s9 + $0x150] sm:$0xf]  ;;  %v13502_v43 = vpop.f32.mrf.mxu0 }
 0x861   : > { %v15470_v3 = vld [vmem:[#allocation132_spill] sm:$0xff] }
 0x862   : > { %15465 = vst [vmem:[#allocation175_spill] sm:$0xff] %v13465_v37  ;;  %6659 = vmatmul.bf16.gmra.mxu0 %v13459_v21  ;;  %v5078_v37 = vadd.f32 %v5077_v15, %v15470_v3 }
 0x863   : > { %6788 = vmatmul.bf16.gmra.mxu1 %v13463_v18  ;;  %v15472_v18 = vld [vmem:[#allocation134_spill] sm:$0xff] }
 0x864   : > { %v5080_v21 = vadd.f32 %v5079_v42, %v15472_v18  ;;  %v5162_v18 = vadd.f32 %v5161_v12, %v5073_v27 }
 0x865   : > { %6246 = vmatmul.bf16.gmra.mxu2 %v15466_v38  ;;  %v8347_v38 = vld [vmem:[%s14338_s9 + $0x154] sm:$0xf0] }
 0x866   : > { %v13495_v24 = vor.u32 %v8347_v38, %v8038_v61 }
 0x867   : > { %v5166_v29 = vpop.f32.mrf.mxu3  ;;  %v6751_v41 = vpop.f32.mrf.mxu1 }
 0x868   : > { %v13476_v60 = vadd.f32 %v6751_v41, %v6583_v16  ;;  %v7976_v16 = vld [vmem:[%s14338_s9 + $0xd8] sm:$0xf0]  ;;  %v13491_v41 = vpop.permute.xlu2 %5625  ;;  %v5167_v45 = vadd.f32 %v5166_v29, %v5078_v37  ;;  %v5070_v37 = vadd.f32 %v13394_v25, %v15389_v17  ;;  %v5065_v17 = vadd.f32 %v13343_v22, %v15391_v31  ;;  %v13526_v31 = vpop.f32.mrf.mxu0  ;;  %v8046_v22 = vld [vmem:[%s14338_s9 + $0x160] sm:$0xf] }
 0x869   : > { %v6586_v15 = vadd.f32 %v13203_v54, %v13491_v41  ;;  %v13499_v62 = vor.u32 %v8330_v32, %v7976_v16  ;;  %v5068_v54 = vadd.f32 %v13363_v7, %v15390_v11  ;;  %v5405_v25 = vmax.f32 %v5162_v18, 0.0 }
 0x86a   : > { %15469 = vst [vmem:[#allocation89_spill] sm:$0xff] %v13476_v60  ;;  %v15471_v60 = vld [vmem:[#allocation56_spill] sm:$0xff]  ;;  %v5154_v11 = vadd.f32 %v13387_v1, %v5065_v17  ;;  %v5055_v29 = vadd.f32 %v13248_v46, %v15395_v6  ;;  %v5050_v6 = vadd.f32 %v13211_v48, %v15397_v33  ;;  %v5393_v46 = vmax.f32 %v13319_v55, 0.0 }
 0x86b   : > { %v5075_v2 = vadd.f32 %v5074_v53, %v15471_v60  ;;  %v5409_v53 = vmax.f32 %v5167_v45, 0.0  ;;  %v5157_v45 = vadd.f32 %v13402_v9, %v5068_v54  ;;  %v5397_v60 = vmax.f32 %v13361_v26, 0.0 }
 0x86c   : > { %v5399_v1 = vmax.f32 %v5154_v11, 0.0  ;;  %v5144_v32 = vadd.f32 %v13303_v20, %v5055_v29  ;;  %v5045_v33 = vadd.f32 %v13171_v52, %v15398_v49  ;;  %v5389_v48 = vmax.f32 %v13281_v44, 0.0  ;;  %v8054_v49 = vld [vmem:[%s14338_s9 + $0x170] sm:$0xf]  ;;  %v8351_v52 = vld [vmem:[%s14338_s9 + $0x174] sm:$0xf0] }
 0x86d   : > { %v5164_v10 = vadd.f32 %v5163_v58, %v5075_v2  ;;  %v5159_v2 = vadd.f32 %v13426_v47, %v5070_v37  ;;  %v5401_v27 = vmax.f32 %v5157_v45, 0.0  ;;  %v5381_v17 = vmax.f32 %v13219_v23, 0.0 }
 0x86e   : > { %v5391_v26 = vmax.f32 %v5144_v32, 0.0  ;;  %v13590_v45 = vor.u32 %v8351_v52, %v8054_v49  ;;  %v15479_v49 = vld [vmem:[#allocation46_spill] sm:$0xff] }
 0x86f   : > { %v5168_v3 = vpop.f32.mrf.mxu3  ;;  %v6754_v39 = vpop.f32.mrf.mxu1  ;;  %v5407_v63 = vmax.f32 %v5164_v10, 0.0  ;;  %v5403_v12 = vmax.f32 %v5159_v2, 0.0 }
 0x870   : > { %v5169_v56 = vadd.f32 %v5168_v3, %v5080_v21  ;;  %v13504_v50 = vadd.f32 %v6754_v39, %v6586_v15  ;;  %v13514_v39 = vpop.permute.xlu0 %5630  ;;  %v13541_v21 = vpop.permute.xlu1 %5635  ;;  %v5437_v3 = vpack.c.bf16 %v5399_v1, %v5397_v60  ;;  %v5433_v2 = vpack.c.bf16 %v5391_v26, %v5389_v48  ;;  %v8070_v48 = vld [vmem:[%s14338_s9 + $0x190] sm:$0xf] }
 0x871   : > { %v5441_v10 = vpack.c.bf16 %v5407_v63, %v5405_v25  ;;  %v5439_v47 = vpack.c.bf16 %v5403_v12, %v5401_v27  ;;  %v13561_v20 = vpop.f32.mrf.mxu0 }
 0x872   : > { %v5411_v42 = vmax.f32 %v5169_v56, 0.0  ;;  %6664 = vmatmul.bf16.gmra.mxu0 %v13495_v24  ;;  %v6588_v56 = vadd.f32 %v13221_v51, %v13514_v39  ;;  %v8349_v51 = vld [vmem:[%s14338_s9 + $0x164] sm:$0xf0] }
 0x873   : > { %6793 = vmatmul.bf16.gmra.mxu1 %v13499_v62  ;;  %v13546_v61 = vor.u32 %v8349_v51, %v8046_v22 }
 0x874   : > { %v5443_v58 = vpack.c.bf16 %v5411_v42, %v5409_v53  ;;  %v13564_v53 = vpop.permute.xlu2 %5640  ;;  %v5134_v42 = vadd.f32 %v13238_v30, %v5045_v33  ;;  %v8334_v30 = vld [vmem:[%s14338_s9 + $0xf4] sm:$0xf] }
 0x875   : > { %6251 = vmatmul.bf16.gmra.mxu2 %v12996_v57  ;;  %v5060_v57 = vadd.f32 %v13283_v36, %v15394_v40  ;;  %v8332_v40 = vld [vmem:[%s14338_s9 + $0xe4] sm:$0xf]  ;;  %v7984_v36 = vld [vmem:[%s14338_s9 + $0xe8] sm:$0xf0]  ;;  %v6593_v55 = vadd.f32 %v13265_v13, %v13564_v53 }
 0x876   : > { %6382 = vmatpush.bf16.msrb.mxu3 %v5443_v58  ;;  %v13550_v38 = vor.u32 %v8332_v40, %v7984_v36  ;;  %v5383_v44 = vmax.f32 %v5134_v42, 0.0  ;;  %v7992_v58 = vld [vmem:[%s14338_s9 + $0xf8] sm:$0xf0]  ;;  %v15474_v40 = vld [vmem:[#allocation123_spill] sm:$0xff]  ;;  %v8338_v42 = vld [vmem:[%s14338_s9 + $0x114] sm:$0xf] }
 0x877   : > { %v6756_v7 = vpop.f32.mrf.mxu1  ;;  %v5149_v9 = vadd.f32 %v13345_v14, %v5060_v57  ;;  %v6591_v14 = vadd.f32 %v13243_v19, %v13541_v21  ;;  %v5139_v19 = vadd.f32 %v13270_v28, %v5050_v6  ;;  %v13596_v11 = vor.u32 %v8334_v30, %v7992_v58 }
 0x878   : > { %v13522_v5 = vadd.f32 %v6756_v7, %v6588_v56  ;;  %v5429_v7 = vpack.c.bf16 %v5383_v44, %v5381_v17  ;;  %v13604_v23 = vpop.permute.xlu1 %5650  ;;  %v15481_v17 = vld [vmem:[#allocation126_spill] sm:$0xff] }
 0x879   : > { %v5395_v16 = vmax.f32 %v5149_v9, 0.0  ;;  %v5387_v28 = vmax.f32 %v5139_v19, 0.0  ;;  %v13594_v56 = vpop.f32.mrf.mxu0  ;;  %v8062_v9 = vld [vmem:[%s14338_s9 + $0x180] sm:$0xf] }
 0x87a   : > { %6383 = vmatpush.bf16.msrb.mxu3 %v5441_v10 }
 0x87b   : > { %v5435_v18 = vpack.c.bf16 %v5395_v16, %v5393_v46  ;;  %v15477_v46 = vld [vmem:[#allocation92_spill] sm:$0xff] }
 0x87c   : > { %v13626_v1 = vpop.permute.xlu2 %5655 }
 0x87d   : > { %v6601_v36 = vadd.f32 %v15474_v40, %v13626_v1  ;;  %v8357_v40 = vld [vmem:[%s14338_s9 + $0x1a4] sm:$0xf0] }
 0x87e   : > { %6384 = vmatpush.bf16.msrb.mxu3 %v5439_v47 }
 0x880   : > { %v6759_v15 = vpop.f32.mrf.mxu1 }
 0x881   : > { %v13553_v37 = vadd.f32 %v6759_v15, %v6591_v14  ;;  %v13610_v22 = vpop.f32.mrf.mxu0  ;;  %v15475_v15 = vld [vmem:[#allocation124_spill] sm:$0xff] }
 0x882   : > { %6385 = vmatpush.bf16.msrb.mxu3 %v5437_v3  ;;  %6669 = vmatmul.bf16.gmra.mxu0 %v13546_v61  ;;  %v15476_v3 = vld [vmem:[#allocation14_spill] sm:$0xff] }
 0x883   : > { %6798 = vmatmul.bf16.gmra.mxu1 %v13550_v38 }
 0x885   : > { %6256 = vmatmul.bf16.gmra.mxu2 %v13027_v0  ;;  %v5385_v0 = vmax.f32 %v13250_v59, 0.0  ;;  %v13587_v59 = vpop.permute.xlu0 %5645 }
 0x886   : > { %6386 = vmatpush.bf16.msrb.mxu3 %v5435_v18  ;;  %v6596_v25 = vadd.f32 %v13279_v8, %v13587_v59  ;;  %v6598_v8 = vadd.f32 %v13307_v35, %v13604_v23  ;;  %v8000_v35 = vld [vmem:[%s14338_s9 + $0x108] sm:$0xf0] }
 0x887   : > { %v5431_v13 = vpack.c.bf16 %v5387_v28, %v5385_v0  ;;  %v8008_v28 = vld [vmem:[%s14338_s9 + $0x118] sm:$0xf0] }
 0x888   : > { %v6761_v54 = vpop.f32.mrf.mxu1  ;;  %v13672_v44 = vor.u32 %v8338_v42, %v8008_v28 }
 0x889   : > { %v13572_v63 = vadd.f32 %v6761_v54, %v6593_v55  ;;  %v13639_v16 = vpop.f32.mrf.mxu0  ;;  %v8355_v55 = vld [vmem:[%s14338_s9 + $0x194] sm:$0xf0] }
 0x88a   : > { %6387 = vmatpush.bf16.msrb.mxu3 %v5433_v2  ;;  %v13666_v2 = vpop.permute.xlu1 %5665  ;;  %v13668_v0 = vor.u32 %v8355_v55, %v8070_v48 }
 0x88b   : > { %15478 = vst [vmem:[#allocation25_spill] sm:$0xff] %v13666_v2  ;;  %v6606_v52 = vadd.f32 %v15479_v49, %v13666_v2  ;;  %v15491_v49 = vld [vmem:[#allocation127_spill] sm:$0xff] }
 0x88d   : > { %v13644_v6 = vpop.permute.xlu0 %5660 }
 0x88e   : > { %6388 = vmatpush.bf16.msrb.mxu3 %v5431_v13  ;;  %v6603_v19 = vadd.f32 %v15477_v46, %v13644_v6  ;;  %v15488_v46 = vld [vmem:[#allocation73_spill] sm:$0xff] }
 0x890   : > { %v6764_v12 = vpop.f32.mrf.mxu1 }
 0x891   : > { %v13598_v10 = vadd.f32 %v6764_v12, %v6596_v25  ;;  %v13664_v54 = vpop.f32.mrf.mxu0  ;;  %v15482_v25 = vld [vmem:[#allocation115_spill] sm:$0xff]  ;;  %v13682_v12 = vpop.permute.xlu2 %5670 }
 0x892   : > { %6389 = vmatpush.bf16.msrb.mxu3 %v5429_v7  ;;  %6674 = vmatmul.bf16.gmra.mxu0 %v13590_v45  ;;  %15483 = vst [vmem:[#allocation32_spill] sm:$0xff] %v13682_v12  ;;  %v15484_v7 = vld [vmem:[#allocation166_spill] sm:$0xff] }
 0x893   : > { %6803 = vmatmul.bf16.gmra.mxu1 %v13596_v11 }
 0x895   : > { %6261 = vmatmul.bf16.gmra.mxu2 %v13061_v4  ;;  %6390 = vmatmul.bf16.vlgmr.msrb.gmra.mxu3 %v13063_v34  ;;  %v8353_v4 = vld [vmem:[%s14338_s9 + $0x184] sm:$0xf0]  ;;  %v8336_v34 = vld [vmem:[%s14338_s9 + $0x104] sm:$0xf] }
 0x896   : > { %v13628_v47 = vor.u32 %v8353_v4, %v8062_v9  ;;  %v13632_v29 = vor.u32 %v8336_v34, %v8000_v35  ;;  %v8078_v35 = vld [vmem:[%s14338_s9 + $0x1a0] sm:$0xf] }
 0x898   : > { %v6766_v57 = vpop.f32.mrf.mxu1  ;;  %v13608_v27 = vpop.f32.mrf.mxu2 }
 0x899   : > { %v13612_v51 = vadd.f32 %v6766_v57, %v6598_v8  ;;  %v6608_v8 = vadd.f32 %v15484_v7, %v13682_v12  ;;  %v13686_v57 = vpop.f32.mrf.mxu0  ;;  %v15526_v12 = vld [vmem:[#allocation118_spill] sm:$0xff] }
 0x8a0   : > { %v6769_v60 = vpop.f32.mrf.mxu1  ;;  %v13634_v14 = vpop.f32.mrf.mxu2 }
 0x8a1   : > { %v13636_v32 = vadd.f32 %v6769_v60, %v6601_v36  ;;  %v8340_v36 = vld [vmem:[%s14338_s9 + $0x124] sm:$0xf]  ;;  %v8016_v60 = vld [vmem:[%s14338_s9 + $0x128] sm:$0xf0]  ;;  %v13714_v42 = vpop.f32.mrf.mxu0 }
 0x8a2   : > { %6679 = vmatmul.bf16.gmra.mxu0 %v13628_v47 }
 0x8a3   : > { %6808 = vmatmul.bf16.gmra.mxu1 %v13632_v29 }
 0x8a5   : > { %6266 = vmatmul.bf16.gmra.mxu2 %v15475_v15  ;;  %6395 = vmatmul.bf16.gmra.mxu3 %v15476_v3  ;;  %v13704_v15 = vpop.permute.xlu0 %5675  ;;  %v13706_v3 = vor.u32 %v8357_v40, %v8078_v35  ;;  %v8086_v40 = vld [vmem:[%s14338_s9 + $0x1b0] sm:$0xf] }
 0x8a6   : > { %15486 = vst [vmem:[#allocation30_spill] sm:$0xff] %v13704_v15 }
 0x8a7   : > { %15487 = vst [vmem:[#allocation31_spill] sm:$0xff] %v13706_v3 }
 0x8a8   : > { %v6771_v26 = vpop.f32.mrf.mxu1  ;;  %v13648_v18 = vpop.f32.mrf.mxu2 }
 0x8a9   : > { %v13650_v33 = vadd.f32 %v6771_v26, %v6603_v19  ;;  %v6611_v19 = vadd.f32 %v15488_v46, %v13704_v15  ;;  %v13710_v26 = vor.u32 %v8340_v36, %v8016_v60  ;;  %v13730_v35 = vpop.f32.mrf.mxu0  ;;  %v8359_v36 = vld [vmem:[%s14338_s9 + $0x1b4] sm:$0xf0]  ;;  %v8342_v60 = vld [vmem:[%s14338_s9 + $0x134] sm:$0xf]  ;;  %v8024_v46 = vld [vmem:[%s14338_s9 + $0x138] sm:$0xf0] }
 0x8aa   : > { %v15509_v15 = vld [vmem:[#allocation133_spill] sm:$0xff] }
 0x8ab   : > { %15489 = vst [vmem:[#allocation27_spill] sm:$0xff] %v13710_v26 }
 0x8b0   : > { %v6774_v13 = vpop.f32.mrf.mxu1  ;;  %v13674_v30 = vpop.f32.mrf.mxu2 }
 0x8b1   : > { %v13676_v58 = vadd.f32 %v6774_v13, %v6606_v52  ;;  %v15492_v52 = vld [vmem:[#allocation131_spill] sm:$0xff]  ;;  %v13722_v13 = vpop.permute.xlu1 %5680 }
 0x8b2   : > { %6684 = vmatmul.bf16.gmra.mxu0 %v13668_v0  ;;  %15493 = vst [vmem:[#allocation51_spill] sm:$0xff] %v13722_v13 }
 0x8b3   : > { %15480 = vst [vmem:[#allocation45_spill] sm:$0xff] %v13676_v58  ;;  %6813 = vmatmul.bf16.gmra.mxu1 %v13672_v44  ;;  %v15533_v58 = vld [vmem:[#allocation22_spill] sm:$0xff] }
 0x8b5   : > { %6271 = vmatmul.bf16.gmra.mxu2 %v15481_v17  ;;  %6400 = vmatmul.bf16.gmra.mxu3 %v15482_v25  ;;  %v15494_v17 = vld [vmem:[#allocation173_spill] sm:$0xff] }
 0x8b6   : > { %v6613_v25 = vadd.f32 %v15494_v17, %v13722_v13  ;;  %v13750_v17 = vor.u32 %v8342_v60, %v8024_v46  ;;  %v13758_v13 = vpop.f32.mrf.mxu0 }
 0x8b8   : > { %v6776_v9 = vpop.f32.mrf.mxu1  ;;  %v13688_v4 = vpop.f32.mrf.mxu2  ;;  %15499 = vst [vmem:[#allocation54_spill] sm:$0xff] %v13750_v17 }
 0x8b9   : > { %v13690_v34 = vadd.f32 %v6776_v9, %v6608_v8 }
 0x8bb   : > { %15485 = vst [vmem:[#allocation62_spill] sm:$0xff] %v13690_v34  ;;  %v15525_v34 = vld [vmem:[#allocation137_spill] sm:$0xff] }
 0x8c0   : > { %v6779_v48 = vpop.f32.mrf.mxu1  ;;  %v13712_v55 = vpop.f32.mrf.mxu2 }
 0x8c1   : > { %v13716_v28 = vadd.f32 %v6779_v48, %v6611_v19  ;;  %v13744_v19 = vpop.permute.xlu2 %5685  ;;  %v13746_v48 = vor.u32 %v8359_v36, %v8086_v40  ;;  %v15502_v40 = vld [vmem:[#allocation44_spill] sm:$0xff]  ;;  %v13762_v36 = vpop.permute.xlu0 %5690 }
 0x8c2   : > { %6689 = vmatmul.bf16.gmra.mxu0 %v13706_v3  ;;  %15496 = vst [vmem:[#allocation40_spill] sm:$0xff] %v13744_v19  ;;  %v6618_v60 = vadd.f32 %v13502_v43, %v13762_v36  ;;  %v8032_v43 = vld [vmem:[%s14338_s9 + $0x148] sm:$0xf0]  ;;  %v15517_v3 = vld [vmem:[#allocation136_spill] sm:$0xff] }
 0x8c3   : > { %15490 = vst [vmem:[#allocation58_spill] sm:$0xff] %v13716_v28  ;;  %6818 = vmatmul.bf16.gmra.mxu1 %v13710_v26  ;;  %v15501_v28 = vld [vmem:[#allocation129_spill] sm:$0xff] }
 0x8c4   : > { %15497 = vst [vmem:[#allocation13_spill] sm:$0xff] %v13746_v48 }
 0x8c5   : > { %6276 = vmatmul.bf16.gmra.mxu2 %v15491_v49  ;;  %6405 = vmatmul.bf16.gmra.mxu3 %v15492_v52  ;;  %v15498_v49 = vld [vmem:[#allocation38_spill] sm:$0xff]  ;;  %15503 = vst [vmem:[#allocation10_spill] sm:$0xff] %v13762_v36  ;;  %v13782_v36 = vpop.permute.xlu1 %5695 }
 0x8c6   : > { %v6616_v52 = vadd.f32 %v15498_v49, %v13744_v19  ;;  %15505 = vst [vmem:[#allocation67_spill] sm:$0xff] %v13782_v36 }
 0x8c8   : > { %v6781_v7 = vpop.f32.mrf.mxu1  ;;  %v13726_v8 = vpop.f32.mrf.mxu2 }
 0x8c9   : > { %v13728_v9 = vadd.f32 %v6781_v7, %v6613_v25 }
 0x8cb   : > { %15495 = vst [vmem:[#allocation35_spill] sm:$0xff] %v13728_v9 }
 0x8d0   : > { %v6784_v25 = vpop.f32.mrf.mxu1  ;;  %v13752_v7 = vpop.f32.mrf.mxu2 }
 0x8d1   : > { %v13754_v9 = vadd.f32 %v6784_v25, %v6616_v52  ;;  %v8094_v25 = vld [vmem:[%s14338_s9 + $0x1c0] sm:$0xf] }
 0x8d2   : > { %6694 = vmatmul.bf16.gmra.mxu0 %v13746_v48 }
 0x8d3   : > { %15500 = vst [vmem:[#allocation70_spill] sm:$0xff] %v13754_v9  ;;  %6823 = vmatmul.bf16.gmra.mxu1 %v13750_v17 }
 0x8d5   : > { %6281 = vmatmul.bf16.gmra.mxu2 %v15501_v28  ;;  %6410 = vmatmul.bf16.gmra.mxu3 %v15502_v40  ;;  %v8361_v28 = vld [vmem:[%s14338_s9 + $0x1c4] sm:$0xf0]  ;;  %v8344_v40 = vld [vmem:[%s14338_s9 + $0x144] sm:$0xf] }
 0x8d6   : > { %v13790_v9 = vor.u32 %v8344_v40, %v8032_v43 }
 0x8d8   : > { %v6786_v46 = vpop.f32.mrf.mxu1  ;;  %v13766_v49 = vpop.f32.mrf.mxu2  ;;  %15507 = vst [vmem:[#allocation61_spill] sm:$0xff] %v13790_v9 }
 0x8d9   : > { %v13768_v52 = vadd.f32 %v6786_v46, %v6618_v60  ;;  %v13784_v60 = vor.u32 %v8361_v28, %v8094_v25  ;;  %v6621_v46 = vadd.f32 %v13526_v31, %v13782_v36  ;;  %v15510_v25 = vld [vmem:[#allocation121_spill] sm:$0xff]  ;;  %v13800_v28 = vpop.permute.xlu2 %5700 }
 0x8da   : > { %15511 = vst [vmem:[#allocation64_spill] sm:$0xff] %v13800_v28  ;;  %v6623_v31 = vadd.f32 %v13561_v20, %v13800_v28  ;;  %v8040_v20 = vld [vmem:[%s14338_s9 + $0x158] sm:$0xf0] }
 0x8db   : > { %15504 = vst [vmem:[#allocation33_spill] sm:$0xff] %v13768_v52  ;;  %v13788_v52 = vpop.f32.mrf.mxu0 }
 0x8dc   : > { %15506 = vst [vmem:[#allocation47_spill] sm:$0xff] %v13784_v60 }
 0x8e0   : > { %v6789_v19 = vpop.f32.mrf.mxu1  ;;  %v13792_v17 = vpop.f32.mrf.mxu2 }
 0x8e1   : > { %v13794_v48 = vadd.f32 %v6789_v19, %v6621_v46  ;;  %v8102_v46 = vld [vmem:[%s14338_s9 + $0x1d0] sm:$0xf] }
 0x8e2   : > { %6699 = vmatmul.bf16.gmra.mxu0 %v13784_v60 }
 0x8e3   : > { %15508 = vst [vmem:[#allocation177_spill] sm:$0xff] %v13794_v48  ;;  %6828 = vmatmul.bf16.gmra.mxu1 %v13790_v9  ;;  %v13808_v19 = vpop.f32.mrf.mxu0 }
 0x8e5   : > { %6286 = vmatmul.bf16.gmra.mxu2 %v15509_v15  ;;  %6415 = vmatmul.bf16.gmra.mxu3 %v15510_v25  ;;  %v8363_v15 = vld [vmem:[%s14338_s9 + $0x1d4] sm:$0xf0]  ;;  %v8346_v25 = vld [vmem:[%s14338_s9 + $0x154] sm:$0xf] }
 0x8e6   : > { %v13828_v28 = vor.u32 %v8346_v25, %v8040_v20 }
 0x8e8   : > { %v6791_v40 = vpop.f32.mrf.mxu1  ;;  %v13804_v43 = vpop.f32.mrf.mxu2  ;;  %15515 = vst [vmem:[#allocation63_spill] sm:$0xff] %v13828_v28 }
 0x8e9   : > { %v13806_v36 = vadd.f32 %v6791_v40, %v6623_v31  ;;  %v13822_v31 = vpop.permute.xlu0 %5705  ;;  %v13824_v40 = vor.u32 %v8363_v15, %v8102_v46  ;;  %v15518_v46 = vld [vmem:[#allocation138_spill] sm:$0xff]  ;;  %v13840_v15 = vpop.permute.xlu1 %5710 }
 0x8ea   : > { %15513 = vst [vmem:[#allocation57_spill] sm:$0xff] %v13822_v31 }
 0x8eb   : > { %15512 = vst [vmem:[#allocation91_spill] sm:$0xff] %v13806_v36  ;;  %v6626_v36 = vadd.f32 %v13594_v56, %v13822_v31  ;;  %v13836_v26 = vpop.f32.mrf.mxu0  ;;  %v6628_v56 = vadd.f32 %v13610_v22, %v13840_v15  ;;  %v8048_v22 = vld [vmem:[%s14338_s9 + $0x168] sm:$0xf0] }
 0x8ec   : > { %15514 = vst [vmem:[#allocation55_spill] sm:$0xff] %v13824_v40 }
 0x8ed   : > { %15519 = vst [vmem:[#allocation24_spill] sm:$0xff] %v13840_v15  ;;  %v13860_v15 = vpop.permute.xlu2 %5715 }
 0x8ee   : > { %15521 = vst [vmem:[#allocation20_spill] sm:$0xff] %v13860_v15 }
 0x8f0   : > { %v6794_v48 = vpop.f32.mrf.mxu1  ;;  %v13830_v9 = vpop.f32.mrf.mxu2 }
 0x8f1   : > { %v13832_v60 = vadd.f32 %v6794_v48, %v6626_v36  ;;  %v8110_v36 = vld [vmem:[%s14338_s9 + $0x1e0] sm:$0xf] }
 0x8f2   : > { %6704 = vmatmul.bf16.gmra.mxu0 %v13824_v40 }
 0x8f3   : > { %15516 = vst [vmem:[#allocation179_spill] sm:$0xff] %v13832_v60  ;;  %6833 = vmatmul.bf16.gmra.mxu1 %v13828_v28 }
 0x8f5   : > { %6291 = vmatmul.bf16.gmra.mxu2 %v15517_v3  ;;  %6420 = vmatmul.bf16.gmra.mxu3 %v15518_v46  ;;  %v8365_v3 = vld [vmem:[%s14338_s9 + $0x1e4] sm:$0xf0]  ;;  %v8348_v46 = vld [vmem:[%s14338_s9 + $0x164] sm:$0xf] }
 0x8f6   : > { %v13868_v60 = vor.u32 %v8348_v46, %v8048_v22  ;;  %v8118_v22 = vld [vmem:[%s14338_s9 + $0x1f0] sm:$0xf] }
 0x8f8   : > { %v6796_v25 = vpop.f32.mrf.mxu1  ;;  %v13844_v20 = vpop.f32.mrf.mxu2  ;;  %15523 = vst [vmem:[#allocation18_spill] sm:$0xff] %v13868_v60 }
 0x8f9   : > { %v13846_v48 = vadd.f32 %v6796_v25, %v6628_v56  ;;  %v13862_v56 = vpop.f32.mrf.mxu0  ;;  %v13864_v25 = vor.u32 %v8365_v3, %v8110_v36  ;;  %v13878_v36 = vpop.permute.xlu0 %5720 }
 0x8fa   : > { %15527 = vst [vmem:[#allocation49_spill] sm:$0xff] %v13878_v36 }
 0x8fb   : > { %15520 = vst [vmem:[#allocation86_spill] sm:$0xff] %v13846_v48  ;;  %v6631_v48 = vadd.f32 %v13639_v16, %v13860_v15  ;;  %v6633_v16 = vadd.f32 %v13664_v54, %v13878_v36  ;;  %v8056_v54 = vld [vmem:[%s14338_s9 + $0x178] sm:$0xf0] }
 0x8fc   : > { %15522 = vst [vmem:[#allocation178_spill] sm:$0xff] %v13864_v25 }
 0x900   : > { %v6799_v31 = vpop.f32.mrf.mxu1  ;;  %v13872_v40 = vpop.f32.mrf.mxu2 }
 0x901   : > { %v13870_v28 = vadd.f32 %v6799_v31, %v6631_v48  ;;  %v13882_v3 = vpop.f32.mrf.mxu0 }
 0x902   : > { %6709 = vmatmul.bf16.gmra.mxu0 %v13864_v25 }
 0x903   : > { %15524 = vst [vmem:[#allocation182_spill] sm:$0xff] %v13870_v28  ;;  %6838 = vmatmul.bf16.gmra.mxu1 %v13868_v60 }
 0x905   : > { %6296 = vmatmul.bf16.gmra.mxu2 %v15525_v34  ;;  %6425 = vmatmul.bf16.gmra.mxu3 %v15526_v12  ;;  %v8367_v12 = vld [vmem:[%s14338_s9 + $0x1f4] sm:$0xf0]  ;;  %v8350_v34 = vld [vmem:[%s14338_s9 + $0x174] sm:$0xf] }
 0x906   : > { %v13906_v36 = vor.u32 %v8350_v34, %v8056_v54  ;;  %v15536_v34 = vld [vmem:[#allocation39_spill] sm:$0xff] }
 0x908   : > { %v6801_v46 = vpop.f32.mrf.mxu1  ;;  %v13886_v48 = vpop.f32.mrf.mxu2  ;;  %15531 = vst [vmem:[#allocation185_spill] sm:$0xff] %v13906_v36 }
 0x909   : > { %v13884_v31 = vadd.f32 %v6801_v46, %v6633_v16  ;;  %v13900_v16 = vpop.permute.xlu1 %5725  ;;  %v13902_v46 = vor.u32 %v8367_v12, %v8118_v22  ;;  %v13910_v60 = vpop.f32.mrf.mxu0  ;;  %v15534_v22 = vld [vmem:[#allocation96_spill] sm:$0xff] }
 0x90a   : > { %15529 = vst [vmem:[#allocation180_spill] sm:$0xff] %v13900_v16  ;;  %v13918_v12 = vpop.permute.xlu2 %5730 }
 0x90b   : > { %15528 = vst [vmem:[#allocation7_spill] sm:$0xff] %v13884_v31  ;;  %v6636_v31 = vadd.f32 %v13686_v57, %v13900_v16  ;;  %v6638_v57 = vadd.f32 %v13714_v42, %v13918_v12  ;;  %v8352_v42 = vld [vmem:[%s14338_s9 + $0x184] sm:$0xf] }
 0x90c   : > { %15530 = vst [vmem:[#allocation11_spill] sm:$0xff] %v13902_v46 }
 0x90d   : > { %15535 = vst [vmem:[#allocation181_spill] sm:$0xff] %v13918_v12 }
 0x910   : > { %v6804_v28 = vpop.f32.mrf.mxu1  ;;  %v13914_v25 = vpop.f32.mrf.mxu2 }
 0x911   : > { %v13908_v15 = vadd.f32 %v6804_v28, %v6636_v31  ;;  %v6223_v28 = vadd.f32 %v13608_v27, %v15536_v34  ;;  %v8064_v27 = vld [vmem:[%s14338_s9 + $0x188] sm:$0xf0] }
 0x912   : > { %6714 = vmatmul.bf16.gmra.mxu0 %v13902_v46  ;;  %v15541_v46 = vld [vmem:[#allocation148_spill] sm:$0xff] }
 0x913   : > { %15532 = vst [vmem:[#allocation72_spill] sm:$0xff] %v13908_v15  ;;  %6843 = vmatmul.bf16.gmra.mxu1 %v13906_v36 }
 0x915   : > { %6301 = vmatmul.bf16.gmra.mxu2 %v15533_v58  ;;  %6430 = vmatmul.bf16.gmra.mxu3 %v15534_v22  ;;  %v15538_v58 = vld [vmem:[#allocation94_spill] sm:$0xff] }
 0x918   : > { %v6806_v31 = vpop.f32.mrf.mxu1  ;;  %v6391_v15 = vpop.f32.mrf.mxu3 }
 0x919   : > { %v13925_v54 = vadd.f32 %v6806_v31, %v6638_v57  ;;  %v6392_v16 = vadd.f32 %v6391_v15, %v6223_v28  ;;  %v13939_v57 = vpop.permute.xlu0 %5735  ;;  %v13944_v34 = vpop.f32.mrf.mxu2  ;;  %v13946_v28 = vor.u32 %v8352_v42, %v8064_v27  ;;  %v15545_v42 = vld [vmem:[#allocation90_spill] sm:$0xff] }
 0x91a   : > { %15539 = vst [vmem:[#allocation79_spill] sm:$0xff] %v13939_v57  ;;  %v6641_v15 = vadd.f32 %v13730_v35, %v13939_v57  ;;  %v15543_v35 = vld [vmem:[#allocation53_spill] sm:$0xff]  ;;  %v13956_v57 = vpop.permute.xlu1 %5740  ;;  %v6228_v27 = vadd.f32 %v13648_v18, %v15545_v42 }
 0x91b   : > { %15537 = vst [vmem:[#allocation183_spill] sm:$0xff] %v13925_v54  ;;  %v6889_v22 = vpack.c.bf16 %v15538_v58, %v6392_v16  ;;  %v15540_v16 = vld [vmem:[#allocation149_spill] sm:$0xff] }
 0x91c   : > { %v6225_v31 = vadd.f32 %v13634_v14, %v15540_v16  ;;  %15544 = vst [vmem:[#allocation81_spill] sm:$0xff] %v13956_v57  ;;  %v6643_v14 = vadd.f32 %v13758_v13, %v13956_v57  ;;  %v13974_v13 = vpop.permute.xlu2 %5745 }
 0x91d   : > { %6953 = vst [vmem:[%s13930_s19] sm:$0xff] %v6889_v22  ;;  %v15542_v22 = vld [vmem:[#allocation153_spill] sm:$0xff]  ;;  %v6646_v18 = vadd.f32 %v13788_v52, %v13974_v13  ;;  %v15552_v52 = vld [vmem:[#allocation163_spill] sm:$0xff] }
 0x920   : > { %v6809_v58 = vpop.f32.mrf.mxu1  ;;  %v6393_v12 = vpop.f32.mrf.mxu3 }
 0x921   : > { %v13950_v54 = vadd.f32 %v6809_v58, %v6641_v15  ;;  %v6394_v36 = vadd.f32 %v6393_v12, %v6225_v31  ;;  %v13963_v12 = vpop.f32.mrf.mxu2  ;;  %v15547_v31 = vld [vmem:[#allocation154_spill] sm:$0xff] }
 0x923   : > { %6848 = vmatmul.bf16.gmra.mxu1 %v13946_v28  ;;  %v6890_v2 = vpack.c.bf16 %v15541_v46, %v6394_v36 }
 0x925   : > { %6306 = vmatmul.bf16.gmra.mxu2 %v15542_v22  ;;  %6435 = vmatmul.bf16.gmra.mxu3 %v15543_v35  ;;  %6954 = vst [vmem:[%s13930_s19 + $0x8] sm:$0xff] %v6890_v2  ;;  %v8354_v22 = vld [vmem:[%s14338_s9 + $0x194] sm:$0xf]  ;;  %v8072_v2 = vld [vmem:[%s14338_s9 + $0x198] sm:$0xf0] }
 0x926   : > { %v13979_v35 = vor.u32 %v8354_v22, %v8072_v2  ;;  %v13991_v22 = vpop.permute.xlu0 %5750  ;;  %v15554_v2 = vld [vmem:[#allocation128_spill] sm:$0xff] }
 0x927   : > { %15553 = vst [vmem:[#allocation87_spill] sm:$0xff] %v13991_v22 }
 0x928   : > { %v6811_v15 = vpop.f32.mrf.mxu1  ;;  %v6396_v36 = vpop.f32.mrf.mxu3 }
 0x929   : > { %v13965_v16 = vadd.f32 %v6811_v15, %v6643_v14  ;;  %v6397_v46 = vadd.f32 %v6396_v36, %v6228_v27  ;;  %v15548_v14 = vld [vmem:[#allocation158_spill] sm:$0xff] }
 0x92a   : > { %v6230_v42 = vadd.f32 %v13674_v30, %v15548_v14  ;;  %v6648_v30 = vadd.f32 %v13808_v19, %v13991_v22 }
 0x92b   : > { %15546 = vst [vmem:[#allocation184_spill] sm:$0xff] %v13965_v16  ;;  %v6891_v58 = vpack.c.bf16 %v15547_v31, %v6397_v46  ;;  %v13985_v31 = vpop.f32.mrf.mxu2  ;;  %v15550_v16 = vld [vmem:[#allocation156_spill] sm:$0xff] }
 0x92d   : > { %6955 = vst [vmem:[%s13930_s19 + $0x10] sm:$0xff] %v6891_v58  ;;  %v15551_v58 = vld [vmem:[#allocation160_spill] sm:$0xff] }
 0x930   : > { %v6814_v27 = vpop.f32.mrf.mxu1  ;;  %v6398_v36 = vpop.f32.mrf.mxu3 }
 0x931   : > { %v13983_v15 = vadd.f32 %v6814_v27, %v6646_v18  ;;  %v6399_v46 = vadd.f32 %v6398_v36, %v6230_v42  ;;  %v6233_v18 = vadd.f32 %v13688_v4, %v15554_v2  ;;  %v15557_v2 = vld [vmem:[#allocation23_spill] sm:$0xff] }
 0x933   : > { %15549 = vst [vmem:[#allocation186_spill] sm:$0xff] %v13983_v15  ;;  %6853 = vmatmul.bf16.gmra.mxu1 %v13979_v35  ;;  %v6892_v57 = vpack.c.bf16 %v15550_v16, %v6399_v46  ;;  %v15556_v16 = vld [vmem:[#allocation164_spill] sm:$0xff]  ;;  %v14007_v19 = vpop.f32.mrf.mxu2 }
 0x934   : > { %v15559_v15 = vld [vmem:[#allocation168_spill] sm:$0xff] }
 0x935   : > { %6311 = vmatmul.bf16.gmra.mxu2 %v15551_v58  ;;  %6440 = vmatmul.bf16.gmra.mxu3 %v15552_v52  ;;  %6956 = vst [vmem:[%s13930_s19 + $0x18] sm:$0xff] %v6892_v57  ;;  %v8356_v58 = vld [vmem:[%s14338_s9 + $0x1a4] sm:$0xf]  ;;  %v8080_v57 = vld [vmem:[%s14338_s9 + $0x1a8] sm:$0xf0]  ;;  %v14009_v52 = vpop.permute.xlu1 %5755 }
 0x936   : > { %v6651_v4 = vadd.f32 %v13836_v26, %v14009_v52  ;;  %v14024_v26 = vpop.permute.xlu2 %5760 }
 0x937   : > { %15561 = vst [vmem:[#allocation60_spill] sm:$0xff] %v14024_v26 }
 0x938   : > { %v6816_v14 = vpop.f32.mrf.mxu1  ;;  %v6401_v27 = vpop.f32.mrf.mxu3 }
 0x939   : > { %v13998_v42 = vadd.f32 %v6816_v14, %v6648_v30  ;;  %v6402_v36 = vadd.f32 %v6401_v27, %v6233_v18  ;;  %v14014_v30 = vor.u32 %v8356_v58, %v8080_v57  ;;  %v6235_v18 = vadd.f32 %v13712_v55, %v15557_v2  ;;  %v15562_v57 = vld [vmem:[#allocation169_spill] sm:$0xff] }
 0x93a   : > { %v6653_v55 = vadd.f32 %v13862_v56, %v14024_v26  ;;  %v8088_v56 = vld [vmem:[%s14338_s9 + $0x1b8] sm:$0xf0]  ;;  %v15567_v26 = vld [vmem:[#allocation82_spill] sm:$0xff] }
 0x93b   : > { %15555 = vst [vmem:[#allocation88_spill] sm:$0xff] %v13998_v42  ;;  %v6893_v46 = vpack.c.bf16 %v15556_v16, %v6402_v36  ;;  %v15558_v42 = vld [vmem:[#allocation2_spill] sm:$0xff]  ;;  %v14029_v58 = vpop.f32.mrf.mxu2 }
 0x93d   : > { %6957 = vst [vmem:[%s13930_s19 + $0x20] sm:$0xff] %v6893_v46  ;;  %v15560_v46 = vld [vmem:[#allocation171_spill] sm:$0xff] }
 0x940   : > { %v6819_v14 = vpop.f32.mrf.mxu1  ;;  %v6403_v36 = vpop.f32.mrf.mxu3 }
 0x941   : > { %v14018_v27 = vadd.f32 %v6819_v14, %v6651_v4  ;;  %v6404_v16 = vadd.f32 %v6403_v36, %v6235_v18  ;;  %v6238_v4 = vadd.f32 %v13726_v8, %v15562_v57  ;;  %v15564_v36 = vld [vmem:[#allocation170_spill] sm:$0xff] }
 0x943   : > { %6858 = vmatmul.bf16.gmra.mxu1 %v14014_v30  ;;  %v6894_v22 = vpack.c.bf16 %v15558_v42, %v6404_v16  ;;  %v8358_v16 = vld [vmem:[%s14338_s9 + $0x1b4] sm:$0xf] }
 0x945   : > { %6316 = vmatmul.bf16.gmra.mxu2 %v15559_v15  ;;  %6445 = vmatmul.bf16.gmra.mxu3 %v15560_v46  ;;  %6958 = vst [vmem:[%s13930_s19 + $0x28] sm:$0xff] %v6894_v22  ;;  %v14042_v22 = vpop.permute.xlu0 %5765  ;;  %v14047_v46 = vor.u32 %v8358_v16, %v8088_v56  ;;  %v14059_v16 = vpop.permute.xlu1 %5770  ;;  %v15569_v56 = vld [vmem:[#allocation34_spill] sm:$0xff] }
 0x946   : > { %v6656_v8 = vadd.f32 %v13882_v3, %v14042_v22  ;;  %v15568_v3 = vld [vmem:[#allocation174_spill] sm:$0xff] }
 0x948   : > { %v6821_v2 = vpop.f32.mrf.mxu1  ;;  %v6406_v42 = vpop.f32.mrf.mxu3 }
 0x949   : > { %v14033_v18 = vadd.f32 %v6821_v2, %v6653_v55  ;;  %v6407_v14 = vadd.f32 %v6406_v42, %v6238_v4  ;;  %v15565_v55 = vld [vmem:[#allocation75_spill] sm:$0xff]  ;;  %v14051_v2 = vpop.f32.mrf.mxu2 }
 0x94a   : > { %v6240_v57 = vadd.f32 %v13752_v7, %v15565_v55  ;;  %v6658_v7 = vadd.f32 %v13910_v60, %v14059_v16  ;;  %v8096_v60 = vld [vmem:[%s14338_s9 + $0x1c8] sm:$0xf0] }
 0x94b   : > { %15563 = vst [vmem:[#allocation3_spill] sm:$0xff] %v14033_v18  ;;  %v6895_v15 = vpack.c.bf16 %v15564_v36, %v6407_v14  ;;  %v15566_v18 = vld [vmem:[#allocation172_spill] sm:$0xff] }
 0x94d   : > { %6959 = vst [vmem:[%s13930_s19 + $0x30] sm:$0xff] %v6895_v15 }
 0x950   : > { %v6824_v4 = vpop.f32.mrf.mxu1  ;;  %v6408_v14 = vpop.f32.mrf.mxu3 }
 0x951   : > { %v14053_v42 = vadd.f32 %v6824_v4, %v6656_v8  ;;  %v6409_v36 = vadd.f32 %v6408_v14, %v6240_v57  ;;  %v6243_v8 = vadd.f32 %v13766_v49, %v15569_v56 }
 0x953   : > { %6863 = vmatmul.bf16.gmra.mxu1 %v14047_v46  ;;  %v6896_v15 = vpack.c.bf16 %v15566_v18, %v6409_v36  ;;  %v14068_v18 = vpop.f32.mrf.mxu2 }
 0x955   : > { %6321 = vmatmul.bf16.gmra.mxu2 %v15567_v26  ;;  %6450 = vmatmul.bf16.gmra.mxu3 %v15568_v3  ;;  %6960 = vst [vmem:[%s13930_s19 + $0x38] sm:$0xff] %v6896_v15  ;;  %v15570_v26 = vld [vmem:[#allocation175_spill] sm:$0xff]  ;;  %v8360_v15 = vld [vmem:[%s14338_s9 + $0x1c4] sm:$0xf]  ;;  %v15571_v3 = vld [vmem:[#allocation176_spill] sm:$0xff] }
 0x956   : > { %v14078_v49 = vor.u32 %v8360_v15, %v8096_v60  ;;  %v8362_v60 = vld [vmem:[%s14338_s9 + $0x1d4] sm:$0xf] }
 0x958   : > { %v6826_v55 = vpop.f32.mrf.mxu1  ;;  %v6411_v4 = vpop.f32.mrf.mxu3 }
 0x959   : > { %v14066_v57 = vadd.f32 %v6826_v55, %v6658_v7  ;;  %v6412_v14 = vadd.f32 %v6411_v4, %v6243_v8  ;;  %v6245_v7 = vadd.f32 %v13792_v17, %v15571_v3  ;;  %v15572_v55 = vld [vmem:[#allocation89_spill] sm:$0xff] }
 0x95a   : > { %v8104_v3 = vld [vmem:[%s14338_s9 + $0x1d8] sm:$0xf0] }
 0x95b   : > { %v6897_v36 = vpack.c.bf16 %v15570_v26, %v6412_v14  ;;  %v14084_v14 = vpop.f32.mrf.mxu2  ;;  %v6248_v26 = vadd.f32 %v13804_v43, %v13491_v41  ;;  %v6250_v41 = vadd.f32 %v13830_v9, %v13514_v39  ;;  %v8364_v9 = vld [vmem:[%s14338_s9 + $0x1e4] sm:$0xf] }
 0x95d   : > { %6961 = vst [vmem:[%s13930_s19 + $0x40] sm:$0xff] %v6897_v36 }
 0x960   : > { %v6413_v56 = vpop.f32.mrf.mxu3 }
 0x961   : > { %v6414_v8 = vadd.f32 %v6413_v56, %v6245_v7  ;;  %v6253_v56 = vadd.f32 %v13844_v20, %v13541_v21  ;;  %v6255_v21 = vadd.f32 %v13872_v40, %v13564_v53 }
 0x963   : > { %6868 = vmatmul.bf16.gmra.mxu1 %v14078_v49  ;;  %v6898_v4 = vpack.c.bf16 %v15572_v55, %v6414_v8 }
 0x965   : > { %6326 = vmatmul.bf16.gmra.mxu2 %v13495_v24  ;;  %6455 = vmatmul.bf16.gmra.mxu3 %v13499_v62  ;;  %6962 = vst [vmem:[%s13930_s19 + $0x48] sm:$0xff] %v6898_v4  ;;  %v14099_v24 = vpop.f32.mrf.mxu2  ;;  %v14101_v62 = vor.u32 %v8362_v60, %v8104_v3 }
 0x968   : > { %v6416_v36 = vpop.f32.mrf.mxu3 }
 0x969   : > { %v6417_v15 = vadd.f32 %v6416_v36, %v6248_v26  ;;  %v6258_v36 = vadd.f32 %v13886_v48, %v13587_v59  ;;  %v6260_v59 = vadd.f32 %v13914_v25, %v13604_v23 }
 0x96b   : > { %v6899_v17 = vpack.c.bf16 %v13504_v50, %v6417_v15 }
 0x96d   : > { %6963 = vst [vmem:[%s13930_s19 + $0x50] sm:$0xff] %v6899_v17  ;;  %v14112_v8 = vpop.f32.mrf.mxu2  ;;  %v8366_v17 = vld [vmem:[%s14338_s9 + $0x1f4] sm:$0xf] }
 0x970   : > { %v6418_v43 = vpop.f32.mrf.mxu3 }
 0x971   : > { %v6419_v7 = vadd.f32 %v6418_v43, %v6250_v41  ;;  %v6263_v41 = vadd.f32 %v13944_v34, %v13626_v1  ;;  %v15573_v1 = vld [vmem:[#allocation25_spill] sm:$0xff] }
 0x972   : > { %v6268_v34 = vadd.f32 %v13985_v31, %v15573_v1  ;;  %v15578_v31 = vld [vmem:[#allocation27_spill] sm:$0xff] }
 0x973   : > { %6873 = vmatmul.bf16.gmra.mxu1 %v14101_v62  ;;  %v6900_v50 = vpack.c.bf16 %v13522_v5, %v6419_v7  ;;  %v8112_v5 = vld [vmem:[%s14338_s9 + $0x1e8] sm:$0xf0] }
 0x975   : > { %6331 = vmatmul.bf16.gmra.mxu2 %v13546_v61  ;;  %6460 = vmatmul.bf16.gmra.mxu3 %v13550_v38  ;;  %6964 = vst [vmem:[%s13930_s19 + $0x58] sm:$0xff] %v6900_v50  ;;  %v14122_v61 = vor.u32 %v8364_v9, %v8112_v5  ;;  %v14126_v26 = vpop.f32.mrf.mxu2  ;;  %v15576_v9 = vld [vmem:[#allocation62_spill] sm:$0xff] }
 0x978   : > { %v6421_v55 = vpop.f32.mrf.mxu3 }
 0x979   : > { %v6422_v4 = vadd.f32 %v6421_v55, %v6253_v56 }
 0x97b   : > { %v6901_v39 = vpack.c.bf16 %v13553_v37, %v6422_v4  ;;  %v15575_v4 = vld [vmem:[#allocation32_spill] sm:$0xff] }
 0x97d   : > { %6965 = vst [vmem:[%s13930_s19 + $0x60] sm:$0xff] %v6901_v39 }
 0x980   : > { %v6423_v38 = vpop.f32.mrf.mxu3 }
 0x981   : > { %v6424_v20 = vadd.f32 %v6423_v38, %v6255_v21  ;;  %v15577_v21 = vld [vmem:[#allocation31_spill] sm:$0xff]  ;;  %v15579_v38 = vld [vmem:[#allocation30_spill] sm:$0xff] }
 0x983   : > { %6878 = vmatmul.bf16.gmra.mxu1 %v14122_v61  ;;  %v6902_v37 = vpack.c.bf16 %v13572_v63, %v6424_v20  ;;  %v8120_v63 = vld [vmem:[%s14338_s9 + $0x1f8] sm:$0xf0]  ;;  %v6273_v20 = vadd.f32 %v14029_v58, %v15579_v38  ;;  %v15585_v58 = vld [vmem:[#allocation40_spill] sm:$0xff] }
 0x985   : > { %6336 = vmatmul.bf16.gmra.mxu2 %v13590_v45  ;;  %6465 = vmatmul.bf16.gmra.mxu3 %v13596_v11  ;;  %6966 = vst [vmem:[%s13930_s19 + $0x68] sm:$0xff] %v6902_v37  ;;  %v14142_v45 = vpop.f32.mrf.mxu2  ;;  %v14145_v11 = vor.u32 %v8366_v17, %v8120_v63 }
 0x988   : > { %v6426_v15 = vpop.f32.mrf.mxu3 }
 0x989   : > { %v6427_v53 = vadd.f32 %v6426_v15, %v6258_v36  ;;  %v15580_v15 = vld [vmem:[#allocation58_spill] sm:$0xff] }
 0x98b   : > { %v6903_v40 = vpack.c.bf16 %v13598_v10, %v6427_v53 }
 0x98d   : > { %6967 = vst [vmem:[%s13930_s19 + $0x70] sm:$0xff] %v6903_v40  ;;  %v14154_v3 = vpop.f32.mrf.mxu2  ;;  %v15581_v40 = vld [vmem:[#allocation51_spill] sm:$0xff] }
 0x98e   : > { %v6275_v17 = vadd.f32 %v14051_v2, %v15581_v40  ;;  %v15597_v40 = vld [vmem:[#allocation57_spill] sm:$0xff] }
 0x990   : > { %v6428_v48 = vpop.f32.mrf.mxu3 }
 0x991   : > { %v6429_v60 = vadd.f32 %v6428_v48, %v6260_v59  ;;  %v15582_v48 = vld [vmem:[#allocation35_spill] sm:$0xff] }
 0x993   : > { %6883 = vmatmul.bf16.gmra.mxu1 %v14145_v11  ;;  %v6904_v10 = vpack.c.bf16 %v13612_v51, %v6429_v60  ;;  %v6265_v51 = vadd.f32 %v13963_v12, %v13644_v6  ;;  %v15574_v6 = vld [vmem:[#allocation45_spill] sm:$0xff] }
 0x995   : > { %6341 = vmatmul.bf16.gmra.mxu2 %v13628_v47  ;;  %6470 = vmatmul.bf16.gmra.mxu3 %v13632_v29  ;;  %6968 = vst [vmem:[%s13930_s19 + $0x78] sm:$0xff] %v6904_v10  ;;  %v14162_v25 = vpop.f32.mrf.mxu2  ;;  %v15583_v10 = vld [vmem:[#allocation13_spill] sm:$0xff] }
 0x998   : > { %v6431_v43 = vpop.f32.mrf.mxu3 }
 0x999   : > { %v6432_v7 = vadd.f32 %v6431_v43, %v6263_v41  ;;  %v15584_v41 = vld [vmem:[#allocation54_spill] sm:$0xff]  ;;  %v6278_v43 = vadd.f32 %v14068_v18, %v15585_v58  ;;  %v15590_v18 = vld [vmem:[#allocation61_spill] sm:$0xff] }
 0x99b   : > { %v6905_v23 = vpack.c.bf16 %v13636_v32, %v6432_v7 }
 0x99d   : > { %6969 = vst [vmem:[%s13930_s19 + $0x80] sm:$0xff] %v6905_v23  ;;  %v14170_v55 = vpop.f32.mrf.mxu2 }
 0x9a0   : > { %v6433_v47 = vpop.f32.mrf.mxu3 }
 0x9a1   : > { %v6434_v50 = vadd.f32 %v6433_v47, %v6265_v51  ;;  %v15586_v47 = vld [vmem:[#allocation70_spill] sm:$0xff] }
 0x9a3   : > { %v6906_v29 = vpack.c.bf16 %v13650_v33, %v6434_v50  ;;  %v6270_v33 = vadd.f32 %v14007_v19, %v15575_v4  ;;  %v15587_v50 = vld [vmem:[#allocation10_spill] sm:$0xff]  ;;  %v15591_v4 = vld [vmem:[#allocation67_spill] sm:$0xff] }
 0x9a5   : > { %6346 = vmatmul.bf16.gmra.mxu2 %v13668_v0  ;;  %6475 = vmatmul.bf16.gmra.mxu3 %v13672_v44  ;;  %6970 = vst [vmem:[%s13930_s19 + $0x88] sm:$0xff] %v6906_v29  ;;  %v14177_v44 = vpop.f32.mrf.mxu2  ;;  %v6280_v29 = vadd.f32 %v14084_v14, %v15587_v50 }
 0x9a8   : > { %v6436_v32 = vpop.f32.mrf.mxu3 }
 0x9a9   : > { %v6437_v56 = vadd.f32 %v6436_v32, %v6268_v34 }
 0x9ab   : > { %v6907_v12 = vpack.c.bf16 %v15574_v6, %v6437_v56  ;;  %v15588_v56 = vld [vmem:[#allocation33_spill] sm:$0xff] }
 0x9ad   : > { %6971 = vst [vmem:[%s13930_s19 + $0x90] sm:$0xff] %v6907_v12  ;;  %v14186_v53 = vpop.f32.mrf.mxu2  ;;  %v15589_v12 = vld [vmem:[#allocation47_spill] sm:$0xff] }
 0x9b0   : > { %v6438_v39 = vpop.f32.mrf.mxu3 }
 0x9b1   : > { %v6439_v0 = vadd.f32 %v6438_v39, %v6270_v33  ;;  %v6283_v33 = vadd.f32 %v14099_v24, %v15591_v4 }
 0x9b3   : > { %v6908_v5 = vpack.c.bf16 %v15576_v9, %v6439_v0  ;;  %v15592_v9 = vld [vmem:[#allocation177_spill] sm:$0xff] }
 0x9b5   : > { %6351 = vmatmul.bf16.gmra.mxu2 %v15577_v21  ;;  %6480 = vmatmul.bf16.gmra.mxu3 %v15578_v31  ;;  %6972 = vst [vmem:[%s13930_s19 + $0x98] sm:$0xff] %v6908_v5  ;;  %v14196_v7 = vpop.f32.mrf.mxu2  ;;  %v15593_v21 = vld [vmem:[#allocation64_spill] sm:$0xff] }
 0x9b6   : > { %v6285_v31 = vadd.f32 %v14112_v8, %v15593_v21 }
 0x9b8   : > { %v6441_v37 = vpop.f32.mrf.mxu3 }
 0x9b9   : > { %v6442_v36 = vadd.f32 %v6441_v37, %v6273_v20  ;;  %v15594_v37 = vld [vmem:[#allocation91_spill] sm:$0xff] }
 0x9bb   : > { %v6909_v19 = vpack.c.bf16 %v15580_v15, %v6442_v36  ;;  %v15595_v15 = vld [vmem:[#allocation55_spill] sm:$0xff] }
 0x9bd   : > { %6973 = vst [vmem:[%s13930_s19 + $0xa0] sm:$0xff] %v6909_v19  ;;  %v14202_v32 = vpop.f32.mrf.mxu2  ;;  %v15596_v19 = vld [vmem:[#allocation63_spill] sm:$0xff] }
 0x9c0   : > { %v6443_v63 = vpop.f32.mrf.mxu3 }
 0x9c1   : > { %v6444_v59 = vadd.f32 %v6443_v63, %v6275_v17  ;;  %v6288_v17 = vadd.f32 %v14126_v26, %v15597_v40  ;;  %v15603_v26 = vld [vmem:[#allocation20_spill] sm:$0xff]  ;;  %v15612_v40 = vld [vmem:[#allocation183_spill] sm:$0xff] }
 0x9c2   : > { %v6293_v50 = vadd.f32 %v14154_v3, %v15603_v26  ;;  %v15608_v3 = vld [vmem:[#allocation185_spill] sm:$0xff]  ;;  %v15616_v26 = vld [vmem:[#allocation186_spill] sm:$0xff] }
 0x9c3   : > { %v6910_v60 = vpack.c.bf16 %v15582_v48, %v6444_v59  ;;  %v15598_v48 = vld [vmem:[#allocation179_spill] sm:$0xff] }
 0x9c5   : > { %6356 = vmatmul.bf16.gmra.mxu2 %v15583_v10  ;;  %6485 = vmatmul.bf16.gmra.mxu3 %v15584_v41  ;;  %6974 = vst [vmem:[%s13930_s19 + $0xa8] sm:$0xff] %v6910_v60  ;;  %v14211_v5 = vpop.f32.mrf.mxu2  ;;  %v15599_v60 = vld [vmem:[#allocation24_spill] sm:$0xff] }
 0x9c6   : > { %v6290_v10 = vadd.f32 %v14142_v45, %v15599_v60  ;;  %v15604_v45 = vld [vmem:[#allocation182_spill] sm:$0xff]  ;;  %v15614_v60 = vld [vmem:[#allocation81_spill] sm:$0xff] }
 0x9c8   : > { %v6446_v23 = vpop.f32.mrf.mxu3 }
 0x9c9   : > { %v6447_v51 = vadd.f32 %v6446_v23, %v6278_v43  ;;  %v15600_v23 = vld [vmem:[#allocation86_spill] sm:$0xff] }
 0x9cb   : > { %v6911_v2 = vpack.c.bf16 %v15586_v47, %v6447_v51  ;;  %v15601_v47 = vld [vmem:[#allocation178_spill] sm:$0xff] }
 0x9cd   : > { %6975 = vst [vmem:[%s13930_s19 + $0xb0] sm:$0xff] %v6911_v2  ;;  %v14220_v24 = vpop.f32.mrf.mxu2  ;;  %v15602_v2 = vld [vmem:[#allocation18_spill] sm:$0xff] }
 0x9d0   : > { %v6448_v1 = vpop.f32.mrf.mxu3 }
 0x9d1   : > { %v6449_v34 = vadd.f32 %v6448_v1, %v6280_v29 }
 0x9d3   : > { %v6912_v6 = vpack.c.bf16 %v15588_v56, %v6449_v34 }
 0x9d5   : > { %6361 = vmatmul.bf16.gmra.mxu2 %v15589_v12  ;;  %6490 = vmatmul.bf16.gmra.mxu3 %v15590_v18  ;;  %6976 = vst [vmem:[%s13930_s19 + $0xb8] sm:$0xff] %v6912_v6  ;;  %v14228_v41 = vpop.f32.mrf.mxu2  ;;  %v15605_v6 = vld [vmem:[#allocation49_spill] sm:$0xff] }
 0x9d6   : > { %v6295_v12 = vadd.f32 %v14162_v25, %v15605_v6 }
 0x9d8   : > { %v6451_v39 = vpop.f32.mrf.mxu3 }
 0x9d9   : > { %v6452_v0 = vadd.f32 %v6451_v39, %v6283_v33  ;;  %v15606_v33 = vld [vmem:[#allocation7_spill] sm:$0xff] }
 0x9db   : > { %v6913_v14 = vpack.c.bf16 %v15592_v9, %v6452_v0  ;;  %v15607_v9 = vld [vmem:[#allocation11_spill] sm:$0xff] }
 0x9dd   : > { %6977 = vst [vmem:[%s13930_s19 + $0xc0] sm:$0xff] %v6913_v14  ;;  %v14236_v34 = vpop.f32.mrf.mxu2  ;;  %v15609_v14 = vld [vmem:[#allocation180_spill] sm:$0xff] }
 0x9de   : > { %v6298_v21 = vadd.f32 %v14170_v55, %v15609_v14 }
 0x9e0   : > { %v6453_v38 = vpop.f32.mrf.mxu3 }
 0x9e1   : > { %v6454_v20 = vadd.f32 %v6453_v38, %v6285_v31 }
 0x9e3   : > { %v6914_v36 = vpack.c.bf16 %v15594_v37, %v6454_v20  ;;  %v15610_v20 = vld [vmem:[#allocation72_spill] sm:$0xff]  ;;  %v15611_v37 = vld [vmem:[#allocation181_spill] sm:$0xff] }
 0x9e5   : > { %6366 = vmatmul.bf16.gmra.mxu2 %v15595_v15  ;;  %6495 = vmatmul.bf16.gmra.mxu3 %v15596_v19  ;;  %6978 = vst [vmem:[%s13930_s19 + $0xc8] sm:$0xff] %v6914_v36  ;;  %v14243_v0 = vpop.f32.mrf.mxu2  ;;  %v6300_v36 = vadd.f32 %v14177_v44, %v15611_v37  ;;  %v6305_v44 = vadd.f32 %v14196_v7, %v15614_v60 }
 0x9e8   : > { %v6456_v63 = vpop.f32.mrf.mxu3 }
 0x9e9   : > { %v6457_v59 = vadd.f32 %v6456_v63, %v6288_v17  ;;  %v15613_v63 = vld [vmem:[#allocation79_spill] sm:$0xff] }
 0x9eb   : > { %v6915_v8 = vpack.c.bf16 %v15598_v48, %v6457_v59  ;;  %v6303_v59 = vadd.f32 %v14186_v53, %v15613_v63  ;;  %v6308_v53 = vadd.f32 %v14202_v32, %v13974_v13  ;;  %v6313_v13 = vadd.f32 %v14220_v24, %v14009_v52 }
 0x9ed   : > { %6979 = vst [vmem:[%s13930_s19 + $0xd0] sm:$0xff] %v6915_v8 }
 0x9f0   : > { %v6458_v58 = vpop.f32.mrf.mxu3 }
 0x9f1   : > { %v6459_v43 = vadd.f32 %v6458_v58, %v6290_v10 }
 0x9f3   : > { %v6916_v51 = vpack.c.bf16 %v15600_v23, %v6459_v43  ;;  %v15615_v43 = vld [vmem:[#allocation184_spill] sm:$0xff] }
 0x9f5   : > { %6371 = vmatmul.bf16.gmra.mxu2 %v15601_v47  ;;  %6500 = vmatmul.bf16.gmra.mxu3 %v15602_v2  ;;  %6980 = vst [vmem:[%s13930_s19 + $0xd8] sm:$0xff] %v6916_v51  ;;  %v6322_v51 = vpop.f32.mrf.mxu2  ;;  %v6829_v47 = vpop.f32.mrf.mxu1 }
 0x9f8   : > { %v6461_v29 = vpop.f32.mrf.mxu3 }
 0x9f9   : > { %v6462_v1 = vadd.f32 %v6461_v29, %v6293_v50  ;;  %v15617_v29 = vld [vmem:[#allocation87_spill] sm:$0xff] }
 0x9fb   : > { %v6917_v56 = vpack.c.bf16 %v15604_v45, %v6462_v1  ;;  %v6310_v1 = vadd.f32 %v14211_v5, %v15617_v29 }
 0x9fd   : > { %6981 = vst [vmem:[%s13930_s19 + $0xe0] sm:$0xff] %v6917_v56  ;;  %v6324_v45 = vpop.f32.mrf.mxu2  ;;  %v6831_v6 = vpop.f32.mrf.mxu1 }
 0xa00   : > { %v6463_v18 = vpop.f32.mrf.mxu3 }
 0xa01   : > { %v6464_v4 = vadd.f32 %v6463_v18, %v6295_v12  ;;  %v15618_v12 = vld [vmem:[#allocation88_spill] sm:$0xff] }
 0xa03   : > { %v6918_v39 = vpack.c.bf16 %v15606_v33, %v6464_v4 }
 0xa05   : > { %6376 = vmatmul.bf16.gmra.mxu2 %v15607_v9  ;;  %6505 = vmatmul.bf16.gmra.mxu3 %v15608_v3  ;;  %6982 = vst [vmem:[%s13930_s19 + $0xe8] sm:$0xff] %v6918_v39  ;;  %v6327_v39 = vpop.f32.mrf.mxu2  ;;  %v6834_v5 = vpop.f32.mrf.mxu1  ;;  %v15619_v3 = vld [vmem:[#allocation60_spill] sm:$0xff] }
 0xa06   : > { %v6315_v14 = vadd.f32 %v14228_v41, %v15619_v3 }
 0xa08   : > { %v6466_v31 = vpop.f32.mrf.mxu3 }
 0xa09   : > { %v6467_v38 = vadd.f32 %v6466_v31, %v6298_v21 }
 0xa0b   : > { %v6919_v25 = vpack.c.bf16 %v15610_v20, %v6467_v38  ;;  %v15620_v38 = vld [vmem:[#allocation3_spill] sm:$0xff] }
 0xa0d   : > { %6983 = vst [vmem:[%s13930_s19 + $0xf0] sm:$0xff] %v6919_v25  ;;  %v6329_v25 = vpop.f32.mrf.mxu2  ;;  %v6836_v52 = vpop.f32.mrf.mxu1 }
 0xa10   : > { %v6468_v15 = vpop.f32.mrf.mxu3 }
 0xa11   : > { %v6469_v19 = vadd.f32 %v6468_v15, %v6300_v36 }
 0xa13   : > { %v6920_v17 = vpack.c.bf16 %v15612_v40, %v6469_v19  ;;  %v6320_v19 = vadd.f32 %v14243_v0, %v14059_v16  ;;  %v5781_v0 = vpop.permute.xlu0 %5780 }
 0xa15   : > { %6510 = vmatmul.bf16.gmra.mxu3 %v13946_v28  ;;  %6984 = vst [vmem:[%s13930_s19 + $0xf8] sm:$0xff] %v6920_v17  ;;  %v6660_v28 = vpop.f32.mrf.mxu0  ;;  %v6332_v41 = vpop.f32.mrf.mxu2 }
 0xa16   : > { %v6839_v40 = vpop.f32.mrf.mxu1 }
 0xa18   : > { %v6471_v55 = vpop.f32.mrf.mxu3 }
 0xa19   : > { %v6472_v48 = vadd.f32 %v6471_v55, %v6303_v59 }
 0xa1b   : > { %v6921_v8 = vpack.c.bf16 %v13950_v54, %v6472_v48 }
 0xa1d   : > { %6985 = vst [vmem:[%s13930_s19 + $0x100] sm:$0xff] %v6921_v8  ;;  %v6662_v7 = vpop.f32.mrf.mxu0 }
 0xa20   : > { %v6473_v10 = vpop.f32.mrf.mxu3 }
 0xa21   : > { %v6474_v58 = vadd.f32 %v6473_v10, %v6305_v44  ;;  %v6841_v44 = vpop.f32.mrf.mxu1  ;;  %v6663_v10 = vadd.f32 %v6662_v7, %v5781_v0 }
 0xa23   : > { %v6922_v23 = vpack.c.bf16 %v15615_v43, %v6474_v58  ;;  %v6325_v58 = vadd.f32 %v6324_v45, %v5781_v0 }
 0xa25   : > { %6515 = vmatmul.bf16.gmra.mxu3 %v13979_v35  ;;  %6986 = vst [vmem:[%s13930_s19 + $0x108] sm:$0xff] %v6922_v23  ;;  %v6665_v4 = vpop.f32.mrf.mxu0  ;;  %v6832_v23 = vadd.f32 %v6831_v6, %v6663_v10 }
 0xa28   : > { %v6476_v2 = vpop.f32.mrf.mxu3 }
 0xa29   : > { %v6477_v54 = vadd.f32 %v6476_v2, %v6308_v53  ;;  %v6844_v2 = vpop.f32.mrf.mxu1 }
 0xa2b   : > { %v6923_v50 = vpack.c.bf16 %v15616_v26, %v6477_v54 }
 0xa2d   : > { %6987 = vst [vmem:[%s13930_s19 + $0x110] sm:$0xff] %v6923_v50 }
 0xa30   : > { %v6478_v35 = vpop.f32.mrf.mxu3 }
 0xa31   : > { %v6479_v56 = vadd.f32 %v6478_v35, %v6310_v1 }
 0xa33   : > { %v6924_v18 = vpack.c.bf16 %v15618_v12, %v6479_v56  ;;  %v6846_v56 = vpop.f32.mrf.mxu1 }
 0xa35   : > { %6520 = vmatmul.bf16.gmra.mxu3 %v14014_v30  ;;  %6988 = vst [vmem:[%s13930_s19 + $0x118] sm:$0xff] %v6924_v18  ;;  %v6667_v30 = vpop.f32.mrf.mxu0 }
 0xa38   : > { %v6481_v32 = vpop.f32.mrf.mxu3 }
 0xa39   : > { %v6482_v33 = vadd.f32 %v6481_v32, %v6313_v13 }
 0xa3b   : > { %v6925_v9 = vpack.c.bf16 %v14018_v27, %v6482_v33  ;;  %v6318_v27 = vadd.f32 %v14236_v34, %v14042_v22  ;;  %v5776_v22 = vpop.permute.xlu2 %5775  ;;  %v5796_v33 = vpop.permute.xlu0 %5795 }
 0xa3c   : > { %v6661_v34 = vadd.f32 %v6660_v28, %v5776_v22  ;;  %v6323_v55 = vadd.f32 %v6322_v51, %v5776_v22  ;;  %v5786_v51 = vpop.permute.xlu1 %5785  ;;  %v6849_v3 = vpop.f32.mrf.mxu1 }
 0xa3d   : > { %6989 = vst [vmem:[%s13930_s19 + $0x120] sm:$0xff] %v6925_v9  ;;  %v6670_v15 = vpop.f32.mrf.mxu0  ;;  %v6328_v54 = vadd.f32 %v6327_v39, %v5786_v51 }
 0xa3e   : > { %v6830_v8 = vadd.f32 %v6829_v47, %v6661_v34  ;;  %v6666_v47 = vadd.f32 %v6665_v4, %v5786_v51  ;;  %v6671_v9 = vadd.f32 %v6670_v15, %v5796_v33 }
 0xa40   : > { %v6483_v21 = vpop.f32.mrf.mxu3  ;;  %v6835_v50 = vadd.f32 %v6834_v5, %v6666_v47  ;;  %v6333_v5 = vadd.f32 %v6332_v41, %v5796_v33 }
 0xa41   : > { %v6484_v31 = vadd.f32 %v6483_v21, %v6315_v14  ;;  %v6840_v21 = vadd.f32 %v6839_v40, %v6671_v9 }
 0xa43   : > { %v6926_v20 = vpack.c.bf16 %v15620_v38, %v6484_v31  ;;  %v5791_v35 = vpop.permute.xlu2 %5790 }
 0xa44   : > { %v6668_v6 = vadd.f32 %v6667_v30, %v5791_v35  ;;  %v6330_v12 = vadd.f32 %v6329_v25, %v5791_v35  ;;  %v5801_v38 = vpop.permute.xlu1 %5800 }
 0xa45   : > { %6525 = vmatmul.bf16.gmra.mxu3 %v14047_v46  ;;  %6990 = vst [vmem:[%s13930_s19 + $0x128] sm:$0xff] %v6926_v20  ;;  %v6672_v59 = vpop.f32.mrf.mxu0 }
 0xa46   : > { %v6837_v13 = vadd.f32 %v6836_v52, %v6668_v6  ;;  %v6673_v20 = vadd.f32 %v6672_v59, %v5801_v38 }
 0xa48   : > { %v6486_v24 = vpop.f32.mrf.mxu3 }
 0xa49   : > { %v6487_v37 = vadd.f32 %v6486_v24, %v6318_v27 }
 0xa4b   : > { %v6927_v36 = vpack.c.bf16 %v14053_v42, %v6487_v37  ;;  %v6334_v42 = vpop.f32.mrf.mxu2  ;;  %v5806_v15 = vpop.permute.xlu2 %5805 }
 0xa4c   : > { %v6335_v52 = vadd.f32 %v6334_v42, %v5801_v38  ;;  %v5811_v42 = vpop.permute.xlu0 %5810 }
 0xa4d   : > { %6991 = vst [vmem:[%s13930_s19 + $0x130] sm:$0xff] %v6927_v36  ;;  %v6851_v36 = vpop.f32.mrf.mxu1 }
 0xa50   : > { %v6488_v17 = vpop.f32.mrf.mxu3 }
 0xa51   : > { %v6489_v46 = vadd.f32 %v6488_v17, %v6320_v19 }
 0xa53   : > { %v6928_v63 = vpack.c.bf16 %v14066_v57, %v6489_v46  ;;  %v6675_v57 = vpop.f32.mrf.mxu0  ;;  %v6337_v53 = vpop.f32.mrf.mxu2 }
 0xa54   : > { %v6676_v41 = vadd.f32 %v6675_v57, %v5806_v15  ;;  %v6338_v40 = vadd.f32 %v6337_v53, %v5806_v15  ;;  %v5821_v47 = vpop.permute.xlu2 %5820 }
 0xa55   : > { %6530 = vmatmul.bf16.gmra.mxu3 %v14078_v49  ;;  %6992 = vst [vmem:[%s13930_s19 + $0x138] sm:$0xff] %v6928_v63 }
 0xa56   : > { %v6845_v63 = vadd.f32 %v6844_v2, %v6676_v41 }
 0xa58   : > { %v6491_v48 = vpop.f32.mrf.mxu3 }
 0xa59   : > { %v6492_v60 = vadd.f32 %v6491_v48, %v6323_v55  ;;  %v6854_v55 = vpop.f32.mrf.mxu1 }
 0xa5b   : > { %v6929_v16 = vpack.c.bf16 %v6830_v8, %v6492_v60  ;;  %v6677_v7 = vpop.f32.mrf.mxu0  ;;  %v6339_v45 = vpop.f32.mrf.mxu2 }
 0xa5c   : > { %v6678_v48 = vadd.f32 %v6677_v7, %v5811_v42  ;;  %v6340_v8 = vadd.f32 %v6339_v45, %v5811_v42 }
 0xa5d   : > { %6993 = vst [vmem:[%s13930_s19 + $0x140] sm:$0xff] %v6929_v16 }
 0xa60   : > { %v6493_v43 = vpop.f32.mrf.mxu3 }
 0xa61   : > { %v6494_v49 = vadd.f32 %v6493_v43, %v6325_v58  ;;  %v5816_v58 = vpop.permute.xlu1 %5815  ;;  %v6856_v43 = vpop.f32.mrf.mxu1 }
 0xa63   : > { %v6930_v28 = vpack.c.bf16 %v6832_v23, %v6494_v49  ;;  %v6680_v4 = vpop.f32.mrf.mxu0  ;;  %v6342_v39 = vpop.f32.mrf.mxu2 }
 0xa64   : > { %v6681_v57 = vadd.f32 %v6680_v4, %v5816_v58  ;;  %v6343_v23 = vadd.f32 %v6342_v39, %v5816_v58 }
 0xa65   : > { %6535 = vmatmul.bf16.gmra.mxu3 %v14101_v62  ;;  %6994 = vst [vmem:[%s13930_s19 + $0x148] sm:$0xff] %v6930_v28 }
 0xa66   : > { %v6850_v53 = vadd.f32 %v6849_v3, %v6681_v57 }
 0xa68   : > { %v6496_v26 = vpop.f32.mrf.mxu3 }
 0xa69   : > { %v6497_v29 = vadd.f32 %v6496_v26, %v6328_v54  ;;  %v5831_v9 = vpop.permute.xlu1 %5830 }
 0xa6b   : > { %v6931_v1 = vpack.c.bf16 %v6835_v50, %v6497_v29  ;;  %v6682_v25 = vpop.f32.mrf.mxu0  ;;  %v6344_v27 = vpop.f32.mrf.mxu2 }
 0xa6c   : > { %v6683_v26 = vadd.f32 %v6682_v25, %v5821_v47  ;;  %v6345_v50 = vadd.f32 %v6344_v27, %v5821_v47  ;;  %v6859_v29 = vpop.f32.mrf.mxu1 }
 0xa6d   : > { %6995 = vst [vmem:[%s13930_s19 + $0x150] sm:$0xff] %v6931_v1 }
 0xa6e   : > { %v6852_v1 = vadd.f32 %v6851_v36, %v6683_v26 }
 0xa70   : > { %v6498_v18 = vpop.f32.mrf.mxu3 }
 0xa71   : > { %v6499_v62 = vadd.f32 %v6498_v18, %v6330_v12 }
 0xa73   : > { %v6932_v32 = vpack.c.bf16 %v6837_v13, %v6499_v62  ;;  %v6685_v46 = vpop.f32.mrf.mxu0  ;;  %v6347_v34 = vpop.f32.mrf.mxu2 }
 0xa74   : > { %v6861_v33 = vpop.f32.mrf.mxu1 }
 0xa75   : > { %6540 = vmatmul.bf16.gmra.mxu3 %v14122_v61  ;;  %6996 = vst [vmem:[%s13930_s19 + $0x158] sm:$0xff] %v6932_v32  ;;  %v6842_v61 = vadd.f32 %v6841_v44, %v6673_v20  ;;  %v6847_v44 = vadd.f32 %v6846_v56, %v6678_v48  ;;  %v5826_v56 = vpop.permute.xlu0 %5825  ;;  %v5846_v48 = vpop.permute.xlu1 %5845 }
 0xa76   : > { %v6686_v6 = vadd.f32 %v6685_v46, %v5826_v56  ;;  %v6348_v18 = vadd.f32 %v6347_v34, %v5826_v56 }
 0xa78   : > { %v6501_v14 = vpop.f32.mrf.mxu3  ;;  %v6855_v32 = vadd.f32 %v6854_v55, %v6686_v6 }
 0xa79   : > { %v6502_v31 = vadd.f32 %v6501_v14, %v6333_v5 }
 0xa7b   : > { %v6933_v30 = vpack.c.bf16 %v6840_v21, %v6502_v31  ;;  %v6687_v16 = vpop.f32.mrf.mxu0  ;;  %v6349_v10 = vpop.f32.mrf.mxu2 }
 0xa7c   : > { %v6688_v5 = vadd.f32 %v6687_v16, %v5831_v9  ;;  %v6350_v3 = vadd.f32 %v6349_v10, %v5831_v9  ;;  %v6864_v25 = vpop.f32.mrf.mxu1 }
 0xa7d   : > { %6997 = vst [vmem:[%s13930_s19 + $0x160] sm:$0xff] %v6933_v30 }
 0xa7e   : > { %v6857_v31 = vadd.f32 %v6856_v43, %v6688_v5 }
 0xa80   : > { %v6503_v24 = vpop.f32.mrf.mxu3 }
 0xa81   : > { %v6504_v37 = vadd.f32 %v6503_v24, %v6335_v52  ;;  %v5836_v52 = vpop.permute.xlu2 %5835 }
 0xa83   : > { %v6934_v19 = vpack.c.bf16 %v6842_v61, %v6504_v37  ;;  %v6690_v51 = vpop.f32.mrf.mxu0  ;;  %v6352_v54 = vpop.f32.mrf.mxu2 }
 0xa84   : > { %v6691_v27 = vadd.f32 %v6690_v51, %v5836_v52  ;;  %v6353_v24 = vadd.f32 %v6352_v54, %v5836_v52 }
 0xa85   : > { %6545 = vmatmul.bf16.gmra.mxu3 %v14145_v11  ;;  %6998 = vst [vmem:[%s13930_s19 + $0x168] sm:$0xff] %v6934_v19 }
 0xa86   : > { %v6860_v37 = vadd.f32 %v6859_v29, %v6691_v27 }
 0xa88   : > { %v6506_v17 = vpop.f32.mrf.mxu3 }
 0xa89   : > { %v6507_v22 = vadd.f32 %v6506_v17, %v6338_v40  ;;  %v5841_v40 = vpop.permute.xlu0 %5840  ;;  %v6866_v17 = vpop.f32.mrf.mxu1 }
 0xa8a   : > { %v5851_v43 = vpop.permute.xlu2 %5850 }
 0xa8b   : > { %v6935_v59 = vpack.c.bf16 %v6845_v63, %v6507_v22  ;;  %v6692_v12 = vpop.f32.mrf.mxu0  ;;  %v6354_v13 = vpop.f32.mrf.mxu2 }
 0xa8c   : > { %v6693_v46 = vadd.f32 %v6692_v12, %v5841_v40  ;;  %v6355_v63 = vadd.f32 %v6354_v13, %v5841_v40 }
 0xa8d   : > { %6999 = vst [vmem:[%s13930_s19 + $0x170] sm:$0xff] %v6935_v59 }
 0xa8e   : > { %v6862_v34 = vadd.f32 %v6861_v33, %v6693_v46 }
 0xa90   : > { %v6508_v60 = vpop.f32.mrf.mxu3 }
 0xa91   : > { %v6509_v11 = vadd.f32 %v6508_v60, %v6340_v8  ;;  %v5856_v26 = vpop.permute.xlu0 %5855 }
 0xa93   : > { %v6936_v0 = vpack.c.bf16 %v6847_v44, %v6509_v11  ;;  %v6695_v21 = vpop.f32.mrf.mxu0  ;;  %v6357_v38 = vpop.f32.mrf.mxu2 }
 0xa94   : > { %v6696_v60 = vadd.f32 %v6695_v21, %v5846_v48  ;;  %v6358_v44 = vadd.f32 %v6357_v38, %v5846_v48  ;;  %v6869_v11 = vpop.f32.mrf.mxu1 }
 0xa95   : > { %7000 = vst [vmem:[%s13930_s19 + $0x178] sm:$0xff] %v6936_v0 }
 0xa96   : > { %v6865_v0 = vadd.f32 %v6864_v25, %v6696_v60 }
 0xa98   : > { %v6511_v49 = vpop.f32.mrf.mxu3 }
 0xa99   : > { %v6512_v28 = vadd.f32 %v6511_v49, %v6343_v23  ;;  %v5871_v27 = vpop.permute.xlu0 %5870 }
 0xa9b   : > { %v6937_v2 = vpack.c.bf16 %v6850_v53, %v6512_v28  ;;  %v6697_v19 = vpop.f32.mrf.mxu0  ;;  %v6359_v41 = vpop.f32.mrf.mxu2 }
 0xa9c   : > { %v6698_v57 = vadd.f32 %v6697_v19, %v5851_v43  ;;  %v6360_v49 = vadd.f32 %v6359_v41, %v5851_v43  ;;  %v6871_v47 = vpop.f32.mrf.mxu1 }
 0xa9d   : > { %7001 = vst [vmem:[%s13930_s19 + $0x180] sm:$0xff] %v6937_v2 }
 0xa9e   : > { %v6867_v2 = vadd.f32 %v6866_v17, %v6698_v57 }
 0xaa0   : > { %v6513_v7 = vpop.f32.mrf.mxu3 }
 0xaa1   : > { %v6514_v45 = vadd.f32 %v6513_v7, %v6345_v50 }
 0xaa3   : > { %v6938_v35 = vpack.c.bf16 %v6852_v1, %v6514_v45  ;;  %v6700_v42 = vpop.f32.mrf.mxu0  ;;  %v6362_v8 = vpop.f32.mrf.mxu2 }
 0xaa4   : > { %v6701_v50 = vadd.f32 %v6700_v42, %v5856_v26  ;;  %v6363_v29 = vadd.f32 %v6362_v8, %v5856_v26  ;;  %v6874_v12 = vpop.f32.mrf.mxu1 }
 0xaa5   : > { %7002 = vst [vmem:[%s13930_s19 + $0x188] sm:$0xff] %v6938_v35 }
 0xaa6   : > { %v6870_v45 = vadd.f32 %v6869_v11, %v6701_v50 }
 0xaa8   : > { %v6516_v62 = vpop.f32.mrf.mxu3 }
 0xaa9   : > { %v6517_v4 = vadd.f32 %v6516_v62, %v6348_v18  ;;  %v5861_v18 = vpop.permute.xlu1 %5860 }
 0xaab   : > { %v6939_v39 = vpack.c.bf16 %v6855_v32, %v6517_v4  ;;  %v6702_v23 = vpop.f32.mrf.mxu0  ;;  %v6364_v53 = vpop.f32.mrf.mxu2 }
 0xaac   : > { %v6703_v13 = vadd.f32 %v6702_v23, %v5861_v18  ;;  %v6365_v62 = vadd.f32 %v6364_v53, %v5861_v18 }
 0xaad   : > { %7003 = vst [vmem:[%s13930_s19 + $0x190] sm:$0xff] %v6939_v39 }
 0xaae   : > { %v6872_v4 = vadd.f32 %v6871_v47, %v6703_v13 }
 0xab0   : > { %v6518_v14 = vpop.f32.mrf.mxu3 }
 0xab1   : > { %v6519_v30 = vadd.f32 %v6518_v14, %v6350_v3  ;;  %v5866_v3 = vpop.permute.xlu2 %5865  ;;  %v6876_v14 = vpop.f32.mrf.mxu1 }
 0xab2   : > { %v5876_v17 = vpop.permute.xlu1 %5875 }
 0xab3   : > { %v6940_v20 = vpack.c.bf16 %v6857_v31, %v6519_v30  ;;  %v6705_v1 = vpop.f32.mrf.mxu0  ;;  %v6367_v56 = vpop.f32.mrf.mxu2 }
 0xab4   : > { %v6706_v21 = vadd.f32 %v6705_v1, %v5866_v3  ;;  %v6368_v31 = vadd.f32 %v6367_v56, %v5866_v3 }
 0xab5   : > { %7004 = vst [vmem:[%s13930_s19 + $0x198] sm:$0xff] %v6940_v20 }
 0xab6   : > { %v6875_v38 = vadd.f32 %v6874_v12, %v6706_v21 }
 0xab8   : > { %v6521_v61 = vpop.f32.mrf.mxu3 }
 0xab9   : > { %v6522_v36 = vadd.f32 %v6521_v61, %v6353_v24  ;;  %v5881_v60 = vpop.permute.xlu2 %5880 }
 0xabb   : > { %v6941_v15 = vpack.c.bf16 %v6860_v37, %v6522_v36  ;;  %v6707_v39 = vpop.f32.mrf.mxu0  ;;  %v6369_v5 = vpop.f32.mrf.mxu2 }
 0xabc   : > { %v6708_v61 = vadd.f32 %v6707_v39, %v5871_v27  ;;  %v6370_v37 = vadd.f32 %v6369_v5, %v5871_v27  ;;  %v6879_v36 = vpop.f32.mrf.mxu1 }
 0xabd   : > { %7005 = vst [vmem:[%s13930_s19 + $0x1a0] sm:$0xff] %v6941_v15 }
 0xabe   : > { %v6877_v15 = vadd.f32 %v6876_v14, %v6708_v61 }
 0xac0   : > { %v6523_v22 = vpop.f32.mrf.mxu3 }
 0xac1   : > { %v6524_v59 = vadd.f32 %v6523_v22, %v6355_v63 }
 0xac3   : > { %v6942_v55 = vpack.c.bf16 %v6862_v34, %v6524_v59  ;;  %v6710_v52 = vpop.f32.mrf.mxu0  ;;  %v6372_v24 = vpop.f32.mrf.mxu2 }
 0xac4   : > { %v6711_v46 = vadd.f32 %v6710_v52, %v5876_v17  ;;  %v6373_v22 = vadd.f32 %v6372_v24, %v5876_v17  ;;  %v6881_v48 = vpop.f32.mrf.mxu1 }
 0xac5   : > { %7006 = vst [vmem:[%s13930_s19 + $0x1a8] sm:$0xff] %v6942_v55 }
 0xac6   : > { %v6880_v55 = vadd.f32 %v6879_v36, %v6711_v46 }
 0xac8   : > { %v6526_v16 = vpop.f32.mrf.mxu3 }
 0xac9   : > { %v6527_v10 = vadd.f32 %v6526_v16, %v6358_v44 }
 0xacb   : > { %v6943_v58 = vpack.c.bf16 %v6865_v0, %v6527_v10  ;;  %v6712_v63 = vpop.f32.mrf.mxu0  ;;  %v6374_v34 = vpop.f32.mrf.mxu2 }
 0xacc   : > { %v6713_v44 = vadd.f32 %v6712_v63, %v5881_v60  ;;  %v6375_v11 = vadd.f32 %v6374_v34, %v5881_v60  ;;  %v6884_v23 = vpop.f32.mrf.mxu1 }
 0xacd   : > { %7007 = vst [vmem:[%s13930_s19 + $0x1b0] sm:$0xff] %v6943_v58 }
 0xace   : > { %v6882_v0 = vadd.f32 %v6881_v48, %v6713_v44 }
 0xad0   : > { %v6528_v28 = vpop.f32.mrf.mxu3 }
 0xad1   : > { %v6529_v51 = vadd.f32 %v6528_v28, %v6360_v49  ;;  %v5886_v49 = vpop.permute.xlu0 %5885 }
 0xad3   : > { %v6944_v54 = vpack.c.bf16 %v6867_v2, %v6529_v51  ;;  %v6715_v58 = vpop.f32.mrf.mxu0  ;;  %v6377_v43 = vpop.f32.mrf.mxu2 }
 0xad4   : > { %v6716_v53 = vadd.f32 %v6715_v58, %v5886_v49  ;;  %v6378_v28 = vadd.f32 %v6377_v43, %v5886_v49 }
 0xad5   : > { %7008 = vst [vmem:[%s13930_s19 + $0x1b8] sm:$0xff] %v6944_v54 }
 0xad6   : > { %v6885_v51 = vadd.f32 %v6884_v23, %v6716_v53 }
 0xad8   : > { %v6531_v7 = vpop.f32.mrf.mxu3 }
 0xad9   : > { %v6532_v35 = vadd.f32 %v6531_v7, %v6363_v29  ;;  %v5891_v29 = vpop.permute.xlu1 %5890  ;;  %v6886_v7 = vpop.f32.mrf.mxu1 }
 0xadb   : > { %v6945_v6 = vpack.c.bf16 %v6870_v45, %v6532_v35  ;;  %v6717_v26 = vpop.f32.mrf.mxu0  ;;  %v6379_v50 = vpop.f32.mrf.mxu2 }
 0xadc   : > { %v6718_v1 = vadd.f32 %v6717_v26, %v5891_v29  ;;  %v6380_v45 = vadd.f32 %v6379_v50, %v5891_v29 }
 0xadd   : > { %7009 = vst [vmem:[%s13930_s19 + $0x1c0] sm:$0xff] %v6945_v6 }
 0xade   : > { %v6887_v56 = vadd.f32 %v6886_v7, %v6718_v1 }
 0xae0   : > { %v6533_v32 = vpop.f32.mrf.mxu3 }
 0xae1   : > { %v6534_v33 = vadd.f32 %v6533_v32, %v6365_v62 }
 0xae3   : > { %v6946_v9 = vpack.c.bf16 %v6872_v4, %v6534_v33 }
 0xae5   : > { %7010 = vst [vmem:[%s13930_s19 + $0x1c8] sm:$0xff] %v6946_v9 }
 0xae8   : > { %v6536_v30 = vpop.f32.mrf.mxu3 }
 0xae9   : > { %v6537_v20 = vadd.f32 %v6536_v30, %v6368_v31 }
 0xaeb   : > { %v6947_v25 = vpack.c.bf16 %v6875_v38, %v6537_v20 }
 0xaed   : > { %7011 = vst [vmem:[%s13930_s19 + $0x1d0] sm:$0xff] %v6947_v25 }
 0xaf0   : > { %v6538_v19 = vpop.f32.mrf.mxu3 }
 0xaf1   : > { %v6539_v41 = vadd.f32 %v6538_v19, %v6370_v37 }
 0xaf3   : > { %v6948_v40 = vpack.c.bf16 %v6877_v15, %v6539_v41 }
 0xaf5   : > { %7012 = vst [vmem:[%s13930_s19 + $0x1d8] sm:$0xff] %v6948_v40 }
 0xaf8   : > { %v6541_v59 = vpop.f32.mrf.mxu3 }
 0xaf9   : > { %v6542_v42 = vadd.f32 %v6541_v59, %v6373_v22 }
 0xafb   : > { %v6949_v8 = vpack.c.bf16 %v6880_v55, %v6542_v42 }
 0xafd   : > { %7013 = vst [vmem:[%s13930_s19 + $0x1e0] sm:$0xff] %v6949_v8 }
 0xb00   : > { %v6543_v16 = vpop.f32.mrf.mxu3 }
 0xb01   : > { %v6544_v10 = vadd.f32 %v6543_v16, %v6375_v11 }
 0xb03   : > { %v6950_v57 = vpack.c.bf16 %v6882_v0, %v6544_v10 }
 0xb05   : > { %7014 = vst [vmem:[%s13930_s19 + $0x1e8] sm:$0xff] %v6950_v57 }
 0xb08   : > { %v6546_v2 = vpop.f32.mrf.mxu3 }
 0xb09   : > { %v6547_v47 = vadd.f32 %v6546_v2, %v6378_v28 }
 0xb0b   : > { %v6951_v54 = vpack.c.bf16 %v6885_v51, %v6547_v47 }
 0xb0d   : > { %7015 = vst [vmem:[%s13930_s19 + $0x1f0] sm:$0xff] %v6951_v54 }
 0xb10   : > { %v6548_v35 = vpop.f32.mrf.mxu3 }
 0xb11   : > { %v6549_v6 = vadd.f32 %v6548_v35, %v6380_v45 }
 0xb13   : > { %v6952_v12 = vpack.c.bf16 %v6887_v56, %v6549_v6 }
 0xb15   : > { %7016 = vst [vmem:[%s13930_s19 + $0x1f8] sm:$0xff] %v6952_v12 }
 0xb16 PF: > { %s25_s15 = sadd.s32 1, %s8435_s15   ;;  %s15621_s29 = smov %s8431_s30 }
 0xb17   : > { %p22_p5 = scmp.ge.s32.totalorder %s25_s15, 4   ;;  %s15622_s30 = smov %s15624_s16 }
 0xb19   :  { %24 = sbr.rel (!%p22_p5) target bundleno = 2 (0x2), region = 114 }

</bundles_post_ra>
